<compile_context>
chip_gen: v7x
topology: tpu7x:2x2x1
jax: 0.10.0
libtpu: 0.0.40
codegen_flags: <defaults>
</compile_context>

<pallas_src>
import functools

import numpy as np
import jax
import jax.numpy as jnp
from jax.experimental import pallas as pl
from jax.experimental.pallas import tpu as pltpu


PAD = 128  # lane width: every channel segment is zero-padded to this many lanes


# ----------------------------------------------------------------------------
# Darknet cfg (embedded, replaces parse_cfg(cfgfile))
# ----------------------------------------------------------------------------
CFG = """
[net]
height=32
width=32
channels=4

[convolutional]
batch_normalize=1
filters=8
size=3
stride=1
pad=1
activation=leaky

[maxpool]
size=2
stride=2

[convolutional]
batch_normalize=1
filters=16
size=3
stride=2
pad=1
activation=leaky

[convolutional]
batch_normalize=1
filters=16
size=1
stride=1
pad=1
activation=leaky

[shortcut]
from=-2
activation=linear

[maxpool]
size=3
stride=1

[convolutional]
filters=21
size=1
stride=1
pad=1
activation=linear

[yolo]
mask = 3,4,5
anchors = 10,14, 23,27, 37,58, 81,82, 135,169, 344,319
classes=2
num=6

[route]
layers = -4

[convolutional]
batch_normalize=1
filters=8
size=1
stride=1
pad=1
activation=leaky

[upsample]
stride=2

[route]
layers = -1, -10

[convolutional]
batch_normalize=1
filters=21
size=3
stride=1
pad=1
activation=leaky

[yolo]
mask = 0,1,2
anchors = 10,14, 23,27, 37,58, 81,82, 135,169, 344,319
classes=2
num=6
"""


def parse_cfg_str(cfg_text):
    lines = [x.strip() for x in cfg_text.split("\n")]
    lines = [x for x in lines if len(x) > 0 and x[0] != "#"]
    block, blocks = {}, []
    for line in lines:
        if line[0] == "[":
            if block:
                blocks.append(block)
                block = {}
            block["type"] = line[1:-1].strip()
        else:
            k, v = line.split("=")
            block[k.strip()] = v.strip()
    blocks.append(block)
    return blocks


# ----------------------------------------------------------------------------
# Pallas kernels
# ----------------------------------------------------------------------------
def _conv_direct_kernel(*refs, k, leaky, fuse_add):
    # refs: k W-shifted input views (1,Hp,Wo,CPin), w (k*k,CPin,NP), bias (1,NP),
    #       [residual (1,Ho,Wo,NP)], out (1,Ho,Wo,NP)
    xw = refs[:k]
    w_ref = refs[k]
    b_ref = refs[k + 1]
    if fuse_add:
        res_ref = refs[k + 2]
        o_ref = refs[k + 3]
    else:
        o_ref = refs[k + 2]
    Ho, Wo, NP = o_ref.shape[1], o_ref.shape[2], o_ref.shape[3]
    cpin = w_ref.shape[1]

    acc = jnp.zeros((Ho * Wo, NP), jnp.float32)
    for kh in range(k):
        for kw in range(k):
            # Only a leading-dim (H) slice happens in-kernel; the W shift was
            # pre-applied in the wrapper -> every VMEM access stays tile aligned.
            win = xw[kw][:, kh:kh + Ho, :, :].reshape(Ho * Wo, cpin)
            acc = acc + jnp.dot(win, w_ref[kh * k + kw],
                                preferred_element_type=jnp.float32)
    y = acc + b_ref[...]                       # bias (BN scale already folded)
    if leaky:
        y = jnp.where(y > 0.0, y, 0.1 * y)
    if fuse_add:
        y = y + res_ref[...].reshape(Ho * Wo, NP)   # fused shortcut add
    o_ref[...] = y.reshape(1, Ho, Wo, NP)


def _conv_mm_kernel(x_ref, w_ref, b_ref, o_ref, *, leaky):
    # im2col fallback: (tm, K) @ (K, NP) on the MXU, fused bias (+ LeakyReLU).
    y = jnp.dot(x_ref[...], w_ref[...], preferred_element_type=jnp.float32)
    y = y + b_ref[...]
    if leaky:
        y = jnp.where(y > 0.0, y, 0.1 * y)
    o_ref[...] = y


def _pool_shift_kernel(*refs, k):
    # stride-1 pooling: k W-shifted views, in-kernel H shifts + max reduce.
    xw, o_ref = refs[:k], refs[k]
    Ho = o_ref.shape[1]
    acc = None
    for kh in range(k):
        for kw in range(k):
            win = xw[kw][:, kh:kh + Ho, :, :]
            acc = win if acc is None else jnp.maximum(acc, win)
    o_ref[...] = acc


def _window_max_kernel(*refs):
    # strided pooling: max over wrapper-extracted windows (all lane-dense).
    o_ref = refs[-1]
    acc = refs[0][...]
    for r in refs[1:-1]:
        acc = jnp.maximum(acc, r[...])
    o_ref[...] = acc


def _add_kernel(a_ref, b_ref, o_ref):
    o_ref[...] = a_ref[...] + b_ref[...]


def _yolo_kernel(p_ref, off_ref, cls_ref, anch_ref, o_ref, *, stride):
    # Channel-wise predict_transform on the padded (1,G,G,128) conv output:
    #   cls==0 lanes: (sigmoid + grid offset) * stride      (x, y)
    #   cls==1 lanes: exp * (anchor/stride) * stride        (w, h)
    #   cls==2 lanes: sigmoid                               (obj / classes / pad)
    p = p_ref[...]
    off = off_ref[...]
    cls = cls_ref[...]
    anch = anch_ref[...]
    sig = 1.0 / (1.0 + jnp.exp(-p))
    xy = (sig + off) * stride
    is_wh = cls == 1.0
    # exp only where needed (avoids inf on large objectness/class logits)
    wh = jnp.exp(jnp.where(is_wh, p, 0.0)) * anch * stride
    o_ref[...] = jnp.where(cls < 0.5, xy, jnp.where(is_wh, wh, sig))


# ----------------------------------------------------------------------------
# Pallas op wrappers
# ----------------------------------------------------------------------------
def _parallel_params():
    return pltpu.CompilerParams(dimension_semantics=("parallel",))


def _pick_tm(M):
    for tm in (1024, 512, 256, 128, 64, 32, 16, 8):
        if M % tm == 0 and M // tm >= 2:
            return tm
    return M


def _extract_patches(xp, k, s):
    """im2col glue for the stride>1 fallback (input already spatially padded)."""
    B, Hp, Wp, C = xp.shape
    Ho = (Hp - k) // s + 1
    Wo = (Wp - k) // s + 1
    wins = []
    for kh in range(k):
        for kw in range(k):
            wins.append(jax.lax.slice(
                xp, (0, kh, kw, 0),
                (B, kh + (Ho - 1) * s + 1, kw + (Wo - 1) * s + 1, C),
                (1, s, s, 1)))
    patches = jnp.stack(wins, axis=3)                # (B,Ho,Wo,k*k,C)
    return patches.reshape(B * Ho * Wo, k * k * C), Ho, Wo


def conv_pallas(x, p, residual=None):
    """x: (B,H,W,CPin) channel-padded NHWC.  Returns (B,Ho,Wo,PAD)."""
    k, s, pad = p["k"], p["stride"], p["pad"]
    NP = p["bias_p"].shape[-1]
    if pad:
        x = jnp.pad(x, ((0, 0), (pad, pad), (pad, pad), (0, 0)))
    B, Hp, Wp, CPin = x.shape
    Ho = (Hp - k) // s + 1
    Wo = (Wp - k) // s + 1

    if s == 1:
        # Direct conv: k W-shifted views (small wrapper slices), H shift + k*k
        # accumulated MXU matmuls in-kernel.  No im2col in HBM.
        if k == 1:
            xs = [x]
        else:
            xs = [jax.lax.slice(x, (0, 0, kw, 0), (B, Hp, kw + Wo, CPin))
                  for kw in range(k)]
        in_specs = [pl.BlockSpec((1, Hp, Wo, CPin), lambda b: (b, 0, 0, 0))
                    for _ in xs]
        in_specs += [pl.BlockSpec((k * k, CPin, NP), lambda b: (0, 0, 0)),
                     pl.BlockSpec((1, NP), lambda b: (0, 0))]
        args = xs + [p["w_kcp"], p["bias_p"]]
        if residual is not None:
            in_specs.append(pl.BlockSpec((1, Ho, Wo, NP), lambda b: (b, 0, 0, 0)))
            args.append(residual)
        return pl.pallas_call(
            functools.partial(_conv_direct_kernel, k=k, leaky=p["leaky"],
                              fuse_add=residual is not None),
            out_shape=jax.ShapeDtypeStruct((B, Ho, Wo, NP), jnp.float32),
            grid=(B,),
            in_specs=in_specs,
            out_specs=pl.BlockSpec((1, Ho, Wo, NP), lambda b: (b, 0, 0, 0)),
            compiler_params=_parallel_params(),
        )(*args)

    # TODO(synk): only the single 3x3/stride-2 conv takes this im2col fallback;
    # the strided gather could also be moved in-kernel to drop the patch copy.
    patches, Ho, Wo = _extract_patches(x, k, s)
    M, K = patches.shape
    tm = _pick_tm(M)
    out = pl.pallas_call(
        functools.partial(_conv_mm_kernel, leaky=p["leaky"]),
        out_shape=jax.ShapeDtypeStruct((M, NP), jnp.float32),
        grid=(M // tm,),
        in_specs=[pl.BlockSpec((tm, K), lambda i: (i, 0)),
                  pl.BlockSpec((K, NP), lambda i: (0, 0)),
                  pl.BlockSpec((1, NP), lambda i: (0, 0))],
        out_specs=pl.BlockSpec((tm, NP), lambda i: (i, 0)),
        compiler_params=_parallel_params(),
    )(patches, p["w_mat"], p["bias_p"])
    out = out.reshape(B, Ho, Wo, NP)
    if residual is not None:
        out = add_pallas(out, residual)
    return out


def maxpool_pallas(x, k, s):
    B, H, W, C = x.shape
    # stride==1 -> MaxPoolStride1: F.pad constant 0 then MaxPool2d (faithful to
    # the torch module).  stride!=1 -> nn.MaxPool2d(size, stride): no padding.
    pad = (k - 1) // 2 if s == 1 else 0
    if pad:
        x = jnp.pad(x, ((0, 0), (pad, pad), (pad, pad), (0, 0)))
    Hp, Wp = x.shape[1], x.shape[2]
    Ho = (Hp - k) // s + 1
    Wo = (Wp - k) // s + 1

    if s == 1:
        xs = [jax.lax.slice(x, (0, 0, kw, 0), (B, Hp, kw + Wo, C))
              for kw in range(k)]
        return pl.pallas_call(
            functools.partial(_pool_shift_kernel, k=k),
            out_shape=jax.ShapeDtypeStruct((B, Ho, Wo, C), jnp.float32),
            grid=(B,),
            in_specs=[pl.BlockSpec((1, Hp, Wo, C), lambda b: (b, 0, 0, 0))
                      for _ in xs],
            out_specs=pl.BlockSpec((1, Ho, Wo, C), lambda b: (b, 0, 0, 0)),
            compiler_params=_parallel_params(),
        )(*xs)

    wins = [jax.lax.slice(x, (0, kh, kw, 0),
                          (B, kh + (Ho - 1) * s + 1, kw + (Wo - 1) * s + 1, C),
                          (1, s, s, 1))
            for kh in range(k) for kw in range(k)]
    return pl.pallas_call(
        _window_max_kernel,
        out_shape=jax.ShapeDtypeStruct((B, Ho, Wo, C), jnp.float32),
        grid=(B,),
        in_specs=[pl.BlockSpec((1, Ho, Wo, C), lambda b: (b, 0, 0, 0))
                  for _ in wins],
        out_specs=pl.BlockSpec((1, Ho, Wo, C), lambda b: (b, 0, 0, 0)),
        compiler_params=_parallel_params(),
    )(*wins)


def add_pallas(a, b):
    # Fallback shortcut add (the usual case is fused into the conv epilogue).
    B, H, W, C = a.shape
    return pl.pallas_call(
        _add_kernel,
        out_shape=jax.ShapeDtypeStruct(a.shape, jnp.float32),
        grid=(B,),
        in_specs=[pl.BlockSpec((1, H, W, C), lambda i: (i, 0, 0, 0)),
                  pl.BlockSpec((1, H, W, C), lambda i: (i, 0, 0, 0))],
        out_specs=pl.BlockSpec((1, H, W, C), lambda i: (i, 0, 0, 0)),
        compiler_params=_parallel_params(),
    )(a, b)


def predict_transform_pallas(x, inp_dim, anchors, num_classes):
    """x: (B,G,G,PAD) padded conv output.  Returns (B, G*G*A, 5+num_classes)."""
    B, G, _, CP = x.shape
    stride = inp_dim // G
    bbox = 5 + num_classes
    A = len(anchors)

    # Per-lane (channel) metadata, built host-side.
    ch = np.arange(CP)
    jmod = ch % bbox
    valid = ch < A * bbox
    cls = np.full((CP,), 2.0, np.float32)          # 2 -> plain sigmoid
    cls[valid & (jmod < 2)] = 0.0                  # 0 -> x,y
    cls[valid & (jmod >= 2) & (jmod < 4)] = 1.0    # 1 -> w,h
    anch_vec = np.ones((CP,), np.float32)
    for a in range(A):
        anch_vec[a * bbox + 2] = anchors[a][0] / float(stride)
        anch_vec[a * bbox + 3] = anchors[a][1] / float(stride)
    hh = np.arange(G, dtype=np.float32).reshape(G, 1, 1)
    ww = np.arange(G, dtype=np.float32).reshape(1, G, 1)
    off = (np.where(valid & (jmod == 0), 1.0, 0.0) * ww
           + np.where(valid & (jmod == 1), 1.0, 0.0) * hh)      # (G,G,CP)
    off = jnp.asarray(off[None].astype(np.float32))             # (1,G,G,CP)
    cls_a = jnp.asarray(cls.reshape(1, 1, 1, CP))
    anch_a = jnp.asarray(anch_vec.reshape(1, 1, 1, CP))

    out = pl.pallas_call(
        functools.partial(_yolo_kernel, stride=float(stride)),
        out_shape=jax.ShapeDtypeStruct((B, G, G, CP), jnp.float32),
        grid=(B,),
        in_specs=[pl.BlockSpec((1, G, G, CP), lambda b: (b, 0, 0, 0)),
                  pl.BlockSpec((1, G, G, CP), lambda b: (0, 0, 0, 0)),
                  pl.BlockSpec((1, 1, 1, CP), lambda b: (0, 0, 0, 0)),
                  pl.BlockSpec((1, 1, 1, CP), lambda b: (0, 0, 0, 0))],
        out_specs=pl.BlockSpec((1, G, G, CP), lambda b: (b, 0, 0, 0)),
        compiler_params=_parallel_params(),
    )(x, off, cls_a, anch_a)
    return out[..., :A * bbox].reshape(B, G * G * A, bbox)


# ----------------------------------------------------------------------------
# Pure-JAX reference (for numerical validation against the Pallas path)
# ----------------------------------------------------------------------------
def conv_ref(x, p):
    y = jax.lax.conv_general_dilated(
        x, p["w_hwio"], (p["stride"], p["stride"]),
        [(p["pad"], p["pad"]), (p["pad"], p["pad"])],
        dimension_numbers=("NHWC", "HWIO", "NHWC"))
    y = y * p["scale"] + p["bias"]
    if p["leaky"]:
        y = jnp.where(y > 0.0, y, 0.1 * y)
    return y


def maxpool_ref(x, k, s, pad):
    if pad:
        x = jnp.pad(x, ((0, 0), (pad, pad), (pad, pad), (0, 0)))
    return jax.lax.reduce_window(x, -jnp.inf, jax.lax.max,
                                 (1, k, k, 1), (1, s, s, 1), "VALID")


def _yolo_offsets(G, A, anchors, stride, bbox):
    gl = jnp.arange(G, dtype=jnp.float32)
    ax, ay = jnp.meshgrid(gl, gl)
    xy = jnp.concatenate([ax.reshape(-1, 1), ay.reshape(-1, 1)], axis=1)
    xy = jnp.tile(xy, (1, A)).reshape(-1, 2)
    anch = jnp.tile(jnp.array(anchors, jnp.float32) / float(stride), (G * G, 1))
    N = G * G * A
    off_full = jnp.zeros((N, bbox), jnp.float32).at[:, 0:2].set(xy)
    anch_full = jnp.ones((N, bbox), jnp.float32).at[:, 2:4].set(anch)
    return off_full, anch_full, N


def predict_transform_ref(x, inp_dim, anchors, num_classes):
    B, G, _, C = x.shape
    stride = inp_dim // G
    bbox = 5 + num_classes
    A = len(anchors)
    pred = x.reshape(B, G * G * A, bbox)
    off_full, anch_full, _ = _yolo_offsets(G, A, anchors, stride, bbox)
    sig = 1.0 / (1.0 + jnp.exp(-pred))
    xy_o = (sig[..., 0:2] + off_full[None, :, 0:2]) * stride
    wh_o = jnp.exp(pred[..., 2:4]) * anch_full[None, :, 2:4] * stride
    return jnp.concatenate([xy_o, wh_o, sig[..., 4:]], axis=-1)


# ----------------------------------------------------------------------------
# Parameter init (deterministic, mirrors create_modules shapes)
# ----------------------------------------------------------------------------
def init_params(blocks):
    base = jax.random.PRNGKey(0)
    params = {}
    modules = blocks[1:]
    prev_layout = [int(blocks[0]["channels"])]   # real-channel segments of the input
    prev_filters = int(blocks[0]["channels"])
    layouts = {}
    out_filters = []
    for idx, b in enumerate(modules):
        t = b["type"]
        filters = prev_filters
        layout = prev_layout
        if t == "convolutional":
            bnorm = int(b["batch_normalize"]) if "batch_normalize" in b else 0
            filters = int(b["filters"])
            ksz = int(b["size"])
            stride = int(b["stride"])
            pad = (ksz - 1) // 2 if int(b["pad"]) else 0
            cin = sum(prev_layout)
            kk = jax.random.fold_in(base, idx)
            # torch Conv2d weight layout (Cout, Cin, kh, kw)
            w = 0.1 * jax.random.normal(jax.random.fold_in(kk, 0),
                                        (filters, cin, ksz, ksz), jnp.float32)
            w_hwio = jnp.transpose(w, (2, 3, 1, 0))            # (kh, kw, Cin, Cout)
            if bnorm:
                gamma = 1.0 + 0.1 * jax.random.normal(jax.random.fold_in(kk, 1), (filters,), jnp.float32)
                beta = 0.1 * jax.random.normal(jax.random.fold_in(kk, 2), (filters,), jnp.float32)
                rmean = 0.1 * jax.random.normal(jax.random.fold_in(kk, 3), (filters,), jnp.float32)
                rvar = 0.5 + jnp.abs(jax.random.normal(jax.random.fold_in(kk, 4), (filters,), jnp.float32))
                scale = gamma / jnp.sqrt(rvar + 1e-5)
                bias = beta - rmean * scale
            else:
                scale = jnp.ones((filters,), jnp.float32)
                bias = 0.1 * jax.random.normal(jax.random.fold_in(kk, 5), (filters,), jnp.float32)

            # Pallas-path padded weights: BN scale folded into the weights, input
            # channels laid out per the padded segment layout, output channels
            # zero-padded to PAD lanes (x @ (w*s) + b == (x @ w) * s + b).
            w_fold = w_hwio * scale[None, None, None, :]
            cpin = PAD * len(prev_layout)
            w_kcp = jnp.zeros((ksz * ksz, cpin, PAD), jnp.float32)
            coff = 0
            for si, r in enumerate(prev_layout):
                seg = w_fold[:, :, coff:coff + r, :].reshape(ksz * ksz, r, filters)
                w_kcp = w_kcp.at[:, si * PAD:si * PAD + r, :filters].set(seg)
                coff += r
            bias_p = jnp.zeros((1, PAD), jnp.float32).at[0, :filters].set(bias)

            params[idx] = dict(w_hwio=w_hwio, scale=scale, bias=bias,
                               w_kcp=w_kcp,
                               w_mat=w_kcp.reshape(ksz * ksz * cpin, PAD),
                               bias_p=bias_p,
                               k=ksz, stride=stride, pad=pad,
                               leaky=(b["activation"] == "leaky"))
            layout = [filters]
        elif t == "route":
            ls = [int(a) for a in b["layers"].split(",")]
            abs_idx = [idx + l if l < 0 else l for l in ls]
            filters = sum(out_filters[a] for a in abs_idx)
            layout = []
            for a in abs_idx:
                layout = layout + layouts[a]
        # shortcut / maxpool / upsample / yolo keep previous filters & layout
        layouts[idx] = layout
        out_filters.append(filters)
        prev_filters = filters
        prev_layout = layout
    return params


# ----------------------------------------------------------------------------
# Darknet.forward equivalent
# ----------------------------------------------------------------------------
def _referenced_after(modules, start):
    """Absolute module indices explicitly referenced by modules[start:]."""
    refs = set()
    for j in range(start, len(modules)):
        m = modules[j]
        t = m["type"]
        if t == "route":
            ls = [int(a) for a in m["layers"].split(",")]
            refs.update(j + l if l < 0 else l for l in ls)
        elif t == "shortcut":
            refs.add(j - 1)
            refs.add(j + int(m["from"]))
        elif t == "yolo":
            refs.add(j - 1)
    return refs


def run_darknet(x_nchw, blocks, params, use_pallas=True):
    x = jnp.transpose(x_nchw, (0, 2, 3, 1)).astype(jnp.float32)   # NCHW -> NHWC
    if use_pallas:
        # pad the channel axis to 128 lanes once; carried through the network
        x = jnp.pad(x, ((0, 0), (0, 0), (0, 0), (0, PAD - x.shape[-1])))
    inp_dim = int(blocks[0]["height"])
    modules = blocks[1:]
    outputs = {}
    detections = None
    fused_shortcut = -1
    for i, m in enumerate(modules):
        t = m["type"]
        if t == "convolutional":
            p = params[i]
            if use_pallas:
                residual = None
                # Fuse an immediately-following shortcut into the conv epilogue
                # when the raw conv output is never referenced afterwards.
                if (p["stride"] == 1 and 2 * p["pad"] - p["k"] + 1 == 0
                        and i + 1 < len(modules)
                        and modules[i + 1]["type"] == "shortcut"
                        and i not in _referenced_after(modules, i + 2)):
                    r = (i + 1) + int(modules[i + 1]["from"])
                    if r in outputs and outputs[r].shape == x.shape:
                        residual = outputs[r]
                        fused_shortcut = i + 1
                x = conv_pallas(x, p, residual=residual)
            else:
                x = conv_ref(x, p)
            outputs[i] = x
        elif t == "upsample":
            # nearest-neighbor x2 (nn.Upsample scale_factor=2, mode='nearest')
            x = jnp.repeat(jnp.repeat(x, 2, axis=1), 2, axis=2)
            outputs[i] = x
        elif t == "maxpool":
            size = int(m["size"])
            stride = int(m["stride"])
            if use_pallas:
                x = maxpool_pallas(x, size, stride)
            else:
                pad = (size - 1) // 2 if stride == 1 else 0
                x = maxpool_ref(x, size, stride, pad)
            outputs[i] = x
        elif t == "route":
            ls = [int(a) for a in m["layers"].split(",")]
            abs_idx = [i + l if l < 0 else l for l in ls]
            maps = [outputs[a] for a in abs_idx]
            x = maps[0] if len(maps) == 1 else jnp.concatenate(maps, axis=-1)
            outputs[i] = x
        elif t == "shortcut":
            if use_pallas and i == fused_shortcut:
                outputs[i] = x          # add already fused into the conv epilogue
            else:
                frm = int(m["from"])
                a, b = outputs[i - 1], outputs[i + frm]
                x = add_pallas(a, b) if use_pallas else a + b
                outputs[i] = x
        elif t == "yolo":
            mask = [int(v) for v in m["mask"].split(",")]
            anch = [int(v) for v in m["anchors"].split(",")]
            anch = [(anch[j], anch[j + 1]) for j in range(0, len(anch), 2)]
            anch = [anch[j] for j in mask]
            num_classes = int(m["classes"])
            if use_pallas:
                det = predict_transform_pallas(x, inp_dim, anch, num_classes)
            else:
                det = predict_transform_ref(x, inp_dim, anch, num_classes)
            detections = det if detections is None else jnp.concatenate(
                [detections, det], axis=1)
            outputs[i] = outputs[i - 1]
    return detections


# ----------------------------------------------------------------------------
# main
# ----------------------------------------------------------------------------
if __name__ == "__main__":
    blocks = parse_cfg_str(CFG)
    params = init_params(blocks)
    inp_dim = int(blocks[0]["height"])
    channels = int(blocks[0]["channels"])
    batch = 2

    x = jax.random.normal(jax.random.PRNGKey(0),
                          (batch, channels, inp_dim, inp_dim), jnp.float32)

    det = run_darknet(x, blocks, params, use_pallas=True)
    det = jax.block_until_ready(det)

    # detections: (B, sum over yolo heads of G*G*num_anchors, 5 + num_classes)
    assert det.shape == (batch, 8 * 8 * 3 + 16 * 16 * 3, 7), det.shape

    ref = jax.block_until_ready(run_darknet(x, blocks, params, use_pallas=False))
    np.testing.assert_allclose(np.asarray(det), np.asarray(ref), rtol=5e-3, atol=5e-3)

    print("KERNEL_OK")
</pallas_src>

<mosaic_0001>
module attributes {stable_mosaic.version = 11 : i64} {
  func.func @_conv_direct_kernel(%arg0: i32, %arg1: memref<1x34x32x128xf32, #tpu.memory_space<vmem>>, %arg2: memref<1x34x32x128xf32, #tpu.memory_space<vmem>>, %arg3: memref<1x34x32x128xf32, #tpu.memory_space<vmem>>, %arg4: memref<9x128x128xf32, #tpu.memory_space<vmem>>, %arg5: memref<1x128xf32, #tpu.memory_space<vmem>>, %arg6: memref<1x32x32x128xf32, #tpu.memory_space<vmem>>) attributes {dimension_semantics = [#tpu.dimension_semantics<parallel>], iteration_bounds = array<i64: 2>, scalar_prefetch = 0 : i64, scratch_operands = 0 : i64, tpu.core_type = #tpu.core_type<tc>, window_params = [{transform_indices = @transform_0, window_bounds = array<i64: 1, 34, 32, 128>}, {transform_indices = @transform_1, window_bounds = array<i64: 1, 34, 32, 128>}, {transform_indices = @transform_2, window_bounds = array<i64: 1, 34, 32, 128>}, {pipeline_mode = #tpu.pipeline_mode<synchronous>, transform_indices = @transform_3, window_bounds = array<i64: 9, 128, 128>}, {pipeline_mode = #tpu.pipeline_mode<synchronous>, transform_indices = @transform_4, window_bounds = array<i64: 1, 128>}, {transform_indices = @transform_5, window_bounds = array<i64: 1, 32, 32, 128>}]} {
    %cst = arith.constant 0.000000e+00 : f32
    %0 = vector.broadcast %cst : f32 to vector<1024x128xf32>
    %c0 = arith.constant 0 : index
    %c0_0 = arith.constant 0 : index
    %c0_1 = arith.constant 0 : index
    %c0_2 = arith.constant 0 : index
    %1 = vector.load %arg1[%c0, %c0_0, %c0_1, %c0_2] : memref<1x34x32x128xf32, #tpu.memory_space<vmem>>, vector<1x32x32x128xf32>
    %2 = vector.shape_cast %1 : vector<1x32x32x128xf32> to vector<1024x128xf32>
    %c0_3 = arith.constant 0 : index
    %c0_4 = arith.constant 0 : index
    %c0_5 = arith.constant 0 : index
    %3 = vector.load %arg4[%c0_3, %c0_4, %c0_5] : memref<9x128x128xf32, #tpu.memory_space<vmem>>, vector<1x128x128xf32>
    %4 = vector.shape_cast %3 : vector<1x128x128xf32> to vector<128x128xf32>
    %cst_6 = arith.constant dense<0.000000e+00> : vector<1024x128xf32>
    %5 = tpu.matmul %2, %4, %cst_6 {dimension_numbers = #tpu.dot_dimension_numbers<[1], [0], [0], [1], [0, 0, 1, 1], [], []>} : vector<1024x128xf32>, vector<128x128xf32>, vector<1024x128xf32> -> vector<1024x128xf32>
    %6 = arith.addf %0, %5 : vector<1024x128xf32>
    %c0_7 = arith.constant 0 : index
    %c0_8 = arith.constant 0 : index
    %c0_9 = arith.constant 0 : index
    %c0_10 = arith.constant 0 : index
    %7 = vector.load %arg2[%c0_7, %c0_8, %c0_9, %c0_10] : memref<1x34x32x128xf32, #tpu.memory_space<vmem>>, vector<1x32x32x128xf32>
    %8 = vector.shape_cast %7 : vector<1x32x32x128xf32> to vector<1024x128xf32>
    %c1 = arith.constant 1 : index
    %c0_11 = arith.constant 0 : index
    %c0_12 = arith.constant 0 : index
    %9 = vector.load %arg4[%c1, %c0_11, %c0_12] : memref<9x128x128xf32, #tpu.memory_space<vmem>>, vector<1x128x128xf32>
    %10 = vector.shape_cast %9 : vector<1x128x128xf32> to vector<128x128xf32>
    %cst_13 = arith.constant dense<0.000000e+00> : vector<1024x128xf32>
    %11 = tpu.matmul %8, %10, %cst_13 {dimension_numbers = #tpu.dot_dimension_numbers<[1], [0], [0], [1], [0, 0, 1, 1], [], []>} : vector<1024x128xf32>, vector<128x128xf32>, vector<1024x128xf32> -> vector<1024x128xf32>
    %12 = arith.addf %6, %11 : vector<1024x128xf32>
    %c0_14 = arith.constant 0 : index
    %c0_15 = arith.constant 0 : index
    %c0_16 = arith.constant 0 : index
    %c0_17 = arith.constant 0 : index
    %13 = vector.load %arg3[%c0_14, %c0_15, %c0_16, %c0_17] : memref<1x34x32x128xf32, #tpu.memory_space<vmem>>, vector<1x32x32x128xf32>
    %14 = vector.shape_cast %13 : vector<1x32x32x128xf32> to vector<1024x128xf32>
    %c2 = arith.constant 2 : index
    %c0_18 = arith.constant 0 : index
    %c0_19 = arith.constant 0 : index
    %15 = vector.load %arg4[%c2, %c0_18, %c0_19] : memref<9x128x128xf32, #tpu.memory_space<vmem>>, vector<1x128x128xf32>
    %16 = vector.shape_cast %15 : vector<1x128x128xf32> to vector<128x128xf32>
    %cst_20 = arith.constant dense<0.000000e+00> : vector<1024x128xf32>
    %17 = tpu.matmul %14, %16, %cst_20 {dimension_numbers = #tpu.dot_dimension_numbers<[1], [0], [0], [1], [0, 0, 1, 1], [], []>} : vector<1024x128xf32>, vector<128x128xf32>, vector<1024x128xf32> -> vector<1024x128xf32>
    %18 = arith.addf %12, %17 : vector<1024x128xf32>
    %c0_21 = arith.constant 0 : index
    %c1_22 = arith.constant 1 : index
    %c0_23 = arith.constant 0 : index
    %c0_24 = arith.constant 0 : index
    %19 = vector.load %arg1[%c0_21, %c1_22, %c0_23, %c0_24] : memref<1x34x32x128xf32, #tpu.memory_space<vmem>>, vector<1x32x32x128xf32>
    %20 = vector.shape_cast %19 : vector<1x32x32x128xf32> to vector<1024x128xf32>
    %c3 = arith.constant 3 : index
    %c0_25 = arith.constant 0 : index
    %c0_26 = arith.constant 0 : index
    %21 = vector.load %arg4[%c3, %c0_25, %c0_26] : memref<9x128x128xf32, #tpu.memory_space<vmem>>, vector<1x128x128xf32>
    %22 = vector.shape_cast %21 : vector<1x128x128xf32> to vector<128x128xf32>
    %cst_27 = arith.constant dense<0.000000e+00> : vector<1024x128xf32>
    %23 = tpu.matmul %20, %22, %cst_27 {dimension_numbers = #tpu.dot_dimension_numbers<[1], [0], [0], [1], [0, 0, 1, 1], [], []>} : vector<1024x128xf32>, vector<128x128xf32>, vector<1024x128xf32> -> vector<1024x128xf32>
    %24 = arith.addf %18, %23 : vector<1024x128xf32>
    %c0_28 = arith.constant 0 : index
    %c1_29 = arith.constant 1 : index
    %c0_30 = arith.constant 0 : index
    %c0_31 = arith.constant 0 : index
    %25 = vector.load %arg2[%c0_28, %c1_29, %c0_30, %c0_31] : memref<1x34x32x128xf32, #tpu.memory_space<vmem>>, vector<1x32x32x128xf32>
    %26 = vector.shape_cast %25 : vector<1x32x32x128xf32> to vector<1024x128xf32>
    %c4 = arith.constant 4 : index
    %c0_32 = arith.constant 0 : index
    %c0_33 = arith.constant 0 : index
    %27 = vector.load %arg4[%c4, %c0_32, %c0_33] : memref<9x128x128xf32, #tpu.memory_space<vmem>>, vector<1x128x128xf32>
    %28 = vector.shape_cast %27 : vector<1x128x128xf32> to vector<128x128xf32>
    %cst_34 = arith.constant dense<0.000000e+00> : vector<1024x128xf32>
    %29 = tpu.matmul %26, %28, %cst_34 {dimension_numbers = #tpu.dot_dimension_numbers<[1], [0], [0], [1], [0, 0, 1, 1], [], []>} : vector<1024x128xf32>, vector<128x128xf32>, vector<1024x128xf32> -> vector<1024x128xf32>
    %30 = arith.addf %24, %29 : vector<1024x128xf32>
    %c0_35 = arith.constant 0 : index
    %c1_36 = arith.constant 1 : index
    %c0_37 = arith.constant 0 : index
    %c0_38 = arith.constant 0 : index
    %31 = vector.load %arg3[%c0_35, %c1_36, %c0_37, %c0_38] : memref<1x34x32x128xf32, #tpu.memory_space<vmem>>, vector<1x32x32x128xf32>
    %32 = vector.shape_cast %31 : vector<1x32x32x128xf32> to vector<1024x128xf32>
    %c5 = arith.constant 5 : index
    %c0_39 = arith.constant 0 : index
    %c0_40 = arith.constant 0 : index
    %33 = vector.load %arg4[%c5, %c0_39, %c0_40] : memref<9x128x128xf32, #tpu.memory_space<vmem>>, vector<1x128x128xf32>
    %34 = vector.shape_cast %33 : vector<1x128x128xf32> to vector<128x128xf32>
    %cst_41 = arith.constant dense<0.000000e+00> : vector<1024x128xf32>
    %35 = tpu.matmul %32, %34, %cst_41 {dimension_numbers = #tpu.dot_dimension_numbers<[1], [0], [0], [1], [0, 0, 1, 1], [], []>} : vector<1024x128xf32>, vector<128x128xf32>, vector<1024x128xf32> -> vector<1024x128xf32>
    %36 = arith.addf %30, %35 : vector<1024x128xf32>
    %c0_42 = arith.constant 0 : index
    %c2_43 = arith.constant 2 : index
    %c0_44 = arith.constant 0 : index
    %c0_45 = arith.constant 0 : index
    %37 = vector.load %arg1[%c0_42, %c2_43, %c0_44, %c0_45] : memref<1x34x32x128xf32, #tpu.memory_space<vmem>>, vector<1x32x32x128xf32>
    %38 = vector.shape_cast %37 : vector<1x32x32x128xf32> to vector<1024x128xf32>
    %c6 = arith.constant 6 : index
    %c0_46 = arith.constant 0 : index
    %c0_47 = arith.constant 0 : index
    %39 = vector.load %arg4[%c6, %c0_46, %c0_47] : memref<9x128x128xf32, #tpu.memory_space<vmem>>, vector<1x128x128xf32>
    %40 = vector.shape_cast %39 : vector<1x128x128xf32> to vector<128x128xf32>
    %cst_48 = arith.constant dense<0.000000e+00> : vector<1024x128xf32>
    %41 = tpu.matmul %38, %40, %cst_48 {dimension_numbers = #tpu.dot_dimension_numbers<[1], [0], [0], [1], [0, 0, 1, 1], [], []>} : vector<1024x128xf32>, vector<128x128xf32>, vector<1024x128xf32> -> vector<1024x128xf32>
    %42 = arith.addf %36, %41 : vector<1024x128xf32>
    %c0_49 = arith.constant 0 : index
    %c2_50 = arith.constant 2 : index
    %c0_51 = arith.constant 0 : index
    %c0_52 = arith.constant 0 : index
    %43 = vector.load %arg2[%c0_49, %c2_50, %c0_51, %c0_52] : memref<1x34x32x128xf32, #tpu.memory_space<vmem>>, vector<1x32x32x128xf32>
    %44 = vector.shape_cast %43 : vector<1x32x32x128xf32> to vector<1024x128xf32>
    %c7 = arith.constant 7 : index
    %c0_53 = arith.constant 0 : index
    %c0_54 = arith.constant 0 : index
    %45 = vector.load %arg4[%c7, %c0_53, %c0_54] : memref<9x128x128xf32, #tpu.memory_space<vmem>>, vector<1x128x128xf32>
    %46 = vector.shape_cast %45 : vector<1x128x128xf32> to vector<128x128xf32>
    %cst_55 = arith.constant dense<0.000000e+00> : vector<1024x128xf32>
    %47 = tpu.matmul %44, %46, %cst_55 {dimension_numbers = #tpu.dot_dimension_numbers<[1], [0], [0], [1], [0, 0, 1, 1], [], []>} : vector<1024x128xf32>, vector<128x128xf32>, vector<1024x128xf32> -> vector<1024x128xf32>
    %48 = arith.addf %42, %47 : vector<1024x128xf32>
    %c0_56 = arith.constant 0 : index
    %c2_57 = arith.constant 2 : index
    %c0_58 = arith.constant 0 : index
    %c0_59 = arith.constant 0 : index
    %49 = vector.load %arg3[%c0_56, %c2_57, %c0_58, %c0_59] : memref<1x34x32x128xf32, #tpu.memory_space<vmem>>, vector<1x32x32x128xf32>
    %50 = vector.shape_cast %49 : vector<1x32x32x128xf32> to vector<1024x128xf32>
    %c8 = arith.constant 8 : index
    %c0_60 = arith.constant 0 : index
    %c0_61 = arith.constant 0 : index
    %51 = vector.load %arg4[%c8, %c0_60, %c0_61] : memref<9x128x128xf32, #tpu.memory_space<vmem>>, vector<1x128x128xf32>
    %52 = vector.shape_cast %51 : vector<1x128x128xf32> to vector<128x128xf32>
    %cst_62 = arith.constant dense<0.000000e+00> : vector<1024x128xf32>
    %53 = tpu.matmul %50, %52, %cst_62 {dimension_numbers = #tpu.dot_dimension_numbers<[1], [0], [0], [1], [0, 0, 1, 1], [], []>} : vector<1024x128xf32>, vector<128x128xf32>, vector<1024x128xf32> -> vector<1024x128xf32>
    %54 = arith.addf %48, %53 : vector<1024x128xf32>
    %c0_63 = arith.constant 0 : index
    %c0_64 = arith.constant 0 : index
    %55 = vector.load %arg5[%c0_63, %c0_64] : memref<1x128xf32, #tpu.memory_space<vmem>>, vector<1x128xf32>
    %56 = vector.broadcast %55 : vector<1x128xf32> to vector<1024x128xf32>
    %57 = arith.addf %54, %56 : vector<1024x128xf32>
    %cst_65 = arith.constant 0.000000e+00 : f32
    %58 = vector.broadcast %cst_65 : f32 to vector<1024x128xf32>
    %59 = arith.cmpf ogt, %57, %58 : vector<1024x128xf32>
    %cst_66 = arith.constant 1.000000e-01 : f32
    %60 = vector.broadcast %cst_66 : f32 to vector<1024x128xf32>
    %61 = arith.mulf %60, %57 : vector<1024x128xf32>
    %62 = arith.select %59, %57, %61 : vector<1024x128xi1>, vector<1024x128xf32>
    %63 = vector.shape_cast %62 : vector<1024x128xf32> to vector<1x32x32x128xf32>
    %c0_67 = arith.constant 0 : index
    %c0_68 = arith.constant 0 : index
    %c0_69 = arith.constant 0 : index
    %c0_70 = arith.constant 0 : index
    %64 = vector.load %arg6[%c0_67, %c0_68, %c0_69, %c0_70] : memref<1x32x32x128xf32, #tpu.memory_space<vmem>>, vector<1x32x32x128xf32>
    tpu.vector_store %arg6[%c0_67, %c0_68, %c0_69, %c0_70], %63 {strides = array<i32>} : memref<1x32x32x128xf32, #tpu.memory_space<vmem>>, vector<1x32x32x128xf32>,
    return
  }
  func.func @transform_0(%arg0: i32) -> (i32, i32, i32, i32) {
    %c0_i32 = arith.constant 0 : i32
    %c0_i32_0 = arith.constant 0 : i32
    %c0_i32_1 = arith.constant 0 : i32
    %c0_i32_2 = arith.constant 0 : i32
    return %arg0, %c0_i32, %c0_i32_0, %c0_i32_1 : i32, i32, i32, i32
  }
  func.func @transform_1(%arg0: i32) -> (i32, i32, i32, i32) {
    %c0_i32 = arith.constant 0 : i32
    %c0_i32_0 = arith.constant 0 : i32
    %c0_i32_1 = arith.constant 0 : i32
    %c0_i32_2 = arith.constant 0 : i32
    return %arg0, %c0_i32, %c0_i32_0, %c0_i32_1 : i32, i32, i32, i32
  }
  func.func @transform_2(%arg0: i32) -> (i32, i32, i32, i32) {
    %c0_i32 = arith.constant 0 : i32
    %c0_i32_0 = arith.constant 0 : i32
    %c0_i32_1 = arith.constant 0 : i32
    %c0_i32_2 = arith.constant 0 : i32
    return %arg0, %c0_i32, %c0_i32_0, %c0_i32_1 : i32, i32, i32, i32
  }
  func.func @transform_3(%arg0: i32) -> (i32, i32, i32) {
    %c0_i32 = arith.constant 0 : i32
    %c0_i32_0 = arith.constant 0 : i32
    %c0_i32_1 = arith.constant 0 : i32
    %c0_i32_2 = arith.constant 0 : i32
    return %c0_i32, %c0_i32_0, %c0_i32_1 : i32, i32, i32
  }
  func.func @transform_4(%arg0: i32) -> (i32, i32) {
    %c0_i32 = arith.constant 0 : i32
    %c0_i32_0 = arith.constant 0 : i32
    %c0_i32_1 = arith.constant 0 : i32
    return %c0_i32, %c0_i32_0 : i32, i32
  }
  func.func @transform_5(%arg0: i32) -> (i32, i32, i32, i32) {
    %c0_i32 = arith.constant 0 : i32
    %c0_i32_0 = arith.constant 0 : i32
    %c0_i32_1 = arith.constant 0 : i32
    %c0_i32_2 = arith.constant 0 : i32
    return %arg0, %c0_i32, %c0_i32_0, %c0_i32_1 : i32, i32, i32, i32
  }
}

</mosaic_0001>

<bundles_post_ra>
// kernel: tpu_custom_call.1
= control target key start
LH: loop header
LB: loop body
LE: loop exit
PB: predicated region body
PF: predicated region fallthrough
CT: control target
= control target key end

     0   :  { %s17773_s0 = inlined_call_operand.hbm [shape: f32[2,34,32,128], index: 0, kind: input, shape index: {}]   ;;  %s17774_s1 = inlined_call_operand.hbm [shape: f32[2,34,32,128], index: 1, kind: input, shape index: {}]   ;;  %s17775_s2 = inlined_call_operand.hbm [shape: f32[2,34,32,128], index: 2, kind: input, shape index: {}]   ;;  %s17776_s3 = inlined_call_operand.hbm [shape: f32[9,128,128], index: 3, kind: input, shape index: {}]   ;;  %s17777_s4 = inlined_call_operand.hbm [shape: f32[1,128], index: 4, kind: input, shape index: {}]   ;;  %s17778_s5 = inlined_call_operand.hbm [shape: f32[2,32,32,128], index: 5, kind: output, shape index: {}]  }
   0x1   :  { %17824 = sst [smem:[#allocation35_spill]] %s17774_s1 }
   0x2   :  { %17825 = sst [smem:[#allocation36_spill]] %s17776_s3 }
   0x3   :  { %10 = vsyncpa [#allocation3], 0 }
   0x4   :  { %12 = vsyncpa [#allocation3 + $0x1], 0 }
   0x5   :  { %13 = vsyncpa [#allocation6], 0 }
   0x6   :  { %15 = vsyncpa [#allocation6 + $0x1], 0 }
   0x7   :  { %16 = vsyncpa [#allocation9], 0 }
   0x8   :  { %17 = vsyncpa [#allocation4], 0 }
   0x9   :  { %19 = vsyncpa [#allocation4 + $0x1], 0  ;;  %s15473_s18 = smov 0   ;;  %s15475_s19 = smov 0  }
   0xa   :  { %s15477_s20 = smov 0   ;;  %s15479_s21 = smov 0  }
   0xb LB: > { %17826 = sst [smem:[#allocation16_spill]] %s15431_s21  ;;  %s15494_s22 = sadd.s32 4294967295, %s15431_s21   ;;  %s15431_s21 = sphi %s15479_s21, %s17925_s21   ;;  %s15427_s20 = sphi %s15477_s20, %s17929_s20   ;;  %s15423_s19 = sphi %s15475_s19, %s17928_s19   ;;  %s15419_s18 = sphi %s15473_s18, %s17927_s18  }
   0xc   : > { %s9694_s23 = sadd.s32 4294967294, %s15431_s21   ;;  %s15498_s24 = sadd.s32 1, %s15431_s21  }
   0xd   : > { %17827 = sst [smem:[#allocation17_spill]] %s15498_s24  ;;  %s32_s25 = sadd.s32 1, %s15427_s20 }
   0xe   : > { %s29_s26 = ssub.s32 %s15431_s21, %s15498_s24  ;;  %p39_p0 = scmp.ne.s32.totalorder %s15427_s20, %s15423_s19 }
   0xf   : > { %p30_p1 = scmp.eq.s32.totalorder %s29_s26, 0  ;;  %p40_p2 = scmp.eq.s32.totalorder %s15431_s21, 0 }
  0x10   : > { %p45_p3 = scmp.ne.s32.totalorder %s15423_s19, %s15419_s18  ;;  %p17779_p4 = scmp.eq.s32.totalorder %s15494_s22, 0 }
  0x11   : > { %s15510_s27 = scalar_select %p30_p1, %s15427_s20, %s32_s25  }
  0x12   : > { %p15512_p5 = por %p40_p2, %p39_p0  ;;  %p15518_p6 = por %p17779_p4, %p45_p3 }
  0x13   : > { %17828 = sst [smem:[#allocation18_spill]] %s15510_s27  ;;  %p163_p7 = scmp.eq.s32.totalorder %s15494_s22, 1 }
  0x14   : > { %s17829_s28 = scalar_select %p15512_p5, 1, 0 }
  0x15   : > { %s17830_s29 = scalar_select %p15518_p6, 1, 0 }
  0x16   : > { %p169_p8 = scmp.eq.s32.totalorder %s9694_s23, 1  ;;  %p9695_p9 = scmp.ge.s32.totalorder %s15431_s21, 1 }
  0x17   : > { %p176_p10 = scmp.lt.s32.totalorder %s15431_s21, 3  ;;  %p15525_p11 = por %p163_p7, %p39_p0 }
  0x18   : > { %p15529_p12 = por %p169_p8, %p45_p3  ;;  %s15433_s8 = smov [#allocation8]  }
  0x19   : > { %s17831_s30 = scalar_select %p15525_p11, 1, 0 }
  0x1a   : > { %s17832_s6 = scalar_select %p15529_p12, 1, 0 }
  0x1b   : > { %p15533_p13 = pnand %p9695_p9, %p176_p10  ;;  %s188_s9 = sshll.u32 %s15433_s8, 4  ;;  %s189_s9 = int_to_ptr.vmem [resolvable:$true] %s188_s9 }
  0x1c   : > { %s17783_s11 = sand.u32 1, %s15427_s20   ;;  %s17835_s3 = sld [smem:[#allocation36_spill]] }
  0x1d   : > { %s17833_s7 = scalar_select %p15533_p13, 1, 0 }
  0x1e   : > { %p15144_p1 = pneg %p15533_p13  ;;  %s15550_s12 = smul.u32 1088, %s17783_s11 }
  0x20   : > { %p15541_p2 = pnand %p15144_p1, %p17779_p4 }
  0x22   : > { %s17834_s10 = scalar_select %p15541_p2, 1, 0 }
  0x23   : > { %s15211_s15 = scalar_lea.hbm %s17835_s3, 18432  ;;  %p17788_p8 = pneg %p15541_p2 }
  0x24   : > { %p15212_p7 = scmp.ne.s32.totalorder %s17835_s3, %s15211_s15  ;;  %p15218_p1 = scmp.lt.u32.totalorder %s15211_s15, %s17835_s3 }
  0x26   : > { %p15214_p9 = pnand %p17788_p8, %p15212_p7 }
  0x28   : > { %p15215_p10 = pneg %p15214_p9 }
  0x2a   : > { %p15220_p0 = pnand %p15218_p1, %p15215_p10 }
  0x2c   : > { %15223 = shalt.err (!%p15220_p0)
}
  0x2d   : > { %s15224_s26 = scalar_lea.vmem %s189_s9, 18432  ;;  %p15232_p11 = scmp.lt.s32.totalorder %s189_s9, %s189_s9 }
  0x2e   : > { %p15225_p4 = scmp.ne.s32.totalorder %s189_s9, %s15224_s26  ;;  %p15233_p6 = scmp.lt.s32.totalorder %s15224_s26, %s15224_s26 }
  0x30   : > { %p15227_p3 = pnand %p15225_p4, %p17788_p8  ;;  %p15234_p13 = por %p15233_p6, %p15232_p11 }
  0x32   : > { %p15228_p12 = pneg %p15227_p3 }
  0x34   : > { %p15235_p5 = pnand %p15234_p13, %p15228_p12 }
  0x36   : > { %15238 = shalt.err (!%p15235_p5)
}
  0x37   : > { %s17784_s8 = smov 128   ;;  %s17786_s13 = smov 8  }
  0x38   : > { %15147 = dma.hbm_to_vmem [thread:$0]  (!%p15541_p2), %s17835_s3, 18432, %s189_s9, [#allocation9], %s17784_s8, %s17784_s8, %s17786_s13  }
  0x39   : > { %s15578_s16 = smul.u32 17408, %s15431_s21  ;;  %p17836_p4 = scmp.ne.s32.totalorder %s17829_s28, 0 }
  0x3a   : > { %p17837_p5 = scmp.lt.s32.totalorder %s15431_s21, 2  ;;  %s234_s23 = sand.u32 1, %s15431_s21  }
  0x3b   : > { %s17839_s1 = sld [smem:[#allocation35_spill]]  ;;  %s238_s9 = scalar_lea.vmem [#allocation5], %s15550_s12 }
  0x3c   : > { %p15584_p6 = pnand %p17837_p5, %p17836_p4  ;;  %s245_s14 = sshll.u32 %s238_s9, 4  ;;  %s15596_s14 = int_to_ptr.vmem [resolvable:$true] %s245_s14 }
  0x3d   : > { %s15598_s28 = scalar_lea.sflag [#allocation6], %s234_s23 }
  0x3e   : > { %s17838_s17 = scalar_select %p15584_p6, 1, 0 }
  0x3f   : > { %p15604_p12 = pneg %p15584_p6 }
  0x41   : > { %s15593_s11 = scalar_lea.hbm %s17839_s1, %s15578_s16  ;;  %s15244_s13 = scalar_lea.hbm %s17839_s1, 34816 }
  0x42   : > { %s15239_s15 = scalar_lea.hbm %s15593_s11, 17408  ;;  %p15245_p3 = scmp.lt.u32.totalorder %s15593_s11, %s17839_s1 }
  0x43   : > { %p15240_p11 = scmp.ne.s32.totalorder %s15593_s11, %s15239_s15  ;;  %p15246_p7 = scmp.lt.u32.totalorder %s15244_s13, %s15239_s15 }
  0x44   : > { %s17840_s8 = scalar_select %p15604_p12, 1, 0 }
  0x45   : > { %p15242_p13 = pnand %p15604_p12, %p15240_p11  ;;  %p15247_p9 = por %p15246_p7, %p15245_p3 }
  0x46   : > { %p15248_p10 = scmp.lt.u32.totalorder %s15239_s15, %s15593_s11 }
  0x47   : > { %p15243_p0 = pneg %p15242_p13 }
  0x48   : > { %p15249_p1 = por %p15248_p10, %p15247_p9 }
  0x4a   : > { %p15250_p4 = pnand %p15249_p1, %p15243_p0 }
  0x4c   : > { %15253 = shalt.err (!%p15250_p4)
}
  0x4d   : > { %s15254_s23 = scalar_lea.vmem %s15596_s14, 17408  ;;  %s15436_s25 = smov [#allocation5]  }
  0x4e   : > { %p15255_p5 = scmp.ne.s32.totalorder %s15596_s14, %s15254_s23  ;;  %s15259_s26 = sshll.u32 %s15436_s25, 4  ;;  %s15260_s26 = int_to_ptr.vmem [resolvable:$false] %s15259_s26 }
  0x4f   : > { %s15261_s3 = scalar_lea.vmem %s15260_s26, 34816  ;;  %p15262_p8 = scmp.lt.s32.totalorder %s15596_s14, %s15260_s26 }
  0x50   : > { %p15257_p11 = pnand %p15255_p5, %p15604_p12  ;;  %p15263_p2 = scmp.lt.s32.totalorder %s15261_s3, %s15254_s23 }
  0x52   : > { %p15258_p13 = pneg %p15257_p11  ;;  %p15264_p3 = por %p15263_p2, %p15262_p8 }
  0x54   : > { %p15265_p7 = pnand %p15264_p3, %p15258_p13 }
  0x56   : > { %15268 = shalt.err (!%p15265_p7)
}
  0x57   : > { %s17841_s13 = smov 8   ;;  %s17842_s15 = smov 128  }
  0x58   : > { %15157 = dma.hbm_to_vmem [thread:$0]  (!%p15584_p6), %s15593_s11, 17408, %s15596_s14, %s15598_s28, %s17842_s15, %s17842_s15, %s17841_s13  }
  0x59   : > { %s15437_s9 = smov [#allocation10]   ;;  %s15269_s23 = scalar_lea.hbm %s17777_s4, 16 }
  0x5a   : > { %s202_s1 = sshll.u32 %s15437_s9, 4  ;;  %p15270_p2 = scmp.ne.s32.totalorder %s17777_s4, %s15269_s23  ;;  %s203_s1 = int_to_ptr.vmem [resolvable:$true] %s202_s1 }
  0x5b   : > { %p17843_p8 = scmp.ne.s32.totalorder %s17834_s10, 0  ;;  %p15276_p1 = scmp.lt.u32.totalorder %s15269_s23, %s17777_s4 }
  0x5d   : > { %p17844_p0 = pneg %p17843_p8 }
  0x5f   : > { %p15272_p9 = pnand %p15270_p2, %p17844_p0 }
  0x61   : > { %p15273_p10 = pneg %p15272_p9 }
  0x63   : > { %p15278_p4 = pnand %p15276_p1, %p15273_p10 }
  0x65   : > { %15281 = shalt.err (!%p15278_p4)
}
  0x66   : > { %s15282_s11 = scalar_lea.vmem %s203_s1, 16  ;;  %p17845_p11 = pmov %p17844_p0 }
  0x67   : > { %p15283_p5 = scmp.ne.s32.totalorder %s203_s1, %s15282_s11  ;;  %s15289_s27 = scalar_lea.vmem %s203_s1, 32 }
  0x68   : > { %p15290_p7 = scmp.lt.s32.totalorder %s203_s1, %s203_s1  ;;  %p15291_p6 = scmp.lt.s32.totalorder %s15289_s27, %s15282_s11 }
  0x69   : > { %p15285_p13 = pnand %p15283_p5, %p17845_p11 }
  0x6a   : > { %p15292_p12 = por %p15291_p6, %p15290_p7 }
  0x6b   : > { %p15286_p3 = pneg %p15285_p13 }
  0x6d   : > { %p15293_p0 = pnand %p15292_p12, %p15286_p3 }
  0x6f   : > { %15296 = shalt.err (!%p15293_p0)
}
  0x70   : > { %15150 = dma.hbm_to_vmem [thread:$0]  (!%p17843_p8), %s17777_s4, 16, %s203_s1, [#allocation9]  }
  0x71   : > { %s15655_s25 = scalar_lea.hbm %s17773_s0, %s15578_s16  ;;  %s217_s23 = scalar_lea.vmem [#allocation2], %s15550_s12 }
  0x72   : > { %s224_s26 = sshll.u32 %s217_s23, 4  ;;  %s17846_s10 = sand.u32 1, %s15427_s20   ;;  %s15658_s26 = int_to_ptr.vmem [resolvable:$true] %s224_s26 }
  0x73   : > { %s15662_s3 = scalar_lea.sflag [#allocation3], %s17846_s10  ;;  %s15297_s11 = scalar_lea.hbm %s15655_s25, 17408 }
  0x74   : > { %p15298_p6 = scmp.ne.s32.totalorder %s15655_s25, %s15297_s11  ;;  %p17847_p12 = scmp.ne.s32.totalorder %s17840_s8, 0 }
  0x75   : > { %s15302_s14 = scalar_lea.hbm %s17773_s0, 34816  ;;  %p15303_p9 = scmp.lt.u32.totalorder %s15655_s25, %s17773_s0 }
  0x76   : > { %p15300_p2 = pnand %p15298_p6, %p17847_p12  ;;  %p15304_p10 = scmp.lt.u32.totalorder %s15302_s14, %s15297_s11 }
  0x77   : > { %p15306_p4 = scmp.lt.u32.totalorder %s15297_s11, %s15655_s25 }
  0x78   : > { %p15301_p8 = pneg %p15300_p2  ;;  %p15305_p1 = por %p15304_p10, %p15303_p9 }
  0x7a   : > { %p15307_p5 = por %p15306_p4, %p15305_p1 }
  0x7c   : > { %p15308_p11 = pnand %p15307_p5, %p15301_p8 }
  0x7e   : > { %15311 = shalt.err (!%p15308_p11)
}
  0x7f   : > { %s15312_s9 = scalar_lea.vmem %s15658_s26, 17408  ;;  %s15438_s23 = smov [#allocation2]  }
  0x80   : > { %p15313_p13 = scmp.ne.s32.totalorder %s15658_s26, %s15312_s9  ;;  %s15317_s10 = sshll.u32 %s15438_s23, 4  ;;  %s15318_s10 = int_to_ptr.vmem [resolvable:$false] %s15317_s10 }
  0x81   : > { %s15319_s1 = scalar_lea.vmem %s15318_s10, 34816  ;;  %p15320_p0 = scmp.lt.s32.totalorder %s15658_s26, %s15318_s10 }
  0x82   : > { %p15315_p3 = pnand %p15313_p13, %p17847_p12  ;;  %p15321_p6 = scmp.lt.s32.totalorder %s15319_s1, %s15312_s9 }
  0x84   : > { %p15316_p7 = pneg %p15315_p3  ;;  %p15322_p2 = por %p15321_p6, %p15320_p0 }
  0x86   : > { %p15323_p9 = pnand %p15322_p2, %p15316_p7 }
  0x88   : > { %15326 = shalt.err (!%p15323_p9)
}
  0x89   : > { %p17848_p8 = scmp.ne.s32.totalorder %s17838_s17, 0  ;;  %s15693_s14 = scalar_lea.hbm %s17775_s2, %s15578_s16 }
  0x8a   : > { %s259_s21 = scalar_lea.vmem [#allocation7], %s15550_s12  ;;  %s15327_s9 = scalar_lea.hbm %s15693_s14, 17408 }
  0x8b   : > { %15154 = dma.hbm_to_vmem [thread:$0]  (!%p17848_p8), %s15655_s25, 17408, %s15658_s26, %s15662_s3, %s17842_s15, %s17842_s15, %s17841_s13  }
  0x8c   : > { %s266_s24 = sshll.u32 %s259_s21, 4  ;;  %p15328_p10 = scmp.ne.s32.totalorder %s15693_s14, %s15327_s9  ;;  %s15696_s24 = int_to_ptr.vmem [resolvable:$true] %s266_s24 }
  0x8d   : > { %s15332_s26 = scalar_lea.hbm %s17775_s2, 34816  ;;  %p15333_p5 = scmp.lt.u32.totalorder %s15693_s14, %s17775_s2 }
  0x8e   : > { %p15330_p1 = pnand %p15328_p10, %p17847_p12  ;;  %p15334_p11 = scmp.lt.u32.totalorder %s15332_s26, %s15327_s9 }
  0x8f   : > { %p15336_p3 = scmp.lt.u32.totalorder %s15327_s9, %s15693_s14 }
  0x90   : > { %p15331_p4 = pneg %p15330_p1  ;;  %p15335_p13 = por %p15334_p11, %p15333_p5 }
  0x92   : > { %p15337_p7 = por %p15336_p3, %p15335_p13 }
  0x94   : > { %p15338_p0 = pnand %p15337_p7, %p15331_p4 }
  0x96   : > { %15341 = shalt.err (!%p15338_p0)
}
  0x97   : > { %s15342_s12 = scalar_lea.vmem %s15696_s24, 17408  ;;  %s15439_s10 = smov [#allocation7]  }
  0x98   : > { %p15343_p6 = scmp.ne.s32.totalorder %s15696_s24, %s15342_s12  ;;  %s15347_s1 = sshll.u32 %s15439_s10, 4  ;;  %s15348_s1 = int_to_ptr.vmem [resolvable:$false] %s15347_s1 }
  0x99   : > { %s15349_s11 = scalar_lea.vmem %s15348_s1, 34816  ;;  %p15350_p10 = scmp.lt.s32.totalorder %s15696_s24, %s15348_s1 }
  0x9a   : > { %p15345_p2 = pnand %p15343_p6, %p17847_p12  ;;  %p15351_p1 = scmp.lt.s32.totalorder %s15349_s11, %s15342_s12 }
  0x9c   : > { %p15346_p9 = pneg %p15345_p2  ;;  %p15352_p5 = por %p15351_p1, %p15350_p10 }
  0x9e   : > { %p15353_p11 = pnand %p15352_p5, %p15346_p9 }
  0xa0   : > { %15356 = shalt.err (!%p15353_p11)
}
  0xa1   : > { %15160 = dma.hbm_to_vmem [thread:$0]  (!%p17848_p8), %s15693_s14, 17408, %s15696_s24, %s15598_s28, %s17842_s15, %s17842_s15, %s17841_s13  }
  0xa2   : > { %p17849_p12 = scmp.ne.s32.totalorder %s17833_s7, 0 }
  0xa4   : > { %278 = sbr.rel (%p17849_p12) target bundleno = 1601 (0x641), region = 40 }
  0xab   : > { %s15726_s8 = sand.u32 1, %s15423_s19   ;;  %p17850_p4 = scmp.ne.s32.totalorder %s17830_s29, 0 }
  0xac   : > { %s15127_s27 = smul.u32 1088, %s15726_s8  ;;  %s281_s21 = scalar_lea.sflag [#allocation3], %s15726_s8 }
  0xae   : > { %s15730_s9 = scalar_lea.vmem [#allocation2], %s15127_s27 }
  0xaf   : > { %15402 = dma.done.wait (%p17850_p4), %s281_s21, 17408  }
  0xb0   : > { %15404 = vsyncadd (%p17850_p4), %s281_s21, 4294949888  ;;  %s289_s17 = sand.u32 1, %s15494_s22   ;;  %s15737_s28 = scalar_lea.vmem [#allocation5], %s15127_s27 }
  0xb1   : > { %s290_s7 = scalar_lea.sflag [#allocation6], %s289_s17 }
  0xb2   : > { %15406 = dma.done.wait (%p17850_p4), %s290_s7, 34816  }
  0xb3   : > { %15408 = vsyncadd (%p17850_p4), %s290_s7, 4294932480  ;;  %s15743_s13 = scalar_lea.vmem [#allocation7], %s15127_s27  ;;  %p17851_p8 = scmp.eq.s32.totalorder %s15494_s22, 0 }
  0xb5   : > { %15410 = dma.done.wait (%p17851_p8), [#allocation9], 18448   ;;  %p17852_p13 = pmov %p17851_p8 }
  0xb6   : > { %v620_v0 = vld [vmem:[#allocation8 + $0x80] sm:$0xff]  ;;  %v621_v1 = vld [vmem:[#allocation8 + $0x88] sm:$0xff]  ;;  %v622_v5 = vld [vmem:[#allocation8 + $0x90] sm:$0xff]  ;;  %s9705_s29 = sshll.u32 %s15726_s8, 10  ;;  %s10480_s14 = sshll.u32 %s15494_s22, 14 }
  0xb7   : > { %15412 = vsyncadd (%p17852_p13), [#allocation9], 4294948848  ;;  %v4133_v2 = vld [vmem:[#allocation8 + $0x200] sm:$0xff]  ;;  %v13793_v3 = vpack.c.bf16 %v621_v1, %v620_v0  ;;  %v4134_v4 = vld [vmem:[#allocation8 + $0x208] sm:$0xff]  ;;  %s17377_s15 = scalar_lea.vmem [#allocation11], %s9705_s29  ;;  %s17725_s26 = scalar_lea.hbm %s17778_s5, %s10480_s14 }
  0xb8   : > { %v623_v6 = vld [vmem:[#allocation8 + $0x98] sm:$0xff]  ;;  %v15749_v7 = vpack.c.bf16 %v4134_v4, %v4133_v2  ;;  %v4135_v9 = vld [vmem:[#allocation8 + $0x210] sm:$0xff]  ;;  %v624_v11 = vld [vmem:[#allocation8 + $0xa0] sm:$0xff]  ;;  %s9559_s24 = sshll.u32 %s17377_s15, 4  ;;  %s9546_s22 = scalar_lea.sflag [#allocation4], %s15726_s8  ;;  %s17727_s24 = int_to_ptr.vmem [resolvable:$true] %s9559_s24 }
  0xb9   : > { %v13797_v8 = vpack.c.bf16 %v623_v6, %v622_v5  ;;  %v4136_v10 = vld [vmem:[#allocation8 + $0x218] sm:$0xff]  ;;  %13794 = vmatprep.subr.bf16.mxu1 %v13793_v3  ;;  %v625_v13 = vld [vmem:[#allocation8 + $0xa8] sm:$0xff]  ;;  %v4137_v14 = vld [vmem:[#allocation8 + $0x220] sm:$0xff]  ;;  %s15357_s3 = scalar_lea.vmem %s17727_s24, 16384  ;;  %p17921_p7 = scmp.ne.s32.totalorder %s17831_s30, 0 }
  0xba   : > { %17853 = vst [vmem:[#allocation19_spill] sm:$0xff] %v15749_v7  ;;  %v15751_v12 = vpack.c.bf16 %v4136_v10, %v4135_v9  ;;  %v4138_v15 = vld [vmem:[#allocation8 + $0x228] sm:$0xff]  ;;  %13922 = vmatprep.subr.bf16.mxu0 %v15749_v7  ;;  %13796 = vmatpush3.bf16.msra.mxu1 %v13793_v3  ;;  %v13801_v16 = vpack.c.bf16 %v625_v13, %v624_v11  ;;  %v626_v18 = vld [vmem:[#allocation8 + $0xb0] sm:$0xff]  ;;  %v627_v19 = vld [vmem:[#allocation8 + $0xb8] sm:$0xff]  ;;  %p15358_p3 = scmp.ne.s32.totalorder %s17727_s24, %s15357_s3  ;;  %s15440_s16 = smov [#allocation11]  }
  0xbb   : > { %13924 = vmatpush3.bf16.msra.mxu0 %v15749_v7  ;;  %13798 = vmatprep.subr.bf16.mxu1 %v13797_v8  ;;  %v15756_v17 = vpack.c.bf16 %v4138_v15, %v4137_v14  ;;  %v4139_v20 = vld [vmem:[#allocation8 + $0x230] sm:$0xff]  ;;  %v4140_v21 = vld [vmem:[#allocation8 + $0x238] sm:$0xff]  ;;  %v13805_v22 = vpack.c.bf16 %v627_v19, %v626_v18  ;;  %v628_v24 = vld [vmem:[#allocation8 + $0xc0] sm:$0xff]  ;;  %s15361_s12 = sshll.u32 %s15440_s16, 4  ;;  %s15362_s12 = int_to_ptr.vmem [resolvable:$false] %s15361_s12 }
  0xbc   : > { %17854 = vst [vmem:[#allocation20_spill] sm:$0xff] %v15751_v12  ;;  %13926 = vmatprep.subr.bf16.mxu0 %v15751_v12  ;;  %v15760_v23 = vpack.c.bf16 %v4140_v21, %v4139_v20  ;;  %v629_v25 = vld [vmem:[#allocation8 + $0xc8] sm:$0xff]  ;;  %v491_v26 = vld [vmem:[%s15737_s28] sm:$0xff]  ;;  %v630_v32 = vld [vmem:[#allocation8 + $0xd0] sm:$0xff]  ;;  %p15359_p0 = pnand %p15358_p3, %p17921_p7  ;;  %s15363_s10 = scalar_lea.vmem %s15362_s12, 32768 }
  0xbd   : > { %17855 = vst [vmem:[#allocation21_spill] sm:$0xff] %v15756_v17  ;;  %v4141_v27 = vld [vmem:[#allocation8 + $0x240] sm:$0xff]  ;;  %v4142_v28 = vld [vmem:[#allocation8 + $0x248] sm:$0xff]  ;;  %11809 = vmatprep.mubr.f32.mxu1 %v491_v26  ;;  %v13809_v30 = vpack.c.bf16 %v629_v25, %v628_v24  ;;  %v631_v33 = vld [vmem:[#allocation8 + $0xd8] sm:$0xff]  ;;  %p15364_p2 = scmp.lt.s32.totalorder %s17727_s24, %s15362_s12  ;;  %p15365_p9 = scmp.lt.s32.totalorder %s15363_s10, %s15357_s3 }
  0xbe   : > { %13800 = vmatpush3.bf16.msra.mxu1 %v13797_v8  ;;  %17856 = vst [vmem:[#allocation22_spill] sm:$0xff] %v15760_v23  ;;  %v15764_v29 = vld [vmem:[%s15737_s28 + $0x20] sm:$0xff]  ;;  %v15769_v31 = vpack.c.bf16 %v4142_v28, %v4141_v27  ;;  %v4143_v34 = vld [vmem:[#allocation8 + $0x250] sm:$0xff]  ;;  %v4144_v35 = vld [vmem:[#allocation8 + $0x258] sm:$0xff]  ;;  %v13813_v36 = vpack.c.bf16 %v631_v33, %v630_v32  ;;  %p15360_p6 = pneg %p15359_p0 }
  0xbf   : > { %13928 = vmatpush3.bf16.msra.mxu0 %v15751_v12  ;;  %13802 = vmatprep.subr.bf16.mxu1 %v13801_v16  ;;  %v15773_v37 = vpack.c.bf16 %v4144_v35, %v4143_v34  ;;  %v632_v38 = vld [vmem:[#allocation8 + $0xe0] sm:$0xff]  ;;  %v633_v39 = vld [vmem:[#allocation8 + $0xe8] sm:$0xff]  ;;  %v634_v44 = vld [vmem:[#allocation8 + $0xf0] sm:$0xff]  ;;  %p15366_p10 = por %p15365_p9, %p15364_p2 }
  0xc0   : > { %13930 = vmatprep.subr.bf16.mxu0 %v15756_v17  ;;  %12705 = vmatprep.mubr.f32.mxu0 %v15764_v29  ;;  %17857 = vst [vmem:[#allocation23_spill] sm:$0xff] %v15769_v31  ;;  %v4145_v40 = vld [vmem:[#allocation8 + $0x260] sm:$0xff]  ;;  %v4146_v41 = vld [vmem:[#allocation8 + $0x268] sm:$0xff]  ;;  %v13817_v42 = vpack.c.bf16 %v633_v39, %v632_v38  ;;  %v635_v45 = vld [vmem:[#allocation8 + $0xf8] sm:$0xff] }
  0xc1   : > { %17858 = vst [vmem:[#allocation24_spill] sm:$0xff] %v15773_v37  ;;  %v15777_v43 = vpack.c.bf16 %v4146_v41, %v4145_v40  ;;  %v4147_v46 = vld [vmem:[#allocation8 + $0x270] sm:$0xff]  ;;  %v4148_v47 = vld [vmem:[#allocation8 + $0x278] sm:$0xff]  ;;  %v13821_v48 = vpack.c.bf16 %v635_v45, %v634_v44  ;;  %v475_v50 = vld [vmem:[#allocation8] sm:$0xff]  ;;  %p15367_p1 = pnand %p15366_p10, %p15360_p6 }
  0xc2   : > { %13804 = vmatpush3.bf16.msra.mxu1 %v13801_v16  ;;  %v15781_v49 = vpack.c.bf16 %v4148_v47, %v4147_v46  ;;  %v476_v51 = vld [vmem:[#allocation8 + $0x8] sm:$0xff]  ;;  %v5112_v52 = vld [vmem:[#allocation8 + $0x280] sm:$0xff]  ;;  %v5114_v56 = vld [vmem:[#allocation8 + $0x290] sm:$0xff] }
  0xc3   : > { %13932 = vmatpush3.bf16.msra.mxu0 %v15756_v17  ;;  %13806 = vmatprep.subr.bf16.mxu1 %v13805_v22  ;;  %17859 = vst [vmem:[#allocation25_spill] sm:$0xff] %v15777_v43  ;;  %v5113_v53 = vld [vmem:[#allocation8 + $0x288] sm:$0xff]  ;;  %v13825_v54 = vpack.c.bf16 %v476_v51, %v475_v50  ;;  %v5115_v57 = vld [vmem:[#allocation8 + $0x298] sm:$0xff]  ;;  %v477_v59 = vld [vmem:[#allocation8 + $0x10] sm:$0xff] }
  0xc4   : > { %13934 = vmatprep.subr.bf16.mxu0 %v15760_v23  ;;  %17860 = vst [vmem:[#allocation26_spill] sm:$0xff] %v15781_v49  ;;  %v13953_v55 = vpack.c.bf16 %v5113_v53, %v5112_v52  ;;  %v492_v58 = vld [vmem:[%s15737_s28 + $0x8] sm:$0xff]  ;;  %v478_v60 = vld [vmem:[#allocation8 + $0x18] sm:$0xff]  ;;  %v493_v62 = vld [vmem:[%s15737_s28 + $0x10] sm:$0xff]  ;;  %v13957_v63 = vpack.c.bf16 %v5115_v57, %v5114_v56 }
  0xc5   : > { %v9835_v61 = vld [vmem:[%s15737_s28 + $0x28] sm:$0xff]  ;;  %v9836_v0 = vld [vmem:[%s15737_s28 + $0x30] sm:$0xff]  ;;  %v13829_v1 = vpack.c.bf16 %v478_v60, %v477_v59  ;;  %v5116_v2 = vld [vmem:[#allocation8 + $0x2a0] sm:$0xff] }
  0xc6   : > { %13808 = vmatpush3.bf16.msra.mxu1 %v13805_v22  ;;  %v5117_v3 = vld [vmem:[#allocation8 + $0x2a8] sm:$0xff]  ;;  %v494_v4 = vld [vmem:[%s15737_s28 + $0x18] sm:$0xff]  ;;  %v479_v5 = vld [vmem:[#allocation8 + $0x20] sm:$0xff] }
  0xc7   : > { %13936 = vmatpush3.bf16.msra.mxu0 %v15760_v23  ;;  %13810 = vmatprep.subr.bf16.mxu1 %v13809_v30  ;;  %v480_v6 = vld [vmem:[#allocation8 + $0x28] sm:$0xff]  ;;  %v9837_v8 = vld [vmem:[%s15737_s28 + $0x38] sm:$0xff]  ;;  %v9838_v9 = vld [vmem:[%s15737_s28 + $0x40] sm:$0xff]  ;;  %v13961_v10 = vpack.c.bf16 %v5117_v3, %v5116_v2 }
  0xc8   : > { %13938 = vmatprep.subr.bf16.mxu0 %v15769_v31  ;;  %v5118_v11 = vld [vmem:[#allocation8 + $0x2b0] sm:$0xff]  ;;  %v5119_v13 = vld [vmem:[#allocation8 + $0x2b8] sm:$0xff]  ;;  %v13833_v14 = vpack.c.bf16 %v480_v6, %v479_v5  ;;  %v9839_v18 = vld [vmem:[%s15737_s28 + $0x48] sm:$0xff] }
  0xc9   : > { %v481_v15 = vld [vmem:[#allocation8 + $0x30] sm:$0xff]  ;;  %v482_v16 = vld [vmem:[#allocation8 + $0x38] sm:$0xff]  ;;  %v13965_v20 = vpack.c.bf16 %v5119_v13, %v5118_v11  ;;  %v5120_v21 = vld [vmem:[#allocation8 + $0x2c0] sm:$0xff] }
  0xca   : > { %13812 = vmatpush3.bf16.msra.mxu1 %v13809_v30  ;;  %v9840_v19 = vld [vmem:[%s15737_s28 + $0x50] sm:$0xff]  ;;  %v5121_v22 = vld [vmem:[#allocation8 + $0x2c8] sm:$0xff]  ;;  %v13837_v24 = vpack.c.bf16 %v482_v16, %v481_v15  ;;  %v483_v25 = vld [vmem:[#allocation8 + $0x40] sm:$0xff] }
  0xcb   : > { %13940 = vmatpush3.bf16.msra.mxu0 %v15769_v31  ;;  %13814 = vmatprep.subr.bf16.mxu1 %v13813_v36  ;;  %v484_v26 = vld [vmem:[#allocation8 + $0x48] sm:$0xff]  ;;  %v9841_v27 = vld [vmem:[%s15737_s28 + $0x58] sm:$0xff]  ;;  %v9842_v28 = vld [vmem:[%s15737_s28 + $0x60] sm:$0xff] }
  0xcc   : > { %13942 = vmatprep.subr.bf16.mxu0 %v15773_v37  ;;  %v5122_v30 = vld [vmem:[#allocation8 + $0x2d0] sm:$0xff]  ;;  %v5123_v32 = vld [vmem:[#allocation8 + $0x2d8] sm:$0xff]  ;;  %v13841_v33 = vpack.c.bf16 %v484_v26, %v483_v25  ;;  %v9843_v34 = vld [vmem:[%s15737_s28 + $0x68] sm:$0xff] }
  0xcd   : > { %v9844_v35 = vld [vmem:[%s15737_s28 + $0x70] sm:$0xff]  ;;  %v5124_v38 = vld [vmem:[#allocation8 + $0x2e0] sm:$0xff]  ;;  %v5125_v39 = vld [vmem:[#allocation8 + $0x2e8] sm:$0xff] }
  0xce   : > { %13816 = vmatpush3.bf16.msra.mxu1 %v13813_v36  ;;  %v13973_v36 = vpack.c.bf16 %v5123_v32, %v5122_v30  ;;  %v9845_v40 = vld [vmem:[%s15737_s28 + $0x78] sm:$0xff]  ;;  %v9846_v41 = vld [vmem:[%s15737_s28 + $0x80] sm:$0xff]  ;;  %v5126_v44 = vld [vmem:[#allocation8 + $0x2f0] sm:$0xff] }
  0xcf   : > { %13944 = vmatpush3.bf16.msra.mxu0 %v15773_v37  ;;  %13818 = vmatprep.subr.bf16.mxu1 %v13817_v42  ;;  %v5127_v45 = vld [vmem:[#allocation8 + $0x2f8] sm:$0xff]  ;;  %v9847_v46 = vld [vmem:[%s15737_s28 + $0x88] sm:$0xff]  ;;  %v9848_v47 = vld [vmem:[%s15737_s28 + $0x90] sm:$0xff] }
  0xd0   : > { %13946 = vmatprep.subr.bf16.mxu0 %v15777_v43  ;;  %v6091_v50 = vld [vmem:[#allocation8 + $0x300] sm:$0xff]  ;;  %v6092_v51 = vld [vmem:[#allocation8 + $0x308] sm:$0xff]  ;;  %v9849_v52 = vld [vmem:[%s15737_s28 + $0x98] sm:$0xff] }
  0xd1   : > { %v9850_v53 = vld [vmem:[%s15737_s28 + $0xa0] sm:$0xff]  ;;  %v9852_v56 = vld [vmem:[%s15737_s28 + $0xb0] sm:$0xff]  ;;  %v9853_v60 = vld [vmem:[%s15737_s28 + $0xb8] sm:$0xff] }
  0xd2   : > { %13820 = vmatpush3.bf16.msra.mxu1 %v13817_v42  ;;  %v13977_v42 = vpack.c.bf16 %v5125_v39, %v5124_v38  ;;  %v485_v57 = vld [vmem:[#allocation8 + $0x50] sm:$0xff]  ;;  %v9859_v2 = vld [vmem:[%s15737_s28 + $0xe8] sm:$0xff]  ;;  %v9862_v5 = vld [vmem:[%s15737_s28 + $0x100] sm:$0xff] }
  0xd3   : > { %13948 = vmatpush3.bf16.msra.mxu0 %v15777_v43  ;;  %13822 = vmatprep.subr.bf16.mxu1 %v13821_v48  ;;  %v9860_v3 = vld [vmem:[%s15737_s28 + $0xf0] sm:$0xff]  ;;  %v9863_v6 = vld [vmem:[%s15737_s28 + $0x108] sm:$0xff]  ;;  %v9881_v32 = vld [vmem:[%s15737_s28 + $0x198] sm:$0xff] }
  0xd4   : > { %13950 = vmatprep.subr.bf16.mxu0 %v15781_v49  ;;  %v9867_v11 = vld [vmem:[%s15737_s28 + $0x128] sm:$0xff]  ;;  %v9868_v13 = vld [vmem:[%s15737_s28 + $0x130] sm:$0xff]  ;;  %v490_v38 = vld [vmem:[#allocation8 + $0x78] sm:$0xff] }
  0xd5   : > { %v488_v15 = vld [vmem:[#allocation8 + $0x68] sm:$0xff]  ;;  %v9876_v26 = vld [vmem:[%s15737_s28 + $0x170] sm:$0xff]  ;;  %v16264_v43 = vld [vmem:[%s15730_s9 + $0x1e0] sm:$0xff] }
  0xd6   : > { %13824 = vmatpush3.bf16.msra.mxu1 %v13821_v48  ;;  %v13981_v48 = vpack.c.bf16 %v5127_v45, %v5126_v44  ;;  %v9875_v25 = vld [vmem:[%s15737_s28 + $0x168] sm:$0xff]  ;;  %v9880_v30 = vld [vmem:[%s15737_s28 + $0x190] sm:$0xff]  ;;  %v9889_v45 = vld [vmem:[%s15737_s28 + $0x1d8] sm:$0xff]  ;;  %17861 = vst [vmem:[#allocation27_spill] sm:$0xff] %v16264_v43 }
  0xd7   : > { %13952 = vmatpush3.bf16.msra.mxu0 %v15781_v49  ;;  %13826 = vmatprep.subr.bf16.mxu1 %v13825_v54  ;;  %v9888_v44 = vld [vmem:[%s15737_s28 + $0x1d0] sm:$0xff]  ;;  %v16260_v49 = vld [vmem:[%s15730_s9 + $0x1d8] sm:$0xff]  ;;  %v16270_v37 = vld [vmem:[%s15730_s9 + $0x1e8] sm:$0xff] }
  0xd8   : > { %13954 = vmatprep.subr.bf16.mxu0 %v13953_v55  ;;  %17862 = vst [vmem:[#allocation28_spill] sm:$0xff] %v16270_v37  ;;  %v16274_v31 = vld [vmem:[%s15730_s9 + $0x1f0] sm:$0xff]  ;;  %v16280_v23 = vld [vmem:[%s15730_s9 + $0x1f8] sm:$0xff]  ;;  %v16284_v17 = vld [vmem:[%s15730_s9 + $0x200] sm:$0xff] }
  0xd9   : > { %11810 = vmatmul.mubr.f32.vlgmr.msra.gmra.mrb[0].mxu1 %v492_v58  ;;  %v486_v58 = vld [vmem:[#allocation8 + $0x58] sm:$0xff]  ;;  %17863 = vst [vmem:[#allocation29_spill] sm:$0xff] %v16274_v31  ;;  %17864 = vst [vmem:[#allocation30_spill] sm:$0xff] %v16280_v23  ;;  %v16289_v7 = vld [vmem:[%s15730_s9 + $0x208] sm:$0xff] }
  0xda   : > { %12706 = vmatmul.mubr.f32.vlgmr.msra.gmra.mrb[0].mxu0 %v9835_v61  ;;  %13828 = vmatpush3.bf16.msra.mxu1 %v13825_v54  ;;  %v15806_v54 = vpack.c.bf16 %v6092_v51, %v6091_v50  ;;  %v13845_v59 = vpack.c.bf16 %v486_v58, %v485_v57  ;;  %v9893_v50 = vld [vmem:[%s15737_s28 + $0x1f8] sm:$0xff]  ;;  %v9894_v51 = vld [vmem:[%s15737_s28 + $0x200] sm:$0xff]  ;;  %v6093_v57 = vld [vmem:[#allocation8 + $0x310] sm:$0xff]  ;;  %17865 = vst [vmem:[#allocation31_spill] sm:$0xff] %v16284_v17 }
  0xdb   : > { %13956 = vmatpush3.bf16.msra.mxu0 %v13953_v55  ;;  %11812 = vmatprep.mubr.f32.mxu1 %v493_v62  ;;  %v9851_v55 = vld [vmem:[%s15737_s28 + $0xa8] sm:$0xff]  ;;  %v6094_v58 = vld [vmem:[#allocation8 + $0x318] sm:$0xff] }
  0xdc   : > { %12708 = vmatprep.mubr.f32.mxu0 %v9836_v0  ;;  %13958 = vmatprep.subr.bf16.mxu0 %v13957_v63  ;;  %v9855_v62 = vld [vmem:[%s15737_s28 + $0xc8] sm:$0xff]  ;;  %v7073_v12 = vld [vmem:[#allocation8 + $0x398] sm:$0xff] }
  0xdd   : > { %11813 = vmatmul.mubr.f32.gmra.mrb[2].mxu1 %v494_v4  ;;  %13830 = vmatprep.subr.bf16.mxu1 %v13829_v1  ;;  %v9861_v4 = vld [vmem:[%s15737_s28 + $0xf8] sm:$0xff] }
  0xde   : > { %12709 = vmatmul.mubr.f32.gmra.mrb[2].mxu0 %v9837_v8  ;;  %11815 = vmatprep.mubr.f32.mxu1 %v15764_v29  ;;  %v13969_v29 = vpack.c.bf16 %v5121_v22, %v5120_v21  ;;  %v9872_v21 = vld [vmem:[%s15737_s28 + $0x150] sm:$0xff]  ;;  %v9873_v22 = vld [vmem:[%s15737_s28 + $0x158] sm:$0xff] }
  0xdf   : > { %12711 = vmatprep.mubr.f32.mxu0 %v9838_v9  ;;  %13960 = vmatpush3.bf16.msra.mxu0 %v13957_v63  ;;  %v9856_v63 = vld [vmem:[%s15737_s28 + $0xd0] sm:$0xff] }
  0xe0   : > { %13962 = vmatprep.subr.bf16.mxu0 %v13961_v10  ;;  %13832 = vmatpush3.bf16.msra.mxu1 %v13829_v1  ;;  %v9858_v1 = vld [vmem:[%s15737_s28 + $0xe0] sm:$0xff] }
  0xe1   : > { %11816 = vmatmul.mubr.f32.gmra.mrb[4].mxu1 %v9835_v61  ;;  %13834 = vmatprep.subr.bf16.mxu1 %v13833_v14  ;;  %v9854_v61 = vld [vmem:[%s15737_s28 + $0xc0] sm:$0xff] }
  0xe2   : > { %12712 = vmatmul.mubr.f32.gmra.mrb[4].mxu0 %v9839_v18  ;;  %11818 = vmatprep.mubr.f32.mxu1 %v9836_v0  ;;  %v9857_v0 = vld [vmem:[%s15737_s28 + $0xd8] sm:$0xff] }
  0xe3   : > { %12714 = vmatprep.mubr.f32.mxu0 %v9840_v19  ;;  %13964 = vmatpush3.bf16.msra.mxu0 %v13961_v10  ;;  %v9866_v10 = vld [vmem:[%s15737_s28 + $0x120] sm:$0xff] }
  0xe4   : > { %13966 = vmatprep.subr.bf16.mxu0 %v13965_v20  ;;  %13836 = vmatpush3.bf16.msra.mxu1 %v13833_v14  ;;  %v487_v14 = vld [vmem:[#allocation8 + $0x60] sm:$0xff] }
  0xe5   : > { %11819 = vmatmul.mubr.f32.gmra.mrb[6].mxu1 %v9837_v8  ;;  %13838 = vmatprep.subr.bf16.mxu1 %v13837_v24  ;;  %v9864_v8 = vld [vmem:[%s15737_s28 + $0x110] sm:$0xff]  ;;  %v13849_v16 = vpack.c.bf16 %v488_v15, %v487_v14  ;;  %v6099_v15 = vld [vmem:[#allocation8 + $0x340] sm:$0xff] }
  0xe6   : > { %12715 = vmatmul.mubr.f32.gmra.mrb[6].mxu0 %v9841_v27  ;;  %11821 = vmatprep.mubr.f32.mxu1 %v9838_v9  ;;  %v9865_v9 = vld [vmem:[%s15737_s28 + $0x118] sm:$0xff] }
  0xe7   : > { %12717 = vmatprep.mubr.f32.mxu0 %v9842_v28  ;;  %13968 = vmatpush3.bf16.msra.mxu0 %v13965_v20  ;;  %v9871_v20 = vld [vmem:[%s15737_s28 + $0x148] sm:$0xff] }
  0xe8   : > { %13970 = vmatprep.subr.bf16.mxu0 %v13969_v29  ;;  %13840 = vmatpush3.bf16.msra.mxu1 %v13837_v24  ;;  %v9874_v24 = vld [vmem:[%s15737_s28 + $0x160] sm:$0xff] }
  0xe9   : > { %11822 = vmatmul.mubr.f32.gmra.mrb[8].mxu1 %v9839_v18  ;;  %13842 = vmatprep.subr.bf16.mxu1 %v13841_v33  ;;  %v9869_v18 = vld [vmem:[%s15737_s28 + $0x138] sm:$0xff] }
  0xea   : > { %12718 = vmatmul.mubr.f32.gmra.mrb[8].mxu0 %v9843_v34  ;;  %11824 = vmatprep.mubr.f32.mxu1 %v9840_v19  ;;  %v9870_v19 = vld [vmem:[%s15737_s28 + $0x140] sm:$0xff] }
  0xeb   : > { %12720 = vmatprep.mubr.f32.mxu0 %v9844_v35  ;;  %13972 = vmatpush3.bf16.msra.mxu0 %v13969_v29  ;;  %v9879_v29 = vld [vmem:[%s15737_s28 + $0x188] sm:$0xff] }
  0xec   : > { %13974 = vmatprep.subr.bf16.mxu0 %v13973_v36  ;;  %13844 = vmatpush3.bf16.msra.mxu1 %v13841_v33  ;;  %v9882_v33 = vld [vmem:[%s15737_s28 + $0x1a0] sm:$0xff] }
  0xed   : > { %11825 = vmatmul.mubr.f32.gmra.mrb[10].mxu1 %v9841_v27  ;;  %13846 = vmatprep.subr.bf16.mxu1 %v13845_v59  ;;  %v9877_v27 = vld [vmem:[%s15737_s28 + $0x178] sm:$0xff] }
  0xee   : > { %12721 = vmatmul.mubr.f32.gmra.mrb[10].mxu0 %v9845_v40  ;;  %11827 = vmatprep.mubr.f32.mxu1 %v9842_v28  ;;  %v9878_v28 = vld [vmem:[%s15737_s28 + $0x180] sm:$0xff] }
  0xef   : > { %12723 = vmatprep.mubr.f32.mxu0 %v9846_v41  ;;  %13976 = vmatpush3.bf16.msra.mxu0 %v13973_v36  ;;  %v489_v36 = vld [vmem:[#allocation8 + $0x70] sm:$0xff] }
  0xf0   : > { %13978 = vmatprep.subr.bf16.mxu0 %v13977_v42  ;;  %13848 = vmatpush3.bf16.msra.mxu1 %v13845_v59  ;;  %v13853_v39 = vpack.c.bf16 %v490_v38, %v489_v36  ;;  %v9963_v59 = vld [vmem:[%s15743_s13 + $0x28] sm:$0xff]  ;;  %v9976_v36 = vld [vmem:[%s15743_s13 + $0x90] sm:$0xff]  ;;  %v570_v38 = vld [vmem:[%s15737_s28 + $0x278] sm:$0xff] }
  0xf1   : > { %11828 = vmatmul.mubr.f32.gmra.mrb[12].mxu1 %v9843_v34  ;;  %13850 = vmatprep.subr.bf16.mxu1 %v13849_v16  ;;  %v9883_v34 = vld [vmem:[%s15737_s28 + $0x1a8] sm:$0xff] }
  0xf2   : > { %12724 = vmatmul.mubr.f32.gmra.mrb[12].mxu0 %v9847_v46  ;;  %11830 = vmatprep.mubr.f32.mxu1 %v9844_v35  ;;  %v9884_v35 = vld [vmem:[%s15737_s28 + $0x1b0] sm:$0xff] }
  0xf3   : > { %12726 = vmatprep.mubr.f32.mxu0 %v9848_v47  ;;  %13980 = vmatpush3.bf16.msra.mxu0 %v13977_v42  ;;  %v9887_v42 = vld [vmem:[%s15737_s28 + $0x1c8] sm:$0xff] }
  0xf4   : > { %13982 = vmatprep.subr.bf16.mxu0 %v13981_v48  ;;  %13852 = vmatpush3.bf16.msra.mxu1 %v13849_v16  ;;  %v6100_v16 = vld [vmem:[#allocation8 + $0x348] sm:$0xff] }
  0xf5   : > { %11831 = vmatmul.mubr.f32.gmra.mrb[14].mxu1 %v9845_v40  ;;  %v9885_v40 = vld [vmem:[%s15737_s28 + $0x1b8] sm:$0xff]  ;;  %13854 = vmatprep.subr.bf16.mxu1 %v13853_v39 }
  0xf6   : > { %12727 = vmatmul.mubr.f32.gmra.mrb[14].mxu0 %v9849_v52  ;;  %11833 = vmatprep.mubr.f32.mxu1 %v9846_v41  ;;  %v9886_v41 = vld [vmem:[%s15737_s28 + $0x1c0] sm:$0xff] }
  0xf7   : > { %12729 = vmatprep.mubr.f32.mxu0 %v9850_v53  ;;  %13984 = vmatpush3.bf16.msra.mxu0 %v13981_v48  ;;  %v9892_v48 = vld [vmem:[%s15737_s28 + $0x1f0] sm:$0xff] }
  0xf8   : > { %13986 = vmatprep.subr.bf16.mxu0 %v15806_v54  ;;  %13856 = vmatpush3.bf16.msra.mxu1 %v13853_v39  ;;  %v9977_v39 = vld [vmem:[%s15743_s13 + $0x98] sm:$0xff] }
  0xf9   : > { %11834 = vmatmul.mubr.f32.gmra.mrb[16].mxu1 %v9847_v46  ;;  %v9890_v46 = vld [vmem:[%s15737_s28 + $0x1e0] sm:$0xff] }
  0xfa   : > { %12730 = vmatmul.mubr.f32.gmra.mrb[16].mxu0 %v9851_v55  ;;  %11836 = vmatprep.mubr.f32.mxu1 %v9848_v47  ;;  %v9891_v47 = vld [vmem:[%s15737_s28 + $0x1e8] sm:$0xff] }
  0xfb   : > { %12732 = vmatprep.mubr.f32.mxu0 %v9852_v56 }
  0xfd   : > { %11837 = vmatmul.mubr.f32.gmra.mrb[18].mxu1 %v9849_v52  ;;  %v9895_v52 = vld [vmem:[%s15737_s28 + $0x208] sm:$0xff] }
  0xfe   : > { %12733 = vmatmul.mubr.f32.gmra.mrb[18].mxu0 %v9853_v60  ;;  %11839 = vmatprep.mubr.f32.mxu1 %v9850_v53  ;;  %v9896_v53 = vld [vmem:[%s15737_s28 + $0x210] sm:$0xff] }
  0xff   : > { %12735 = vmatprep.mubr.f32.mxu0 %v9854_v61 }
 0x101   : > { %11840 = vmatmul.mubr.f32.gmra.mrb[20].mxu1 %v9851_v55  ;;  %v9897_v55 = vld [vmem:[%s15737_s28 + $0x218] sm:$0xff] }
 0x102   : > { %12736 = vmatmul.mubr.f32.gmra.mrb[20].mxu0 %v9855_v62  ;;  %11842 = vmatprep.mubr.f32.mxu1 %v9852_v56  ;;  %v9962_v56 = vld [vmem:[%s15743_s13 + $0x20] sm:$0xff] }
 0x103   : > { %12738 = vmatprep.mubr.f32.mxu0 %v9856_v63 }
 0x105   : > { %11843 = vmatmul.mubr.f32.gmra.mrb[22].mxu1 %v9853_v60  ;;  %v9964_v60 = vld [vmem:[%s15743_s13 + $0x30] sm:$0xff] }
 0x106   : > { %12739 = vmatmul.mubr.f32.gmra.mrb[22].mxu0 %v9857_v0  ;;  %11845 = vmatprep.mubr.f32.mxu1 %v9854_v61  ;;  %v13989_v61 = vpack.c.bf16 %v6094_v58, %v6093_v57  ;;  %v9983_v57 = vld [vmem:[%s15743_s13 + $0xc8] sm:$0xff]  ;;  %v577_v58 = vld [vmem:[%s15737_s28 + $0x2b0] sm:$0xff] }
 0x107   : > { %12741 = vmatprep.mubr.f32.mxu0 %v9858_v1 }
 0x109   : > { %11846 = vmatmul.mubr.f32.gmra.mrb[24].mxu1 %v9855_v62  ;;  %v6095_v62 = vld [vmem:[#allocation8 + $0x320] sm:$0xff] }
 0x10a   : > { %12742 = vmatmul.mubr.f32.gmra.mrb[24].mxu0 %v9859_v2  ;;  %11848 = vmatprep.mubr.f32.mxu1 %v9856_v63  ;;  %v6096_v63 = vld [vmem:[#allocation8 + $0x328] sm:$0xff] }
 0x10b   : > { %12744 = vmatprep.mubr.f32.mxu0 %v9860_v3 }
 0x10d   : > { %11849 = vmatmul.mubr.f32.gmra.mrb[26].mxu1 %v9857_v0  ;;  %v2175_v0 = vld [vmem:[#allocation8 + $0x100] sm:$0xff] }
 0x10e   : > { %12745 = vmatmul.mubr.f32.gmra.mrb[26].mxu0 %v9861_v4  ;;  %11851 = vmatprep.mubr.f32.mxu1 %v9858_v1  ;;  %v2176_v1 = vld [vmem:[#allocation8 + $0x108] sm:$0xff] }
 0x10f   : > { %12747 = vmatprep.mubr.f32.mxu0 %v9862_v5 }
 0x111   : > { %11852 = vmatmul.mubr.f32.gmra.mrb[28].mxu1 %v9859_v2  ;;  %v15859_v2 = vpack.c.bf16 %v2176_v1, %v2175_v0  ;;  %v580_v0 = vld [vmem:[%s15737_s28 + $0x2c8] sm:$0xff] }
 0x112   : > { %12748 = vmatmul.mubr.f32.gmra.mrb[28].mxu0 %v9863_v6  ;;  %11854 = vmatprep.mubr.f32.mxu1 %v9860_v3  ;;  %v9965_v3 = vld [vmem:[%s15743_s13 + $0x38] sm:$0xff]  ;;  %v9987_v1 = vld [vmem:[%s15743_s13 + $0xe8] sm:$0xff] }
 0x113   : > { %12750 = vmatprep.mubr.f32.mxu0 %v9864_v8  ;;  %13858 = vmatprep.subr.bf16.mxu1 %v15859_v2 }
 0x115   : > { %11855 = vmatmul.mubr.f32.gmra.mrb[30].mxu1 %v9861_v4  ;;  %v559_v4 = vld [vmem:[%s15737_s28 + $0x220] sm:$0xff] }
 0x116   : > { %12751 = vmatmul.mubr.f32.gmra.mrb[30].mxu0 %v9865_v9  ;;  %11857 = vmatprep.mubr.f32.mxu1 %v9862_v5  ;;  %v9966_v5 = vld [vmem:[%s15743_s13 + $0x40] sm:$0xff] }
 0x117   : > { %12753 = vmatprep.mubr.f32.mxu0 %v9866_v10 }
 0x119   : > { %11858 = vmatmul.mubr.f32.gmra.mrb[32].mxu1 %v9863_v6  ;;  %v13993_v6 = vpack.c.bf16 %v6096_v63, %v6095_v62  ;;  %v579_v62 = vld [vmem:[%s15737_s28 + $0x2c0] sm:$0xff] }
 0x11a   : > { %12754 = vmatmul.mubr.f32.gmra.mrb[32].mxu0 %v9867_v11  ;;  %11860 = vmatprep.mubr.f32.mxu1 %v9864_v8  ;;  %v6097_v8 = vld [vmem:[#allocation8 + $0x330] sm:$0xff]  ;;  %v9986_v63 = vld [vmem:[%s15743_s13 + $0xe0] sm:$0xff] }
 0x11b   : > { %12756 = vmatprep.mubr.f32.mxu0 %v9868_v13 }
 0x11d   : > { %11861 = vmatmul.mubr.f32.gmra.mrb[34].mxu1 %v9865_v9  ;;  %v6098_v9 = vld [vmem:[#allocation8 + $0x338] sm:$0xff] }
 0x11e   : > { %12757 = vmatmul.mubr.f32.gmra.mrb[34].mxu0 %v9869_v18  ;;  %11863 = vmatprep.mubr.f32.mxu1 %v9866_v10  ;;  %v560_v10 = vld [vmem:[%s15737_s28 + $0x228] sm:$0xff]  ;;  %v13997_v14 = vpack.c.bf16 %v6098_v9, %v6097_v8  ;;  %v583_v8 = vld [vmem:[%s15737_s28 + $0x2e0] sm:$0xff] }
 0x11f   : > { %12759 = vmatprep.mubr.f32.mxu0 %v9870_v19  ;;  %v9990_v9 = vld [vmem:[%s15743_s13 + $0x100] sm:$0xff] }
 0x121   : > { %11864 = vmatmul.mubr.f32.gmra.mrb[36].mxu1 %v9867_v11  ;;  %v561_v11 = vld [vmem:[%s15737_s28 + $0x230] sm:$0xff] }
 0x122   : > { %12760 = vmatmul.mubr.f32.gmra.mrb[36].mxu0 %v9871_v20  ;;  %11866 = vmatprep.mubr.f32.mxu1 %v9868_v13  ;;  %v9968_v13 = vld [vmem:[%s15743_s13 + $0x50] sm:$0xff] }
 0x123   : > { %12762 = vmatprep.mubr.f32.mxu0 %v9872_v21 }
 0x125   : > { %11867 = vmatmul.mubr.f32.gmra.mrb[38].mxu1 %v9869_v18  ;;  %v562_v18 = vld [vmem:[%s15737_s28 + $0x238] sm:$0xff] }
 0x126   : > { %12763 = vmatmul.mubr.f32.gmra.mrb[38].mxu0 %v9873_v22  ;;  %11869 = vmatprep.mubr.f32.mxu1 %v9870_v19  ;;  %v9969_v19 = vld [vmem:[%s15743_s13 + $0x58] sm:$0xff] }
 0x127   : > { %12765 = vmatprep.mubr.f32.mxu0 %v9874_v24 }
 0x129   : > { %11870 = vmatmul.mubr.f32.gmra.mrb[40].mxu1 %v9871_v20  ;;  %v563_v20 = vld [vmem:[%s15737_s28 + $0x240] sm:$0xff] }
 0x12a   : > { %12766 = vmatmul.mubr.f32.gmra.mrb[40].mxu0 %v9875_v25  ;;  %11872 = vmatprep.mubr.f32.mxu1 %v9872_v21  ;;  %v9970_v21 = vld [vmem:[%s15743_s13 + $0x60] sm:$0xff] }
 0x12b   : > { %12768 = vmatprep.mubr.f32.mxu0 %v9876_v26 }
 0x12d   : > { %11873 = vmatmul.mubr.f32.gmra.mrb[42].mxu1 %v9873_v22  ;;  %v14001_v22 = vpack.c.bf16 %v6100_v16, %v6099_v15  ;;  %v9993_v15 = vld [vmem:[%s15743_s13 + $0x118] sm:$0xff]  ;;  %v587_v16 = vld [vmem:[%s15737_s28 + $0x300] sm:$0xff] }
 0x12e   : > { %12769 = vmatmul.mubr.f32.gmra.mrb[42].mxu0 %v9877_v27  ;;  %11875 = vmatprep.mubr.f32.mxu1 %v9874_v24  ;;  %v564_v24 = vld [vmem:[%s15737_s28 + $0x248] sm:$0xff] }
 0x12f   : > { %12771 = vmatprep.mubr.f32.mxu0 %v9878_v28 }
 0x131   : > { %11876 = vmatmul.mubr.f32.gmra.mrb[44].mxu1 %v9875_v25  ;;  %v9971_v25 = vld [vmem:[%s15743_s13 + $0x68] sm:$0xff] }
 0x132   : > { %12772 = vmatmul.mubr.f32.gmra.mrb[44].mxu0 %v9879_v29  ;;  %11878 = vmatprep.mubr.f32.mxu1 %v9876_v26  ;;  %v565_v26 = vld [vmem:[%s15737_s28 + $0x250] sm:$0xff] }
 0x133   : > { %12774 = vmatprep.mubr.f32.mxu0 %v9880_v30 }
 0x135   : > { %11879 = vmatmul.mubr.f32.gmra.mrb[46].mxu1 %v9877_v27  ;;  %v9972_v27 = vld [vmem:[%s15743_s13 + $0x70] sm:$0xff] }
 0x136   : > { %12775 = vmatmul.mubr.f32.gmra.mrb[46].mxu0 %v9881_v32  ;;  %11881 = vmatprep.mubr.f32.mxu1 %v9878_v28  ;;  %v566_v28 = vld [vmem:[%s15737_s28 + $0x258] sm:$0xff] }
 0x137   : > { %12777 = vmatprep.mubr.f32.mxu0 %v9882_v33 }
 0x139   : > { %11882 = vmatmul.mubr.f32.gmra.mrb[48].mxu1 %v9879_v29  ;;  %v9973_v29 = vld [vmem:[%s15743_s13 + $0x78] sm:$0xff] }
 0x13a   : > { %12778 = vmatmul.mubr.f32.gmra.mrb[48].mxu0 %v9883_v34  ;;  %11884 = vmatprep.mubr.f32.mxu1 %v9880_v30  ;;  %v567_v30 = vld [vmem:[%s15737_s28 + $0x260] sm:$0xff] }
 0x13b   : > { %12780 = vmatprep.mubr.f32.mxu0 %v9884_v35 }
 0x13d   : > { %11885 = vmatmul.mubr.f32.gmra.mrb[50].mxu1 %v9881_v32  ;;  %v9974_v32 = vld [vmem:[%s15743_s13 + $0x80] sm:$0xff] }
 0x13e   : > { %12781 = vmatmul.mubr.f32.gmra.mrb[50].mxu0 %v9885_v40  ;;  %11887 = vmatprep.mubr.f32.mxu1 %v9882_v33  ;;  %v568_v33 = vld [vmem:[%s15737_s28 + $0x268] sm:$0xff] }
 0x13f   : > { %12783 = vmatprep.mubr.f32.mxu0 %v9886_v41 }
 0x141   : > { %11888 = vmatmul.mubr.f32.gmra.mrb[52].mxu1 %v9883_v34  ;;  %v9975_v34 = vld [vmem:[%s15743_s13 + $0x88] sm:$0xff] }
 0x142   : > { %12784 = vmatmul.mubr.f32.gmra.mrb[52].mxu0 %v9887_v42  ;;  %11890 = vmatprep.mubr.f32.mxu1 %v9884_v35  ;;  %v569_v35 = vld [vmem:[%s15737_s28 + $0x270] sm:$0xff] }
 0x143   : > { %12786 = vmatprep.mubr.f32.mxu0 %v9888_v44 }
 0x145   : > { %11891 = vmatmul.mubr.f32.gmra.mrb[54].mxu1 %v9885_v40  ;;  %v571_v40 = vld [vmem:[%s15737_s28 + $0x280] sm:$0xff] }
 0x146   : > { %12787 = vmatmul.mubr.f32.gmra.mrb[54].mxu0 %v9889_v45  ;;  %11893 = vmatprep.mubr.f32.mxu1 %v9886_v41  ;;  %v9978_v41 = vld [vmem:[%s15743_s13 + $0xa0] sm:$0xff] }
 0x147   : > { %12789 = vmatprep.mubr.f32.mxu0 %v9890_v46 }
 0x149   : > { %11894 = vmatmul.mubr.f32.gmra.mrb[56].mxu1 %v9887_v42  ;;  %v572_v42 = vld [vmem:[%s15737_s28 + $0x288] sm:$0xff] }
 0x14a   : > { %12790 = vmatmul.mubr.f32.gmra.mrb[56].mxu0 %v9891_v47  ;;  %11896 = vmatprep.mubr.f32.mxu1 %v9888_v44  ;;  %v9979_v44 = vld [vmem:[%s15743_s13 + $0xa8] sm:$0xff] }
 0x14b   : > { %12792 = vmatprep.mubr.f32.mxu0 %v9892_v48 }
 0x14d   : > { %11897 = vmatmul.mubr.f32.gmra.mrb[58].mxu1 %v9889_v45  ;;  %v573_v45 = vld [vmem:[%s15737_s28 + $0x290] sm:$0xff] }
 0x14e   : > { %12793 = vmatmul.mubr.f32.gmra.mrb[58].mxu0 %v9893_v50  ;;  %11899 = vmatprep.mubr.f32.mxu1 %v9890_v46  ;;  %v9980_v46 = vld [vmem:[%s15743_s13 + $0xb0] sm:$0xff] }
 0x14f   : > { %12795 = vmatprep.mubr.f32.mxu0 %v9894_v51 }
 0x151   : > { %11900 = vmatmul.mubr.f32.gmra.mrb[60].mxu1 %v9891_v47  ;;  %v574_v47 = vld [vmem:[%s15737_s28 + $0x298] sm:$0xff] }
 0x152   : > { %12796 = vmatmul.mubr.f32.gmra.mrb[60].mxu0 %v9895_v52  ;;  %11902 = vmatprep.mubr.f32.mxu1 %v9892_v48  ;;  %v6101_v48 = vld [vmem:[#allocation8 + $0x350] sm:$0xff] }
 0x153   : > { %12798 = vmatprep.mubr.f32.mxu0 %v9896_v53 }
 0x155   : > { %11903 = vmatmul.mubr.f32.gmra.mrb[62].mxu1 %v9893_v50  ;;  %v6102_v50 = vld [vmem:[#allocation8 + $0x358] sm:$0xff] }
 0x156   : > { %12799 = vmatmul.mubr.f32.gmra.mrb[62].mxu0 %v9897_v55  ;;  %11905 = vmatprep.mubr.f32.mxu1 %v9894_v51  ;;  %v9981_v51 = vld [vmem:[%s15743_s13 + $0xb8] sm:$0xff] }
 0x157   : > { %12929 = vmatprep.mubr.f32.mxu0 %v9962_v56  ;;  %v576_v56 = vld [vmem:[%s15737_s28 + $0x2a8] sm:$0xff] }
 0x159   : > { %11906 = vmatmul.mubr.f32.gmra.mrb[64].mxu1 %v9895_v52  ;;  %v575_v52 = vld [vmem:[%s15737_s28 + $0x2a0] sm:$0xff] }
 0x15a   : > { %12930 = vmatmul.mubr.f32.vlgmr.msra.gmra.mrb[0].mxu0 %v9963_v59  ;;  %11908 = vmatprep.mubr.f32.mxu1 %v9896_v53  ;;  %v14005_v53 = vpack.c.bf16 %v6102_v50, %v6101_v48  ;;  %v9984_v59 = vld [vmem:[%s15743_s13 + $0xd0] sm:$0xff]  ;;  %v599_v48 = vld [vmem:[%s15737_s28 + $0x360] sm:$0xff] }
 0x15b   : > { %13988 = vmatpush3.bf16.msra.mxu0 %v15806_v54  ;;  %12932 = vmatprep.mubr.f32.mxu0 %v9964_v60  ;;  %v9967_v54 = vld [vmem:[%s15743_s13 + $0x48] sm:$0xff]  ;;  %v578_v60 = vld [vmem:[%s15737_s28 + $0x2b8] sm:$0xff]  ;;  %v10006_v50 = vld [vmem:[%s15743_s13 + $0x180] sm:$0xff] }
 0x15c   : > { %13990 = vmatprep.subr.bf16.mxu0 %v13989_v61 }
 0x15d   : > { %11909 = vmatmul.mubr.f32.gmra.mrb[66].mxu1 %v9897_v55  ;;  %v9982_v55 = vld [vmem:[%s15743_s13 + $0xc0] sm:$0xff] }
 0x15e   : > { %12933 = vmatmul.mubr.f32.gmra.mrb[2].mxu0 %v9965_v3  ;;  %11911 = vmatprep.mubr.f32.mxu1 %v559_v4  ;;  %v581_v3 = vld [vmem:[%s15737_s28 + $0x2d0] sm:$0xff] }
 0x15f   : > { %12935 = vmatprep.mubr.f32.mxu0 %v9966_v5  ;;  %13992 = vmatpush3.bf16.msra.mxu0 %v13989_v61  ;;  %v9985_v61 = vld [vmem:[%s15743_s13 + $0xd8] sm:$0xff]  ;;  %v9988_v4 = vld [vmem:[%s15743_s13 + $0xf0] sm:$0xff] }
 0x160   : > { %13994 = vmatprep.subr.bf16.mxu0 %v13993_v6  ;;  %v582_v5 = vld [vmem:[%s15737_s28 + $0x2d8] sm:$0xff] }
 0x161   : > { %11912 = vmatmul.mubr.f32.gmra.mrb[68].mxu1 %v560_v10  ;;  %v584_v10 = vld [vmem:[%s15737_s28 + $0x2e8] sm:$0xff] }
 0x162   : > { %12936 = vmatmul.mubr.f32.gmra.mrb[4].mxu0 %v9967_v54  ;;  %11914 = vmatprep.mubr.f32.mxu1 %v561_v11  ;;  %v9991_v54 = vld [vmem:[%s15743_s13 + $0x108] sm:$0xff]  ;;  %v585_v11 = vld [vmem:[%s15737_s28 + $0x2f0] sm:$0xff] }
 0x163   : > { %12938 = vmatprep.mubr.f32.mxu0 %v9968_v13  ;;  %13996 = vmatpush3.bf16.msra.mxu0 %v13993_v6  ;;  %v9989_v6 = vld [vmem:[%s15743_s13 + $0xf8] sm:$0xff]  ;;  %v9992_v13 = vld [vmem:[%s15743_s13 + $0x110] sm:$0xff] }
 0x164   : > { %13998 = vmatprep.subr.bf16.mxu0 %v13997_v14 }
 0x165   : > { %11915 = vmatmul.mubr.f32.gmra.mrb[70].mxu1 %v562_v18  ;;  %v9994_v18 = vld [vmem:[%s15743_s13 + $0x120] sm:$0xff] }
 0x166   : > { %12939 = vmatmul.mubr.f32.gmra.mrb[6].mxu0 %v9969_v19  ;;  %11917 = vmatprep.mubr.f32.mxu1 %v563_v20  ;;  %v588_v19 = vld [vmem:[%s15737_s28 + $0x308] sm:$0xff] }
 0x167   : > { %12941 = vmatprep.mubr.f32.mxu0 %v9970_v21  ;;  %14000 = vmatpush3.bf16.msra.mxu0 %v13997_v14  ;;  %v586_v14 = vld [vmem:[%s15737_s28 + $0x2f8] sm:$0xff]  ;;  %v9995_v20 = vld [vmem:[%s15743_s13 + $0x128] sm:$0xff]  ;;  %v589_v21 = vld [vmem:[%s15737_s28 + $0x310] sm:$0xff] }
 0x168   : > { %14002 = vmatprep.subr.bf16.mxu0 %v14001_v22 }
 0x169   : > { %11918 = vmatmul.mubr.f32.gmra.mrb[72].mxu1 %v564_v24  ;;  %v590_v24 = vld [vmem:[%s15737_s28 + $0x318] sm:$0xff] }
 0x16a   : > { %12942 = vmatmul.mubr.f32.gmra.mrb[8].mxu0 %v9971_v25  ;;  %11920 = vmatprep.mubr.f32.mxu1 %v565_v26  ;;  %v6103_v25 = vld [vmem:[#allocation8 + $0x360] sm:$0xff]  ;;  %v6104_v26 = vld [vmem:[#allocation8 + $0x368] sm:$0xff] }
 0x16b   : > { %12944 = vmatprep.mubr.f32.mxu0 %v9972_v27  ;;  %14004 = vmatpush3.bf16.msra.mxu0 %v14001_v22  ;;  %v9996_v22 = vld [vmem:[%s15743_s13 + $0x130] sm:$0xff]  ;;  %v9997_v27 = vld [vmem:[%s15743_s13 + $0x138] sm:$0xff] }
 0x16c   : > { %14006 = vmatprep.subr.bf16.mxu0 %v14005_v53 }
 0x16d   : > { %11921 = vmatmul.mubr.f32.gmra.mrb[74].mxu1 %v566_v28  ;;  %v591_v28 = vld [vmem:[%s15737_s28 + $0x320] sm:$0xff] }
 0x16e   : > { %12945 = vmatmul.mubr.f32.gmra.mrb[10].mxu0 %v9973_v29  ;;  %11923 = vmatprep.mubr.f32.mxu1 %v567_v30  ;;  %v14009_v29 = vpack.c.bf16 %v6104_v26, %v6103_v25  ;;  %v9998_v30 = vld [vmem:[%s15743_s13 + $0x140] sm:$0xff] }
 0x16f   : > { %12947 = vmatprep.mubr.f32.mxu0 %v9974_v32  ;;  %14008 = vmatpush3.bf16.msra.mxu0 %v14005_v53  ;;  %v592_v32 = vld [vmem:[%s15737_s28 + $0x328] sm:$0xff]  ;;  %v601_v53 = vld [vmem:[%s15737_s28 + $0x370] sm:$0xff]  ;;  %v615_v25 = vld [vmem:[%s15737_s28 + $0x3e0] sm:$0xff] }
 0x170   : > { %14010 = vmatprep.subr.bf16.mxu0 %v14009_v29  ;;  %v10022_v26 = vld [vmem:[%s15743_s13 + $0x200] sm:$0xff] }
 0x171   : > { %11924 = vmatmul.mubr.f32.gmra.mrb[76].mxu1 %v568_v33  ;;  %v9999_v33 = vld [vmem:[%s15743_s13 + $0x148] sm:$0xff] }
 0x172   : > { %12948 = vmatmul.mubr.f32.gmra.mrb[12].mxu0 %v9975_v34  ;;  %11926 = vmatprep.mubr.f32.mxu1 %v569_v35  ;;  %v593_v34 = vld [vmem:[%s15737_s28 + $0x330] sm:$0xff] }
 0x173   : > { %12950 = vmatprep.mubr.f32.mxu0 %v9976_v36  ;;  %14012 = vmatpush3.bf16.msra.mxu0 %v14009_v29  ;;  %v10000_v35 = vld [vmem:[%s15743_s13 + $0x150] sm:$0xff]  ;;  %v594_v36 = vld [vmem:[%s15737_s28 + $0x338] sm:$0xff] }
 0x174   : > { %v617_v29 = vld [vmem:[%s15737_s28 + $0x3f0] sm:$0xff] }
 0x175   : > { %11927 = vmatmul.mubr.f32.gmra.mrb[78].mxu1 %v570_v38  ;;  %v10001_v38 = vld [vmem:[%s15743_s13 + $0x158] sm:$0xff] }
 0x176   : > { %12951 = vmatmul.mubr.f32.gmra.mrb[14].mxu0 %v9977_v39  ;;  %11929 = vmatprep.mubr.f32.mxu1 %v571_v40  ;;  %v595_v39 = vld [vmem:[%s15737_s28 + $0x340] sm:$0xff] }
 0x177   : > { %12953 = vmatprep.mubr.f32.mxu0 %v9978_v41  ;;  %v10002_v40 = vld [vmem:[%s15743_s13 + $0x160] sm:$0xff]  ;;  %v596_v41 = vld [vmem:[%s15737_s28 + $0x348] sm:$0xff] }
 0x179   : > { %11930 = vmatmul.mubr.f32.gmra.mrb[80].mxu1 %v572_v42  ;;  %v10003_v42 = vld [vmem:[%s15743_s13 + $0x168] sm:$0xff] }
 0x17a   : > { %12954 = vmatmul.mubr.f32.gmra.mrb[16].mxu0 %v9979_v44  ;;  %11932 = vmatprep.mubr.f32.mxu1 %v573_v45  ;;  %v597_v44 = vld [vmem:[%s15737_s28 + $0x350] sm:$0xff] }
 0x17b   : > { %12956 = vmatprep.mubr.f32.mxu0 %v9980_v46  ;;  %v10004_v45 = vld [vmem:[%s15743_s13 + $0x170] sm:$0xff]  ;;  %v598_v46 = vld [vmem:[%s15737_s28 + $0x358] sm:$0xff] }
 0x17d   : > { %11933 = vmatmul.mubr.f32.gmra.mrb[82].mxu1 %v574_v47  ;;  %v10005_v47 = vld [vmem:[%s15743_s13 + $0x178] sm:$0xff] }
 0x17e   : > { %12957 = vmatmul.mubr.f32.gmra.mrb[18].mxu0 %v9981_v51  ;;  %11935 = vmatprep.mubr.f32.mxu1 %v575_v52  ;;  %v600_v51 = vld [vmem:[%s15737_s28 + $0x368] sm:$0xff] }
 0x17f   : > { %12959 = vmatprep.mubr.f32.mxu0 %v9982_v55  ;;  %v10007_v52 = vld [vmem:[%s15743_s13 + $0x188] sm:$0xff]  ;;  %v10008_v55 = vld [vmem:[%s15743_s13 + $0x190] sm:$0xff] }
 0x181   : > { %11936 = vmatmul.mubr.f32.gmra.mrb[84].mxu1 %v576_v56  ;;  %v602_v56 = vld [vmem:[%s15737_s28 + $0x378] sm:$0xff] }
 0x182   : > { %12960 = vmatmul.mubr.f32.gmra.mrb[20].mxu0 %v9983_v57  ;;  %11938 = vmatprep.mubr.f32.mxu1 %v577_v58  ;;  %v10009_v57 = vld [vmem:[%s15743_s13 + $0x198] sm:$0xff]  ;;  %v603_v58 = vld [vmem:[%s15737_s28 + $0x380] sm:$0xff] }
 0x183   : > { %12962 = vmatprep.mubr.f32.mxu0 %v9984_v59  ;;  %v10010_v59 = vld [vmem:[%s15743_s13 + $0x1a0] sm:$0xff] }
 0x185   : > { %11939 = vmatmul.mubr.f32.gmra.mrb[86].mxu1 %v578_v60  ;;  %v604_v60 = vld [vmem:[%s15737_s28 + $0x388] sm:$0xff] }
 0x186   : > { %12963 = vmatmul.mubr.f32.gmra.mrb[22].mxu0 %v9985_v61  ;;  %11941 = vmatprep.mubr.f32.mxu1 %v579_v62  ;;  %v10011_v61 = vld [vmem:[%s15743_s13 + $0x1a8] sm:$0xff]  ;;  %v605_v62 = vld [vmem:[%s15737_s28 + $0x390] sm:$0xff] }
 0x187   : > { %12965 = vmatprep.mubr.f32.mxu0 %v9986_v63  ;;  %v10012_v63 = vld [vmem:[%s15743_s13 + $0x1b0] sm:$0xff] }
 0x189   : > { %11942 = vmatmul.mubr.f32.gmra.mrb[88].mxu1 %v580_v0  ;;  %v606_v0 = vld [vmem:[%s15737_s28 + $0x398] sm:$0xff] }
 0x18a   : > { %12966 = vmatmul.mubr.f32.gmra.mrb[24].mxu0 %v9987_v1  ;;  %11944 = vmatprep.mubr.f32.mxu1 %v581_v3  ;;  %v6105_v1 = vld [vmem:[#allocation8 + $0x370] sm:$0xff]  ;;  %v6106_v3 = vld [vmem:[#allocation8 + $0x378] sm:$0xff] }
 0x18b   : > { %12968 = vmatprep.mubr.f32.mxu0 %v9988_v4  ;;  %v10013_v4 = vld [vmem:[%s15743_s13 + $0x1b8] sm:$0xff] }
 0x18d   : > { %11945 = vmatmul.mubr.f32.gmra.mrb[90].mxu1 %v582_v5  ;;  %v607_v5 = vld [vmem:[%s15737_s28 + $0x3a0] sm:$0xff] }
 0x18e   : > { %12969 = vmatmul.mubr.f32.gmra.mrb[26].mxu0 %v9989_v6  ;;  %11947 = vmatprep.mubr.f32.mxu1 %v583_v8  ;;  %v14013_v6 = vpack.c.bf16 %v6106_v3, %v6105_v1  ;;  %v10014_v8 = vld [vmem:[%s15743_s13 + $0x1c0] sm:$0xff]  ;;  %v354_v1 = vld [vmem:[%s15730_s9 + $0x38] sm:$0xff] }
 0x18f   : > { %12971 = vmatprep.mubr.f32.mxu0 %v9990_v9  ;;  %v608_v9 = vld [vmem:[%s15737_s28 + $0x3a8] sm:$0xff]  ;;  %v10033_v3 = vld [vmem:[%s15743_s13 + $0x258] sm:$0xff] }
 0x190   : > { %14014 = vmatprep.subr.bf16.mxu0 %v14013_v6 }
 0x191   : > { %11948 = vmatmul.mubr.f32.gmra.mrb[92].mxu1 %v584_v10  ;;  %v10015_v10 = vld [vmem:[%s15743_s13 + $0x1c8] sm:$0xff]  ;;  %14016 = vmatpush3.bf16.msra.mxu0 %v14013_v6 }
 0x192   : > { %12972 = vmatmul.mubr.f32.gmra.mrb[28].mxu0 %v9991_v54  ;;  %11950 = vmatprep.mubr.f32.mxu1 %v585_v11  ;;  %v609_v54 = vld [vmem:[%s15737_s28 + $0x3b0] sm:$0xff] }
 0x193   : > { %12974 = vmatprep.mubr.f32.mxu0 %v9992_v13  ;;  %v10016_v11 = vld [vmem:[%s15743_s13 + $0x1d0] sm:$0xff]  ;;  %v610_v13 = vld [vmem:[%s15737_s28 + $0x3b8] sm:$0xff] }
 0x195   : > { %11951 = vmatmul.mubr.f32.gmra.mrb[94].mxu1 %v586_v14  ;;  %v10017_v14 = vld [vmem:[%s15743_s13 + $0x1d8] sm:$0xff] }
 0x196   : > { %12975 = vmatmul.mubr.f32.gmra.mrb[30].mxu0 %v9993_v15  ;;  %11953 = vmatprep.mubr.f32.mxu1 %v587_v16  ;;  %v611_v15 = vld [vmem:[%s15737_s28 + $0x3c0] sm:$0xff] }
 0x197   : > { %12977 = vmatprep.mubr.f32.mxu0 %v9994_v18  ;;  %v10018_v16 = vld [vmem:[%s15743_s13 + $0x1e0] sm:$0xff]  ;;  %v612_v18 = vld [vmem:[%s15737_s28 + $0x3c8] sm:$0xff] }
 0x199   : > { %11954 = vmatmul.mubr.f32.gmra.mrb[96].mxu1 %v588_v19  ;;  %v10019_v19 = vld [vmem:[%s15743_s13 + $0x1e8] sm:$0xff] }
 0x19a   : > { %12978 = vmatmul.mubr.f32.gmra.mrb[32].mxu0 %v9995_v20  ;;  %11956 = vmatprep.mubr.f32.mxu1 %v589_v21  ;;  %v613_v20 = vld [vmem:[%s15737_s28 + $0x3d0] sm:$0xff] }
 0x19b   : > { %12980 = vmatprep.mubr.f32.mxu0 %v9996_v22  ;;  %v10020_v21 = vld [vmem:[%s15743_s13 + $0x1f0] sm:$0xff]  ;;  %v614_v22 = vld [vmem:[%s15737_s28 + $0x3d8] sm:$0xff] }
 0x19d   : > { %11957 = vmatmul.mubr.f32.gmra.mrb[98].mxu1 %v590_v24  ;;  %v10021_v24 = vld [vmem:[%s15743_s13 + $0x1f8] sm:$0xff] }
 0x19e   : > { %12981 = vmatmul.mubr.f32.gmra.mrb[34].mxu0 %v9997_v27  ;;  %11959 = vmatprep.mubr.f32.mxu1 %v591_v28  ;;  %v616_v27 = vld [vmem:[%s15737_s28 + $0x3e8] sm:$0xff] }
 0x19f   : > { %12983 = vmatprep.mubr.f32.mxu0 %v9998_v30  ;;  %v10023_v28 = vld [vmem:[%s15743_s13 + $0x208] sm:$0xff]  ;;  %v10024_v30 = vld [vmem:[%s15743_s13 + $0x210] sm:$0xff] }
 0x1a1   : > { %11960 = vmatmul.mubr.f32.gmra.mrb[100].mxu1 %v592_v32  ;;  %v618_v32 = vld [vmem:[%s15737_s28 + $0x3f8] sm:$0xff] }
 0x1a2   : > { %12984 = vmatmul.mubr.f32.gmra.mrb[36].mxu0 %v9999_v33  ;;  %11962 = vmatprep.mubr.f32.mxu1 %v593_v34  ;;  %v10025_v33 = vld [vmem:[%s15743_s13 + $0x218] sm:$0xff]  ;;  %v347_v34 = vld [vmem:[%s15730_s9] sm:$0xff] }
 0x1a3   : > { %12986 = vmatprep.mubr.f32.mxu0 %v10000_v35  ;;  %v10026_v35 = vld [vmem:[%s15743_s13 + $0x220] sm:$0xff] }
 0x1a5   : > { %11963 = vmatmul.mubr.f32.gmra.mrb[102].mxu1 %v594_v36  ;;  %v2177_v36 = vld [vmem:[#allocation8 + $0x110] sm:$0xff] }
 0x1a6   : > { %12987 = vmatmul.mubr.f32.gmra.mrb[38].mxu0 %v10001_v38  ;;  %11965 = vmatprep.mubr.f32.mxu1 %v595_v39  ;;  %v2178_v38 = vld [vmem:[#allocation8 + $0x118] sm:$0xff]  ;;  %v348_v39 = vld [vmem:[%s15730_s9 + $0x8] sm:$0xff] }
 0x1a7   : > { %12989 = vmatprep.mubr.f32.mxu0 %v10002_v40  ;;  %v10027_v40 = vld [vmem:[%s15743_s13 + $0x228] sm:$0xff] }
 0x1a9   : > { %11966 = vmatmul.mubr.f32.gmra.mrb[104].mxu1 %v596_v41  ;;  %v349_v41 = vld [vmem:[%s15730_s9 + $0x10] sm:$0xff] }
 0x1aa   : > { %12990 = vmatmul.mubr.f32.gmra.mrb[40].mxu0 %v10003_v42  ;;  %11968 = vmatprep.mubr.f32.mxu1 %v597_v44  ;;  %v10028_v42 = vld [vmem:[%s15743_s13 + $0x230] sm:$0xff]  ;;  %v13861_v44 = vpack.c.bf16 %v2178_v38, %v2177_v36  ;;  %v16064_v36 = vld [vmem:[%s15730_s9 + $0xa0] sm:$0xff] }
 0x1ab   : > { %12992 = vmatprep.mubr.f32.mxu0 %v10004_v45  ;;  %v2179_v45 = vld [vmem:[#allocation8 + $0x120] sm:$0xff] }
 0x1ac   : > { %v10046_v38 = vld [vmem:[%s15743_s13 + $0x2c0] sm:$0xff] }
 0x1ad   : > { %11969 = vmatmul.mubr.f32.gmra.mrb[106].mxu1 %v598_v46  ;;  %v2180_v46 = vld [vmem:[#allocation8 + $0x128] sm:$0xff] }
 0x1ae   : > { %12993 = vmatmul.mubr.f32.gmra.mrb[42].mxu0 %v10005_v47  ;;  %11971 = vmatprep.mubr.f32.mxu1 %v599_v48  ;;  %v350_v47 = vld [vmem:[%s15730_s9 + $0x18] sm:$0xff]  ;;  %v7070_v48 = vld [vmem:[#allocation8 + $0x380] sm:$0xff] }
 0x1af   : > { %12995 = vmatprep.mubr.f32.mxu0 %v10006_v50  ;;  %v7071_v50 = vld [vmem:[#allocation8 + $0x388] sm:$0xff] }
 0x1b1   : > { %11972 = vmatmul.mubr.f32.gmra.mrb[108].mxu1 %v600_v51  ;;  %v10029_v51 = vld [vmem:[%s15743_s13 + $0x238] sm:$0xff] }
 0x1b2   : > { %12996 = vmatmul.mubr.f32.gmra.mrb[44].mxu0 %v10007_v52  ;;  %11974 = vmatprep.mubr.f32.mxu1 %v601_v53  ;;  %v351_v52 = vld [vmem:[%s15730_s9 + $0x20] sm:$0xff]  ;;  %v15994_v53 = vpack.c.bf16 %v7071_v50, %v7070_v48  ;;  %v16090_v48 = vld [vmem:[%s15730_s9 + $0xc8] sm:$0xff] }
 0x1b3   : > { %12998 = vmatprep.mubr.f32.mxu0 %v10008_v55  ;;  %v10030_v55 = vld [vmem:[%s15743_s13 + $0x240] sm:$0xff]  ;;  %v10051_v50 = vld [vmem:[%s15743_s13 + $0x2e8] sm:$0xff] }
 0x1b4   : > { %14018 = vmatprep.subr.bf16.mxu0 %v15994_v53 }
 0x1b5   : > { %11975 = vmatmul.mubr.f32.gmra.mrb[110].mxu1 %v602_v56  ;;  %v13865_v56 = vpack.c.bf16 %v2180_v46, %v2179_v45  ;;  %v10049_v45 = vld [vmem:[%s15743_s13 + $0x2d8] sm:$0xff]  ;;  %v16084_v46 = vld [vmem:[%s15730_s9 + $0xc0] sm:$0xff] }
 0x1b6   : > { %12999 = vmatmul.mubr.f32.gmra.mrb[46].mxu0 %v10009_v57  ;;  %11977 = vmatprep.mubr.f32.mxu1 %v603_v58  ;;  %v2181_v57 = vld [vmem:[#allocation8 + $0x130] sm:$0xff]  ;;  %v2182_v58 = vld [vmem:[#allocation8 + $0x138] sm:$0xff] }
 0x1b7   : > { %13001 = vmatprep.mubr.f32.mxu0 %v10010_v59  ;;  %v10031_v59 = vld [vmem:[%s15743_s13 + $0x248] sm:$0xff] }
 0x1b9   : > { %11978 = vmatmul.mubr.f32.gmra.mrb[112].mxu1 %v604_v60  ;;  %v353_v60 = vld [vmem:[%s15730_s9 + $0x30] sm:$0xff] }
 0x1ba   : > { %13002 = vmatmul.mubr.f32.gmra.mrb[48].mxu0 %v10011_v61  ;;  %11980 = vmatprep.mubr.f32.mxu1 %v605_v62  ;;  %v10032_v61 = vld [vmem:[%s15743_s13 + $0x250] sm:$0xff]  ;;  %v13869_v62 = vpack.c.bf16 %v2182_v58, %v2181_v57  ;;  %v16104_v57 = vld [vmem:[%s15730_s9 + $0xe0] sm:$0xff] }
 0x1bb   : > { %13004 = vmatprep.mubr.f32.mxu0 %v10012_v63  ;;  %v2183_v63 = vld [vmem:[#allocation8 + $0x140] sm:$0xff] }
 0x1bc   : > { %v10054_v58 = vld [vmem:[%s15743_s13 + $0x300] sm:$0xff] }
 0x1bd   : > { %11981 = vmatmul.mubr.f32.gmra.mrb[114].mxu1 %v606_v0  ;;  %v2184_v0 = vld [vmem:[#allocation8 + $0x148] sm:$0xff] }
 0x1be   : > { %13005 = vmatmul.mubr.f32.gmra.mrb[50].mxu0 %v10013_v4  ;;  %11983 = vmatprep.mubr.f32.mxu1 %v607_v5  ;;  %v16005_v4 = vld [vmem:[%s15730_s9 + $0x40] sm:$0xff]  ;;  %v13873_v6 = vpack.c.bf16 %v2184_v0, %v2183_v63  ;;  %v10057_v63 = vld [vmem:[%s15743_s13 + $0x318] sm:$0xff] }
 0x1bf   : > { %13007 = vmatprep.mubr.f32.mxu0 %v10014_v8  ;;  %v10034_v5 = vld [vmem:[%s15743_s13 + $0x260] sm:$0xff]  ;;  %v16010_v8 = vld [vmem:[%s15730_s9 + $0x48] sm:$0xff] }
 0x1c0   : > { %v16124_v0 = vld [vmem:[%s15730_s9 + $0x100] sm:$0xff] }
 0x1c1   : > { %11984 = vmatmul.mubr.f32.gmra.mrb[116].mxu1 %v608_v9  ;;  %v10035_v9 = vld [vmem:[%s15743_s13 + $0x268] sm:$0xff] }
 0x1c2   : > { %13008 = vmatmul.mubr.f32.gmra.mrb[52].mxu0 %v10015_v10  ;;  %11986 = vmatprep.mubr.f32.mxu1 %v609_v54  ;;  %v16014_v10 = vld [vmem:[%s15730_s9 + $0x50] sm:$0xff] }
 0x1c3   : > { %13010 = vmatprep.mubr.f32.mxu0 %v10016_v11  ;;  %v10036_v54 = vld [vmem:[%s15743_s13 + $0x270] sm:$0xff]  ;;  %v16020_v11 = vld [vmem:[%s15730_s9 + $0x58] sm:$0xff] }
 0x1c5   : > { %11987 = vmatmul.mubr.f32.gmra.mrb[118].mxu1 %v610_v13  ;;  %v10037_v13 = vld [vmem:[%s15743_s13 + $0x278] sm:$0xff] }
 0x1c6   : > { %13011 = vmatmul.mubr.f32.gmra.mrb[54].mxu0 %v10017_v14  ;;  %11989 = vmatprep.mubr.f32.mxu1 %v611_v15  ;;  %v16024_v14 = vld [vmem:[%s15730_s9 + $0x60] sm:$0xff] }
 0x1c7   : > { %13013 = vmatprep.mubr.f32.mxu0 %v10018_v16  ;;  %v10038_v15 = vld [vmem:[%s15743_s13 + $0x280] sm:$0xff]  ;;  %v16030_v16 = vld [vmem:[%s15730_s9 + $0x68] sm:$0xff] }
 0x1c9   : > { %11990 = vmatmul.mubr.f32.gmra.mrb[120].mxu1 %v612_v18  ;;  %v10039_v18 = vld [vmem:[%s15743_s13 + $0x288] sm:$0xff] }
 0x1ca   : > { %13014 = vmatmul.mubr.f32.gmra.mrb[56].mxu0 %v10019_v19  ;;  %11992 = vmatprep.mubr.f32.mxu1 %v613_v20  ;;  %v16034_v19 = vld [vmem:[%s15730_s9 + $0x70] sm:$0xff] }
 0x1cb   : > { %13016 = vmatprep.mubr.f32.mxu0 %v10020_v21  ;;  %v10040_v20 = vld [vmem:[%s15743_s13 + $0x290] sm:$0xff]  ;;  %v16040_v21 = vld [vmem:[%s15730_s9 + $0x78] sm:$0xff] }
 0x1cd   : > { %11993 = vmatmul.mubr.f32.gmra.mrb[122].mxu1 %v614_v22  ;;  %v10041_v22 = vld [vmem:[%s15743_s13 + $0x298] sm:$0xff] }
 0x1ce   : > { %13017 = vmatmul.mubr.f32.gmra.mrb[58].mxu0 %v10021_v24  ;;  %11995 = vmatprep.mubr.f32.mxu1 %v615_v25  ;;  %v16044_v24 = vld [vmem:[%s15730_s9 + $0x80] sm:$0xff] }
 0x1cf   : > { %13019 = vmatprep.mubr.f32.mxu0 %v10022_v26  ;;  %v10042_v25 = vld [vmem:[%s15743_s13 + $0x2a0] sm:$0xff]  ;;  %v16050_v26 = vld [vmem:[%s15730_s9 + $0x88] sm:$0xff] }
 0x1d1   : > { %11996 = vmatmul.mubr.f32.gmra.mrb[124].mxu1 %v616_v27  ;;  %v10043_v27 = vld [vmem:[%s15743_s13 + $0x2a8] sm:$0xff] }
 0x1d2   : > { %13020 = vmatmul.mubr.f32.gmra.mrb[60].mxu0 %v10023_v28  ;;  %11998 = vmatprep.mubr.f32.mxu1 %v617_v29  ;;  %v16054_v28 = vld [vmem:[%s15730_s9 + $0x90] sm:$0xff] }
 0x1d3   : > { %13022 = vmatprep.mubr.f32.mxu0 %v10024_v30  ;;  %v10044_v29 = vld [vmem:[%s15743_s13 + $0x2b0] sm:$0xff] }
 0x1d4   : > { %v2185_v30 = vld [vmem:[#allocation8 + $0x150] sm:$0xff] }
 0x1d5   : > { %11999 = vmatmul.mubr.f32.gmra.mrb[126].mxu1 %v618_v32  ;;  %v2186_v32 = vld [vmem:[#allocation8 + $0x158] sm:$0xff] }
 0x1d6   : > { %13023 = vmatmul.mubr.f32.gmra.mrb[62].mxu0 %v10025_v33  ;;  %12033 = vmatprep.mubr.f32.mxu1 %v347_v34  ;;  %v16060_v33 = vld [vmem:[%s15730_s9 + $0x98] sm:$0xff]  ;;  %v13877_v34 = vpack.c.bf16 %v2186_v32, %v2185_v30  ;;  %v16154_v30 = vld [vmem:[%s15730_s9 + $0x130] sm:$0xff] }
 0x1d7   : > { %13025 = vmatprep.mubr.f32.mxu0 %v10026_v35  ;;  %v10045_v35 = vld [vmem:[%s15743_s13 + $0x2b8] sm:$0xff]  ;;  %v10064_v32 = vld [vmem:[%s15743_s13 + $0x350] sm:$0xff] }
 0x1d9   : > { %12034 = vmatmul.mubr.f32.vlgmr.msra.gmra.mrb[0].mxu1 %v348_v39  ;;  %v16070_v39 = vld [vmem:[%s15730_s9 + $0xa8] sm:$0xff] }
 0x1da   : > { %13026 = vmatmul.mubr.f32.gmra.mrb[64].mxu0 %v10027_v40  ;;  %13860 = vmatpush3.bf16.msra.mxu1 %v15859_v2  ;;  %v352_v2 = vld [vmem:[%s15730_s9 + $0x28] sm:$0xff] }
 0x1db   : > { %12036 = vmatprep.mubr.f32.mxu1 %v349_v41  ;;  %13028 = vmatprep.mubr.f32.mxu0 %v10028_v42  ;;  %v10047_v40 = vld [vmem:[%s15743_s13 + $0x2c8] sm:$0xff]  ;;  %v16074_v41 = vld [vmem:[%s15730_s9 + $0xb0] sm:$0xff] }
 0x1dc   : > { %13862 = vmatprep.subr.bf16.mxu1 %v13861_v44  ;;  %v10048_v42 = vld [vmem:[%s15743_s13 + $0x2d0] sm:$0xff] }
 0x1dd   : > { %12037 = vmatmul.mubr.f32.gmra.mrb[2].mxu1 %v350_v47  ;;  %v10050_v47 = vld [vmem:[%s15743_s13 + $0x2e0] sm:$0xff] }
 0x1de   : > { %13029 = vmatmul.mubr.f32.gmra.mrb[66].mxu0 %v10029_v51  ;;  %12039 = vmatprep.mubr.f32.mxu1 %v351_v52  ;;  %v16094_v51 = vld [vmem:[%s15730_s9 + $0xd0] sm:$0xff] }
 0x1df   : > { %13031 = vmatprep.mubr.f32.mxu0 %v10030_v55  ;;  %13864 = vmatpush3.bf16.msra.mxu1 %v13861_v44  ;;  %v16080_v44 = vld [vmem:[%s15730_s9 + $0xb8] sm:$0xff]  ;;  %v10052_v52 = vld [vmem:[%s15743_s13 + $0x2f0] sm:$0xff] }
 0x1e0   : > { %13866 = vmatprep.subr.bf16.mxu1 %v13865_v56  ;;  %v16100_v55 = vld [vmem:[%s15730_s9 + $0xd8] sm:$0xff] }
 0x1e1   : > { %12040 = vmatmul.mubr.f32.gmra.mrb[4].mxu1 %v352_v2  ;;  %v16110_v2 = vld [vmem:[%s15730_s9 + $0xe8] sm:$0xff] }
 0x1e2   : > { %13032 = vmatmul.mubr.f32.gmra.mrb[68].mxu0 %v10031_v59  ;;  %12042 = vmatprep.mubr.f32.mxu1 %v353_v60  ;;  %v10055_v59 = vld [vmem:[%s15743_s13 + $0x308] sm:$0xff]  ;;  %v16114_v60 = vld [vmem:[%s15730_s9 + $0xf0] sm:$0xff] }
 0x1e3   : > { %13034 = vmatprep.mubr.f32.mxu0 %v10032_v61  ;;  %13868 = vmatpush3.bf16.msra.mxu1 %v13865_v56  ;;  %v10053_v56 = vld [vmem:[%s15743_s13 + $0x2f8] sm:$0xff]  ;;  %v10056_v61 = vld [vmem:[%s15743_s13 + $0x310] sm:$0xff] }
 0x1e4   : > { %13870 = vmatprep.subr.bf16.mxu1 %v13869_v62 }
 0x1e5   : > { %12043 = vmatmul.mubr.f32.gmra.mrb[6].mxu1 %v354_v1  ;;  %v10058_v1 = vld [vmem:[%s15743_s13 + $0x320] sm:$0xff] }
 0x1e6   : > { %13035 = vmatmul.mubr.f32.gmra.mrb[70].mxu0 %v10033_v3  ;;  %12045 = vmatprep.mubr.f32.mxu1 %v16005_v4  ;;  %v16130_v3 = vld [vmem:[%s15730_s9 + $0x108] sm:$0xff] }
 0x1e7   : > { %13037 = vmatprep.mubr.f32.mxu0 %v10034_v5  ;;  %13872 = vmatpush3.bf16.msra.mxu1 %v13869_v62  ;;  %v16120_v62 = vld [vmem:[%s15730_s9 + $0xf8] sm:$0xff]  ;;  %v10059_v5 = vld [vmem:[%s15743_s13 + $0x328] sm:$0xff] }
 0x1e8   : > { %13874 = vmatprep.subr.bf16.mxu1 %v13873_v6 }
 0x1e9   : > { %12046 = vmatmul.mubr.f32.gmra.mrb[8].mxu1 %v16010_v8 }
 0x1ea   : > { %13038 = vmatmul.mubr.f32.gmra.mrb[72].mxu0 %v10035_v9  ;;  %12048 = vmatprep.mubr.f32.mxu1 %v16014_v10  ;;  %v10060_v9 = vld [vmem:[%s15743_s13 + $0x330] sm:$0xff] }
 0x1eb   : > { %13040 = vmatprep.mubr.f32.mxu0 %v10036_v54  ;;  %13876 = vmatpush3.bf16.msra.mxu1 %v13873_v6  ;;  %v16134_v6 = vld [vmem:[%s15730_s9 + $0x110] sm:$0xff]  ;;  %v2187_v54 = vld [vmem:[#allocation8 + $0x160] sm:$0xff] }
 0x1ec   : > { %13878 = vmatprep.subr.bf16.mxu1 %v13877_v34 }
 0x1ed   : > { %12049 = vmatmul.mubr.f32.gmra.mrb[10].mxu1 %v16020_v11 }
 0x1ee   : > { %13041 = vmatmul.mubr.f32.gmra.mrb[74].mxu0 %v10037_v13  ;;  %12051 = vmatprep.mubr.f32.mxu1 %v16024_v14  ;;  %v2188_v13 = vld [vmem:[#allocation8 + $0x168] sm:$0xff] }
 0x1ef   : > { %13043 = vmatprep.mubr.f32.mxu0 %v10038_v15  ;;  %13880 = vmatpush3.bf16.msra.mxu1 %v13877_v34  ;;  %v16140_v15 = vld [vmem:[%s15730_s9 + $0x118] sm:$0xff] }
 0x1f0   : > { %v16160_v34 = vld [vmem:[%s15730_s9 + $0x138] sm:$0xff] }
 0x1f1   : > { %12052 = vmatmul.mubr.f32.gmra.mrb[12].mxu1 %v16030_v16 }
 0x1f2   : > { %13044 = vmatmul.mubr.f32.gmra.mrb[76].mxu0 %v10039_v18  ;;  %12054 = vmatprep.mubr.f32.mxu1 %v16034_v19  ;;  %v13881_v18 = vpack.c.bf16 %v2188_v13, %v2187_v54  ;;  %v10073_v54 = vld [vmem:[%s15743_s13 + $0x398] sm:$0xff]  ;;  %v16204_v13 = vld [vmem:[%s15730_s9 + $0x180] sm:$0xff] }
 0x1f3   : > { %13046 = vmatprep.mubr.f32.mxu0 %v10040_v20  ;;  %v10061_v20 = vld [vmem:[%s15743_s13 + $0x338] sm:$0xff] }
 0x1f4   : > { %13882 = vmatprep.subr.bf16.mxu1 %v13881_v18 }
 0x1f5   : > { %12055 = vmatmul.mubr.f32.gmra.mrb[14].mxu1 %v16040_v21 }
 0x1f6   : > { %13047 = vmatmul.mubr.f32.gmra.mrb[78].mxu0 %v10041_v22  ;;  %12057 = vmatprep.mubr.f32.mxu1 %v16044_v24  ;;  %v16144_v22 = vld [vmem:[%s15730_s9 + $0x120] sm:$0xff] }
 0x1f7   : > { %13049 = vmatprep.mubr.f32.mxu0 %v10042_v25  ;;  %v10062_v25 = vld [vmem:[%s15743_s13 + $0x340] sm:$0xff]  ;;  %13884 = vmatpush3.bf16.msra.mxu1 %v13881_v18 }
 0x1f8   : > { %v10074_v18 = vld [vmem:[%s15743_s13 + $0x3a0] sm:$0xff] }
 0x1f9   : > { %12058 = vmatmul.mubr.f32.gmra.mrb[16].mxu1 %v16050_v26 }
 0x1fa   : > { %13050 = vmatmul.mubr.f32.gmra.mrb[80].mxu0 %v10043_v27  ;;  %12060 = vmatprep.mubr.f32.mxu1 %v16054_v28  ;;  %v16150_v27 = vld [vmem:[%s15730_s9 + $0x128] sm:$0xff] }
 0x1fb   : > { %13052 = vmatprep.mubr.f32.mxu0 %v10044_v29  ;;  %v10063_v29 = vld [vmem:[%s15743_s13 + $0x348] sm:$0xff] }
 0x1fd   : > { %12061 = vmatmul.mubr.f32.gmra.mrb[18].mxu1 %v16060_v33 }
 0x1fe   : > { %13053 = vmatmul.mubr.f32.gmra.mrb[82].mxu0 %v10045_v35  ;;  %12063 = vmatprep.mubr.f32.mxu1 %v16064_v36  ;;  %v10065_v35 = vld [vmem:[%s15743_s13 + $0x358] sm:$0xff] }
 0x1ff   : > { %13055 = vmatprep.mubr.f32.mxu0 %v10046_v38  ;;  %v16164_v38 = vld [vmem:[%s15730_s9 + $0x140] sm:$0xff] }
 0x201   : > { %12064 = vmatmul.mubr.f32.gmra.mrb[20].mxu1 %v16070_v39 }
 0x202   : > { %13056 = vmatmul.mubr.f32.gmra.mrb[84].mxu0 %v10047_v40  ;;  %12066 = vmatprep.mubr.f32.mxu1 %v16074_v41  ;;  %v10066_v40 = vld [vmem:[%s15743_s13 + $0x360] sm:$0xff] }
 0x203   : > { %13058 = vmatprep.mubr.f32.mxu0 %v10048_v42  ;;  %v16170_v42 = vld [vmem:[%s15730_s9 + $0x148] sm:$0xff] }
 0x205   : > { %12067 = vmatmul.mubr.f32.gmra.mrb[22].mxu1 %v16080_v44 }
 0x206   : > { %13059 = vmatmul.mubr.f32.gmra.mrb[86].mxu0 %v10049_v45  ;;  %12069 = vmatprep.mubr.f32.mxu1 %v16084_v46  ;;  %v10067_v45 = vld [vmem:[%s15743_s13 + $0x368] sm:$0xff] }
 0x207   : > { %13061 = vmatprep.mubr.f32.mxu0 %v10050_v47  ;;  %v16174_v47 = vld [vmem:[%s15730_s9 + $0x150] sm:$0xff] }
 0x209   : > { %12070 = vmatmul.mubr.f32.gmra.mrb[24].mxu1 %v16090_v48 }
 0x20a   : > { %13062 = vmatmul.mubr.f32.gmra.mrb[88].mxu0 %v10051_v50  ;;  %12072 = vmatprep.mubr.f32.mxu1 %v16094_v51  ;;  %v10068_v50 = vld [vmem:[%s15743_s13 + $0x370] sm:$0xff] }
 0x20b   : > { %13064 = vmatprep.mubr.f32.mxu0 %v10052_v52  ;;  %v16180_v52 = vld [vmem:[%s15730_s9 + $0x158] sm:$0xff] }
 0x20d   : > { %12073 = vmatmul.mubr.f32.gmra.mrb[26].mxu1 %v16100_v55 }
 0x20e   : > { %13065 = vmatmul.mubr.f32.gmra.mrb[90].mxu0 %v10053_v56  ;;  %12075 = vmatprep.mubr.f32.mxu1 %v16104_v57  ;;  %v10069_v56 = vld [vmem:[%s15743_s13 + $0x378] sm:$0xff] }
 0x20f   : > { %13067 = vmatprep.mubr.f32.mxu0 %v10054_v58  ;;  %v16184_v58 = vld [vmem:[%s15730_s9 + $0x160] sm:$0xff] }
 0x211   : > { %12076 = vmatmul.mubr.f32.gmra.mrb[28].mxu1 %v16110_v2 }
 0x212   : > { %13068 = vmatmul.mubr.f32.gmra.mrb[92].mxu0 %v10055_v59  ;;  %12078 = vmatprep.mubr.f32.mxu1 %v16114_v60  ;;  %v10070_v59 = vld [vmem:[%s15743_s13 + $0x380] sm:$0xff] }
 0x213   : > { %13070 = vmatprep.mubr.f32.mxu0 %v10056_v61  ;;  %v16190_v61 = vld [vmem:[%s15730_s9 + $0x168] sm:$0xff] }
 0x215   : > { %12079 = vmatmul.mubr.f32.gmra.mrb[30].mxu1 %v16120_v62 }
 0x216   : > { %13071 = vmatmul.mubr.f32.gmra.mrb[94].mxu0 %v10057_v63  ;;  %12081 = vmatprep.mubr.f32.mxu1 %v16124_v0  ;;  %v10071_v63 = vld [vmem:[%s15743_s13 + $0x388] sm:$0xff] }
 0x217   : > { %13073 = vmatprep.mubr.f32.mxu0 %v10058_v1  ;;  %v16194_v1 = vld [vmem:[%s15730_s9 + $0x170] sm:$0xff] }
 0x219   : > { %12082 = vmatmul.mubr.f32.gmra.mrb[32].mxu1 %v16130_v3 }
 0x21a   : > { %13074 = vmatmul.mubr.f32.gmra.mrb[96].mxu0 %v10059_v5  ;;  %12084 = vmatprep.mubr.f32.mxu1 %v16134_v6  ;;  %v10072_v5 = vld [vmem:[%s15743_s13 + $0x390] sm:$0xff] }
 0x21b   : > { %13076 = vmatprep.mubr.f32.mxu0 %v10060_v9  ;;  %v16200_v9 = vld [vmem:[%s15730_s9 + $0x178] sm:$0xff] }
 0x21d   : > { %12085 = vmatmul.mubr.f32.gmra.mrb[34].mxu1 %v16140_v15 }
 0x21e   : > { %13077 = vmatmul.mubr.f32.gmra.mrb[98].mxu0 %v10061_v20  ;;  %12087 = vmatprep.mubr.f32.mxu1 %v16144_v22  ;;  %v16210_v20 = vld [vmem:[%s15730_s9 + $0x188] sm:$0xff] }
 0x21f   : > { %13079 = vmatprep.mubr.f32.mxu0 %v10062_v25  ;;  %v10075_v25 = vld [vmem:[%s15743_s13 + $0x3a8] sm:$0xff] }
 0x221   : > { %12088 = vmatmul.mubr.f32.gmra.mrb[36].mxu1 %v16150_v27 }
 0x222   : > { %13080 = vmatmul.mubr.f32.gmra.mrb[100].mxu0 %v10063_v29  ;;  %12090 = vmatprep.mubr.f32.mxu1 %v16154_v30  ;;  %v16214_v29 = vld [vmem:[%s15730_s9 + $0x190] sm:$0xff] }
 0x223   : > { %13082 = vmatprep.mubr.f32.mxu0 %v10064_v32  ;;  %v10076_v32 = vld [vmem:[%s15743_s13 + $0x3b0] sm:$0xff] }
 0x225   : > { %12091 = vmatmul.mubr.f32.gmra.mrb[38].mxu1 %v16160_v34 }
 0x226   : > { %13083 = vmatmul.mubr.f32.gmra.mrb[102].mxu0 %v10065_v35  ;;  %12093 = vmatprep.mubr.f32.mxu1 %v16164_v38  ;;  %v2189_v35 = vld [vmem:[#allocation8 + $0x170] sm:$0xff] }
 0x227   : > { %13085 = vmatprep.mubr.f32.mxu0 %v10066_v40  ;;  %v2190_v40 = vld [vmem:[#allocation8 + $0x178] sm:$0xff] }
 0x229   : > { %12094 = vmatmul.mubr.f32.gmra.mrb[40].mxu1 %v16170_v42 }
 0x22a   : > { %13086 = vmatmul.mubr.f32.gmra.mrb[104].mxu0 %v10067_v45  ;;  %12096 = vmatprep.mubr.f32.mxu1 %v16174_v47  ;;  %v16220_v45 = vld [vmem:[%s15730_s9 + $0x198] sm:$0xff] }
 0x22b   : > { %13088 = vmatprep.mubr.f32.mxu0 %v10068_v50  ;;  %v13885_v50 = vpack.c.bf16 %v2190_v40, %v2189_v35  ;;  %v10081_v35 = vld [vmem:[%s15743_s13 + $0x3d8] sm:$0xff]  ;;  %v16244_v40 = vld [vmem:[%s15730_s9 + $0x1c0] sm:$0xff] }
 0x22d   : > { %12097 = vmatmul.mubr.f32.gmra.mrb[42].mxu1 %v16180_v52  ;;  %13886 = vmatprep.subr.bf16.mxu1 %v13885_v50 }
 0x22e   : > { %13089 = vmatmul.mubr.f32.gmra.mrb[106].mxu0 %v10069_v56  ;;  %12099 = vmatprep.mubr.f32.mxu1 %v16184_v58  ;;  %v10077_v56 = vld [vmem:[%s15743_s13 + $0x3b8] sm:$0xff] }
 0x22f   : > { %13091 = vmatprep.mubr.f32.mxu0 %v10070_v59  ;;  %v16224_v59 = vld [vmem:[%s15730_s9 + $0x1a0] sm:$0xff]  ;;  %13888 = vmatpush3.bf16.msra.mxu1 %v13885_v50  ;;  %v16250_v50 = vld [vmem:[%s15730_s9 + $0x1c8] sm:$0xff] }
 0x231   : > { %12100 = vmatmul.mubr.f32.gmra.mrb[44].mxu1 %v16190_v61 }
 0x232   : > { %13092 = vmatmul.mubr.f32.gmra.mrb[108].mxu0 %v10071_v63  ;;  %12102 = vmatprep.mubr.f32.mxu1 %v16194_v1  ;;  %v10078_v63 = vld [vmem:[%s15743_s13 + $0x3c0] sm:$0xff] }
 0x233   : > { %13094 = vmatprep.mubr.f32.mxu0 %v10072_v5  ;;  %v16230_v5 = vld [vmem:[%s15730_s9 + $0x1a8] sm:$0xff] }
 0x235   : > { %12103 = vmatmul.mubr.f32.gmra.mrb[46].mxu1 %v16200_v9 }
 0x236   : > { %13095 = vmatmul.mubr.f32.gmra.mrb[110].mxu0 %v10073_v54  ;;  %12105 = vmatprep.mubr.f32.mxu1 %v16204_v13  ;;  %v10079_v54 = vld [vmem:[%s15743_s13 + $0x3c8] sm:$0xff] }
 0x237   : > { %13097 = vmatprep.mubr.f32.mxu0 %v10074_v18  ;;  %v16234_v18 = vld [vmem:[%s15730_s9 + $0x1b0] sm:$0xff] }
 0x239   : > { %12106 = vmatmul.mubr.f32.gmra.mrb[48].mxu1 %v16210_v20 }
 0x23a   : > { %13098 = vmatmul.mubr.f32.gmra.mrb[112].mxu0 %v10075_v25  ;;  %12108 = vmatprep.mubr.f32.mxu1 %v16214_v29  ;;  %v10080_v25 = vld [vmem:[%s15743_s13 + $0x3d0] sm:$0xff] }
 0x23b   : > { %13100 = vmatprep.mubr.f32.mxu0 %v10076_v32  ;;  %v16240_v32 = vld [vmem:[%s15730_s9 + $0x1b8] sm:$0xff] }
 0x23d   : > { %12109 = vmatmul.mubr.f32.gmra.mrb[50].mxu1 %v16220_v45 }
 0x23e   : > { %13101 = vmatmul.mubr.f32.gmra.mrb[114].mxu0 %v10077_v56  ;;  %12111 = vmatprep.mubr.f32.mxu1 %v16224_v59  ;;  %v10082_v56 = vld [vmem:[%s15743_s13 + $0x3e0] sm:$0xff] }
 0x23f   : > { %13103 = vmatprep.mubr.f32.mxu0 %v10078_v63  ;;  %v10083_v63 = vld [vmem:[%s15743_s13 + $0x3e8] sm:$0xff] }
 0x241   : > { %12112 = vmatmul.mubr.f32.gmra.mrb[52].mxu1 %v16230_v5 }
 0x242   : > { %13104 = vmatmul.mubr.f32.gmra.mrb[116].mxu0 %v10079_v54  ;;  %12114 = vmatprep.mubr.f32.mxu1 %v16234_v18  ;;  %v16254_v54 = vld [vmem:[%s15730_s9 + $0x1d0] sm:$0xff] }
 0x243   : > { %13106 = vmatprep.mubr.f32.mxu0 %v10080_v25  ;;  %v10084_v25 = vld [vmem:[%s15743_s13 + $0x3f0] sm:$0xff] }
 0x245   : > { %12115 = vmatmul.mubr.f32.gmra.mrb[54].mxu1 %v16240_v32 }
 0x246   : > { %13107 = vmatmul.mubr.f32.gmra.mrb[118].mxu0 %v10081_v35  ;;  %12117 = vmatprep.mubr.f32.mxu1 %v16244_v40  ;;  %v10085_v35 = vld [vmem:[%s15743_s13 + $0x3f8] sm:$0xff] }
 0x247   : > { %13109 = vmatprep.mubr.f32.mxu0 %v10082_v56  ;;  %v10086_v56 = vld [vmem:[%s15743_s13 + $0x400] sm:$0xff] }
 0x249   : > { %12118 = vmatmul.mubr.f32.gmra.mrb[56].mxu1 %v16250_v50 }
 0x24a   : > { %13110 = vmatmul.mubr.f32.gmra.mrb[120].mxu0 %v10083_v63  ;;  %12120 = vmatprep.mubr.f32.mxu1 %v16254_v54  ;;  %v10087_v63 = vld [vmem:[%s15743_s13 + $0x408] sm:$0xff] }
 0x24b   : > { %13112 = vmatprep.mubr.f32.mxu0 %v10084_v25  ;;  %v10088_v25 = vld [vmem:[%s15743_s13 + $0x410] sm:$0xff] }
 0x24d   : > { %12121 = vmatmul.mubr.f32.gmra.mrb[58].mxu1 %v16260_v49 }
 0x24e   : > { %13113 = vmatmul.mubr.f32.gmra.mrb[122].mxu0 %v10085_v35  ;;  %12123 = vmatprep.mubr.f32.mxu1 %v16264_v43  ;;  %v10089_v35 = vld [vmem:[%s15743_s13 + $0x418] sm:$0xff]  ;;  %v3154_v43 = vld [vmem:[#allocation8 + $0x180] sm:$0xff] }
 0x24f   : > { %13115 = vmatprep.mubr.f32.mxu0 %v10086_v56  ;;  %v7072_v56 = vld [vmem:[#allocation8 + $0x390] sm:$0xff] }
 0x251   : > { %12124 = vmatmul.mubr.f32.gmra.mrb[60].mxu1 %v16270_v37  ;;  %v7075_v37 = vld [vmem:[#allocation8 + $0x3a8] sm:$0xff] }
 0x252   : > { %13116 = vmatmul.mubr.f32.gmra.mrb[124].mxu0 %v10087_v63  ;;  %12126 = vmatprep.mubr.f32.mxu1 %v16274_v31  ;;  %v16293_v63 = vld [vmem:[%s15730_s9 + $0x210] sm:$0xff]  ;;  %v14021_v31 = vpack.c.bf16 %v7073_v12, %v7072_v56  ;;  %v16306_v12 = vld [vmem:[%s15730_s9 + $0x220] sm:$0xff]  ;;  %v7077_v56 = vld [vmem:[#allocation8 + $0x3b8] sm:$0xff] }
 0x253   : > { %13118 = vmatprep.mubr.f32.mxu0 %v10088_v25  ;;  %v7074_v25 = vld [vmem:[#allocation8 + $0x3a0] sm:$0xff] }
 0x255   : > { %12127 = vmatmul.mubr.f32.gmra.mrb[62].mxu1 %v16280_v23  ;;  %v3155_v23 = vld [vmem:[#allocation8 + $0x188] sm:$0xff] }
 0x256   : > { %13119 = vmatmul.mubr.f32.gmra.mrb[126].mxu0 %v10089_v35  ;;  %12129 = vmatprep.mubr.f32.mxu1 %v16284_v17  ;;  %v16299_v35 = vld [vmem:[%s15730_s9 + $0x218] sm:$0xff]  ;;  %v16301_v17 = vpack.c.bf16 %v3155_v23, %v3154_v43  ;;  %v16313_v23 = vld [vmem:[%s15730_s9 + $0x228] sm:$0xff]  ;;  %v16317_v43 = vld [vmem:[%s15730_s9 + $0x230] sm:$0xff] }
 0x257   : > { %13153 = vmatprep.mubr.f32.mxu0 %v16005_v4  ;;  %v14025_v4 = vpack.c.bf16 %v7075_v37, %v7074_v25  ;;  %v16347_v25 = vld [vmem:[%s15730_s9 + $0x260] sm:$0xff] }
 0x258   : > { %13890 = vmatprep.subr.bf16.mxu1 %v16301_v17 }
 0x259   : > { %12130 = vmatmul.mubr.f32.gmra.mrb[64].mxu1 %v16289_v7 }
 0x25a   : > { %13154 = vmatmul.mubr.f32.vlgmr.msra.gmra.mrb[0].mxu0 %v16010_v8  ;;  %12132 = vmatprep.mubr.f32.mxu1 %v16293_v63  ;;  %v7076_v8 = vld [vmem:[#allocation8 + $0x3b0] sm:$0xff] }
 0x25b   : > { %14020 = vmatpush3.bf16.msra.mxu0 %v15994_v53  ;;  %13156 = vmatprep.mubr.f32.mxu0 %v16014_v10  ;;  %v14029_v37 = vpack.c.bf16 %v7077_v56, %v7076_v8  ;;  %v7078_v53 = vld [vmem:[#allocation8 + $0x3c0] sm:$0xff]  ;;  %v7079_v10 = vld [vmem:[#allocation8 + $0x3c8] sm:$0xff]  ;;  %v16397_v56 = vld [vmem:[%s15730_s9 + $0x2b0] sm:$0xff] }
 0x25c   : > { %14022 = vmatprep.subr.bf16.mxu0 %v14021_v31  ;;  %v16387_v8 = vld [vmem:[%s15730_s9 + $0x2a0] sm:$0xff] }
 0x25d   : > { %12133 = vmatmul.mubr.f32.gmra.mrb[66].mxu1 %v16299_v35 }
 0x25e   : > { %13157 = vmatmul.mubr.f32.gmra.mrb[2].mxu0 %v16020_v11  ;;  %12135 = vmatprep.mubr.f32.mxu1 %v16306_v12  ;;  %v16323_v11 = vld [vmem:[%s15730_s9 + $0x238] sm:$0xff] }
 0x25f   : > { %13159 = vmatprep.mubr.f32.mxu0 %v16024_v14  ;;  %14024 = vmatpush3.bf16.msra.mxu0 %v14021_v31  ;;  %v16327_v14 = vld [vmem:[%s15730_s9 + $0x240] sm:$0xff]  ;;  %v14033_v31 = vpack.c.bf16 %v7079_v10, %v7078_v53  ;;  %v16477_v10 = vld [vmem:[%s15730_s9 + $0x330] sm:$0xff] }
 0x260   : > { %14026 = vmatprep.subr.bf16.mxu0 %v14025_v4  ;;  %v16467_v53 = vld [vmem:[%s15730_s9 + $0x320] sm:$0xff] }
 0x261   : > { %12136 = vmatmul.mubr.f32.gmra.mrb[68].mxu1 %v16313_v23 }
 0x262   : > { %13160 = vmatmul.mubr.f32.gmra.mrb[4].mxu0 %v16030_v16  ;;  %12138 = vmatprep.mubr.f32.mxu1 %v16317_v43  ;;  %v16333_v16 = vld [vmem:[%s15730_s9 + $0x248] sm:$0xff] }
 0x263   : > { %13162 = vmatprep.mubr.f32.mxu0 %v16034_v19  ;;  %14028 = vmatpush3.bf16.msra.mxu0 %v14025_v4  ;;  %v16337_v19 = vld [vmem:[%s15730_s9 + $0x250] sm:$0xff] }
 0x264   : > { %14030 = vmatprep.subr.bf16.mxu0 %v14029_v37  ;;  %v7080_v4 = vld [vmem:[#allocation8 + $0x3d0] sm:$0xff] }
 0x265   : > { %12139 = vmatmul.mubr.f32.gmra.mrb[70].mxu1 %v16323_v11 }
 0x266   : > { %13163 = vmatmul.mubr.f32.gmra.mrb[6].mxu0 %v16040_v21  ;;  %12141 = vmatprep.mubr.f32.mxu1 %v16327_v14  ;;  %v16343_v21 = vld [vmem:[%s15730_s9 + $0x258] sm:$0xff] }
 0x267   : > { %13165 = vmatprep.mubr.f32.mxu0 %v16044_v24  ;;  %14032 = vmatpush3.bf16.msra.mxu0 %v14029_v37  ;;  %v16353_v24 = vld [vmem:[%s15730_s9 + $0x268] sm:$0xff]  ;;  %v7082_v37 = vld [vmem:[#allocation8 + $0x3e0] sm:$0xff] }
 0x268   : > { %14034 = vmatprep.subr.bf16.mxu0 %v14033_v31 }
 0x269   : > { %12142 = vmatmul.mubr.f32.gmra.mrb[72].mxu1 %v16333_v16 }
 0x26a   : > { %13166 = vmatmul.mubr.f32.gmra.mrb[8].mxu0 %v16050_v26  ;;  %12144 = vmatprep.mubr.f32.mxu1 %v16337_v19  ;;  %v16357_v26 = vld [vmem:[%s15730_s9 + $0x270] sm:$0xff] }
 0x26b   : > { %13168 = vmatprep.mubr.f32.mxu0 %v16054_v28  ;;  %14036 = vmatpush3.bf16.msra.mxu0 %v14033_v31  ;;  %v16363_v28 = vld [vmem:[%s15730_s9 + $0x278] sm:$0xff]  ;;  %v7084_v31 = vld [vmem:[#allocation8 + $0x3f0] sm:$0xff] }
 0x26d   : > { %12145 = vmatmul.mubr.f32.gmra.mrb[74].mxu1 %v16343_v21 }
 0x26e   : > { %13169 = vmatmul.mubr.f32.gmra.mrb[10].mxu0 %v16060_v33  ;;  %12147 = vmatprep.mubr.f32.mxu1 %v16347_v25  ;;  %v16367_v33 = vld [vmem:[%s15730_s9 + $0x280] sm:$0xff] }
 0x26f   : > { %13171 = vmatprep.mubr.f32.mxu0 %v16064_v36  ;;  %v16373_v36 = vld [vmem:[%s15730_s9 + $0x288] sm:$0xff] }
 0x271   : > { %12148 = vmatmul.mubr.f32.gmra.mrb[76].mxu1 %v16353_v24 }
 0x272   : > { %13172 = vmatmul.mubr.f32.gmra.mrb[12].mxu0 %v16070_v39  ;;  %12150 = vmatprep.mubr.f32.mxu1 %v16357_v26  ;;  %v16377_v39 = vld [vmem:[%s15730_s9 + $0x290] sm:$0xff] }
 0x273   : > { %13174 = vmatprep.mubr.f32.mxu0 %v16074_v41  ;;  %v16383_v41 = vld [vmem:[%s15730_s9 + $0x298] sm:$0xff] }
 0x275   : > { %12151 = vmatmul.mubr.f32.gmra.mrb[78].mxu1 %v16363_v28 }
 0x276   : > { %13175 = vmatmul.mubr.f32.gmra.mrb[14].mxu0 %v16080_v44  ;;  %12153 = vmatprep.mubr.f32.mxu1 %v16367_v33  ;;  %v7081_v44 = vld [vmem:[#allocation8 + $0x3d8] sm:$0xff] }
 0x277   : > { %13177 = vmatprep.mubr.f32.mxu0 %v16084_v46  ;;  %v14037_v46 = vpack.c.bf16 %v7081_v44, %v7080_v4  ;;  %v16547_v4 = vld [vmem:[%s15730_s9 + $0x3a0] sm:$0xff] }
 0x278   : > { %v17866_v44 = vld [vmem:[#allocation27_spill] sm:$0xff] }
 0x279   : > { %12154 = vmatmul.mubr.f32.gmra.mrb[80].mxu1 %v16373_v36  ;;  %14038 = vmatprep.subr.bf16.mxu0 %v14037_v46 }
 0x27a   : > { %13178 = vmatmul.mubr.f32.gmra.mrb[16].mxu0 %v16090_v48  ;;  %12156 = vmatprep.mubr.f32.mxu1 %v16377_v39  ;;  %v16393_v48 = vld [vmem:[%s15730_s9 + $0x2a8] sm:$0xff] }
 0x27b   : > { %13180 = vmatprep.mubr.f32.mxu0 %v16094_v51  ;;  %14040 = vmatpush3.bf16.msra.mxu0 %v14037_v46  ;;  %v16403_v51 = vld [vmem:[%s15730_s9 + $0x2b8] sm:$0xff]  ;;  %v16557_v46 = vld [vmem:[%s15730_s9 + $0x3b0] sm:$0xff] }
 0x27d   : > { %12157 = vmatmul.mubr.f32.gmra.mrb[82].mxu1 %v16383_v41 }
 0x27e   : > { %13181 = vmatmul.mubr.f32.gmra.mrb[18].mxu0 %v16100_v55  ;;  %12159 = vmatprep.mubr.f32.mxu1 %v16387_v8  ;;  %v16407_v55 = vld [vmem:[%s15730_s9 + $0x2c0] sm:$0xff] }
 0x27f   : > { %13183 = vmatprep.mubr.f32.mxu0 %v16104_v57  ;;  %v16413_v57 = vld [vmem:[%s15730_s9 + $0x2c8] sm:$0xff] }
 0x281   : > { %12160 = vmatmul.mubr.f32.gmra.mrb[84].mxu1 %v16393_v48 }
 0x282   : > { %13184 = vmatmul.mubr.f32.gmra.mrb[20].mxu0 %v16110_v2  ;;  %12162 = vmatprep.mubr.f32.mxu1 %v16397_v56  ;;  %v16417_v2 = vld [vmem:[%s15730_s9 + $0x2d0] sm:$0xff] }
 0x283   : > { %13186 = vmatprep.mubr.f32.mxu0 %v16114_v60  ;;  %v16423_v60 = vld [vmem:[%s15730_s9 + $0x2d8] sm:$0xff] }
 0x285   : > { %12163 = vmatmul.mubr.f32.gmra.mrb[86].mxu1 %v16403_v51 }
 0x286   : > { %13187 = vmatmul.mubr.f32.gmra.mrb[22].mxu0 %v16120_v62  ;;  %12165 = vmatprep.mubr.f32.mxu1 %v16407_v55  ;;  %v16427_v62 = vld [vmem:[%s15730_s9 + $0x2e0] sm:$0xff] }
 0x287   : > { %13189 = vmatprep.mubr.f32.mxu0 %v16124_v0  ;;  %v16433_v0 = vld [vmem:[%s15730_s9 + $0x2e8] sm:$0xff] }
 0x289   : > { %12166 = vmatmul.mubr.f32.gmra.mrb[88].mxu1 %v16413_v57 }
 0x28a   : > { %13190 = vmatmul.mubr.f32.gmra.mrb[24].mxu0 %v16130_v3  ;;  %12168 = vmatprep.mubr.f32.mxu1 %v16417_v2  ;;  %v16437_v3 = vld [vmem:[%s15730_s9 + $0x2f0] sm:$0xff] }
 0x28b   : > { %13192 = vmatprep.mubr.f32.mxu0 %v16134_v6  ;;  %v16443_v6 = vld [vmem:[%s15730_s9 + $0x2f8] sm:$0xff] }
 0x28d   : > { %12169 = vmatmul.mubr.f32.gmra.mrb[90].mxu1 %v16423_v60 }
 0x28e   : > { %13193 = vmatmul.mubr.f32.gmra.mrb[26].mxu0 %v16140_v15  ;;  %12171 = vmatprep.mubr.f32.mxu1 %v16427_v62  ;;  %v16447_v15 = vld [vmem:[%s15730_s9 + $0x300] sm:$0xff] }
 0x28f   : > { %13195 = vmatprep.mubr.f32.mxu0 %v16144_v22  ;;  %v16453_v22 = vld [vmem:[%s15730_s9 + $0x308] sm:$0xff] }
 0x291   : > { %12172 = vmatmul.mubr.f32.gmra.mrb[92].mxu1 %v16433_v0 }
 0x292   : > { %13196 = vmatmul.mubr.f32.gmra.mrb[28].mxu0 %v16150_v27  ;;  %12174 = vmatprep.mubr.f32.mxu1 %v16437_v3  ;;  %v16457_v27 = vld [vmem:[%s15730_s9 + $0x310] sm:$0xff] }
 0x293   : > { %13198 = vmatprep.mubr.f32.mxu0 %v16154_v30  ;;  %v16463_v30 = vld [vmem:[%s15730_s9 + $0x318] sm:$0xff] }
 0x295   : > { %12175 = vmatmul.mubr.f32.gmra.mrb[94].mxu1 %v16443_v6 }
 0x296   : > { %13199 = vmatmul.mubr.f32.gmra.mrb[30].mxu0 %v16160_v34  ;;  %12177 = vmatprep.mubr.f32.mxu1 %v16447_v15  ;;  %v7083_v34 = vld [vmem:[#allocation8 + $0x3e8] sm:$0xff] }
 0x297   : > { %13201 = vmatprep.mubr.f32.mxu0 %v16164_v38  ;;  %v14041_v38 = vpack.c.bf16 %v7083_v34, %v7082_v37  ;;  %v16563_v37 = vld [vmem:[%s15730_s9 + $0x3b8] sm:$0xff]  ;;  %v16567_v34 = vld [vmem:[%s15730_s9 + $0x3c0] sm:$0xff] }
 0x299   : > { %12178 = vmatmul.mubr.f32.gmra.mrb[96].mxu1 %v16453_v22  ;;  %14042 = vmatprep.subr.bf16.mxu0 %v14041_v38 }
 0x29a   : > { %13202 = vmatmul.mubr.f32.gmra.mrb[32].mxu0 %v16170_v42  ;;  %12180 = vmatprep.mubr.f32.mxu1 %v16457_v27  ;;  %v16473_v42 = vld [vmem:[%s15730_s9 + $0x328] sm:$0xff] }
 0x29b   : > { %13204 = vmatprep.mubr.f32.mxu0 %v16174_v47  ;;  %14044 = vmatpush3.bf16.msra.mxu0 %v14041_v38  ;;  %v16483_v47 = vld [vmem:[%s15730_s9 + $0x338] sm:$0xff] }
 0x29c   : > { %v17869_v38 = vld [vmem:[#allocation30_spill] sm:$0xff] }
 0x29d   : > { %12181 = vmatmul.mubr.f32.gmra.mrb[98].mxu1 %v16463_v30 }
 0x29e   : > { %13205 = vmatmul.mubr.f32.gmra.mrb[34].mxu0 %v16180_v52  ;;  %12183 = vmatprep.mubr.f32.mxu1 %v16467_v53  ;;  %v16487_v52 = vld [vmem:[%s15730_s9 + $0x340] sm:$0xff] }
 0x29f   : > { %13207 = vmatprep.mubr.f32.mxu0 %v16184_v58  ;;  %v16493_v58 = vld [vmem:[%s15730_s9 + $0x348] sm:$0xff] }
 0x2a1   : > { %12184 = vmatmul.mubr.f32.gmra.mrb[100].mxu1 %v16473_v42 }
 0x2a2   : > { %13208 = vmatmul.mubr.f32.gmra.mrb[36].mxu0 %v16190_v61  ;;  %12186 = vmatprep.mubr.f32.mxu1 %v16477_v10  ;;  %v16497_v61 = vld [vmem:[%s15730_s9 + $0x350] sm:$0xff] }
 0x2a3   : > { %13210 = vmatprep.mubr.f32.mxu0 %v16194_v1  ;;  %v16503_v1 = vld [vmem:[%s15730_s9 + $0x358] sm:$0xff] }
 0x2a5   : > { %12187 = vmatmul.mubr.f32.gmra.mrb[102].mxu1 %v16483_v47 }
 0x2a6   : > { %13211 = vmatmul.mubr.f32.gmra.mrb[38].mxu0 %v16200_v9  ;;  %12189 = vmatprep.mubr.f32.mxu1 %v16487_v52  ;;  %v16507_v9 = vld [vmem:[%s15730_s9 + $0x360] sm:$0xff] }
 0x2a7   : > { %13213 = vmatprep.mubr.f32.mxu0 %v16204_v13  ;;  %v16513_v13 = vld [vmem:[%s15730_s9 + $0x368] sm:$0xff] }
 0x2a9   : > { %12190 = vmatmul.mubr.f32.gmra.mrb[104].mxu1 %v16493_v58 }
 0x2aa   : > { %13214 = vmatmul.mubr.f32.gmra.mrb[40].mxu0 %v16210_v20  ;;  %12192 = vmatprep.mubr.f32.mxu1 %v16497_v61  ;;  %v16517_v20 = vld [vmem:[%s15730_s9 + $0x370] sm:$0xff] }
 0x2ab   : > { %13216 = vmatprep.mubr.f32.mxu0 %v16214_v29  ;;  %v16523_v29 = vld [vmem:[%s15730_s9 + $0x378] sm:$0xff] }
 0x2ad   : > { %12193 = vmatmul.mubr.f32.gmra.mrb[106].mxu1 %v16503_v1 }
 0x2ae   : > { %13217 = vmatmul.mubr.f32.gmra.mrb[42].mxu0 %v16220_v45  ;;  %12195 = vmatprep.mubr.f32.mxu1 %v16507_v9  ;;  %v16527_v45 = vld [vmem:[%s15730_s9 + $0x380] sm:$0xff] }
 0x2af   : > { %13219 = vmatprep.mubr.f32.mxu0 %v16224_v59  ;;  %v16533_v59 = vld [vmem:[%s15730_s9 + $0x388] sm:$0xff] }
 0x2b1   : > { %12196 = vmatmul.mubr.f32.gmra.mrb[108].mxu1 %v16513_v13 }
 0x2b2   : > { %13220 = vmatmul.mubr.f32.gmra.mrb[44].mxu0 %v16230_v5  ;;  %12198 = vmatprep.mubr.f32.mxu1 %v16517_v20  ;;  %v16537_v5 = vld [vmem:[%s15730_s9 + $0x390] sm:$0xff] }
 0x2b3   : > { %13222 = vmatprep.mubr.f32.mxu0 %v16234_v18  ;;  %v16543_v18 = vld [vmem:[%s15730_s9 + $0x398] sm:$0xff] }
 0x2b5   : > { %12199 = vmatmul.mubr.f32.gmra.mrb[110].mxu1 %v16523_v29 }
 0x2b6   : > { %13223 = vmatmul.mubr.f32.gmra.mrb[46].mxu0 %v16240_v32  ;;  %12201 = vmatprep.mubr.f32.mxu1 %v16527_v45  ;;  %v7085_v32 = vld [vmem:[#allocation8 + $0x3f8] sm:$0xff] }
 0x2b7   : > { %13225 = vmatprep.mubr.f32.mxu0 %v16244_v40  ;;  %v14045_v40 = vpack.c.bf16 %v7085_v32, %v7084_v31  ;;  %v16573_v31 = vld [vmem:[%s15730_s9 + $0x3c8] sm:$0xff] }
 0x2b8   : > { %v17870_v32 = vld [vmem:[#allocation31_spill] sm:$0xff] }
 0x2b9   : > { %12202 = vmatmul.mubr.f32.gmra.mrb[112].mxu1 %v16533_v59  ;;  %14046 = vmatprep.subr.bf16.mxu0 %v14045_v40 }
 0x2ba   : > { %13226 = vmatmul.mubr.f32.gmra.mrb[48].mxu0 %v16250_v50  ;;  %12204 = vmatprep.mubr.f32.mxu1 %v16537_v5  ;;  %v16553_v50 = vld [vmem:[%s15730_s9 + $0x3a8] sm:$0xff] }
 0x2bb   : > { %13228 = vmatprep.mubr.f32.mxu0 %v16254_v54  ;;  %14048 = vmatpush3.bf16.msra.mxu0 %v14045_v40  ;;  %v17867_v54 = vld [vmem:[#allocation28_spill] sm:$0xff] }
 0x2bc   : > { %v16577_v40 = vld [vmem:[%s15730_s9 + $0x3d0] sm:$0xff] }
 0x2bd   : > { %12205 = vmatmul.mubr.f32.gmra.mrb[114].mxu1 %v16543_v18 }
 0x2be   : > { %13229 = vmatmul.mubr.f32.gmra.mrb[50].mxu0 %v16260_v49  ;;  %12207 = vmatprep.mubr.f32.mxu1 %v16547_v4  ;;  %v17868_v49 = vld [vmem:[#allocation29_spill] sm:$0xff] }
 0x2bf   : > { %13231 = vmatprep.mubr.f32.mxu0 %v17866_v44  ;;  %v16583_v44 = vld [vmem:[%s15730_s9 + $0x3d8] sm:$0xff] }
 0x2c0   : > { %17871 = vst [vmem:[#allocation27_spill] sm:$0xff] %v16583_v44 }
 0x2c1   : > { %12208 = vmatmul.mubr.f32.gmra.mrb[116].mxu1 %v16553_v50 }
 0x2c2   : > { %13232 = vmatmul.mubr.f32.gmra.mrb[52].mxu0 %v17867_v54  ;;  %12210 = vmatprep.mubr.f32.mxu1 %v16557_v46  ;;  %v16587_v54 = vld [vmem:[%s15730_s9 + $0x3e0] sm:$0xff] }
 0x2c3   : > { %13234 = vmatprep.mubr.f32.mxu0 %v17868_v49  ;;  %17872 = vst [vmem:[#allocation28_spill] sm:$0xff] %v16587_v54  ;;  %v16593_v49 = vld [vmem:[%s15730_s9 + $0x3e8] sm:$0xff] }
 0x2c4   : > { %17873 = vst [vmem:[#allocation29_spill] sm:$0xff] %v16593_v49 }
 0x2c5   : > { %12211 = vmatmul.mubr.f32.gmra.mrb[118].mxu1 %v16563_v37 }
 0x2c6   : > { %13235 = vmatmul.mubr.f32.gmra.mrb[54].mxu0 %v17869_v38  ;;  %12213 = vmatprep.mubr.f32.mxu1 %v16567_v34  ;;  %v3156_v38 = vld [vmem:[#allocation8 + $0x190] sm:$0xff] }
 0x2c7   : > { %13237 = vmatprep.mubr.f32.mxu0 %v17870_v32  ;;  %v3157_v32 = vld [vmem:[#allocation8 + $0x198] sm:$0xff] }
 0x2c9   : > { %12214 = vmatmul.mubr.f32.gmra.mrb[120].mxu1 %v16573_v31 }
 0x2ca   : > { %13238 = vmatmul.mubr.f32.gmra.mrb[56].mxu0 %v16289_v7  ;;  %12216 = vmatprep.mubr.f32.mxu1 %v16577_v40  ;;  %v16597_v7 = vld [vmem:[%s15730_s9 + $0x3f0] sm:$0xff] }
 0x2cb   : > { %13240 = vmatprep.mubr.f32.mxu0 %v16293_v63  ;;  %17874 = vst [vmem:[#allocation30_spill] sm:$0xff] %v16597_v7  ;;  %v16603_v63 = vld [vmem:[%s15730_s9 + $0x3f8] sm:$0xff] }
 0x2cc   : > { %17875 = vst [vmem:[#allocation31_spill] sm:$0xff] %v16603_v63 }
 0x2cd   : > { %12217 = vmatmul.mubr.f32.gmra.mrb[122].mxu1 %v16583_v44  ;;  %v8050_v44 = vld [vmem:[#allocation8 + $0x408] sm:$0xff] }
 0x2ce   : > { %13241 = vmatmul.mubr.f32.gmra.mrb[58].mxu0 %v16299_v35  ;;  %12219 = vmatprep.mubr.f32.mxu1 %v16587_v54  ;;  %v2046_v35 = vld [vmem:[%s15743_s13] sm:$0xff]  ;;  %v3159_v54 = vld [vmem:[#allocation8 + $0x1a8] sm:$0xff] }
 0x2cf   : > { %13243 = vmatprep.mubr.f32.mxu0 %v16306_v12  ;;  %v2047_v12 = vld [vmem:[%s15743_s13 + $0x8] sm:$0xff] }
 0x2d1   : > { %12220 = vmatmul.mubr.f32.gmra.mrb[124].mxu1 %v16593_v49  ;;  %v13893_v49 = vpack.c.bf16 %v3157_v32, %v3156_v38  ;;  %v3160_v38 = vld [vmem:[#allocation8 + $0x1b0] sm:$0xff]  ;;  %v3161_v32 = vld [vmem:[#allocation8 + $0x1b8] sm:$0xff] }
 0x2d2   : > { %13244 = vmatmul.mubr.f32.gmra.mrb[60].mxu0 %v16313_v23  ;;  %12222 = vmatprep.mubr.f32.mxu1 %v16597_v7  ;;  %v2048_v23 = vld [vmem:[%s15743_s13 + $0x10] sm:$0xff]  ;;  %v3158_v7 = vld [vmem:[#allocation8 + $0x1a0] sm:$0xff] }
 0x2d3   : > { %13246 = vmatprep.mubr.f32.mxu0 %v16317_v43  ;;  %v2049_v43 = vld [vmem:[%s15743_s13 + $0x18] sm:$0xff] }
 0x2d5   : > { %12223 = vmatmul.mubr.f32.gmra.mrb[126].mxu1 %v16603_v63  ;;  %v8049_v63 = vld [vmem:[#allocation8 + $0x400] sm:$0xff] }
 0x2d6   : > { %13247 = vmatmul.mubr.f32.gmra.mrb[62].mxu0 %v16323_v11  ;;  %12257 = vmatprep.mubr.f32.mxu1 %v2046_v35  ;;  %v2050_v11 = vld [vmem:[%s15743_s13 + $0x20] sm:$0xff]  ;;  %v16617_v35 = vpack.c.bf16 %v8050_v44, %v8049_v63 }
 0x2d7   : > { %13249 = vmatprep.mubr.f32.mxu0 %v16327_v14  ;;  %v13897_v14 = vpack.c.bf16 %v3159_v54, %v3158_v7  ;;  %v3162_v44 = vld [vmem:[#allocation8 + $0x1c0] sm:$0xff]  ;;  %v3163_v54 = vld [vmem:[#allocation8 + $0x1c8] sm:$0xff]  ;;  %v2053_v7 = vld [vmem:[%s15743_s13 + $0x38] sm:$0xff] }
 0x2d8   : > { %14050 = vmatprep.subr.bf16.mxu0 %v16617_v35  ;;  %v2058_v63 = vld [vmem:[%s15743_s13 + $0x60] sm:$0xff] }
 0x2d9   : > { %12258 = vmatmul.mubr.f32.vlgmr.msra.gmra.mrb[0].mxu1 %v2047_v12  ;;  %v3164_v12 = vld [vmem:[#allocation8 + $0x1d0] sm:$0xff] }
 0x2da   : > { %13250 = vmatmul.mubr.f32.gmra.mrb[64].mxu0 %v16333_v16  ;;  %13892 = vmatpush3.bf16.msra.mxu1 %v16301_v17  ;;  %v2051_v17 = vld [vmem:[%s15743_s13 + $0x28] sm:$0xff]  ;;  %v2052_v16 = vld [vmem:[%s15743_s13 + $0x30] sm:$0xff] }
 0x2db   : > { %12260 = vmatprep.mubr.f32.mxu1 %v2048_v23  ;;  %13252 = vmatprep.mubr.f32.mxu0 %v16337_v19  ;;  %v13901_v19 = vpack.c.bf16 %v3161_v32, %v3160_v38  ;;  %v2084_v38 = vld [vmem:[%s15743_s13 + $0x130] sm:$0xff] }
 0x2dc   : > { %13894 = vmatprep.subr.bf16.mxu1 %v13893_v49  ;;  %v3168_v32 = vld [vmem:[#allocation8 + $0x1f0] sm:$0xff] }
 0x2dd   : > { %12261 = vmatmul.mubr.f32.gmra.mrb[2].mxu1 %v2049_v43  ;;  %v2068_v43 = vld [vmem:[%s15743_s13 + $0xb0] sm:$0xff] }
 0x2de   : > { %13253 = vmatmul.mubr.f32.gmra.mrb[66].mxu0 %v16343_v21  ;;  %12263 = vmatprep.mubr.f32.mxu1 %v2050_v11  ;;  %v2054_v21 = vld [vmem:[%s15743_s13 + $0x40] sm:$0xff] }
 0x2df   : > { %13255 = vmatprep.mubr.f32.mxu0 %v16347_v25  ;;  %13896 = vmatpush3.bf16.msra.mxu1 %v13893_v49  ;;  %v13905_v25 = vpack.c.bf16 %v3163_v54, %v3162_v44  ;;  %v2055_v49 = vld [vmem:[%s15743_s13 + $0x48] sm:$0xff]  ;;  %v3166_v11 = vld [vmem:[#allocation8 + $0x1e0] sm:$0xff]  ;;  %v2101_v54 = vld [vmem:[%s15743_s13 + $0x1b8] sm:$0xff] }
 0x2e0   : > { %13898 = vmatprep.subr.bf16.mxu1 %v13897_v14  ;;  %v17878_v44 = vld [vmem:[#allocation19_spill] sm:$0xff] }
 0x2e1   : > { %12264 = vmatmul.mubr.f32.gmra.mrb[4].mxu1 %v2051_v17  ;;  %v2097_v17 = vld [vmem:[%s15743_s13 + $0x198] sm:$0xff] }
 0x2e2   : > { %13256 = vmatmul.mubr.f32.gmra.mrb[68].mxu0 %v16353_v24  ;;  %12266 = vmatprep.mubr.f32.mxu1 %v2052_v16  ;;  %v2056_v24 = vld [vmem:[%s15743_s13 + $0x50] sm:$0xff]  ;;  %v17876_v16 = vld [vmem:[#allocation27_spill] sm:$0xff] }
 0x2e3   : > { %13258 = vmatprep.mubr.f32.mxu0 %v16357_v26  ;;  %13900 = vmatpush3.bf16.msra.mxu1 %v13897_v14  ;;  %v2057_v26 = vld [vmem:[%s15743_s13 + $0x58] sm:$0xff] }
 0x2e4   : > { %13902 = vmatprep.subr.bf16.mxu1 %v13901_v19 }
 0x2e5   : > { %12267 = vmatmul.mubr.f32.gmra.mrb[6].mxu1 %v2053_v7  ;;  %v17880_v7 = vld [vmem:[#allocation30_spill] sm:$0xff] }
 0x2e6   : > { %13259 = vmatmul.mubr.f32.gmra.mrb[70].mxu0 %v16363_v28  ;;  %12269 = vmatprep.mubr.f32.mxu1 %v2054_v21  ;;  %v2059_v28 = vld [vmem:[%s15743_s13 + $0x68] sm:$0xff]  ;;  %v2102_v21 = vld [vmem:[%s15743_s13 + $0x1c0] sm:$0xff] }
 0x2e7   : > { %13261 = vmatprep.mubr.f32.mxu0 %v16367_v33  ;;  %13904 = vmatpush3.bf16.msra.mxu1 %v13901_v19  ;;  %v2060_v33 = vld [vmem:[%s15743_s13 + $0x70] sm:$0xff] }
 0x2e8   : > { %13906 = vmatprep.subr.bf16.mxu1 %v13905_v25  ;;  %v17877_v19 = vld [vmem:[#allocation28_spill] sm:$0xff] }
 0x2e9   : > { %12270 = vmatmul.mubr.f32.gmra.mrb[8].mxu1 %v2055_v49  ;;  %v17881_v49 = vld [vmem:[#allocation31_spill] sm:$0xff] }
 0x2ea   : > { %13262 = vmatmul.mubr.f32.gmra.mrb[72].mxu0 %v16373_v36  ;;  %12272 = vmatprep.mubr.f32.mxu1 %v2056_v24  ;;  %v2061_v36 = vld [vmem:[%s15743_s13 + $0x78] sm:$0xff]  ;;  %v2103_v24 = vld [vmem:[%s15743_s13 + $0x1c8] sm:$0xff] }
 0x2eb   : > { %13264 = vmatprep.mubr.f32.mxu0 %v16377_v39  ;;  %13908 = vmatpush3.bf16.msra.mxu1 %v13905_v25  ;;  %v2062_v39 = vld [vmem:[%s15743_s13 + $0x80] sm:$0xff] }
 0x2ec   : > { %v10210_v25 = vld [vmem:[%s15730_s9 + $0x400] sm:$0xff] }
 0x2ed   : > { %12273 = vmatmul.mubr.f32.gmra.mrb[10].mxu1 %v2057_v26  ;;  %v10211_v26 = vld [vmem:[%s15730_s9 + $0x408] sm:$0xff] }
 0x2ee   : > { %13265 = vmatmul.mubr.f32.gmra.mrb[74].mxu0 %v16383_v41  ;;  %12275 = vmatprep.mubr.f32.mxu1 %v2058_v63  ;;  %v2063_v41 = vld [vmem:[%s15743_s13 + $0x88] sm:$0xff]  ;;  %v2104_v63 = vld [vmem:[%s15743_s13 + $0x1d0] sm:$0xff] }
 0x2ef   : > { %13267 = vmatprep.mubr.f32.mxu0 %v16387_v8  ;;  %v2064_v8 = vld [vmem:[%s15743_s13 + $0x90] sm:$0xff] }
 0x2f1   : > { %12276 = vmatmul.mubr.f32.gmra.mrb[12].mxu1 %v2059_v28  ;;  %v10212_v28 = vld [vmem:[%s15730_s9 + $0x410] sm:$0xff] }
 0x2f2   : > { %13268 = vmatmul.mubr.f32.gmra.mrb[76].mxu0 %v16393_v48  ;;  %12278 = vmatprep.mubr.f32.mxu1 %v2060_v33  ;;  %v3165_v48 = vld [vmem:[#allocation8 + $0x1d8] sm:$0xff] }
 0x2f3   : > { %13270 = vmatprep.mubr.f32.mxu0 %v16397_v56  ;;  %v2065_v56 = vld [vmem:[%s15743_s13 + $0x98] sm:$0xff]  ;;  %v13909_v23 = vpack.c.bf16 %v3165_v48, %v3164_v12  ;;  %v10215_v12 = vld [vmem:[%s15730_s9 + $0x428] sm:$0xff]  ;;  %v2108_v48 = vld [vmem:[%s15743_s13 + $0x1f0] sm:$0xff] }
 0x2f4   : > { %v2105_v33 = vld [vmem:[%s15743_s13 + $0x1d8] sm:$0xff] }
 0x2f5   : > { %12279 = vmatmul.mubr.f32.gmra.mrb[14].mxu1 %v2061_v36  ;;  %13910 = vmatprep.subr.bf16.mxu1 %v13909_v23  ;;  %v10213_v36 = vld [vmem:[%s15730_s9 + $0x418] sm:$0xff] }
 0x2f6   : > { %13271 = vmatmul.mubr.f32.gmra.mrb[78].mxu0 %v16403_v51  ;;  %12281 = vmatprep.mubr.f32.mxu1 %v2062_v39  ;;  %v2066_v51 = vld [vmem:[%s15743_s13 + $0xa0] sm:$0xff] }
 0x2f7   : > { %13273 = vmatprep.mubr.f32.mxu0 %v16407_v55  ;;  %v2067_v55 = vld [vmem:[%s15743_s13 + $0xa8] sm:$0xff]  ;;  %13912 = vmatpush3.bf16.msra.mxu1 %v13909_v23  ;;  %v2106_v39 = vld [vmem:[%s15743_s13 + $0x1e0] sm:$0xff]  ;;  %v2109_v23 = vld [vmem:[%s15743_s13 + $0x1f8] sm:$0xff] }
 0x2f9   : > { %12282 = vmatmul.mubr.f32.gmra.mrb[16].mxu1 %v2063_v41  ;;  %v10214_v41 = vld [vmem:[%s15730_s9 + $0x420] sm:$0xff] }
 0x2fa   : > { %13274 = vmatmul.mubr.f32.gmra.mrb[80].mxu0 %v16413_v57  ;;  %12284 = vmatprep.mubr.f32.mxu1 %v2064_v8  ;;  %v2069_v57 = vld [vmem:[%s15743_s13 + $0xb8] sm:$0xff]  ;;  %v2107_v8 = vld [vmem:[%s15743_s13 + $0x1e8] sm:$0xff] }
 0x2fb   : > { %13276 = vmatprep.mubr.f32.mxu0 %v16417_v2  ;;  %v2070_v2 = vld [vmem:[%s15743_s13 + $0xc0] sm:$0xff] }
 0x2fd   : > { %12285 = vmatmul.mubr.f32.gmra.mrb[18].mxu1 %v2065_v56  ;;  %v10216_v56 = vld [vmem:[%s15730_s9 + $0x430] sm:$0xff] }
 0x2fe   : > { %13277 = vmatmul.mubr.f32.gmra.mrb[82].mxu0 %v16423_v60  ;;  %12287 = vmatprep.mubr.f32.mxu1 %v2066_v51  ;;  %v2071_v60 = vld [vmem:[%s15743_s13 + $0xc8] sm:$0xff]  ;;  %v10217_v51 = vld [vmem:[%s15730_s9 + $0x438] sm:$0xff] }
 0x2ff   : > { %13279 = vmatprep.mubr.f32.mxu0 %v16427_v62  ;;  %v2072_v62 = vld [vmem:[%s15743_s13 + $0xd0] sm:$0xff] }
 0x301   : > { %12288 = vmatmul.mubr.f32.gmra.mrb[20].mxu1 %v2067_v55  ;;  %v2110_v55 = vld [vmem:[%s15743_s13 + $0x200] sm:$0xff] }
 0x302   : > { %13280 = vmatmul.mubr.f32.gmra.mrb[84].mxu0 %v16433_v0  ;;  %12290 = vmatprep.mubr.f32.mxu1 %v2068_v43  ;;  %v2073_v0 = vld [vmem:[%s15743_s13 + $0xd8] sm:$0xff]  ;;  %v10218_v43 = vld [vmem:[%s15737_s28 + $0x40] sm:$0xff] }
 0x303   : > { %13282 = vmatprep.mubr.f32.mxu0 %v16437_v3  ;;  %v2074_v3 = vld [vmem:[%s15743_s13 + $0xe0] sm:$0xff] }
 0x305   : > { %12291 = vmatmul.mubr.f32.gmra.mrb[22].mxu1 %v2069_v57  ;;  %v8051_v57 = vld [vmem:[#allocation8 + $0x410] sm:$0xff] }
 0x306   : > { %13283 = vmatmul.mubr.f32.gmra.mrb[86].mxu0 %v16443_v6  ;;  %12293 = vmatprep.mubr.f32.mxu1 %v2070_v2  ;;  %v2075_v6 = vld [vmem:[%s15743_s13 + $0xe8] sm:$0xff]  ;;  %v8052_v2 = vld [vmem:[#allocation8 + $0x418] sm:$0xff] }
 0x307   : > { %13285 = vmatprep.mubr.f32.mxu0 %v16447_v15  ;;  %v2076_v15 = vld [vmem:[%s15743_s13 + $0xf0] sm:$0xff] }
 0x309   : > { %12294 = vmatmul.mubr.f32.gmra.mrb[24].mxu1 %v2071_v60  ;;  %v2111_v60 = vld [vmem:[%s15743_s13 + $0x208] sm:$0xff] }
 0x30a   : > { %13286 = vmatmul.mubr.f32.gmra.mrb[88].mxu0 %v16453_v22  ;;  %12296 = vmatprep.mubr.f32.mxu1 %v2072_v62  ;;  %v2077_v22 = vld [vmem:[%s15743_s13 + $0xf8] sm:$0xff]  ;;  %v10219_v62 = vld [vmem:[%s15737_s28 + $0x48] sm:$0xff] }
 0x30b   : > { %13288 = vmatprep.mubr.f32.mxu0 %v16457_v27  ;;  %v2078_v27 = vld [vmem:[%s15743_s13 + $0x100] sm:$0xff] }
 0x30d   : > { %12297 = vmatmul.mubr.f32.gmra.mrb[26].mxu1 %v2073_v0  ;;  %v2112_v0 = vld [vmem:[%s15743_s13 + $0x210] sm:$0xff] }
 0x30e   : > { %13289 = vmatmul.mubr.f32.gmra.mrb[90].mxu0 %v16463_v30  ;;  %12299 = vmatprep.mubr.f32.mxu1 %v2074_v3  ;;  %v2079_v30 = vld [vmem:[%s15743_s13 + $0x108] sm:$0xff]  ;;  %v10220_v3 = vld [vmem:[%s15737_s28 + $0x50] sm:$0xff] }
 0x30f   : > { %13291 = vmatprep.mubr.f32.mxu0 %v16467_v53  ;;  %v2080_v53 = vld [vmem:[%s15743_s13 + $0x110] sm:$0xff] }
 0x311   : > { %12300 = vmatmul.mubr.f32.gmra.mrb[28].mxu1 %v2075_v6  ;;  %v14053_v6 = vpack.c.bf16 %v8052_v2, %v8051_v57  ;;  %v2135_v57 = vld [vmem:[%s15743_s13 + $0x2c8] sm:$0xff] }
 0x312   : > { %13292 = vmatmul.mubr.f32.gmra.mrb[92].mxu0 %v16473_v42  ;;  %12302 = vmatprep.mubr.f32.mxu1 %v2076_v15  ;;  %v3167_v42 = vld [vmem:[#allocation8 + $0x1e8] sm:$0xff]  ;;  %v8053_v15 = vld [vmem:[#allocation8 + $0x420] sm:$0xff] }
 0x313   : > { %13294 = vmatprep.mubr.f32.mxu0 %v16477_v10  ;;  %v2081_v10 = vld [vmem:[%s15743_s13 + $0x118] sm:$0xff]  ;;  %v13913_v14 = vpack.c.bf16 %v3167_v42, %v3166_v11  ;;  %v10222_v11 = vld [vmem:[%s15737_s28 + $0x60] sm:$0xff]  ;;  %v10243_v2 = vld [vmem:[%s15737_s28 + $0x108] sm:$0xff] }
 0x315   : > { %12303 = vmatmul.mubr.f32.gmra.mrb[30].mxu1 %v2077_v22  ;;  %13914 = vmatprep.subr.bf16.mxu1 %v13913_v14  ;;  %v8054_v22 = vld [vmem:[#allocation8 + $0x428] sm:$0xff] }
 0x316   : > { %13295 = vmatmul.mubr.f32.gmra.mrb[94].mxu0 %v16483_v47  ;;  %12305 = vmatprep.mubr.f32.mxu1 %v2078_v27  ;;  %v2082_v47 = vld [vmem:[%s15743_s13 + $0x120] sm:$0xff]  ;;  %v2113_v27 = vld [vmem:[%s15743_s13 + $0x218] sm:$0xff]  ;;  %v14057_v42 = vpack.c.bf16 %v8054_v22, %v8053_v15  ;;  %v2139_v22 = vld [vmem:[%s15743_s13 + $0x2e8] sm:$0xff] }
 0x317   : > { %13297 = vmatprep.mubr.f32.mxu0 %v16487_v52  ;;  %v2083_v52 = vld [vmem:[%s15743_s13 + $0x128] sm:$0xff]  ;;  %13916 = vmatpush3.bf16.msra.mxu1 %v13913_v14  ;;  %v8056_v14 = vld [vmem:[#allocation8 + $0x438] sm:$0xff]  ;;  %v10246_v15 = vld [vmem:[%s15737_s28 + $0x120] sm:$0xff] }
 0x319   : > { %12306 = vmatmul.mubr.f32.gmra.mrb[32].mxu1 %v2079_v30  ;;  %v10221_v30 = vld [vmem:[%s15737_s28 + $0x58] sm:$0xff] }
 0x31a   : > { %13298 = vmatmul.mubr.f32.gmra.mrb[96].mxu0 %v16493_v58  ;;  %12308 = vmatprep.mubr.f32.mxu1 %v2080_v53  ;;  %v2085_v58 = vld [vmem:[%s15743_s13 + $0x138] sm:$0xff]  ;;  %v2114_v53 = vld [vmem:[%s15743_s13 + $0x220] sm:$0xff] }
 0x31b   : > { %13300 = vmatprep.mubr.f32.mxu0 %v16497_v61  ;;  %v2086_v61 = vld [vmem:[%s15743_s13 + $0x140] sm:$0xff] }
 0x31d   : > { %12309 = vmatmul.mubr.f32.gmra.mrb[34].mxu1 %v2081_v10  ;;  %v8055_v10 = vld [vmem:[#allocation8 + $0x430] sm:$0xff] }
 0x31e   : > { %13301 = vmatmul.mubr.f32.gmra.mrb[98].mxu0 %v16503_v1  ;;  %12311 = vmatprep.mubr.f32.mxu1 %v2082_v47  ;;  %v2087_v1 = vld [vmem:[%s15743_s13 + $0x148] sm:$0xff] }
 0x31f   : > { %13303 = vmatprep.mubr.f32.mxu0 %v16507_v9  ;;  %v2088_v9 = vld [vmem:[%s15743_s13 + $0x150] sm:$0xff]  ;;  %v2115_v47 = vld [vmem:[%s15743_s13 + $0x228] sm:$0xff] }
 0x321   : > { %12312 = vmatmul.mubr.f32.gmra.mrb[36].mxu1 %v2083_v52  ;;  %v10223_v52 = vld [vmem:[%s15737_s28 + $0x68] sm:$0xff] }
 0x322   : > { %13304 = vmatmul.mubr.f32.gmra.mrb[100].mxu0 %v16513_v13  ;;  %12314 = vmatprep.mubr.f32.mxu1 %v2084_v38  ;;  %v2089_v13 = vld [vmem:[%s15743_s13 + $0x158] sm:$0xff]  ;;  %v10224_v38 = vld [vmem:[%s15737_s28 + $0x70] sm:$0xff] }
 0x323   : > { %13306 = vmatprep.mubr.f32.mxu0 %v16517_v20  ;;  %v2090_v20 = vld [vmem:[%s15743_s13 + $0x160] sm:$0xff] }
 0x325   : > { %12315 = vmatmul.mubr.f32.gmra.mrb[38].mxu1 %v2085_v58  ;;  %v14061_v58 = vpack.c.bf16 %v8056_v14, %v8055_v10  ;;  %v2142_v10 = vld [vmem:[%s15743_s13 + $0x300] sm:$0xff] }
 0x326   : > { %13307 = vmatmul.mubr.f32.gmra.mrb[102].mxu0 %v16523_v29  ;;  %12317 = vmatprep.mubr.f32.mxu1 %v2086_v61  ;;  %v2091_v29 = vld [vmem:[%s15743_s13 + $0x168] sm:$0xff]  ;;  %v8057_v61 = vld [vmem:[#allocation8 + $0x440] sm:$0xff] }
 0x327   : > { %13309 = vmatprep.mubr.f32.mxu0 %v16527_v45  ;;  %v2092_v45 = vld [vmem:[%s15743_s13 + $0x170] sm:$0xff]  ;;  %v10250_v14 = vld [vmem:[%s15737_s28 + $0x140] sm:$0xff] }
 0x329   : > { %12318 = vmatmul.mubr.f32.gmra.mrb[40].mxu1 %v2087_v1  ;;  %v8058_v1 = vld [vmem:[#allocation8 + $0x448] sm:$0xff] }
 0x32a   : > { %13310 = vmatmul.mubr.f32.gmra.mrb[104].mxu0 %v16533_v59  ;;  %12320 = vmatprep.mubr.f32.mxu1 %v2088_v9  ;;  %v2093_v59 = vld [vmem:[%s15743_s13 + $0x178] sm:$0xff] }
 0x32b   : > { %13312 = vmatprep.mubr.f32.mxu0 %v16537_v5  ;;  %v2094_v5 = vld [vmem:[%s15743_s13 + $0x180] sm:$0xff]  ;;  %v2117_v9 = vld [vmem:[%s15743_s13 + $0x238] sm:$0xff] }
 0x32d   : > { %12321 = vmatmul.mubr.f32.gmra.mrb[42].mxu1 %v2089_v13  ;;  %v10225_v13 = vld [vmem:[%s15737_s28 + $0x78] sm:$0xff] }
 0x32e   : > { %13313 = vmatmul.mubr.f32.gmra.mrb[106].mxu0 %v16543_v18  ;;  %12323 = vmatprep.mubr.f32.mxu1 %v2090_v20  ;;  %v2095_v18 = vld [vmem:[%s15743_s13 + $0x188] sm:$0xff]  ;;  %v2118_v20 = vld [vmem:[%s15743_s13 + $0x240] sm:$0xff] }
 0x32f   : > { %13315 = vmatprep.mubr.f32.mxu0 %v16547_v4  ;;  %v2096_v4 = vld [vmem:[%s15743_s13 + $0x190] sm:$0xff] }
 0x331   : > { %12324 = vmatmul.mubr.f32.gmra.mrb[44].mxu1 %v2091_v29  ;;  %v10226_v29 = vld [vmem:[%s15737_s28 + $0x80] sm:$0xff] }
 0x332   : > { %13316 = vmatmul.mubr.f32.gmra.mrb[108].mxu0 %v16553_v50  ;;  %12326 = vmatprep.mubr.f32.mxu1 %v2092_v45  ;;  %v3169_v50 = vld [vmem:[#allocation8 + $0x1f8] sm:$0xff]  ;;  %v14065_v45 = vpack.c.bf16 %v8058_v1, %v8057_v61  ;;  %v8061_v61 = vld [vmem:[#allocation8 + $0x460] sm:$0xff]  ;;  %v8062_v1 = vld [vmem:[#allocation8 + $0x468] sm:$0xff] }
 0x333   : > { %13318 = vmatprep.mubr.f32.mxu0 %v16557_v46  ;;  %v13917_v46 = vpack.c.bf16 %v3169_v50, %v3168_v32  ;;  %v2121_v32 = vld [vmem:[%s15743_s13 + $0x258] sm:$0xff] }
 0x334   : > { %v10229_v50 = vld [vmem:[%s15737_s28 + $0x98] sm:$0xff] }
 0x335   : > { %12327 = vmatmul.mubr.f32.gmra.mrb[46].mxu1 %v2093_v59  ;;  %13918 = vmatprep.subr.bf16.mxu1 %v13917_v46  ;;  %v2119_v59 = vld [vmem:[%s15743_s13 + $0x248] sm:$0xff] }
 0x336   : > { %13319 = vmatmul.mubr.f32.gmra.mrb[110].mxu0 %v16563_v37  ;;  %12329 = vmatprep.mubr.f32.mxu1 %v2094_v5  ;;  %v2098_v37 = vld [vmem:[%s15743_s13 + $0x1a0] sm:$0xff]  ;;  %v10227_v5 = vld [vmem:[%s15737_s28 + $0x88] sm:$0xff] }
 0x337   : > { %13321 = vmatprep.mubr.f32.mxu0 %v16567_v34  ;;  %v2099_v34 = vld [vmem:[%s15743_s13 + $0x1a8] sm:$0xff]  ;;  %13920 = vmatpush3.bf16.msra.mxu1 %v13917_v46  ;;  %v10230_v46 = vld [vmem:[%s15737_s28 + $0xa0] sm:$0xff] }
 0x338   : > { %14081 = vmatprep.subr.bf16.mxu1 %v17878_v44 }
 0x339   : > { %12330 = vmatmul.mubr.f32.gmra.mrb[48].mxu1 %v2095_v18  ;;  %v2120_v18 = vld [vmem:[%s15743_s13 + $0x250] sm:$0xff] }
 0x33a   : > { %13322 = vmatmul.mubr.f32.gmra.mrb[112].mxu0 %v16573_v31  ;;  %12332 = vmatprep.mubr.f32.mxu1 %v2096_v4  ;;  %v2100_v31 = vld [vmem:[%s15743_s13 + $0x1b0] sm:$0xff] }
 0x33b   : > { %13324 = vmatprep.mubr.f32.mxu0 %v16577_v40  ;;  %v17879_v40 = vld [vmem:[#allocation29_spill] sm:$0xff] }
 0x33c   : > { %v10228_v4 = vld [vmem:[%s15737_s28 + $0x90] sm:$0xff] }
 0x33d   : > { %12333 = vmatmul.mubr.f32.gmra.mrb[50].mxu1 %v2097_v17  ;;  %v2122_v17 = vld [vmem:[%s15743_s13 + $0x260] sm:$0xff] }
 0x33e   : > { %13325 = vmatmul.mubr.f32.gmra.mrb[114].mxu0 %v17876_v16  ;;  %12335 = vmatprep.mubr.f32.mxu1 %v2098_v37  ;;  %v2123_v37 = vld [vmem:[%s15743_s13 + $0x268] sm:$0xff] }
 0x33f   : > { %13327 = vmatprep.mubr.f32.mxu0 %v17877_v19  ;;  %v10231_v16 = vld [vmem:[%s15737_s28 + $0xa8] sm:$0xff]  ;;  %v10232_v19 = vld [vmem:[%s15737_s28 + $0xb0] sm:$0xff] }
 0x341   : > { %12336 = vmatmul.mubr.f32.gmra.mrb[52].mxu1 %v2099_v34  ;;  %v2124_v34 = vld [vmem:[%s15743_s13 + $0x270] sm:$0xff] }
 0x342   : > { %13328 = vmatmul.mubr.f32.gmra.mrb[116].mxu0 %v17879_v40  ;;  %12338 = vmatprep.mubr.f32.mxu1 %v2100_v31  ;;  %v2125_v31 = vld [vmem:[%s15743_s13 + $0x278] sm:$0xff] }
 0x343   : > { %13330 = vmatprep.mubr.f32.mxu0 %v17880_v7  ;;  %v10233_v40 = vld [vmem:[%s15737_s28 + $0xb8] sm:$0xff]  ;;  %v10234_v7 = vld [vmem:[%s15737_s28 + $0xc0] sm:$0xff] }
 0x345   : > { %12339 = vmatmul.mubr.f32.gmra.mrb[54].mxu1 %v2101_v54  ;;  %v2126_v54 = vld [vmem:[%s15743_s13 + $0x280] sm:$0xff] }
 0x346   : > { %13331 = vmatmul.mubr.f32.gmra.mrb[118].mxu0 %v17881_v49  ;;  %12341 = vmatprep.mubr.f32.mxu1 %v2102_v21  ;;  %v2127_v21 = vld [vmem:[%s15743_s13 + $0x288] sm:$0xff]  ;;  %v2128_v49 = vld [vmem:[%s15743_s13 + $0x290] sm:$0xff] }
 0x347   : > { %13333 = vmatprep.mubr.f32.mxu0 %v10210_v25  ;;  %v10235_v25 = vld [vmem:[%s15737_s28 + $0xc8] sm:$0xff] }
 0x349   : > { %12342 = vmatmul.mubr.f32.gmra.mrb[56].mxu1 %v2103_v24  ;;  %v10236_v24 = vld [vmem:[%s15737_s28 + $0xd0] sm:$0xff] }
 0x34a   : > { %13334 = vmatmul.mubr.f32.gmra.mrb[120].mxu0 %v10211_v26  ;;  %12344 = vmatprep.mubr.f32.mxu1 %v2104_v63  ;;  %v2129_v26 = vld [vmem:[%s15743_s13 + $0x298] sm:$0xff]  ;;  %v8059_v63 = vld [vmem:[#allocation8 + $0x450] sm:$0xff] }
 0x34b   : > { %13336 = vmatprep.mubr.f32.mxu0 %v10212_v28  ;;  %v8060_v28 = vld [vmem:[#allocation8 + $0x458] sm:$0xff] }
 0x34d   : > { %12345 = vmatmul.mubr.f32.gmra.mrb[58].mxu1 %v2105_v33  ;;  %v10237_v33 = vld [vmem:[%s15737_s28 + $0xd8] sm:$0xff] }
 0x34e   : > { %13337 = vmatmul.mubr.f32.gmra.mrb[122].mxu0 %v10213_v36  ;;  %12347 = vmatprep.mubr.f32.mxu1 %v2106_v39  ;;  %v2130_v36 = vld [vmem:[%s15743_s13 + $0x2a0] sm:$0xff]  ;;  %v14069_v39 = vpack.c.bf16 %v8060_v28, %v8059_v63 }
 0x34f   : > { %13339 = vmatprep.mubr.f32.mxu0 %v10214_v41  ;;  %v10238_v41 = vld [vmem:[%s15737_s28 + $0xe0] sm:$0xff] }
 0x350   : > { %v2158_v63 = vld [vmem:[%s15743_s13 + $0x380] sm:$0xff] }
 0x351   : > { %12348 = vmatmul.mubr.f32.gmra.mrb[60].mxu1 %v2107_v8  ;;  %v2131_v8 = vld [vmem:[%s15743_s13 + $0x2a8] sm:$0xff]  ;;  %v10266_v28 = vld [vmem:[%s15737_s28 + $0x1c0] sm:$0xff] }
 0x352   : > { %13340 = vmatmul.mubr.f32.gmra.mrb[124].mxu0 %v10215_v12  ;;  %12350 = vmatprep.mubr.f32.mxu1 %v2108_v48  ;;  %v10239_v12 = vld [vmem:[%s15737_s28 + $0xe8] sm:$0xff]  ;;  %v2132_v48 = vld [vmem:[%s15743_s13 + $0x2b0] sm:$0xff] }
 0x353   : > { %13342 = vmatprep.mubr.f32.mxu0 %v10216_v56  ;;  %v10240_v56 = vld [vmem:[%s15737_s28 + $0xf0] sm:$0xff] }
 0x355   : > { %12351 = vmatmul.mubr.f32.gmra.mrb[62].mxu1 %v2109_v23  ;;  %v2133_v23 = vld [vmem:[%s15743_s13 + $0x2b8] sm:$0xff] }
 0x356   : > { %13343 = vmatmul.mubr.f32.gmra.mrb[126].mxu0 %v10217_v51  ;;  %12353 = vmatprep.mubr.f32.mxu1 %v2110_v55  ;;  %v10241_v51 = vld [vmem:[%s15737_s28 + $0xf8] sm:$0xff]  ;;  %v2134_v55 = vld [vmem:[%s15743_s13 + $0x2c0] sm:$0xff] }
 0x357   : > { %13377 = vmatprep.mubr.f32.mxu0 %v10218_v43  ;;  %v10242_v43 = vld [vmem:[%s15737_s28 + $0x100] sm:$0xff] }
 0x359   : > { %12354 = vmatmul.mubr.f32.gmra.mrb[64].mxu1 %v2111_v60  ;;  %v2136_v60 = vld [vmem:[%s15743_s13 + $0x2d0] sm:$0xff] }
 0x35a   : > { %13378 = vmatmul.mubr.f32.vlgmr.msra.gmra.mrb[0].mxu0 %v10219_v62  ;;  %12356 = vmatprep.mubr.f32.mxu1 %v2112_v0  ;;  %v10244_v62 = vld [vmem:[%s15737_s28 + $0x110] sm:$0xff]  ;;  %v2137_v0 = vld [vmem:[%s15743_s13 + $0x2d8] sm:$0xff] }
 0x35b   : > { %14052 = vmatpush3.bf16.msra.mxu0 %v16617_v35  ;;  %13380 = vmatprep.mubr.f32.mxu0 %v10220_v3  ;;  %v2116_v35 = vld [vmem:[%s15743_s13 + $0x230] sm:$0xff]  ;;  %v10245_v3 = vld [vmem:[%s15737_s28 + $0x118] sm:$0xff] }
 0x35c   : > { %14054 = vmatprep.subr.bf16.mxu0 %v14053_v6 }
 0x35d   : > { %12357 = vmatmul.mubr.f32.gmra.mrb[66].mxu1 %v2113_v27  ;;  %v10247_v27 = vld [vmem:[%s15737_s28 + $0x128] sm:$0xff] }
 0x35e   : > { %13381 = vmatmul.mubr.f32.gmra.mrb[2].mxu0 %v10221_v30  ;;  %12359 = vmatprep.mubr.f32.mxu1 %v2114_v53  ;;  %v2140_v30 = vld [vmem:[%s15743_s13 + $0x2f0] sm:$0xff] }
 0x35f   : > { %13383 = vmatprep.mubr.f32.mxu0 %v10222_v11  ;;  %14056 = vmatpush3.bf16.msra.mxu0 %v14053_v6  ;;  %v2138_v6 = vld [vmem:[%s15743_s13 + $0x2e0] sm:$0xff]  ;;  %v10248_v53 = vld [vmem:[%s15737_s28 + $0x130] sm:$0xff]  ;;  %v2141_v11 = vld [vmem:[%s15743_s13 + $0x2f8] sm:$0xff] }
 0x360   : > { %14058 = vmatprep.subr.bf16.mxu0 %v14057_v42 }
 0x361   : > { %12360 = vmatmul.mubr.f32.gmra.mrb[68].mxu1 %v2115_v47  ;;  %v2143_v47 = vld [vmem:[%s15743_s13 + $0x308] sm:$0xff] }
 0x362   : > { %13384 = vmatmul.mubr.f32.gmra.mrb[4].mxu0 %v10223_v52  ;;  %12362 = vmatprep.mubr.f32.mxu1 %v2116_v35  ;;  %v10251_v52 = vld [vmem:[%s15737_s28 + $0x148] sm:$0xff]  ;;  %v2144_v35 = vld [vmem:[%s15743_s13 + $0x310] sm:$0xff] }
 0x363   : > { %13386 = vmatprep.mubr.f32.mxu0 %v10224_v38  ;;  %14060 = vmatpush3.bf16.msra.mxu0 %v14057_v42  ;;  %v10249_v42 = vld [vmem:[%s15737_s28 + $0x138] sm:$0xff]  ;;  %v10252_v38 = vld [vmem:[%s15737_s28 + $0x150] sm:$0xff] }
 0x364   : > { %14062 = vmatprep.subr.bf16.mxu0 %v14061_v58 }
 0x365   : > { %12363 = vmatmul.mubr.f32.gmra.mrb[70].mxu1 %v2117_v9  ;;  %v10253_v9 = vld [vmem:[%s15737_s28 + $0x158] sm:$0xff] }
 0x366   : > { %13387 = vmatmul.mubr.f32.gmra.mrb[6].mxu0 %v10225_v13  ;;  %12365 = vmatprep.mubr.f32.mxu1 %v2118_v20  ;;  %v2146_v13 = vld [vmem:[%s15743_s13 + $0x320] sm:$0xff]  ;;  %v14073_v20 = vpack.c.bf16 %v8062_v1, %v8061_v61 }
 0x367   : > { %13389 = vmatprep.mubr.f32.mxu0 %v10226_v29  ;;  %14064 = vmatpush3.bf16.msra.mxu0 %v14061_v58  ;;  %v2145_v58 = vld [vmem:[%s15743_s13 + $0x318] sm:$0xff]  ;;  %v10254_v29 = vld [vmem:[%s15737_s28 + $0x160] sm:$0xff] }
 0x368   : > { %14066 = vmatprep.subr.bf16.mxu0 %v14065_v45  ;;  %v9706_v61 = vld [vmem:[%s15730_s9 + $0x20] sm:$0xff] }
 0x369   : > { %12366 = vmatmul.mubr.f32.gmra.mrb[72].mxu1 %v2119_v59  ;;  %v10255_v59 = vld [vmem:[%s15737_s28 + $0x168] sm:$0xff]  ;;  %v10282_v1 = vld [vmem:[%s15737_s28 + $0x240] sm:$0xff] }
 0x36a   : > { %13390 = vmatmul.mubr.f32.gmra.mrb[8].mxu0 %v10227_v5  ;;  %12368 = vmatprep.mubr.f32.mxu1 %v2120_v18  ;;  %v2148_v5 = vld [vmem:[%s15743_s13 + $0x330] sm:$0xff] }
 0x36b   : > { %13392 = vmatprep.mubr.f32.mxu0 %v10228_v4  ;;  %14068 = vmatpush3.bf16.msra.mxu0 %v14065_v45  ;;  %v2147_v45 = vld [vmem:[%s15743_s13 + $0x328] sm:$0xff]  ;;  %v10256_v18 = vld [vmem:[%s15737_s28 + $0x170] sm:$0xff]  ;;  %v2149_v4 = vld [vmem:[%s15743_s13 + $0x338] sm:$0xff] }
 0x36c   : > { %14070 = vmatprep.subr.bf16.mxu0 %v14069_v39 }
 0x36d   : > { %12369 = vmatmul.mubr.f32.gmra.mrb[74].mxu1 %v2121_v32  ;;  %v10257_v32 = vld [vmem:[%s15737_s28 + $0x178] sm:$0xff] }
 0x36e   : > { %13393 = vmatmul.mubr.f32.gmra.mrb[10].mxu0 %v10229_v50  ;;  %12371 = vmatprep.mubr.f32.mxu1 %v2122_v17  ;;  %v2150_v50 = vld [vmem:[%s15743_s13 + $0x340] sm:$0xff] }
 0x36f   : > { %13395 = vmatprep.mubr.f32.mxu0 %v10230_v46  ;;  %14072 = vmatpush3.bf16.msra.mxu0 %v14069_v39  ;;  %v10258_v17 = vld [vmem:[%s15737_s28 + $0x180] sm:$0xff]  ;;  %v2151_v46 = vld [vmem:[%s15743_s13 + $0x348] sm:$0xff]  ;;  %v2160_v39 = vld [vmem:[%s15743_s13 + $0x390] sm:$0xff] }
 0x370   : > { %14074 = vmatprep.subr.bf16.mxu0 %v14073_v20 }
 0x371   : > { %12372 = vmatmul.mubr.f32.gmra.mrb[76].mxu1 %v2123_v37  ;;  %v10259_v37 = vld [vmem:[%s15737_s28 + $0x188] sm:$0xff] }
 0x372   : > { %13396 = vmatmul.mubr.f32.gmra.mrb[12].mxu0 %v10231_v16  ;;  %12374 = vmatprep.mubr.f32.mxu1 %v2124_v34  ;;  %v2152_v16 = vld [vmem:[%s15743_s13 + $0x350] sm:$0xff] }
 0x373   : > { %13398 = vmatprep.mubr.f32.mxu0 %v10232_v19  ;;  %14076 = vmatpush3.bf16.msra.mxu0 %v14073_v20  ;;  %v10260_v34 = vld [vmem:[%s15737_s28 + $0x190] sm:$0xff]  ;;  %v2153_v19 = vld [vmem:[%s15743_s13 + $0x358] sm:$0xff] }
 0x374   : > { %v9708_v20 = vld [vmem:[%s15730_s9 + $0x30] sm:$0xff] }
 0x375   : > { %12375 = vmatmul.mubr.f32.gmra.mrb[78].mxu1 %v2125_v31  ;;  %v10261_v31 = vld [vmem:[%s15737_s28 + $0x198] sm:$0xff] }
 0x376   : > { %13399 = vmatmul.mubr.f32.gmra.mrb[14].mxu0 %v10233_v40  ;;  %12377 = vmatprep.mubr.f32.mxu1 %v2126_v54  ;;  %v2154_v40 = vld [vmem:[%s15743_s13 + $0x360] sm:$0xff] }
 0x377   : > { %13401 = vmatprep.mubr.f32.mxu0 %v10234_v7  ;;  %v10262_v54 = vld [vmem:[%s15737_s28 + $0x1a0] sm:$0xff]  ;;  %v2155_v7 = vld [vmem:[%s15743_s13 + $0x368] sm:$0xff] }
 0x379   : > { %12378 = vmatmul.mubr.f32.gmra.mrb[80].mxu1 %v2127_v21  ;;  %v10263_v21 = vld [vmem:[%s15737_s28 + $0x1a8] sm:$0xff] }
 0x37a   : > { %13402 = vmatmul.mubr.f32.gmra.mrb[16].mxu0 %v10235_v25  ;;  %12380 = vmatprep.mubr.f32.mxu1 %v2128_v49  ;;  %v2156_v25 = vld [vmem:[%s15743_s13 + $0x370] sm:$0xff] }
 0x37b   : > { %13404 = vmatprep.mubr.f32.mxu0 %v10236_v24  ;;  %v10264_v49 = vld [vmem:[%s15737_s28 + $0x1b0] sm:$0xff]  ;;  %v2157_v24 = vld [vmem:[%s15743_s13 + $0x378] sm:$0xff] }
 0x37d   : > { %12381 = vmatmul.mubr.f32.gmra.mrb[82].mxu1 %v2129_v26  ;;  %v10265_v26 = vld [vmem:[%s15737_s28 + $0x1b8] sm:$0xff] }
 0x37e   : > { %13405 = vmatmul.mubr.f32.gmra.mrb[18].mxu0 %v10237_v33  ;;  %12383 = vmatprep.mubr.f32.mxu1 %v2130_v36  ;;  %v2159_v33 = vld [vmem:[%s15743_s13 + $0x388] sm:$0xff] }
 0x37f   : > { %13407 = vmatprep.mubr.f32.mxu0 %v10238_v41  ;;  %v10267_v36 = vld [vmem:[%s15737_s28 + $0x1c8] sm:$0xff]  ;;  %v10268_v41 = vld [vmem:[%s15737_s28 + $0x1d0] sm:$0xff] }
 0x381   : > { %12384 = vmatmul.mubr.f32.gmra.mrb[84].mxu1 %v2131_v8  ;;  %v2161_v8 = vld [vmem:[%s15743_s13 + $0x398] sm:$0xff] }
 0x382   : > { %13408 = vmatmul.mubr.f32.gmra.mrb[20].mxu0 %v10239_v12  ;;  %12386 = vmatprep.mubr.f32.mxu1 %v2132_v48  ;;  %v8063_v12 = vld [vmem:[#allocation8 + $0x470] sm:$0xff]  ;;  %v8064_v48 = vld [vmem:[#allocation8 + $0x478] sm:$0xff] }
 0x383   : > { %13410 = vmatprep.mubr.f32.mxu0 %v10240_v56  ;;  %v10269_v56 = vld [vmem:[%s15737_s28 + $0x1d8] sm:$0xff] }
 0x385   : > { %12387 = vmatmul.mubr.f32.gmra.mrb[86].mxu1 %v2133_v23  ;;  %v2162_v23 = vld [vmem:[%s15743_s13 + $0x3a0] sm:$0xff] }
 0x386   : > { %13411 = vmatmul.mubr.f32.gmra.mrb[22].mxu0 %v10241_v51  ;;  %12389 = vmatprep.mubr.f32.mxu1 %v2134_v55  ;;  %v14077_v51 = vpack.c.bf16 %v8064_v48, %v8063_v12  ;;  %v10270_v55 = vld [vmem:[%s15737_s28 + $0x1e0] sm:$0xff]  ;;  %v9721_v12 = vld [vmem:[%s15730_s9 + $0x98] sm:$0xff] }
 0x387   : > { %13413 = vmatprep.mubr.f32.mxu0 %v10242_v43  ;;  %v2163_v43 = vld [vmem:[%s15743_s13 + $0x3a8] sm:$0xff]  ;;  %v10297_v48 = vld [vmem:[%s15737_s28 + $0x2b8] sm:$0xff] }
 0x388   : > { %14078 = vmatprep.subr.bf16.mxu0 %v14077_v51 }
 0x389   : > { %12390 = vmatmul.mubr.f32.gmra.mrb[88].mxu1 %v2135_v57  ;;  %v10271_v57 = vld [vmem:[%s15737_s28 + $0x1e8] sm:$0xff]  ;;  %14080 = vmatpush3.bf16.msra.mxu0 %v14077_v51  ;;  %v17888_v51 = vld [vmem:[#allocation26_spill] sm:$0xff] }
 0x38a   : > { %13414 = vmatmul.mubr.f32.gmra.mrb[24].mxu0 %v10243_v2  ;;  %12392 = vmatprep.mubr.f32.mxu1 %v2136_v60  ;;  %v2164_v2 = vld [vmem:[%s15743_s13 + $0x3b0] sm:$0xff] }
 0x38b   : > { %13416 = vmatprep.mubr.f32.mxu0 %v10244_v62  ;;  %v10272_v60 = vld [vmem:[%s15737_s28 + $0x1f0] sm:$0xff]  ;;  %v2165_v62 = vld [vmem:[%s15743_s13 + $0x3b8] sm:$0xff] }
 0x38d   : > { %12393 = vmatmul.mubr.f32.gmra.mrb[90].mxu1 %v2137_v0  ;;  %v10273_v0 = vld [vmem:[%s15737_s28 + $0x1f8] sm:$0xff] }
 0x38e   : > { %13417 = vmatmul.mubr.f32.gmra.mrb[26].mxu0 %v10245_v3  ;;  %12395 = vmatprep.mubr.f32.mxu1 %v2138_v6  ;;  %v2166_v3 = vld [vmem:[%s15743_s13 + $0x3c0] sm:$0xff] }
 0x38f   : > { %13419 = vmatprep.mubr.f32.mxu0 %v10246_v15  ;;  %v10274_v6 = vld [vmem:[%s15737_s28 + $0x200] sm:$0xff]  ;;  %v2167_v15 = vld [vmem:[%s15743_s13 + $0x3c8] sm:$0xff] }
 0x391   : > { %12396 = vmatmul.mubr.f32.gmra.mrb[92].mxu1 %v2139_v22  ;;  %v10275_v22 = vld [vmem:[%s15737_s28 + $0x208] sm:$0xff] }
 0x392   : > { %13420 = vmatmul.mubr.f32.gmra.mrb[28].mxu0 %v10247_v27  ;;  %12398 = vmatprep.mubr.f32.mxu1 %v2140_v30  ;;  %v2168_v27 = vld [vmem:[%s15743_s13 + $0x3d0] sm:$0xff] }
 0x393   : > { %13422 = vmatprep.mubr.f32.mxu0 %v10248_v53  ;;  %v10276_v30 = vld [vmem:[%s15737_s28 + $0x210] sm:$0xff]  ;;  %v2169_v53 = vld [vmem:[%s15743_s13 + $0x3d8] sm:$0xff] }
 0x395   : > { %12399 = vmatmul.mubr.f32.gmra.mrb[94].mxu1 %v2141_v11  ;;  %v10277_v11 = vld [vmem:[%s15737_s28 + $0x218] sm:$0xff] }
 0x396   : > { %13423 = vmatmul.mubr.f32.gmra.mrb[30].mxu0 %v10249_v42  ;;  %12401 = vmatprep.mubr.f32.mxu1 %v2142_v10  ;;  %v2170_v42 = vld [vmem:[%s15743_s13 + $0x3e0] sm:$0xff] }
 0x397   : > { %13425 = vmatprep.mubr.f32.mxu0 %v10250_v14  ;;  %v10278_v10 = vld [vmem:[%s15737_s28 + $0x220] sm:$0xff]  ;;  %v2171_v14 = vld [vmem:[%s15743_s13 + $0x3e8] sm:$0xff] }
 0x399   : > { %12402 = vmatmul.mubr.f32.gmra.mrb[96].mxu1 %v2143_v47  ;;  %v10279_v47 = vld [vmem:[%s15737_s28 + $0x228] sm:$0xff] }
 0x39a   : > { %13426 = vmatmul.mubr.f32.gmra.mrb[32].mxu0 %v10251_v52  ;;  %12404 = vmatprep.mubr.f32.mxu1 %v2144_v35  ;;  %v2172_v52 = vld [vmem:[%s15743_s13 + $0x3f0] sm:$0xff] }
 0x39b   : > { %13428 = vmatprep.mubr.f32.mxu0 %v10252_v38  ;;  %v10280_v35 = vld [vmem:[%s15737_s28 + $0x230] sm:$0xff]  ;;  %v2173_v38 = vld [vmem:[%s15743_s13 + $0x3f8] sm:$0xff] }
 0x39d   : > { %12405 = vmatmul.mubr.f32.gmra.mrb[98].mxu1 %v2145_v58  ;;  %v10281_v58 = vld [vmem:[%s15737_s28 + $0x238] sm:$0xff] }
 0x39e   : > { %13429 = vmatmul.mubr.f32.gmra.mrb[34].mxu0 %v10253_v9  ;;  %12407 = vmatprep.mubr.f32.mxu1 %v2146_v13  ;;  %v9707_v9 = vld [vmem:[%s15730_s9 + $0x28] sm:$0xff] }
 0x39f   : > { %13431 = vmatprep.mubr.f32.mxu0 %v10254_v29  ;;  %v10283_v13 = vld [vmem:[%s15737_s28 + $0x248] sm:$0xff]  ;;  %v10284_v29 = vld [vmem:[%s15737_s28 + $0x250] sm:$0xff] }
 0x3a1   : > { %12408 = vmatmul.mubr.f32.gmra.mrb[100].mxu1 %v2147_v45  ;;  %v9709_v45 = vld [vmem:[%s15730_s9 + $0x38] sm:$0xff] }
 0x3a2   : > { %13432 = vmatmul.mubr.f32.gmra.mrb[36].mxu0 %v10255_v59  ;;  %12410 = vmatprep.mubr.f32.mxu1 %v2148_v5  ;;  %v10285_v59 = vld [vmem:[%s15737_s28 + $0x258] sm:$0xff]  ;;  %v9710_v5 = vld [vmem:[%s15730_s9 + $0x40] sm:$0xff] }
 0x3a3   : > { %13434 = vmatprep.mubr.f32.mxu0 %v10256_v18  ;;  %v10286_v18 = vld [vmem:[%s15737_s28 + $0x260] sm:$0xff] }
 0x3a5   : > { %12411 = vmatmul.mubr.f32.gmra.mrb[102].mxu1 %v2149_v4  ;;  %v17882_v4 = vld [vmem:[#allocation20_spill] sm:$0xff] }
 0x3a6   : > { %13435 = vmatmul.mubr.f32.gmra.mrb[38].mxu0 %v10257_v32  ;;  %12413 = vmatprep.mubr.f32.mxu1 %v2150_v50  ;;  %v9711_v32 = vld [vmem:[%s15730_s9 + $0x48] sm:$0xff] }
 0x3a7   : > { %13437 = vmatprep.mubr.f32.mxu0 %v10258_v17  ;;  %v10287_v50 = vld [vmem:[%s15737_s28 + $0x268] sm:$0xff]  ;;  %v10288_v17 = vld [vmem:[%s15737_s28 + $0x270] sm:$0xff] }
 0x3a9   : > { %12414 = vmatmul.mubr.f32.gmra.mrb[104].mxu1 %v2151_v46  ;;  %v17883_v46 = vld [vmem:[#allocation21_spill] sm:$0xff] }
 0x3aa   : > { %13438 = vmatmul.mubr.f32.gmra.mrb[40].mxu0 %v10259_v37  ;;  %12416 = vmatprep.mubr.f32.mxu1 %v2152_v16  ;;  %v9713_v37 = vld [vmem:[%s15730_s9 + $0x58] sm:$0xff] }
 0x3ab   : > { %13440 = vmatprep.mubr.f32.mxu0 %v10260_v34  ;;  %v10289_v16 = vld [vmem:[%s15737_s28 + $0x278] sm:$0xff]  ;;  %v9714_v34 = vld [vmem:[%s15730_s9 + $0x60] sm:$0xff] }
 0x3ad   : > { %12417 = vmatmul.mubr.f32.gmra.mrb[106].mxu1 %v2153_v19  ;;  %v10290_v19 = vld [vmem:[%s15737_s28 + $0x280] sm:$0xff] }
 0x3ae   : > { %13441 = vmatmul.mubr.f32.gmra.mrb[42].mxu0 %v10261_v31  ;;  %12419 = vmatprep.mubr.f32.mxu1 %v2154_v40  ;;  %v17884_v31 = vld [vmem:[#allocation22_spill] sm:$0xff]  ;;  %v9715_v40 = vld [vmem:[%s15730_s9 + $0x68] sm:$0xff] }
 0x3af   : > { %13443 = vmatprep.mubr.f32.mxu0 %v10262_v54  ;;  %v10291_v54 = vld [vmem:[%s15737_s28 + $0x288] sm:$0xff] }
 0x3b1   : > { %12420 = vmatmul.mubr.f32.gmra.mrb[108].mxu1 %v2155_v7  ;;  %v9716_v7 = vld [vmem:[%s15730_s9 + $0x70] sm:$0xff] }
 0x3b2   : > { %13444 = vmatmul.mubr.f32.gmra.mrb[44].mxu0 %v10263_v21  ;;  %12422 = vmatprep.mubr.f32.mxu1 %v2156_v25  ;;  %v10292_v21 = vld [vmem:[%s15737_s28 + $0x290] sm:$0xff]  ;;  %v17885_v25 = vld [vmem:[#allocation23_spill] sm:$0xff] }
 0x3b3   : > { %13446 = vmatprep.mubr.f32.mxu0 %v10264_v49  ;;  %v9717_v49 = vld [vmem:[%s15730_s9 + $0x78] sm:$0xff] }
 0x3b5   : > { %12423 = vmatmul.mubr.f32.gmra.mrb[110].mxu1 %v2157_v24  ;;  %v10293_v24 = vld [vmem:[%s15737_s28 + $0x298] sm:$0xff] }
 0x3b6   : > { %13447 = vmatmul.mubr.f32.gmra.mrb[46].mxu0 %v10265_v26  ;;  %12425 = vmatprep.mubr.f32.mxu1 %v2158_v63  ;;  %v9718_v26 = vld [vmem:[%s15730_s9 + $0x80] sm:$0xff] }
 0x3b7   : > { %13449 = vmatprep.mubr.f32.mxu0 %v10266_v28  ;;  %v10294_v63 = vld [vmem:[%s15737_s28 + $0x2a0] sm:$0xff]  ;;  %v17886_v28 = vld [vmem:[#allocation24_spill] sm:$0xff] }
 0x3b9   : > { %12426 = vmatmul.mubr.f32.gmra.mrb[112].mxu1 %v2159_v33  ;;  %v9719_v33 = vld [vmem:[%s15730_s9 + $0x88] sm:$0xff] }
 0x3ba   : > { %13450 = vmatmul.mubr.f32.gmra.mrb[48].mxu0 %v10267_v36  ;;  %12428 = vmatprep.mubr.f32.mxu1 %v2160_v39  ;;  %v10295_v36 = vld [vmem:[%s15737_s28 + $0x2a8] sm:$0xff]  ;;  %v9720_v39 = vld [vmem:[%s15730_s9 + $0x90] sm:$0xff] }
 0x3bb   : > { %13452 = vmatprep.mubr.f32.mxu0 %v10268_v41  ;;  %v10296_v41 = vld [vmem:[%s15737_s28 + $0x2b0] sm:$0xff] }
 0x3bd   : > { %12429 = vmatmul.mubr.f32.gmra.mrb[114].mxu1 %v2161_v8  ;;  %v17887_v8 = vld [vmem:[#allocation25_spill] sm:$0xff] }
 0x3be   : > { %13453 = vmatmul.mubr.f32.gmra.mrb[50].mxu0 %v10269_v56  ;;  %12431 = vmatprep.mubr.f32.mxu1 %v2162_v23  ;;  %v9722_v56 = vld [vmem:[%s15730_s9 + $0xa0] sm:$0xff] }
 0x3bf   : > { %13455 = vmatprep.mubr.f32.mxu0 %v10270_v55  ;;  %v10298_v23 = vld [vmem:[%s15737_s28 + $0x2c0] sm:$0xff]  ;;  %v9723_v55 = vld [vmem:[%s15730_s9 + $0xa8] sm:$0xff] }
 0x3c1   : > { %12432 = vmatmul.mubr.f32.gmra.mrb[116].mxu1 %v2163_v43  ;;  %v10299_v43 = vld [vmem:[%s15737_s28 + $0x2c8] sm:$0xff] }
 0x3c2   : > { %13456 = vmatmul.mubr.f32.gmra.mrb[52].mxu0 %v10271_v57  ;;  %12434 = vmatprep.mubr.f32.mxu1 %v2164_v2  ;;  %v9724_v57 = vld [vmem:[%s15730_s9 + $0xb0] sm:$0xff] }
 0x3c3   : > { %13458 = vmatprep.mubr.f32.mxu0 %v10272_v60  ;;  %v10300_v2 = vld [vmem:[%s15737_s28 + $0x2d0] sm:$0xff]  ;;  %v9725_v60 = vld [vmem:[%s15730_s9 + $0xb8] sm:$0xff] }
 0x3c5   : > { %12435 = vmatmul.mubr.f32.gmra.mrb[118].mxu1 %v2165_v62  ;;  %v10301_v62 = vld [vmem:[%s15737_s28 + $0x2d8] sm:$0xff] }
 0x3c6   : > { %13459 = vmatmul.mubr.f32.gmra.mrb[54].mxu0 %v10273_v0  ;;  %12437 = vmatprep.mubr.f32.mxu1 %v2166_v3  ;;  %v9726_v0 = vld [vmem:[%s15730_s9 + $0xc0] sm:$0xff] }
 0x3c7   : > { %13461 = vmatprep.mubr.f32.mxu0 %v10274_v6  ;;  %v10302_v3 = vld [vmem:[%s15737_s28 + $0x2e0] sm:$0xff]  ;;  %v9727_v6 = vld [vmem:[%s15730_s9 + $0xc8] sm:$0xff] }
 0x3c9   : > { %12438 = vmatmul.mubr.f32.gmra.mrb[120].mxu1 %v2167_v15  ;;  %v10303_v15 = vld [vmem:[%s15737_s28 + $0x2e8] sm:$0xff] }
 0x3ca   : > { %13462 = vmatmul.mubr.f32.gmra.mrb[56].mxu0 %v10275_v22  ;;  %12440 = vmatprep.mubr.f32.mxu1 %v2168_v27  ;;  %v9728_v22 = vld [vmem:[%s15730_s9 + $0xd0] sm:$0xff] }
 0x3cb   : > { %13464 = vmatprep.mubr.f32.mxu0 %v10276_v30  ;;  %v10304_v27 = vld [vmem:[%s15737_s28 + $0x2f0] sm:$0xff]  ;;  %v9729_v30 = vld [vmem:[%s15730_s9 + $0xd8] sm:$0xff] }
 0x3cd   : > { %12441 = vmatmul.mubr.f32.gmra.mrb[122].mxu1 %v2169_v53  ;;  %v10305_v53 = vld [vmem:[%s15737_s28 + $0x2f8] sm:$0xff] }
 0x3ce   : > { %13465 = vmatmul.mubr.f32.gmra.mrb[58].mxu0 %v10277_v11  ;;  %12443 = vmatprep.mubr.f32.mxu1 %v2170_v42  ;;  %v9730_v11 = vld [vmem:[%s15730_s9 + $0xe0] sm:$0xff] }
 0x3cf   : > { %13467 = vmatprep.mubr.f32.mxu0 %v10278_v10  ;;  %v10306_v42 = vld [vmem:[%s15737_s28 + $0x300] sm:$0xff]  ;;  %v9731_v10 = vld [vmem:[%s15730_s9 + $0xe8] sm:$0xff] }
 0x3d1   : > { %12444 = vmatmul.mubr.f32.gmra.mrb[124].mxu1 %v2171_v14  ;;  %v10307_v14 = vld [vmem:[%s15737_s28 + $0x308] sm:$0xff] }
 0x3d2   : > { %13468 = vmatmul.mubr.f32.gmra.mrb[60].mxu0 %v10279_v47  ;;  %12446 = vmatprep.mubr.f32.mxu1 %v2172_v52  ;;  %v9732_v47 = vld [vmem:[%s15730_s9 + $0xf0] sm:$0xff] }
 0x3d3   : > { %13470 = vmatprep.mubr.f32.mxu0 %v10280_v35  ;;  %v10308_v52 = vld [vmem:[%s15737_s28 + $0x310] sm:$0xff]  ;;  %v9733_v35 = vld [vmem:[%s15730_s9 + $0xf8] sm:$0xff] }
 0x3d5   : > { %12447 = vmatmul.mubr.f32.gmra.mrb[126].mxu1 %v2173_v38  ;;  %v10309_v38 = vld [vmem:[%s15737_s28 + $0x318] sm:$0xff] }
 0x3d6   : > { %13471 = vmatmul.mubr.f32.gmra.mrb[62].mxu0 %v10281_v58  ;;  %12481 = vmatprep.mubr.f32.mxu1 %v9706_v61  ;;  %v9734_v58 = vld [vmem:[%s15730_s9 + $0x100] sm:$0xff] }
 0x3d7   : > { %13473 = vmatprep.mubr.f32.mxu0 %v10282_v1  ;;  %v10310_v61 = vld [vmem:[%s15737_s28 + $0x320] sm:$0xff]  ;;  %v9735_v1 = vld [vmem:[%s15730_s9 + $0x108] sm:$0xff] }
 0x3d9   : > { %12482 = vmatmul.mubr.f32.vlgmr.msra.gmra.mrb[0].mxu1 %v9707_v9  ;;  %v10311_v9 = vld [vmem:[%s15737_s28 + $0x328] sm:$0xff] }
 0x3da   : > { %13474 = vmatmul.mubr.f32.gmra.mrb[64].mxu0 %v10283_v13  ;;  %14089 = vmatpush3.bf16.msra.mxu1 %v17878_v44  ;;  %v9712_v44 = vld [vmem:[%s15730_s9 + $0x50] sm:$0xff] }
 0x3db   : > { %12484 = vmatprep.mubr.f32.mxu1 %v9708_v20  ;;  %13476 = vmatprep.mubr.f32.mxu0 %v10284_v29  ;;  %v9736_v13 = vld [vmem:[%s15730_s9 + $0x110] sm:$0xff]  ;;  %v9737_v29 = vld [vmem:[%s15730_s9 + $0x118] sm:$0xff] }
 0x3dc   : > { %14082 = vmatprep.subr.bf16.mxu1 %v17882_v4  ;;  %v10312_v20 = vld [vmem:[%s15737_s28 + $0x330] sm:$0xff] }
 0x3dd   : > { %12485 = vmatmul.mubr.f32.gmra.mrb[2].mxu1 %v9709_v45  ;;  %v10313_v45 = vld [vmem:[%s15737_s28 + $0x338] sm:$0xff] }
 0x3de   : > { %13477 = vmatmul.mubr.f32.gmra.mrb[66].mxu0 %v10285_v59  ;;  %12487 = vmatprep.mubr.f32.mxu1 %v9710_v5  ;;  %v9738_v59 = vld [vmem:[%s15730_s9 + $0x120] sm:$0xff] }
 0x3df   : > { %13479 = vmatprep.mubr.f32.mxu0 %v10286_v18  ;;  %14090 = vmatpush3.bf16.msra.mxu1 %v17882_v4  ;;  %v10314_v5 = vld [vmem:[%s15737_s28 + $0x340] sm:$0xff]  ;;  %v9739_v18 = vld [vmem:[%s15730_s9 + $0x128] sm:$0xff] }
 0x3e0   : > { %14083 = vmatprep.subr.bf16.mxu1 %v17883_v46  ;;  %v10315_v4 = vld [vmem:[%s15737_s28 + $0x348] sm:$0xff] }
 0x3e1   : > { %12488 = vmatmul.mubr.f32.gmra.mrb[4].mxu1 %v9711_v32  ;;  %v9740_v32 = vld [vmem:[%s15730_s9 + $0x130] sm:$0xff] }
 0x3e2   : > { %13480 = vmatmul.mubr.f32.gmra.mrb[68].mxu0 %v10287_v50  ;;  %12490 = vmatprep.mubr.f32.mxu1 %v9712_v44  ;;  %v10316_v50 = vld [vmem:[%s15737_s28 + $0x350] sm:$0xff]  ;;  %v9741_v44 = vld [vmem:[%s15730_s9 + $0x138] sm:$0xff] }
 0x3e3   : > { %13482 = vmatprep.mubr.f32.mxu0 %v10288_v17  ;;  %14091 = vmatpush3.bf16.msra.mxu1 %v17883_v46  ;;  %v10317_v17 = vld [vmem:[%s15737_s28 + $0x358] sm:$0xff]  ;;  %v9742_v46 = vld [vmem:[%s15730_s9 + $0x140] sm:$0xff] }
 0x3e4   : > { %14084 = vmatprep.subr.bf16.mxu1 %v17884_v31 }
 0x3e5   : > { %12491 = vmatmul.mubr.f32.gmra.mrb[6].mxu1 %v9713_v37  ;;  %v10318_v37 = vld [vmem:[%s15737_s28 + $0x360] sm:$0xff] }
 0x3e6   : > { %13483 = vmatmul.mubr.f32.gmra.mrb[70].mxu0 %v10289_v16  ;;  %12493 = vmatprep.mubr.f32.mxu1 %v9714_v34  ;;  %v9743_v16 = vld [vmem:[%s15730_s9 + $0x148] sm:$0xff] }
 0x3e7   : > { %13485 = vmatprep.mubr.f32.mxu0 %v10290_v19  ;;  %14092 = vmatpush3.bf16.msra.mxu1 %v17884_v31  ;;  %v10319_v34 = vld [vmem:[%s15737_s28 + $0x368] sm:$0xff]  ;;  %v9744_v19 = vld [vmem:[%s15730_s9 + $0x150] sm:$0xff] }
 0x3e8   : > { %14085 = vmatprep.subr.bf16.mxu1 %v17885_v25  ;;  %v10320_v31 = vld [vmem:[%s15737_s28 + $0x370] sm:$0xff] }
 0x3e9   : > { %12494 = vmatmul.mubr.f32.gmra.mrb[8].mxu1 %v9715_v40  ;;  %v9745_v40 = vld [vmem:[%s15730_s9 + $0x158] sm:$0xff] }
 0x3ea   : > { %13486 = vmatmul.mubr.f32.gmra.mrb[72].mxu0 %v10291_v54  ;;  %12496 = vmatprep.mubr.f32.mxu1 %v9716_v7  ;;  %v10321_v54 = vld [vmem:[%s15737_s28 + $0x378] sm:$0xff]  ;;  %v9746_v7 = vld [vmem:[%s15730_s9 + $0x160] sm:$0xff] }
 0x3eb   : > { %13488 = vmatprep.mubr.f32.mxu0 %v10292_v21  ;;  %14093 = vmatpush3.bf16.msra.mxu1 %v17885_v25  ;;  %v10322_v21 = vld [vmem:[%s15737_s28 + $0x380] sm:$0xff]  ;;  %v9747_v25 = vld [vmem:[%s15730_s9 + $0x168] sm:$0xff] }
 0x3ec   : > { %14086 = vmatprep.subr.bf16.mxu1 %v17886_v28 }
 0x3ed   : > { %12497 = vmatmul.mubr.f32.gmra.mrb[10].mxu1 %v9717_v49  ;;  %v10323_v49 = vld [vmem:[%s15737_s28 + $0x388] sm:$0xff] }
 0x3ee   : > { %13489 = vmatmul.mubr.f32.gmra.mrb[74].mxu0 %v10293_v24  ;;  %12499 = vmatprep.mubr.f32.mxu1 %v9718_v26  ;;  %v9748_v24 = vld [vmem:[%s15730_s9 + $0x170] sm:$0xff] }
 0x3ef   : > { %13491 = vmatprep.mubr.f32.mxu0 %v10294_v63  ;;  %14094 = vmatpush3.bf16.msra.mxu1 %v17886_v28  ;;  %v10324_v26 = vld [vmem:[%s15737_s28 + $0x390] sm:$0xff]  ;;  %v9749_v63 = vld [vmem:[%s15730_s9 + $0x178] sm:$0xff] }
 0x3f0   : > { %14087 = vmatprep.subr.bf16.mxu1 %v17887_v8  ;;  %v10325_v28 = vld [vmem:[%s15737_s28 + $0x398] sm:$0xff] }
 0x3f1   : > { %12500 = vmatmul.mubr.f32.gmra.mrb[12].mxu1 %v9719_v33  ;;  %v9750_v33 = vld [vmem:[%s15730_s9 + $0x180] sm:$0xff] }
 0x3f2   : > { %13492 = vmatmul.mubr.f32.gmra.mrb[76].mxu0 %v10295_v36  ;;  %12502 = vmatprep.mubr.f32.mxu1 %v9720_v39  ;;  %v10326_v36 = vld [vmem:[%s15737_s28 + $0x3a0] sm:$0xff]  ;;  %v9751_v39 = vld [vmem:[%s15730_s9 + $0x188] sm:$0xff] }
 0x3f3   : > { %13494 = vmatprep.mubr.f32.mxu0 %v10296_v41  ;;  %14095 = vmatpush3.bf16.msra.mxu1 %v17887_v8  ;;  %v10327_v41 = vld [vmem:[%s15737_s28 + $0x3a8] sm:$0xff]  ;;  %v9752_v8 = vld [vmem:[%s15730_s9 + $0x190] sm:$0xff] }
 0x3f4   : > { %14088 = vmatprep.subr.bf16.mxu1 %v17888_v51 }
 0x3f5   : > { %12503 = vmatmul.mubr.f32.gmra.mrb[14].mxu1 %v9721_v12  ;;  %v10328_v12 = vld [vmem:[%s15737_s28 + $0x3b0] sm:$0xff] }
 0x3f6   : > { %13495 = vmatmul.mubr.f32.gmra.mrb[78].mxu0 %v10297_v48  ;;  %12505 = vmatprep.mubr.f32.mxu1 %v9722_v56  ;;  %v9753_v48 = vld [vmem:[%s15730_s9 + $0x198] sm:$0xff] }
 0x3f7   : > { %13497 = vmatprep.mubr.f32.mxu0 %v10298_v23  ;;  %14096 = vmatpush3.bf16.msra.mxu1 %v17888_v51  ;;  %v10329_v56 = vld [vmem:[%s15737_s28 + $0x3b8] sm:$0xff]  ;;  %v9754_v23 = vld [vmem:[%s15730_s9 + $0x1a0] sm:$0xff] }
 0x3f8   : > { %v10330_v51 = vld [vmem:[%s15737_s28 + $0x3c0] sm:$0xff] }
 0x3f9   : > { %12506 = vmatmul.mubr.f32.gmra.mrb[16].mxu1 %v9723_v55  ;;  %v9755_v55 = vld [vmem:[%s15730_s9 + $0x1a8] sm:$0xff] }
 0x3fa   : > { %13498 = vmatmul.mubr.f32.gmra.mrb[80].mxu0 %v10299_v43  ;;  %12508 = vmatprep.mubr.f32.mxu1 %v9724_v57  ;;  %v10331_v43 = vld [vmem:[%s15737_s28 + $0x3c8] sm:$0xff]  ;;  %v9756_v57 = vld [vmem:[%s15730_s9 + $0x1b0] sm:$0xff] }
 0x3fb   : > { %13500 = vmatprep.mubr.f32.mxu0 %v10300_v2  ;;  %v10332_v2 = vld [vmem:[%s15737_s28 + $0x3d0] sm:$0xff] }
 0x3fd   : > { %12509 = vmatmul.mubr.f32.gmra.mrb[18].mxu1 %v9725_v60  ;;  %v9757_v60 = vld [vmem:[%s15730_s9 + $0x1b8] sm:$0xff] }
 0x3fe   : > { %13501 = vmatmul.mubr.f32.gmra.mrb[82].mxu0 %v10301_v62  ;;  %12511 = vmatprep.mubr.f32.mxu1 %v9726_v0  ;;  %v10333_v62 = vld [vmem:[%s15737_s28 + $0x3d8] sm:$0xff]  ;;  %v9758_v0 = vld [vmem:[%s15730_s9 + $0x1c0] sm:$0xff] }
 0x3ff   : > { %13503 = vmatprep.mubr.f32.mxu0 %v10302_v3  ;;  %v10334_v3 = vld [vmem:[%s15737_s28 + $0x3e0] sm:$0xff] }
 0x401   : > { %12512 = vmatmul.mubr.f32.gmra.mrb[20].mxu1 %v9727_v6  ;;  %v9759_v6 = vld [vmem:[%s15730_s9 + $0x1c8] sm:$0xff] }
 0x402   : > { %13504 = vmatmul.mubr.f32.gmra.mrb[84].mxu0 %v10303_v15  ;;  %12514 = vmatprep.mubr.f32.mxu1 %v9728_v22  ;;  %v10335_v15 = vld [vmem:[%s15737_s28 + $0x3e8] sm:$0xff]  ;;  %v9760_v22 = vld [vmem:[%s15730_s9 + $0x1d0] sm:$0xff] }
 0x403   : > { %13506 = vmatprep.mubr.f32.mxu0 %v10304_v27  ;;  %v10336_v27 = vld [vmem:[%s15737_s28 + $0x3f0] sm:$0xff] }
 0x405   : > { %12515 = vmatmul.mubr.f32.gmra.mrb[22].mxu1 %v9729_v30  ;;  %v9761_v30 = vld [vmem:[%s15730_s9 + $0x1d8] sm:$0xff] }
 0x406   : > { %13507 = vmatmul.mubr.f32.gmra.mrb[86].mxu0 %v10305_v53  ;;  %12517 = vmatprep.mubr.f32.mxu1 %v9730_v11  ;;  %v10337_v53 = vld [vmem:[%s15737_s28 + $0x3f8] sm:$0xff]  ;;  %v9762_v11 = vld [vmem:[%s15730_s9 + $0x1e0] sm:$0xff] }
 0x407   : > { %13509 = vmatprep.mubr.f32.mxu0 %v10306_v42  ;;  %v10338_v42 = vld [vmem:[%s15737_s28 + $0x400] sm:$0xff] }
 0x409   : > { %12518 = vmatmul.mubr.f32.gmra.mrb[24].mxu1 %v9731_v10  ;;  %v9763_v10 = vld [vmem:[%s15730_s9 + $0x1e8] sm:$0xff] }
 0x40a   : > { %13510 = vmatmul.mubr.f32.gmra.mrb[88].mxu0 %v10307_v14  ;;  %12520 = vmatprep.mubr.f32.mxu1 %v9732_v47  ;;  %v10339_v14 = vld [vmem:[%s15737_s28 + $0x408] sm:$0xff]  ;;  %v9764_v47 = vld [vmem:[%s15730_s9 + $0x1f0] sm:$0xff] }
 0x40b   : > { %13512 = vmatprep.mubr.f32.mxu0 %v10308_v52  ;;  %v10340_v52 = vld [vmem:[%s15737_s28 + $0x410] sm:$0xff] }
 0x40d   : > { %12521 = vmatmul.mubr.f32.gmra.mrb[26].mxu1 %v9733_v35  ;;  %v9765_v35 = vld [vmem:[%s15730_s9 + $0x1f8] sm:$0xff] }
 0x40e   : > { %13513 = vmatmul.mubr.f32.gmra.mrb[90].mxu0 %v10309_v38  ;;  %12523 = vmatprep.mubr.f32.mxu1 %v9734_v58  ;;  %v10341_v38 = vld [vmem:[%s15737_s28 + $0x418] sm:$0xff]  ;;  %v9766_v58 = vld [vmem:[%s15730_s9 + $0x200] sm:$0xff] }
 0x40f   : > { %13515 = vmatprep.mubr.f32.mxu0 %v10310_v61  ;;  %v10342_v61 = vld [vmem:[%s15737_s28 + $0x420] sm:$0xff] }
 0x411   : > { %12524 = vmatmul.mubr.f32.gmra.mrb[28].mxu1 %v9735_v1  ;;  %v9767_v1 = vld [vmem:[%s15730_s9 + $0x208] sm:$0xff] }
 0x412   : > { %13516 = vmatmul.mubr.f32.gmra.mrb[92].mxu0 %v10311_v9  ;;  %12526 = vmatprep.mubr.f32.mxu1 %v9736_v13  ;;  %v10343_v9 = vld [vmem:[%s15737_s28 + $0x428] sm:$0xff]  ;;  %v9768_v13 = vld [vmem:[%s15730_s9 + $0x210] sm:$0xff] }
 0x413   : > { %13518 = vmatprep.mubr.f32.mxu0 %v10312_v20  ;;  %v10344_v20 = vld [vmem:[%s15737_s28 + $0x430] sm:$0xff] }
 0x415   : > { %12527 = vmatmul.mubr.f32.gmra.mrb[30].mxu1 %v9737_v29  ;;  %v9769_v29 = vld [vmem:[%s15730_s9 + $0x218] sm:$0xff] }
 0x416   : > { %13519 = vmatmul.mubr.f32.gmra.mrb[94].mxu0 %v10313_v45  ;;  %12529 = vmatprep.mubr.f32.mxu1 %v9738_v59  ;;  %v10345_v45 = vld [vmem:[%s15737_s28 + $0x438] sm:$0xff]  ;;  %v9770_v59 = vld [vmem:[%s15730_s9 + $0x220] sm:$0xff] }
 0x417   : > { %13521 = vmatprep.mubr.f32.mxu0 %v10314_v5  ;;  %v10346_v5 = vld [vmem:[%s15743_s13 + $0x40] sm:$0xff] }
 0x419   : > { %12530 = vmatmul.mubr.f32.gmra.mrb[32].mxu1 %v9739_v18  ;;  %v9771_v18 = vld [vmem:[%s15730_s9 + $0x228] sm:$0xff] }
 0x41a   : > { %13522 = vmatmul.mubr.f32.gmra.mrb[96].mxu0 %v10315_v4  ;;  %12532 = vmatprep.mubr.f32.mxu1 %v9740_v32  ;;  %v10347_v4 = vld [vmem:[%s15743_s13 + $0x48] sm:$0xff]  ;;  %v9772_v32 = vld [vmem:[%s15730_s9 + $0x230] sm:$0xff] }
 0x41b   : > { %13524 = vmatprep.mubr.f32.mxu0 %v10316_v50  ;;  %v10348_v50 = vld [vmem:[%s15743_s13 + $0x50] sm:$0xff] }
 0x41d   : > { %12533 = vmatmul.mubr.f32.gmra.mrb[34].mxu1 %v9741_v44  ;;  %v9773_v44 = vld [vmem:[%s15730_s9 + $0x238] sm:$0xff] }
 0x41e   : > { %13525 = vmatmul.mubr.f32.gmra.mrb[98].mxu0 %v10317_v17  ;;  %12535 = vmatprep.mubr.f32.mxu1 %v9742_v46  ;;  %v10349_v17 = vld [vmem:[%s15743_s13 + $0x58] sm:$0xff]  ;;  %v9774_v46 = vld [vmem:[%s15730_s9 + $0x240] sm:$0xff] }
 0x41f   : > { %13527 = vmatprep.mubr.f32.mxu0 %v10318_v37  ;;  %v10350_v37 = vld [vmem:[%s15743_s13 + $0x60] sm:$0xff] }
 0x421   : > { %12536 = vmatmul.mubr.f32.gmra.mrb[36].mxu1 %v9743_v16  ;;  %v9775_v16 = vld [vmem:[%s15730_s9 + $0x248] sm:$0xff] }
 0x422   : > { %13528 = vmatmul.mubr.f32.gmra.mrb[100].mxu0 %v10319_v34  ;;  %12538 = vmatprep.mubr.f32.mxu1 %v9744_v19  ;;  %v10351_v34 = vld [vmem:[%s15743_s13 + $0x68] sm:$0xff]  ;;  %v9776_v19 = vld [vmem:[%s15730_s9 + $0x250] sm:$0xff] }
 0x423   : > { %13530 = vmatprep.mubr.f32.mxu0 %v10320_v31  ;;  %v10352_v31 = vld [vmem:[%s15743_s13 + $0x70] sm:$0xff] }
 0x425   : > { %12539 = vmatmul.mubr.f32.gmra.mrb[38].mxu1 %v9745_v40  ;;  %v9777_v40 = vld [vmem:[%s15730_s9 + $0x258] sm:$0xff] }
 0x426   : > { %13531 = vmatmul.mubr.f32.gmra.mrb[102].mxu0 %v10321_v54  ;;  %12541 = vmatprep.mubr.f32.mxu1 %v9746_v7  ;;  %v10353_v54 = vld [vmem:[%s15743_s13 + $0x78] sm:$0xff]  ;;  %v9778_v7 = vld [vmem:[%s15730_s9 + $0x260] sm:$0xff] }
 0x427   : > { %13533 = vmatprep.mubr.f32.mxu0 %v10322_v21  ;;  %v10354_v21 = vld [vmem:[%s15743_s13 + $0x80] sm:$0xff] }
 0x429   : > { %12542 = vmatmul.mubr.f32.gmra.mrb[40].mxu1 %v9747_v25  ;;  %v9779_v25 = vld [vmem:[%s15730_s9 + $0x268] sm:$0xff] }
 0x42a   : > { %13534 = vmatmul.mubr.f32.gmra.mrb[104].mxu0 %v10323_v49  ;;  %12544 = vmatprep.mubr.f32.mxu1 %v9748_v24  ;;  %v10355_v49 = vld [vmem:[%s15743_s13 + $0x88] sm:$0xff]  ;;  %v9780_v24 = vld [vmem:[%s15730_s9 + $0x270] sm:$0xff] }
 0x42b   : > { %13536 = vmatprep.mubr.f32.mxu0 %v10324_v26  ;;  %v10356_v26 = vld [vmem:[%s15743_s13 + $0x90] sm:$0xff] }
 0x42d   : > { %12545 = vmatmul.mubr.f32.gmra.mrb[42].mxu1 %v9749_v63  ;;  %v9781_v63 = vld [vmem:[%s15730_s9 + $0x278] sm:$0xff] }
 0x42e   : > { %13537 = vmatmul.mubr.f32.gmra.mrb[106].mxu0 %v10325_v28  ;;  %12547 = vmatprep.mubr.f32.mxu1 %v9750_v33  ;;  %v10357_v28 = vld [vmem:[%s15743_s13 + $0x98] sm:$0xff]  ;;  %v9782_v33 = vld [vmem:[%s15730_s9 + $0x280] sm:$0xff] }
 0x42f   : > { %13539 = vmatprep.mubr.f32.mxu0 %v10326_v36  ;;  %v10358_v36 = vld [vmem:[%s15743_s13 + $0xa0] sm:$0xff] }
 0x431   : > { %12548 = vmatmul.mubr.f32.gmra.mrb[44].mxu1 %v9751_v39  ;;  %v9783_v39 = vld [vmem:[%s15730_s9 + $0x288] sm:$0xff] }
 0x432   : > { %13540 = vmatmul.mubr.f32.gmra.mrb[108].mxu0 %v10327_v41  ;;  %12550 = vmatprep.mubr.f32.mxu1 %v9752_v8  ;;  %v10359_v41 = vld [vmem:[%s15743_s13 + $0xa8] sm:$0xff]  ;;  %v9784_v8 = vld [vmem:[%s15730_s9 + $0x290] sm:$0xff] }
 0x433   : > { %13542 = vmatprep.mubr.f32.mxu0 %v10328_v12  ;;  %v10360_v12 = vld [vmem:[%s15743_s13 + $0xb0] sm:$0xff] }
 0x435   : > { %12551 = vmatmul.mubr.f32.gmra.mrb[46].mxu1 %v9753_v48  ;;  %v9785_v48 = vld [vmem:[%s15730_s9 + $0x298] sm:$0xff] }
 0x436   : > { %13543 = vmatmul.mubr.f32.gmra.mrb[110].mxu0 %v10329_v56  ;;  %12553 = vmatprep.mubr.f32.mxu1 %v9754_v23  ;;  %v10361_v56 = vld [vmem:[%s15743_s13 + $0xb8] sm:$0xff]  ;;  %v9786_v23 = vld [vmem:[%s15730_s9 + $0x2a0] sm:$0xff] }
 0x437   : > { %13545 = vmatprep.mubr.f32.mxu0 %v10330_v51  ;;  %v10362_v51 = vld [vmem:[%s15743_s13 + $0xc0] sm:$0xff] }
 0x439   : > { %12554 = vmatmul.mubr.f32.gmra.mrb[48].mxu1 %v9755_v55  ;;  %v9787_v55 = vld [vmem:[%s15730_s9 + $0x2a8] sm:$0xff] }
 0x43a   : > { %13546 = vmatmul.mubr.f32.gmra.mrb[112].mxu0 %v10331_v43  ;;  %12556 = vmatprep.mubr.f32.mxu1 %v9756_v57  ;;  %v10363_v43 = vld [vmem:[%s15743_s13 + $0xc8] sm:$0xff]  ;;  %v9788_v57 = vld [vmem:[%s15730_s9 + $0x2b0] sm:$0xff] }
 0x43b   : > { %13548 = vmatprep.mubr.f32.mxu0 %v10332_v2  ;;  %v10364_v2 = vld [vmem:[%s15743_s13 + $0xd0] sm:$0xff] }
 0x43d   : > { %12557 = vmatmul.mubr.f32.gmra.mrb[50].mxu1 %v9757_v60  ;;  %v9789_v60 = vld [vmem:[%s15730_s9 + $0x2b8] sm:$0xff] }
 0x43e   : > { %13549 = vmatmul.mubr.f32.gmra.mrb[114].mxu0 %v10333_v62  ;;  %12559 = vmatprep.mubr.f32.mxu1 %v9758_v0  ;;  %v10365_v62 = vld [vmem:[%s15743_s13 + $0xd8] sm:$0xff]  ;;  %v9790_v0 = vld [vmem:[%s15730_s9 + $0x2c0] sm:$0xff] }
 0x43f   : > { %13551 = vmatprep.mubr.f32.mxu0 %v10334_v3  ;;  %v10366_v3 = vld [vmem:[%s15743_s13 + $0xe0] sm:$0xff] }
 0x441   : > { %12560 = vmatmul.mubr.f32.gmra.mrb[52].mxu1 %v9759_v6  ;;  %v9791_v6 = vld [vmem:[%s15730_s9 + $0x2c8] sm:$0xff] }
 0x442   : > { %13552 = vmatmul.mubr.f32.gmra.mrb[116].mxu0 %v10335_v15  ;;  %12562 = vmatprep.mubr.f32.mxu1 %v9760_v22  ;;  %v10367_v15 = vld [vmem:[%s15743_s13 + $0xe8] sm:$0xff]  ;;  %v9792_v22 = vld [vmem:[%s15730_s9 + $0x2d0] sm:$0xff] }
 0x443   : > { %13554 = vmatprep.mubr.f32.mxu0 %v10336_v27  ;;  %v10368_v27 = vld [vmem:[%s15743_s13 + $0xf0] sm:$0xff] }
 0x445   : > { %12563 = vmatmul.mubr.f32.gmra.mrb[54].mxu1 %v9761_v30  ;;  %v9793_v30 = vld [vmem:[%s15730_s9 + $0x2d8] sm:$0xff] }
 0x446   : > { %13555 = vmatmul.mubr.f32.gmra.mrb[118].mxu0 %v10337_v53  ;;  %12565 = vmatprep.mubr.f32.mxu1 %v9762_v11  ;;  %v10369_v53 = vld [vmem:[%s15743_s13 + $0xf8] sm:$0xff]  ;;  %v9794_v11 = vld [vmem:[%s15730_s9 + $0x2e0] sm:$0xff] }
 0x447   : > { %13557 = vmatprep.mubr.f32.mxu0 %v10338_v42  ;;  %v10370_v42 = vld [vmem:[%s15743_s13 + $0x100] sm:$0xff] }
 0x449   : > { %12566 = vmatmul.mubr.f32.gmra.mrb[56].mxu1 %v9763_v10  ;;  %v9795_v10 = vld [vmem:[%s15730_s9 + $0x2e8] sm:$0xff] }
 0x44a   : > { %13558 = vmatmul.mubr.f32.gmra.mrb[120].mxu0 %v10339_v14  ;;  %12568 = vmatprep.mubr.f32.mxu1 %v9764_v47  ;;  %v10371_v14 = vld [vmem:[%s15743_s13 + $0x108] sm:$0xff]  ;;  %v9796_v47 = vld [vmem:[%s15730_s9 + $0x2f0] sm:$0xff] }
 0x44b   : > { %13560 = vmatprep.mubr.f32.mxu0 %v10340_v52  ;;  %v10372_v52 = vld [vmem:[%s15743_s13 + $0x110] sm:$0xff] }
 0x44d   : > { %12569 = vmatmul.mubr.f32.gmra.mrb[58].mxu1 %v9765_v35  ;;  %v9797_v35 = vld [vmem:[%s15730_s9 + $0x2f8] sm:$0xff] }
 0x44e   : > { %13561 = vmatmul.mubr.f32.gmra.mrb[122].mxu0 %v10341_v38  ;;  %12571 = vmatprep.mubr.f32.mxu1 %v9766_v58  ;;  %v10373_v38 = vld [vmem:[%s15743_s13 + $0x118] sm:$0xff]  ;;  %v9798_v58 = vld [vmem:[%s15730_s9 + $0x300] sm:$0xff] }
 0x44f   : > { %13563 = vmatprep.mubr.f32.mxu0 %v10342_v61  ;;  %v10374_v61 = vld [vmem:[%s15743_s13 + $0x120] sm:$0xff] }
 0x451   : > { %12572 = vmatmul.mubr.f32.gmra.mrb[60].mxu1 %v9767_v1  ;;  %v9799_v1 = vld [vmem:[%s15730_s9 + $0x308] sm:$0xff] }
 0x452   : > { %13564 = vmatmul.mubr.f32.gmra.mrb[124].mxu0 %v10343_v9  ;;  %12574 = vmatprep.mubr.f32.mxu1 %v9768_v13  ;;  %v10375_v9 = vld [vmem:[%s15743_s13 + $0x128] sm:$0xff]  ;;  %v9800_v13 = vld [vmem:[%s15730_s9 + $0x310] sm:$0xff] }
 0x453   : > { %13566 = vmatprep.mubr.f32.mxu0 %v10344_v20  ;;  %v10376_v20 = vld [vmem:[%s15743_s13 + $0x130] sm:$0xff] }
 0x455   : > { %12575 = vmatmul.mubr.f32.gmra.mrb[62].mxu1 %v9769_v29  ;;  %v9801_v29 = vld [vmem:[%s15730_s9 + $0x318] sm:$0xff] }
 0x456   : > { %13567 = vmatmul.mubr.f32.gmra.mrb[126].mxu0 %v10345_v45  ;;  %12577 = vmatprep.mubr.f32.mxu1 %v9770_v59  ;;  %v10377_v45 = vld [vmem:[%s15743_s13 + $0x138] sm:$0xff]  ;;  %v9802_v59 = vld [vmem:[%s15730_s9 + $0x320] sm:$0xff] }
 0x457   : > { %13601 = vmatprep.mubr.f32.mxu0 %v10346_v5  ;;  %v10378_v5 = vld [vmem:[%s15743_s13 + $0x140] sm:$0xff] }
 0x459   : > { %12578 = vmatmul.mubr.f32.gmra.mrb[64].mxu1 %v9771_v18  ;;  %v9803_v18 = vld [vmem:[%s15730_s9 + $0x328] sm:$0xff] }
 0x45a   : > { %13602 = vmatmul.mubr.f32.vlgmr.msra.gmra.mrb[0].mxu0 %v10347_v4  ;;  %12580 = vmatprep.mubr.f32.mxu1 %v9772_v32  ;;  %v10379_v4 = vld [vmem:[%s15743_s13 + $0x148] sm:$0xff]  ;;  %v9804_v32 = vld [vmem:[%s15730_s9 + $0x330] sm:$0xff] }
 0x45b   : > { %13604 = vmatprep.mubr.f32.mxu0 %v10348_v50  ;;  %v10380_v50 = vld [vmem:[%s15743_s13 + $0x150] sm:$0xff] }
 0x45d   : > { %12581 = vmatmul.mubr.f32.gmra.mrb[66].mxu1 %v9773_v44  ;;  %v9805_v44 = vld [vmem:[%s15730_s9 + $0x338] sm:$0xff] }
 0x45e   : > { %13605 = vmatmul.mubr.f32.gmra.mrb[2].mxu0 %v10349_v17  ;;  %12583 = vmatprep.mubr.f32.mxu1 %v9774_v46  ;;  %v10381_v17 = vld [vmem:[%s15743_s13 + $0x158] sm:$0xff]  ;;  %v9806_v46 = vld [vmem:[%s15730_s9 + $0x340] sm:$0xff] }
 0x45f   : > { %13607 = vmatprep.mubr.f32.mxu0 %v10350_v37  ;;  %v10382_v37 = vld [vmem:[%s15743_s13 + $0x160] sm:$0xff] }
 0x461   : > { %12584 = vmatmul.mubr.f32.gmra.mrb[68].mxu1 %v9775_v16  ;;  %v9807_v16 = vld [vmem:[%s15730_s9 + $0x348] sm:$0xff] }
 0x462   : > { %13608 = vmatmul.mubr.f32.gmra.mrb[4].mxu0 %v10351_v34  ;;  %12586 = vmatprep.mubr.f32.mxu1 %v9776_v19  ;;  %v10383_v34 = vld [vmem:[%s15743_s13 + $0x168] sm:$0xff]  ;;  %v9808_v19 = vld [vmem:[%s15730_s9 + $0x350] sm:$0xff] }
 0x463   : > { %13610 = vmatprep.mubr.f32.mxu0 %v10352_v31  ;;  %v10384_v31 = vld [vmem:[%s15743_s13 + $0x170] sm:$0xff] }
 0x465   : > { %12587 = vmatmul.mubr.f32.gmra.mrb[70].mxu1 %v9777_v40  ;;  %v9809_v40 = vld [vmem:[%s15730_s9 + $0x358] sm:$0xff] }
 0x466   : > { %13611 = vmatmul.mubr.f32.gmra.mrb[6].mxu0 %v10353_v54  ;;  %12589 = vmatprep.mubr.f32.mxu1 %v9778_v7  ;;  %v10385_v54 = vld [vmem:[%s15743_s13 + $0x178] sm:$0xff]  ;;  %v9810_v7 = vld [vmem:[%s15730_s9 + $0x360] sm:$0xff] }
 0x467   : > { %13613 = vmatprep.mubr.f32.mxu0 %v10354_v21  ;;  %v10386_v21 = vld [vmem:[%s15743_s13 + $0x180] sm:$0xff] }
 0x469   : > { %12590 = vmatmul.mubr.f32.gmra.mrb[72].mxu1 %v9779_v25  ;;  %v9811_v25 = vld [vmem:[%s15730_s9 + $0x368] sm:$0xff] }
 0x46a   : > { %13614 = vmatmul.mubr.f32.gmra.mrb[8].mxu0 %v10355_v49  ;;  %12592 = vmatprep.mubr.f32.mxu1 %v9780_v24  ;;  %v10387_v49 = vld [vmem:[%s15743_s13 + $0x188] sm:$0xff]  ;;  %v9812_v24 = vld [vmem:[%s15730_s9 + $0x370] sm:$0xff] }
 0x46b   : > { %13616 = vmatprep.mubr.f32.mxu0 %v10356_v26  ;;  %v10388_v26 = vld [vmem:[%s15743_s13 + $0x190] sm:$0xff] }
 0x46d   : > { %12593 = vmatmul.mubr.f32.gmra.mrb[74].mxu1 %v9781_v63  ;;  %v9813_v63 = vld [vmem:[%s15730_s9 + $0x378] sm:$0xff] }
 0x46e   : > { %13617 = vmatmul.mubr.f32.gmra.mrb[10].mxu0 %v10357_v28  ;;  %12595 = vmatprep.mubr.f32.mxu1 %v9782_v33  ;;  %v10389_v28 = vld [vmem:[%s15743_s13 + $0x198] sm:$0xff]  ;;  %v9814_v33 = vld [vmem:[%s15730_s9 + $0x380] sm:$0xff] }
 0x46f   : > { %13619 = vmatprep.mubr.f32.mxu0 %v10358_v36 }
 0x471   : > { %12596 = vmatmul.mubr.f32.gmra.mrb[76].mxu1 %v9783_v39  ;;  %v10390_v39 = vld [vmem:[%s15743_s13 + $0x1a0] sm:$0xff] }
 0x472   : > { %13620 = vmatmul.mubr.f32.gmra.mrb[12].mxu0 %v10359_v41  ;;  %12598 = vmatprep.mubr.f32.mxu1 %v9784_v8  ;;  %v9815_v8 = vld [vmem:[%s15730_s9 + $0x388] sm:$0xff] }
 0x473   : > { %13622 = vmatprep.mubr.f32.mxu0 %v10360_v12  ;;  %v10391_v12 = vld [vmem:[%s15743_s13 + $0x1a8] sm:$0xff] }
 0x475   : > { %12599 = vmatmul.mubr.f32.gmra.mrb[78].mxu1 %v9785_v48  ;;  %v9816_v48 = vld [vmem:[%s15730_s9 + $0x390] sm:$0xff] }
 0x476   : > { %13623 = vmatmul.mubr.f32.gmra.mrb[14].mxu0 %v10361_v56  ;;  %12601 = vmatprep.mubr.f32.mxu1 %v9786_v23  ;;  %v10392_v23 = vld [vmem:[%s15743_s13 + $0x1b0] sm:$0xff] }
 0x477   : > { %13625 = vmatprep.mubr.f32.mxu0 %v10362_v51 }
 0x479   : > { %12602 = vmatmul.mubr.f32.gmra.mrb[80].mxu1 %v9787_v55  ;;  %v9817_v55 = vld [vmem:[%s15730_s9 + $0x398] sm:$0xff] }
 0x47a   : > { %13626 = vmatmul.mubr.f32.gmra.mrb[16].mxu0 %v10363_v43  ;;  %12604 = vmatprep.mubr.f32.mxu1 %v9788_v57  ;;  %v10393_v43 = vld [vmem:[%s15743_s13 + $0x1b8] sm:$0xff]  ;;  %v9818_v57 = vld [vmem:[%s15730_s9 + $0x3a0] sm:$0xff] }
 0x47b   : > { %13628 = vmatprep.mubr.f32.mxu0 %v10364_v2 }
 0x47d   : > { %12605 = vmatmul.mubr.f32.gmra.mrb[82].mxu1 %v9789_v60  ;;  %v10394_v60 = vld [vmem:[%s15743_s13 + $0x1c0] sm:$0xff] }
 0x47e   : > { %13629 = vmatmul.mubr.f32.gmra.mrb[18].mxu0 %v10365_v62  ;;  %12607 = vmatprep.mubr.f32.mxu1 %v9790_v0  ;;  %v9819_v0 = vld [vmem:[%s15730_s9 + $0x3a8] sm:$0xff] }
 0x47f   : > { %13631 = vmatprep.mubr.f32.mxu0 %v10366_v3  ;;  %v10395_v3 = vld [vmem:[%s15743_s13 + $0x1c8] sm:$0xff] }
 0x481   : > { %12608 = vmatmul.mubr.f32.gmra.mrb[84].mxu1 %v9791_v6  ;;  %v9820_v6 = vld [vmem:[%s15730_s9 + $0x3b0] sm:$0xff] }
 0x482   : > { %13632 = vmatmul.mubr.f32.gmra.mrb[20].mxu0 %v10367_v15  ;;  %12610 = vmatprep.mubr.f32.mxu1 %v9792_v22  ;;  %v10396_v22 = vld [vmem:[%s15743_s13 + $0x1d0] sm:$0xff] }
 0x483   : > { %13634 = vmatprep.mubr.f32.mxu0 %v10368_v27 }
 0x485   : > { %12611 = vmatmul.mubr.f32.gmra.mrb[86].mxu1 %v9793_v30  ;;  %v9821_v30 = vld [vmem:[%s15730_s9 + $0x3b8] sm:$0xff] }
 0x486   : > { %13635 = vmatmul.mubr.f32.gmra.mrb[22].mxu0 %v10369_v53  ;;  %12613 = vmatprep.mubr.f32.mxu1 %v9794_v11  ;;  %v10397_v53 = vld [vmem:[%s15743_s13 + $0x1d8] sm:$0xff]  ;;  %v9822_v11 = vld [vmem:[%s15730_s9 + $0x3c0] sm:$0xff] }
 0x487   : > { %13637 = vmatprep.mubr.f32.mxu0 %v10370_v42 }
 0x489   : > { %12614 = vmatmul.mubr.f32.gmra.mrb[88].mxu1 %v9795_v10  ;;  %v10398_v10 = vld [vmem:[%s15743_s13 + $0x1e0] sm:$0xff] }
 0x48a   : > { %13638 = vmatmul.mubr.f32.gmra.mrb[24].mxu0 %v10371_v14  ;;  %12616 = vmatprep.mubr.f32.mxu1 %v9796_v47  ;;  %v9823_v47 = vld [vmem:[%s15730_s9 + $0x3c8] sm:$0xff] }
 0x48b   : > { %13640 = vmatprep.mubr.f32.mxu0 %v10372_v52  ;;  %v10399_v52 = vld [vmem:[%s15743_s13 + $0x1e8] sm:$0xff] }
 0x48d   : > { %12617 = vmatmul.mubr.f32.gmra.mrb[90].mxu1 %v9797_v35  ;;  %v9824_v35 = vld [vmem:[%s15730_s9 + $0x3d0] sm:$0xff] }
 0x48e   : > { %13641 = vmatmul.mubr.f32.gmra.mrb[26].mxu0 %v10373_v38  ;;  %12619 = vmatprep.mubr.f32.mxu1 %v9798_v58  ;;  %v10400_v58 = vld [vmem:[%s15743_s13 + $0x1f0] sm:$0xff] }
 0x48f   : > { %13643 = vmatprep.mubr.f32.mxu0 %v10374_v61 }
 0x491   : > { %12620 = vmatmul.mubr.f32.gmra.mrb[92].mxu1 %v9799_v1  ;;  %v9825_v1 = vld [vmem:[%s15730_s9 + $0x3d8] sm:$0xff] }
 0x492   : > { %13644 = vmatmul.mubr.f32.gmra.mrb[28].mxu0 %v10375_v9  ;;  %12622 = vmatprep.mubr.f32.mxu1 %v9800_v13  ;;  %v10401_v9 = vld [vmem:[%s15743_s13 + $0x1f8] sm:$0xff]  ;;  %v9826_v13 = vld [vmem:[%s15730_s9 + $0x3e0] sm:$0xff] }
 0x493   : > { %13646 = vmatprep.mubr.f32.mxu0 %v10376_v20 }
 0x495   : > { %12623 = vmatmul.mubr.f32.gmra.mrb[94].mxu1 %v9801_v29  ;;  %v10402_v29 = vld [vmem:[%s15743_s13 + $0x200] sm:$0xff] }
 0x496   : > { %13647 = vmatmul.mubr.f32.gmra.mrb[30].mxu0 %v10377_v45  ;;  %12625 = vmatprep.mubr.f32.mxu1 %v9802_v59  ;;  %v9827_v59 = vld [vmem:[%s15730_s9 + $0x3e8] sm:$0xff] }
 0x497   : > { %13649 = vmatprep.mubr.f32.mxu0 %v10378_v5  ;;  %v10403_v5 = vld [vmem:[%s15743_s13 + $0x208] sm:$0xff] }
 0x499   : > { %12626 = vmatmul.mubr.f32.gmra.mrb[96].mxu1 %v9803_v18  ;;  %v9828_v18 = vld [vmem:[%s15730_s9 + $0x3f0] sm:$0xff] }
 0x49a   : > { %13650 = vmatmul.mubr.f32.gmra.mrb[32].mxu0 %v10379_v4  ;;  %12628 = vmatprep.mubr.f32.mxu1 %v9804_v32  ;;  %v10404_v32 = vld [vmem:[%s15743_s13 + $0x210] sm:$0xff] }
 0x49b   : > { %13652 = vmatprep.mubr.f32.mxu0 %v10380_v50 }
 0x49d   : > { %12629 = vmatmul.mubr.f32.gmra.mrb[98].mxu1 %v9805_v44  ;;  %v9829_v44 = vld [vmem:[%s15730_s9 + $0x3f8] sm:$0xff] }
 0x49e   : > { %13653 = vmatmul.mubr.f32.gmra.mrb[34].mxu0 %v10381_v17  ;;  %12631 = vmatprep.mubr.f32.mxu1 %v9806_v46  ;;  %v10405_v17 = vld [vmem:[%s15743_s13 + $0x218] sm:$0xff]  ;;  %v9830_v46 = vld [vmem:[%s15730_s9 + $0x400] sm:$0xff] }
 0x49f   : > { %13655 = vmatprep.mubr.f32.mxu0 %v10382_v37 }
 0x4a1   : > { %12632 = vmatmul.mubr.f32.gmra.mrb[100].mxu1 %v9807_v16  ;;  %v10406_v16 = vld [vmem:[%s15743_s13 + $0x220] sm:$0xff] }
 0x4a2   : > { %13656 = vmatmul.mubr.f32.gmra.mrb[36].mxu0 %v10383_v34  ;;  %12634 = vmatprep.mubr.f32.mxu1 %v9808_v19  ;;  %v9831_v19 = vld [vmem:[%s15730_s9 + $0x408] sm:$0xff] }
 0x4a3   : > { %13658 = vmatprep.mubr.f32.mxu0 %v10384_v31  ;;  %v10407_v31 = vld [vmem:[%s15743_s13 + $0x228] sm:$0xff] }
 0x4a5   : > { %12635 = vmatmul.mubr.f32.gmra.mrb[102].mxu1 %v9809_v40  ;;  %v9832_v40 = vld [vmem:[%s15730_s9 + $0x410] sm:$0xff] }
 0x4a6   : > { %13659 = vmatmul.mubr.f32.gmra.mrb[38].mxu0 %v10385_v54  ;;  %12637 = vmatprep.mubr.f32.mxu1 %v9810_v7  ;;  %v10408_v7 = vld [vmem:[%s15743_s13 + $0x230] sm:$0xff] }
 0x4a7   : > { %13661 = vmatprep.mubr.f32.mxu0 %v10386_v21 }
 0x4a9   : > { %12638 = vmatmul.mubr.f32.gmra.mrb[104].mxu1 %v9811_v25  ;;  %v9833_v25 = vld [vmem:[%s15730_s9 + $0x418] sm:$0xff] }
 0x4aa   : > { %13662 = vmatmul.mubr.f32.gmra.mrb[40].mxu0 %v10387_v49  ;;  %12640 = vmatprep.mubr.f32.mxu1 %v9812_v24  ;;  %v10409_v49 = vld [vmem:[%s15743_s13 + $0x238] sm:$0xff]  ;;  %v9898_v24 = vld [vmem:[%s15737_s28 + $0x220] sm:$0xff] }
 0x4ab   : > { %13664 = vmatprep.mubr.f32.mxu0 %v10388_v26 }
 0x4ac   : > { %v17102_v36 = vpop.f32.mrb[0].mxu1 }
 0x4ad   : > { %v17105_v41 = vpop.f32.mrb[1].mxu1  ;;  %12641 = vmatmul.mubr.f32.gmra.mrb[106].mxu1 %v9813_v63  ;;  %v10410_v63 = vld [vmem:[%s15743_s13 + $0x240] sm:$0xff] }
 0x4ae   : > { %13665 = vmatmul.mubr.f32.gmra.mrb[42].mxu0 %v10389_v28  ;;  %12643 = vmatprep.mubr.f32.mxu1 %v9814_v33  ;;  %v9899_v33 = vld [vmem:[%s15737_s28 + $0x228] sm:$0xff] }
 0x4af   : > { %13667 = vmatprep.mubr.f32.mxu0 %v10390_v39  ;;  %v10411_v39 = vld [vmem:[%s15743_s13 + $0x248] sm:$0xff] }
 0x4b0   : > { %v17110_v56 = vpop.f32.mrb[2].mxu1 }
 0x4b1   : > { %v17113_v51 = vpop.f32.mrb[3].mxu1  ;;  %12644 = vmatmul.mubr.f32.gmra.mrb[108].mxu1 %v9815_v8  ;;  %v9900_v8 = vld [vmem:[%s15737_s28 + $0x230] sm:$0xff] }
 0x4b2   : > { %13668 = vmatmul.mubr.f32.gmra.mrb[44].mxu0 %v10391_v12  ;;  %12646 = vmatprep.mubr.f32.mxu1 %v9816_v48  ;;  %v10412_v48 = vld [vmem:[%s15743_s13 + $0x250] sm:$0xff] }
 0x4b3   : > { %13670 = vmatprep.mubr.f32.mxu0 %v10392_v23 }
 0x4b4   : > { %v17118_v2 = vpop.f32.mrb[4].mxu1 }
 0x4b5   : > { %v17121_v62 = vpop.f32.mrb[5].mxu1  ;;  %12647 = vmatmul.mubr.f32.gmra.mrb[110].mxu1 %v9817_v55  ;;  %v9901_v55 = vld [vmem:[%s15737_s28 + $0x238] sm:$0xff] }
 0x4b6   : > { %13671 = vmatmul.mubr.f32.gmra.mrb[46].mxu0 %v10393_v43  ;;  %12649 = vmatprep.mubr.f32.mxu1 %v9818_v57  ;;  %v10413_v43 = vld [vmem:[%s15743_s13 + $0x258] sm:$0xff]  ;;  %v9902_v57 = vld [vmem:[%s15737_s28 + $0x240] sm:$0xff] }
 0x4b7   : > { %13673 = vmatprep.mubr.f32.mxu0 %v10394_v60 }
 0x4b8   : > { %v17126_v15 = vpop.f32.mrb[6].mxu1 }
 0x4b9   : > { %v17129_v27 = vpop.f32.mrb[7].mxu1  ;;  %12650 = vmatmul.mubr.f32.gmra.mrb[112].mxu1 %v9819_v0  ;;  %v10414_v0 = vld [vmem:[%s15743_s13 + $0x260] sm:$0xff] }
 0x4ba   : > { %13674 = vmatmul.mubr.f32.gmra.mrb[48].mxu0 %v10395_v3  ;;  %12652 = vmatprep.mubr.f32.mxu1 %v9820_v6  ;;  %v9903_v6 = vld [vmem:[%s15737_s28 + $0x248] sm:$0xff] }
 0x4bb   : > { %13676 = vmatprep.mubr.f32.mxu0 %v10396_v22  ;;  %v10415_v22 = vld [vmem:[%s15743_s13 + $0x268] sm:$0xff] }
 0x4bc   : > { %v17134_v42 = vpop.f32.mrb[8].mxu1 }
 0x4bd   : > { %v17137_v14 = vpop.f32.mrb[9].mxu1  ;;  %12653 = vmatmul.mubr.f32.gmra.mrb[114].mxu1 %v9821_v30  ;;  %v9904_v30 = vld [vmem:[%s15737_s28 + $0x250] sm:$0xff] }
 0x4be   : > { %13677 = vmatmul.mubr.f32.gmra.mrb[50].mxu0 %v10397_v53  ;;  %12655 = vmatprep.mubr.f32.mxu1 %v9822_v11  ;;  %v10416_v11 = vld [vmem:[%s15743_s13 + $0x270] sm:$0xff] }
 0x4bf   : > { %13679 = vmatprep.mubr.f32.mxu0 %v10398_v10 }
 0x4c0   : > { %v17142_v38 = vpop.f32.mrb[10].mxu1 }
 0x4c1   : > { %v17145_v61 = vpop.f32.mrb[11].mxu1  ;;  %12656 = vmatmul.mubr.f32.gmra.mrb[116].mxu1 %v9823_v47  ;;  %v9905_v47 = vld [vmem:[%s15737_s28 + $0x258] sm:$0xff] }
 0x4c2   : > { %13680 = vmatmul.mubr.f32.gmra.mrb[52].mxu0 %v10399_v52  ;;  %12658 = vmatprep.mubr.f32.mxu1 %v9824_v35  ;;  %v10417_v52 = vld [vmem:[%s15743_s13 + $0x278] sm:$0xff]  ;;  %v9906_v35 = vld [vmem:[%s15737_s28 + $0x260] sm:$0xff] }
 0x4c3   : > { %13682 = vmatprep.mubr.f32.mxu0 %v10400_v58 }
 0x4c4   : > { %v17150_v20 = vpop.f32.mrb[12].mxu1 }
 0x4c5   : > { %v17153_v45 = vpop.f32.mrb[13].mxu1  ;;  %12659 = vmatmul.mubr.f32.gmra.mrb[118].mxu1 %v9825_v1  ;;  %v10418_v1 = vld [vmem:[%s15743_s13 + $0x280] sm:$0xff] }
 0x4c6   : > { %13683 = vmatmul.mubr.f32.gmra.mrb[54].mxu0 %v10401_v9  ;;  %12661 = vmatprep.mubr.f32.mxu1 %v9826_v13  ;;  %v9907_v13 = vld [vmem:[%s15737_s28 + $0x268] sm:$0xff] }
 0x4c7   : > { %13685 = vmatprep.mubr.f32.mxu0 %v10402_v29  ;;  %v10419_v29 = vld [vmem:[%s15743_s13 + $0x288] sm:$0xff] }
 0x4c8   : > { %v17158_v4 = vpop.f32.mrb[14].mxu1 }
 0x4c9   : > { %v17161_v50 = vpop.f32.mrb[15].mxu1  ;;  %12662 = vmatmul.mubr.f32.gmra.mrb[120].mxu1 %v9827_v59  ;;  %v9908_v59 = vld [vmem:[%s15737_s28 + $0x270] sm:$0xff] }
 0x4ca   : > { %13686 = vmatmul.mubr.f32.gmra.mrb[56].mxu0 %v10403_v5  ;;  %12664 = vmatprep.mubr.f32.mxu1 %v9828_v18  ;;  %v10420_v18 = vld [vmem:[%s15743_s13 + $0x290] sm:$0xff] }
 0x4cb   : > { %13688 = vmatprep.mubr.f32.mxu0 %v10404_v32 }
 0x4cc   : > { %v17166_v37 = vpop.f32.mrb[16].mxu1 }
 0x4cd   : > { %v17169_v34 = vpop.f32.mrb[17].mxu1  ;;  %12665 = vmatmul.mubr.f32.gmra.mrb[122].mxu1 %v9829_v44  ;;  %v9909_v44 = vld [vmem:[%s15737_s28 + $0x278] sm:$0xff] }
 0x4ce   : > { %13689 = vmatmul.mubr.f32.gmra.mrb[58].mxu0 %v10405_v17  ;;  %12667 = vmatprep.mubr.f32.mxu1 %v9830_v46  ;;  %v10421_v17 = vld [vmem:[%s15743_s13 + $0x298] sm:$0xff]  ;;  %v9910_v46 = vld [vmem:[%s15737_s28 + $0x280] sm:$0xff] }
 0x4cf   : > { %13691 = vmatprep.mubr.f32.mxu0 %v10406_v16 }
 0x4d0   : > { %v17174_v54 = vpop.f32.mrb[18].mxu1 }
 0x4d1   : > { %v17177_v21 = vpop.f32.mrb[19].mxu1  ;;  %12668 = vmatmul.mubr.f32.gmra.mrb[124].mxu1 %v9831_v19  ;;  %v10422_v19 = vld [vmem:[%s15743_s13 + $0x2a0] sm:$0xff] }
 0x4d2   : > { %13692 = vmatmul.mubr.f32.gmra.mrb[60].mxu0 %v10407_v31  ;;  %12670 = vmatprep.mubr.f32.mxu1 %v9832_v40  ;;  %v9911_v40 = vld [vmem:[%s15737_s28 + $0x288] sm:$0xff] }
 0x4d3   : > { %13694 = vmatprep.mubr.f32.mxu0 %v10408_v7  ;;  %v10423_v7 = vld [vmem:[%s15743_s13 + $0x2a8] sm:$0xff] }
 0x4d4   : > { %v17182_v26 = vpop.f32.mrb[20].mxu1 }
 0x4d5   : > { %v17185_v28 = vpop.f32.mrb[21].mxu1  ;;  %12671 = vmatmul.mubr.f32.gmra.mrb[126].mxu1 %v9833_v25  ;;  %v9912_v25 = vld [vmem:[%s15737_s28 + $0x290] sm:$0xff] }
 0x4d6   : > { %13695 = vmatmul.mubr.f32.gmra.mrb[62].mxu0 %v10409_v49  ;;  %12801 = vmatprep.mubr.f32.mxu1 %v9898_v24  ;;  %v10424_v24 = vld [vmem:[%s15743_s13 + $0x2b0] sm:$0xff] }
 0x4d7   : > { %13697 = vmatprep.mubr.f32.mxu0 %v10410_v63 }
 0x4d8   : > { %v17190_v12 = vpop.f32.mrb[22].mxu1 }
 0x4d9   : > { %v17193_v23 = vpop.f32.mrb[23].mxu1  ;;  %12802 = vmatmul.mubr.f32.vlgmr.msra.gmra.mrb[64].mxu1 %v9899_v33  ;;  %v9913_v33 = vld [vmem:[%s15737_s28 + $0x298] sm:$0xff] }
 0x4da   : > { %13698 = vmatmul.mubr.f32.gmra.mrb[64].mxu0 %v10411_v39  ;;  %12804 = vmatprep.mubr.f32.mxu1 %v9900_v8  ;;  %v10425_v39 = vld [vmem:[%s15743_s13 + $0x2b8] sm:$0xff]  ;;  %v9914_v8 = vld [vmem:[%s15737_s28 + $0x2a0] sm:$0xff] }
 0x4db   : > { %13700 = vmatprep.mubr.f32.mxu0 %v10412_v48 }
 0x4dc   : > { %v17198_v60 = vpop.f32.mrb[24].mxu1 }
 0x4dd   : > { %v17201_v3 = vpop.f32.mrb[25].mxu1  ;;  %12805 = vmatmul.mubr.f32.gmra.mrb[66].mxu1 %v9901_v55  ;;  %v10426_v55 = vld [vmem:[%s15743_s13 + $0x2c0] sm:$0xff] }
 0x4de   : > { %13701 = vmatmul.mubr.f32.gmra.mrb[66].mxu0 %v10413_v43  ;;  %12807 = vmatprep.mubr.f32.mxu1 %v9902_v57  ;;  %v9915_v57 = vld [vmem:[%s15737_s28 + $0x2a8] sm:$0xff] }
 0x4df   : > { %13703 = vmatprep.mubr.f32.mxu0 %v10414_v0  ;;  %v10427_v0 = vld [vmem:[%s15743_s13 + $0x2c8] sm:$0xff] }
 0x4e0   : > { %v17206_v53 = vpop.f32.mrb[26].mxu1 }
 0x4e1   : > { %v17209_v10 = vpop.f32.mrb[27].mxu1  ;;  %12808 = vmatmul.mubr.f32.gmra.mrb[68].mxu1 %v9903_v6  ;;  %v9916_v6 = vld [vmem:[%s15737_s28 + $0x2b0] sm:$0xff] }
 0x4e2   : > { %13704 = vmatmul.mubr.f32.gmra.mrb[68].mxu0 %v10415_v22  ;;  %12810 = vmatprep.mubr.f32.mxu1 %v9904_v30  ;;  %v10428_v30 = vld [vmem:[%s15743_s13 + $0x2d0] sm:$0xff] }
 0x4e3   : > { %13706 = vmatprep.mubr.f32.mxu0 %v10416_v11 }
 0x4e4   : > { %v17214_v58 = vpop.f32.mrb[28].mxu1 }
 0x4e5   : > { %v17217_v9 = vpop.f32.mrb[29].mxu1  ;;  %12811 = vmatmul.mubr.f32.gmra.mrb[70].mxu1 %v9905_v47  ;;  %v9917_v47 = vld [vmem:[%s15737_s28 + $0x2b8] sm:$0xff] }
 0x4e6   : > { %13707 = vmatmul.mubr.f32.gmra.mrb[70].mxu0 %v10417_v52  ;;  %12813 = vmatprep.mubr.f32.mxu1 %v9906_v35  ;;  %v10429_v52 = vld [vmem:[%s15743_s13 + $0x2d8] sm:$0xff]  ;;  %v9918_v35 = vld [vmem:[%s15737_s28 + $0x2c0] sm:$0xff] }
 0x4e7   : > { %13709 = vmatprep.mubr.f32.mxu0 %v10418_v1 }
 0x4e8   : > { %v17222_v5 = vpop.f32.mrb[30].mxu1 }
 0x4e9   : > { %v17225_v32 = vpop.f32.mrb[31].mxu1  ;;  %12814 = vmatmul.mubr.f32.gmra.mrb[72].mxu1 %v9907_v13  ;;  %v10430_v13 = vld [vmem:[%s15743_s13 + $0x2e0] sm:$0xff] }
 0x4ea   : > { %13710 = vmatmul.mubr.f32.gmra.mrb[72].mxu0 %v10419_v29  ;;  %12816 = vmatprep.mubr.f32.mxu1 %v9908_v59  ;;  %v9919_v59 = vld [vmem:[%s15737_s28 + $0x2c8] sm:$0xff] }
 0x4eb   : > { %13712 = vmatprep.mubr.f32.mxu0 %v10420_v18  ;;  %v10431_v18 = vld [vmem:[%s15743_s13 + $0x2e8] sm:$0xff] }
 0x4ec   : > { %v17230_v16 = vpop.f32.mrb[32].mxu1 }
 0x4ed   : > { %v17233_v31 = vpop.f32.mrb[33].mxu1  ;;  %12817 = vmatmul.mubr.f32.gmra.mrb[74].mxu1 %v9909_v44  ;;  %v9920_v44 = vld [vmem:[%s15737_s28 + $0x2d0] sm:$0xff] }
 0x4ee   : > { %13713 = vmatmul.mubr.f32.gmra.mrb[74].mxu0 %v10421_v17  ;;  %12819 = vmatprep.mubr.f32.mxu1 %v9910_v46  ;;  %v10432_v46 = vld [vmem:[%s15743_s13 + $0x2f0] sm:$0xff] }
 0x4ef   : > { %13715 = vmatprep.mubr.f32.mxu0 %v10422_v19 }
 0x4f0   : > { %v17238_v49 = vpop.f32.mrb[34].mxu1 }
 0x4f1   : > { %v17241_v63 = vpop.f32.mrb[35].mxu1  ;;  %12820 = vmatmul.mubr.f32.gmra.mrb[76].mxu1 %v9911_v40  ;;  %v9921_v40 = vld [vmem:[%s15737_s28 + $0x2d8] sm:$0xff] }
 0x4f2   : > { %13716 = vmatmul.mubr.f32.gmra.mrb[76].mxu0 %v10423_v7  ;;  %12822 = vmatprep.mubr.f32.mxu1 %v9912_v25  ;;  %v10433_v7 = vld [vmem:[%s15743_s13 + $0x2f8] sm:$0xff]  ;;  %v9922_v25 = vld [vmem:[%s15737_s28 + $0x2e0] sm:$0xff] }
 0x4f3   : > { %13718 = vmatprep.mubr.f32.mxu0 %v10424_v24 }
 0x4f4   : > { %v17246_v48 = vpop.f32.mrb[36].mxu1 }
 0x4f5   : > { %v17249_v43 = vpop.f32.mrb[37].mxu1  ;;  %12823 = vmatmul.mubr.f32.gmra.mrb[78].mxu1 %v9913_v33  ;;  %v10434_v33 = vld [vmem:[%s15743_s13 + $0x300] sm:$0xff] }
 0x4f6   : > { %13719 = vmatmul.mubr.f32.gmra.mrb[78].mxu0 %v10425_v39  ;;  %12825 = vmatprep.mubr.f32.mxu1 %v9914_v8  ;;  %v9923_v8 = vld [vmem:[%s15737_s28 + $0x2e8] sm:$0xff] }
 0x4f7   : > { %13721 = vmatprep.mubr.f32.mxu0 %v10426_v55  ;;  %v10435_v55 = vld [vmem:[%s15743_s13 + $0x308] sm:$0xff] }
 0x4f8   : > { %v17254_v22 = vpop.f32.mrb[38].mxu1 }
 0x4f9   : > { %v17257_v11 = vpop.f32.mrb[39].mxu1  ;;  %12826 = vmatmul.mubr.f32.gmra.mrb[80].mxu1 %v9915_v57  ;;  %v9924_v57 = vld [vmem:[%s15737_s28 + $0x2f0] sm:$0xff] }
 0x4fa   : > { %13722 = vmatmul.mubr.f32.gmra.mrb[80].mxu0 %v10427_v0  ;;  %12828 = vmatprep.mubr.f32.mxu1 %v9916_v6  ;;  %v10436_v6 = vld [vmem:[%s15743_s13 + $0x310] sm:$0xff] }
 0x4fb   : > { %13724 = vmatprep.mubr.f32.mxu0 %v10428_v30 }
 0x4fc   : > { %v17262_v1 = vpop.f32.mrb[40].mxu1 }
 0x4fd   : > { %v17265_v29 = vpop.f32.mrb[41].mxu1  ;;  %12829 = vmatmul.mubr.f32.gmra.mrb[82].mxu1 %v9917_v47  ;;  %v9925_v47 = vld [vmem:[%s15737_s28 + $0x2f8] sm:$0xff] }
 0x4fe   : > { %13725 = vmatmul.mubr.f32.gmra.mrb[82].mxu0 %v10429_v52  ;;  %12831 = vmatprep.mubr.f32.mxu1 %v9918_v35  ;;  %v10437_v52 = vld [vmem:[%s15743_s13 + $0x318] sm:$0xff]  ;;  %v9926_v35 = vld [vmem:[%s15737_s28 + $0x300] sm:$0xff] }
 0x4ff   : > { %13727 = vmatprep.mubr.f32.mxu0 %v10430_v13 }
 0x500   : > { %v17270_v17 = vpop.f32.mrb[42].mxu1 }
 0x501   : > { %v17273_v19 = vpop.f32.mrb[43].mxu1  ;;  %12832 = vmatmul.mubr.f32.gmra.mrb[84].mxu1 %v9919_v59  ;;  %v10438_v59 = vld [vmem:[%s15743_s13 + $0x320] sm:$0xff] }
 0x502   : > { %13728 = vmatmul.mubr.f32.gmra.mrb[84].mxu0 %v10431_v18  ;;  %12834 = vmatprep.mubr.f32.mxu1 %v9920_v44  ;;  %v9927_v44 = vld [vmem:[%s15737_s28 + $0x308] sm:$0xff] }
 0x503   : > { %13730 = vmatprep.mubr.f32.mxu0 %v10432_v46  ;;  %v10439_v46 = vld [vmem:[%s15743_s13 + $0x328] sm:$0xff] }
 0x504   : > { %v17278_v24 = vpop.f32.mrb[44].mxu1 }
 0x505   : > { %v17281_v39 = vpop.f32.mrb[45].mxu1  ;;  %12835 = vmatmul.mubr.f32.gmra.mrb[86].mxu1 %v9921_v40  ;;  %v9928_v40 = vld [vmem:[%s15737_s28 + $0x310] sm:$0xff] }
 0x506   : > { %13731 = vmatmul.mubr.f32.gmra.mrb[86].mxu0 %v10433_v7  ;;  %12837 = vmatprep.mubr.f32.mxu1 %v9922_v25  ;;  %v10440_v25 = vld [vmem:[%s15743_s13 + $0x330] sm:$0xff] }
 0x507   : > { %13733 = vmatprep.mubr.f32.mxu0 %v10434_v33 }
 0x508   : > { %v17286_v0 = vpop.f32.mrb[46].mxu1 }
 0x509   : > { %v17289_v30 = vpop.f32.mrb[47].mxu1  ;;  %12838 = vmatmul.mubr.f32.gmra.mrb[88].mxu1 %v9923_v8  ;;  %v9929_v8 = vld [vmem:[%s15737_s28 + $0x318] sm:$0xff] }
 0x50a   : > { %13734 = vmatmul.mubr.f32.gmra.mrb[88].mxu0 %v10435_v55  ;;  %12840 = vmatprep.mubr.f32.mxu1 %v9924_v57  ;;  %v10441_v55 = vld [vmem:[%s15743_s13 + $0x338] sm:$0xff]  ;;  %v9930_v57 = vld [vmem:[%s15737_s28 + $0x320] sm:$0xff] }
 0x50b   : > { %13736 = vmatprep.mubr.f32.mxu0 %v10436_v6 }
 0x50c   : > { %v17294_v13 = vpop.f32.mrb[48].mxu1 }
 0x50d   : > { %17889 = vst [vmem:[#allocation27_spill] sm:$0xff] %v17294_v13  ;;  %v17297_v18 = vpop.f32.mrb[49].mxu1  ;;  %12841 = vmatmul.mubr.f32.gmra.mrb[90].mxu1 %v9925_v47  ;;  %v10442_v47 = vld [vmem:[%s15743_s13 + $0x340] sm:$0xff] }
 0x50e   : > { %17890 = vst [vmem:[#allocation28_spill] sm:$0xff] %v17297_v18  ;;  %13737 = vmatmul.mubr.f32.gmra.mrb[90].mxu0 %v10437_v52  ;;  %12843 = vmatprep.mubr.f32.mxu1 %v9926_v35  ;;  %v9931_v35 = vld [vmem:[%s15737_s28 + $0x328] sm:$0xff] }
 0x50f   : > { %13739 = vmatprep.mubr.f32.mxu0 %v10438_v59  ;;  %v10443_v59 = vld [vmem:[%s15743_s13 + $0x348] sm:$0xff] }
 0x510   : > { %v17302_v7 = vpop.f32.mrb[50].mxu1 }
 0x511   : > { %17891 = vst [vmem:[#allocation19_spill] sm:$0xff] %v17302_v7  ;;  %v17305_v33 = vpop.f32.mrb[51].mxu1  ;;  %12844 = vmatmul.mubr.f32.gmra.mrb[92].mxu1 %v9927_v44  ;;  %v9932_v44 = vld [vmem:[%s15737_s28 + $0x330] sm:$0xff] }
 0x512   : > { %17892 = vst [vmem:[#allocation29_spill] sm:$0xff] %v17305_v33  ;;  %13740 = vmatmul.mubr.f32.gmra.mrb[92].mxu0 %v10439_v46  ;;  %12846 = vmatprep.mubr.f32.mxu1 %v9928_v40  ;;  %v10444_v40 = vld [vmem:[%s15743_s13 + $0x350] sm:$0xff] }
 0x513   : > { %13742 = vmatprep.mubr.f32.mxu0 %v10440_v25  ;;  %v10456_v7 = vld [vmem:[%s15743_s13 + $0x3b0] sm:$0xff] }
 0x514   : > { %v17310_v6 = vpop.f32.mrb[52].mxu1 }
 0x515   : > { %17893 = vst [vmem:[#allocation30_spill] sm:$0xff] %v17310_v6  ;;  %v17313_v52 = vpop.f32.mrb[53].mxu1  ;;  %12847 = vmatmul.mubr.f32.gmra.mrb[94].mxu1 %v9929_v8  ;;  %v9933_v8 = vld [vmem:[%s15737_s28 + $0x338] sm:$0xff] }
 0x516   : > { %17894 = vst [vmem:[#allocation31_spill] sm:$0xff] %v17313_v52  ;;  %13743 = vmatmul.mubr.f32.gmra.mrb[94].mxu0 %v10441_v55  ;;  %12849 = vmatprep.mubr.f32.mxu1 %v9930_v57  ;;  %v10445_v55 = vld [vmem:[%s15743_s13 + $0x358] sm:$0xff]  ;;  %v9934_v57 = vld [vmem:[%s15737_s28 + $0x340] sm:$0xff] }
 0x517   : > { %13745 = vmatprep.mubr.f32.mxu0 %v10442_v47  ;;  %v10446_v47 = vld [vmem:[%s15743_s13 + $0x360] sm:$0xff] }
 0x518   : > { %v17318_v46 = vpop.f32.mrb[54].mxu1 }
 0x519   : > { %17895 = vst [vmem:[#allocation20_spill] sm:$0xff] %v17318_v46  ;;  %v17321_v25 = vpop.f32.mrb[55].mxu1  ;;  %12850 = vmatmul.mubr.f32.gmra.mrb[96].mxu1 %v9931_v35  ;;  %v9935_v35 = vld [vmem:[%s15737_s28 + $0x348] sm:$0xff] }
 0x51a   : > { %17896 = vst [vmem:[#allocation21_spill] sm:$0xff] %v17321_v25  ;;  %13746 = vmatmul.mubr.f32.gmra.mrb[96].mxu0 %v10443_v59  ;;  %12852 = vmatprep.mubr.f32.mxu1 %v9932_v44  ;;  %v10447_v59 = vld [vmem:[%s15743_s13 + $0x368] sm:$0xff]  ;;  %v9936_v44 = vld [vmem:[%s15737_s28 + $0x350] sm:$0xff] }
 0x51b   : > { %13748 = vmatprep.mubr.f32.mxu0 %v10444_v40  ;;  %v10448_v40 = vld [vmem:[%s15743_s13 + $0x370] sm:$0xff] }
 0x51c   : > { %v17326_v52 = vpop.f32.mrb[56].mxu1 }
 0x51d   : > { %17897 = vst [vmem:[#allocation22_spill] sm:$0xff] %v17326_v52  ;;  %v17329_v6 = vpop.f32.mrb[57].mxu1  ;;  %12853 = vmatmul.mubr.f32.gmra.mrb[98].mxu1 %v9933_v8  ;;  %v9937_v8 = vld [vmem:[%s15737_s28 + $0x358] sm:$0xff] }
 0x51e   : > { %17898 = vst [vmem:[#allocation23_spill] sm:$0xff] %v17329_v6  ;;  %13749 = vmatmul.mubr.f32.gmra.mrb[98].mxu0 %v10445_v55  ;;  %12855 = vmatprep.mubr.f32.mxu1 %v9934_v57  ;;  %v10449_v55 = vld [vmem:[%s15743_s13 + $0x378] sm:$0xff]  ;;  %v9938_v57 = vld [vmem:[%s15737_s28 + $0x360] sm:$0xff] }
 0x51f   : > { %13751 = vmatprep.mubr.f32.mxu0 %v10446_v47  ;;  %v10450_v47 = vld [vmem:[%s15743_s13 + $0x380] sm:$0xff] }
 0x520   : > { %v17334_v25 = vpop.f32.mrb[58].mxu1 }
 0x521   : > { %17899 = vst [vmem:[#allocation24_spill] sm:$0xff] %v17334_v25  ;;  %v17337_v46 = vpop.f32.mrb[59].mxu1  ;;  %12856 = vmatmul.mubr.f32.gmra.mrb[100].mxu1 %v9935_v35  ;;  %v9939_v35 = vld [vmem:[%s15737_s28 + $0x368] sm:$0xff] }
 0x522   : > { %17900 = vst [vmem:[#allocation25_spill] sm:$0xff] %v17337_v46  ;;  %13752 = vmatmul.mubr.f32.gmra.mrb[100].mxu0 %v10447_v59  ;;  %12858 = vmatprep.mubr.f32.mxu1 %v9936_v44  ;;  %v10451_v59 = vld [vmem:[%s15743_s13 + $0x388] sm:$0xff]  ;;  %v9940_v44 = vld [vmem:[%s15737_s28 + $0x370] sm:$0xff] }
 0x523   : > { %13754 = vmatprep.mubr.f32.mxu0 %v10448_v40  ;;  %v10452_v40 = vld [vmem:[%s15743_s13 + $0x390] sm:$0xff] }
 0x524   : > { %v17342_v6 = vpop.f32.mrb[60].mxu1 }
 0x525   : > { %17901 = vst [vmem:[#allocation26_spill] sm:$0xff] %v17342_v6  ;;  %v17345_v52 = vpop.f32.mrb[61].mxu1  ;;  %12859 = vmatmul.mubr.f32.gmra.mrb[102].mxu1 %v9937_v8  ;;  %v10453_v8 = vld [vmem:[%s15743_s13 + $0x398] sm:$0xff]  ;;  %v17359_v6 = vld [vmem:[#allocation10] ss:$0 sm:$0xff] }
 0x526   : > { %17902 = vst [vmem:[#allocation32_spill] sm:$0xff] %v17345_v52  ;;  %13755 = vmatmul.mubr.f32.gmra.mrb[102].mxu0 %v10449_v55  ;;  %12861 = vmatprep.mubr.f32.mxu1 %v9938_v57  ;;  %v9941_v52 = vld [vmem:[%s15737_s28 + $0x378] sm:$0xff]  ;;  %v9942_v55 = vld [vmem:[%s15737_s28 + $0x380] sm:$0xff] }
 0x527   : > { %13757 = vmatprep.mubr.f32.mxu0 %v10450_v47  ;;  %v10454_v57 = vld [vmem:[%s15743_s13 + $0x3a0] sm:$0xff] }
 0x528   : > { %v17350_v46 = vpop.f32.mrb[62].mxu1 }
 0x529   : > { %17903 = vst [vmem:[#allocation33_spill] sm:$0xff] %v17350_v46  ;;  %v17353_v25 = vpop.f32.mrb[63].mxu1  ;;  %12862 = vmatmul.mubr.f32.gmra.mrb[104].mxu1 %v9939_v35  ;;  %v9943_v35 = vld [vmem:[%s15737_s28 + $0x388] sm:$0xff] }
 0x52a   : > { %17904 = vst [vmem:[#allocation34_spill] sm:$0xff] %v17353_v25  ;;  %13758 = vmatmul.mubr.f32.gmra.mrb[104].mxu0 %v10451_v59  ;;  %12864 = vmatprep.mubr.f32.mxu1 %v9940_v44  ;;  %v10455_v44 = vld [vmem:[%s15743_s13 + $0x3a8] sm:$0xff] }
 0x52b   : > { %13760 = vmatprep.mubr.f32.mxu0 %v10452_v40  ;;  %v9944_v40 = vld [vmem:[%s15737_s28 + $0x390] sm:$0xff] }
 0x52d   : > { %v13603_v47 = vpop.f32.mrb[0].mxu0  ;;  %12865 = vmatmul.mubr.f32.gmra.mrb[106].mxu1 %v9941_v52 }
 0x52e   : > { %v14097_v46 = vadd.f32 %v13603_v47, %v17102_v36  ;;  %v8131_v25 = vpop.f32.mrb[1].mxu0  ;;  %13761 = vmatmul.mubr.f32.gmra.mrb[106].mxu0 %v10453_v8  ;;  %12867 = vmatprep.mubr.f32.mxu1 %v9942_v55  ;;  %v9946_v47 = vld [vmem:[%s15737_s28 + $0x3a0] sm:$0xff] }
 0x52f   : > { %v14098_v59 = vadd.f32 %v8131_v25, %v17105_v41  ;;  %13763 = vmatprep.mubr.f32.mxu0 %v10454_v57  ;;  %v9945_v41 = vld [vmem:[%s15737_s28 + $0x398] sm:$0xff] }
 0x530   : > { %v8906_v33 = vadd.f32 %v14097_v46, %v17359_v6  ;;  %v10457_v57 = vld [vmem:[%s15743_s13 + $0x3b8] sm:$0xff] }
 0x531   : > { %v8905_v52 = vadd.f32 %v14098_v59, %v17359_v6  ;;  %v13606_v18 = vpop.f32.mrb[2].mxu0  ;;  %12868 = vmatmul.mubr.f32.gmra.mrb[108].mxu1 %v9943_v35  ;;  %v10458_v59 = vld [vmem:[%s15743_s13 + $0x3c0] sm:$0xff] }
 0x532   : > { %vm9034_vm0 = vcmp.gt.f32.partialorder %v8906_v33, 0.0  ;;  %v9162_v36 = vmul.f32 0.1, %v8906_v33  ;;  %v14099_v8 = vadd.f32 %v13606_v18, %v17110_v56  ;;  %v8141_v55 = vpop.f32.mrb[3].mxu0  ;;  %13764 = vmatmul.mubr.f32.gmra.mrb[108].mxu0 %v10455_v44  ;;  %12870 = vmatprep.mubr.f32.mxu1 %v9944_v40  ;;  %v9947_v40 = vld [vmem:[%s15737_s28 + $0x3a8] sm:$0xff] }
 0x533   : > { %vm9033_vm1 = vcmp.gt.f32.partialorder %v8905_v52, 0.0  ;;  %v9161_v25 = vmul.f32 0.1, %v8905_v52  ;;  %v14100_v46 = vadd.f32 %v8141_v55, %v17113_v51  ;;  %13766 = vmatprep.mubr.f32.mxu0 %v10456_v7 }
 0x534   : > { %v9290_v13 = vsel %vm9034_vm0, %v8906_v33, %v9162_v36  ;;  %v8908_v35 = vadd.f32 %v14099_v8, %v17359_v6  ;;  %v10459_v36 = vld [vmem:[%s15743_s13 + $0x3c8] sm:$0xff]  ;;  %v9948_v8 = vld [vmem:[%s15737_s28 + $0x3b0] sm:$0xff] }
 0x535   : > { %9418 = vst [vmem:[%s17377_s15 + $0x8] sm:$0xff] %v9290_v13  ;;  %v9289_v56 = vsel %vm9033_vm1, %v8905_v52, %v9161_v25  ;;  %v8907_v18 = vadd.f32 %v14100_v46, %v17359_v6  ;;  %v13609_v44 = vpop.f32.mrb[4].mxu0  ;;  %12871 = vmatmul.mubr.f32.gmra.mrb[110].mxu1 %v9945_v41  ;;  %v10460_v25 = vld [vmem:[%s15743_s13 + $0x3d0] sm:$0xff] }
 0x536   : > { %9417 = vst [vmem:[%s17377_s15] sm:$0xff] %v9289_v56  ;;  %vm9036_vm2 = vcmp.gt.f32.partialorder %v8908_v35, 0.0  ;;  %v9164_v51 = vmul.f32 0.1, %v8908_v35  ;;  %v14101_v7 = vadd.f32 %v13609_v44, %v17118_v2  ;;  %v8151_v33 = vpop.f32.mrb[5].mxu0  ;;  %13767 = vmatmul.mubr.f32.gmra.mrb[110].mxu0 %v10457_v57  ;;  %12873 = vmatprep.mubr.f32.mxu1 %v9946_v47  ;;  %v10461_v44 = vld [vmem:[%s15743_s13 + $0x3d8] sm:$0xff] }
 0x537   : > { %vm9035_vm3 = vcmp.gt.f32.partialorder %v8907_v18, 0.0  ;;  %v9163_v13 = vmul.f32 0.1, %v8907_v18  ;;  %v14102_v52 = vadd.f32 %v8151_v33, %v17121_v62  ;;  %13769 = vmatprep.mubr.f32.mxu0 %v10458_v59 }
 0x538   : > { %v9292_v55 = vsel %vm9036_vm2, %v8908_v35, %v9164_v51  ;;  %v8910_v41 = vadd.f32 %v14101_v7, %v17359_v6  ;;  %v9949_v35 = vld [vmem:[%s15737_s28 + $0x3b8] sm:$0xff]  ;;  %v9950_v51 = vld [vmem:[%s15737_s28 + $0x3c0] sm:$0xff] }
 0x539   : > { %9420 = vst [vmem:[%s17377_s15 + $0x18] sm:$0xff] %v9292_v55  ;;  %v9291_v46 = vsel %vm9035_vm3, %v8907_v18, %v9163_v13  ;;  %v8909_v2 = vadd.f32 %v14102_v52, %v17359_v6  ;;  %v13612_v57 = vpop.f32.mrb[6].mxu0  ;;  %12874 = vmatmul.mubr.f32.gmra.mrb[112].mxu1 %v9947_v40  ;;  %v10462_v40 = vld [vmem:[%s15743_s13 + $0x3e0] sm:$0xff]  ;;  %v9951_v55 = vld [vmem:[%s15737_s28 + $0x3c8] sm:$0xff] }
 0x53a   : > { %9419 = vst [vmem:[%s17377_s15 + $0x10] sm:$0xff] %v9291_v46  ;;  %vm9038_vm4 = vcmp.gt.f32.partialorder %v8910_v41, 0.0  ;;  %v9166_v62 = vmul.f32 0.1, %v8910_v41  ;;  %v14103_v47 = vadd.f32 %v13612_v57, %v17126_v15  ;;  %v8161_v59 = vpop.f32.mrb[7].mxu0  ;;  %13770 = vmatmul.mubr.f32.gmra.mrb[112].mxu0 %v10459_v36  ;;  %12876 = vmatprep.mubr.f32.mxu1 %v9948_v8  ;;  %v10463_v46 = vld [vmem:[%s15743_s13 + $0x3e8] sm:$0xff] }
 0x53b   : > { %vm9037_vm5 = vcmp.gt.f32.partialorder %v8909_v2, 0.0  ;;  %v9165_v56 = vmul.f32 0.1, %v8909_v2  ;;  %v14104_v18 = vadd.f32 %v8161_v59, %v17129_v27  ;;  %13772 = vmatprep.mubr.f32.mxu0 %v10460_v25 }
 0x53c   : > { %v9294_v7 = vsel %vm9038_vm4, %v8910_v41, %v9166_v62  ;;  %v8912_v33 = vadd.f32 %v14103_v47, %v17359_v6  ;;  %v10464_v47 = vld [vmem:[%s15743_s13 + $0x3f0] sm:$0xff] }
 0x53d   : > { %9422 = vst [vmem:[%s17377_s15 + $0x28] sm:$0xff] %v9294_v7  ;;  %v9293_v13 = vsel %vm9037_vm5, %v8909_v2, %v9165_v56  ;;  %v8911_v15 = vadd.f32 %v14104_v18, %v17359_v6  ;;  %v13615_v52 = vpop.f32.mrb[8].mxu0  ;;  %12877 = vmatmul.mubr.f32.gmra.mrb[114].mxu1 %v9949_v35  ;;  %v9952_v2 = vld [vmem:[%s15737_s28 + $0x3d0] sm:$0xff] }
 0x53e   : > { %9421 = vst [vmem:[%s17377_s15 + $0x20] sm:$0xff] %v9293_v13  ;;  %vm9040_vm6 = vcmp.gt.f32.partialorder %v8912_v33, 0.0  ;;  %v9168_v27 = vmul.f32 0.1, %v8912_v33  ;;  %v14105_v36 = vadd.f32 %v13615_v52, %v17134_v42  ;;  %v8171_v8 = vpop.f32.mrb[9].mxu0  ;;  %13773 = vmatmul.mubr.f32.gmra.mrb[114].mxu0 %v10461_v44  ;;  %12879 = vmatprep.mubr.f32.mxu1 %v9950_v51  ;;  %v9953_v44 = vld [vmem:[%s15737_s28 + $0x3d8] sm:$0xff] }
 0x53f   : > { %vm9039_vm7 = vcmp.gt.f32.partialorder %v8911_v15, 0.0  ;;  %v9167_v41 = vmul.f32 0.1, %v8911_v15  ;;  %v14106_v25 = vadd.f32 %v8171_v8, %v17137_v14  ;;  %13775 = vmatprep.mubr.f32.mxu0 %v10462_v40  ;;  %v9954_v40 = vld [vmem:[%s15737_s28 + $0x3e0] sm:$0xff] }
 0x540   : > { %v9296_v57 = vsel %vm9040_vm6, %v8912_v33, %v9168_v27  ;;  %v8914_v62 = vadd.f32 %v14105_v36, %v17359_v6  ;;  %v10465_v33 = vld [vmem:[%s15743_s13 + $0x3f8] sm:$0xff]  ;;  %v10466_v52 = vld [vmem:[%s15743_s13 + $0x400] sm:$0xff] }
 0x541   : > { %9424 = vst [vmem:[%s17377_s15 + $0x38] sm:$0xff] %v9296_v57  ;;  %v9295_v59 = vsel %vm9039_vm7, %v8911_v15, %v9167_v41  ;;  %v8913_v42 = vadd.f32 %v14106_v25, %v17359_v6  ;;  %v13618_v35 = vpop.f32.mrb[10].mxu0  ;;  %12880 = vmatmul.mubr.f32.gmra.mrb[116].mxu1 %v9951_v55  ;;  %v9955_v41 = vld [vmem:[%s15737_s28 + $0x3e8] sm:$0xff]  ;;  %v9956_v57 = vld [vmem:[%s15737_s28 + $0x3f0] sm:$0xff] }
 0x542   : > { %9423 = vst [vmem:[%s17377_s15 + $0x30] sm:$0xff] %v9295_v59  ;;  %vm9042_vm8 = vcmp.gt.f32.partialorder %v8914_v62, 0.0  ;;  %v9170_v14 = vmul.f32 0.1, %v8914_v62  ;;  %v14107_v56 = vadd.f32 %v13618_v35, %v17142_v38  ;;  %v8181_v18 = vpop.f32.mrb[11].mxu0  ;;  %13776 = vmatmul.mubr.f32.gmra.mrb[116].mxu0 %v10463_v46  ;;  %12882 = vmatprep.mubr.f32.mxu1 %v9952_v2  ;;  %v10467_v2 = vld [vmem:[%s15743_s13 + $0x408] sm:$0xff] }
 0x543   : > { %vm9041_vm9 = vcmp.gt.f32.partialorder %v8913_v42, 0.0  ;;  %v9169_v51 = vmul.f32 0.1, %v8913_v42  ;;  %v14108_v7 = vadd.f32 %v8181_v18, %v17145_v61  ;;  %13778 = vmatprep.mubr.f32.mxu0 %v10464_v47  ;;  %v10468_v59 = vld [vmem:[%s15743_s13 + $0x410] sm:$0xff]  ;;  %v9957_v18 = vld [vmem:[%s15737_s28 + $0x3f8] sm:$0xff] }
 0x544   : > { %v9298_v13 = vsel %vm9042_vm8, %v8914_v62, %v9170_v14  ;;  %v8916_v15 = vadd.f32 %v14107_v56, %v17359_v6 }
 0x545   : > { %9426 = vst [vmem:[%s17377_s15 + $0x48] sm:$0xff] %v9298_v13  ;;  %v9297_v27 = vsel %vm9041_vm9, %v8913_v42, %v9169_v51  ;;  %v8915_v38 = vadd.f32 %v14108_v7, %v17359_v6  ;;  %v13621_v36 = vpop.f32.mrb[12].mxu0  ;;  %12883 = vmatmul.mubr.f32.gmra.mrb[118].mxu1 %v9953_v44  ;;  %v10469_v7 = vld [vmem:[%s15743_s13 + $0x418] sm:$0xff] }
 0x546   : > { %9425 = vst [vmem:[%s17377_s15 + $0x40] sm:$0xff] %v9297_v27  ;;  %vm9044_vm10 = vcmp.gt.f32.partialorder %v8916_v15, 0.0  ;;  %v9172_v61 = vmul.f32 0.1, %v8916_v15  ;;  %v14109_v8 = vadd.f32 %v13621_v36, %v17150_v20  ;;  %v8191_v55 = vpop.f32.mrb[13].mxu0  ;;  %13779 = vmatmul.mubr.f32.gmra.mrb[118].mxu0 %v10465_v33  ;;  %12885 = vmatprep.mubr.f32.mxu1 %v9954_v40  ;;  %v9958_v33 = vld [vmem:[%s15737_s28 + $0x400] sm:$0xff] }
 0x547   : > { %vm9043_vm11 = vcmp.gt.f32.partialorder %v8915_v38, 0.0  ;;  %v9171_v25 = vmul.f32 0.1, %v8915_v38  ;;  %v14110_v46 = vadd.f32 %v8191_v55, %v17153_v45  ;;  %13781 = vmatprep.mubr.f32.mxu0 %v10466_v52 }
 0x548   : > { %v9300_v62 = vsel %vm9044_vm10, %v8916_v15, %v9172_v61  ;;  %v8918_v47 = vadd.f32 %v14109_v8, %v17359_v6  ;;  %v10470_v15 = vld [vmem:[%s15743_s13 + $0x420] sm:$0xff]  ;;  %v9959_v61 = vld [vmem:[%s15737_s28 + $0x408] sm:$0xff] }
 0x549   : > { %9428 = vst [vmem:[%s17377_s15 + $0x58] sm:$0xff] %v9300_v62  ;;  %v9299_v42 = vsel %vm9043_vm11, %v8915_v38, %v9171_v25  ;;  %v8917_v20 = vadd.f32 %v14110_v46, %v17359_v6  ;;  %v13624_v35 = vpop.f32.mrb[14].mxu0  ;;  %12886 = vmatmul.mubr.f32.gmra.mrb[120].mxu1 %v9955_v41  ;;  %v10471_v41 = vld [vmem:[%s15743_s13 + $0x428] sm:$0xff]  ;;  %v9960_v25 = vld [vmem:[%s15737_s28 + $0x410] sm:$0xff] }
 0x54a   : > { %9427 = vst [vmem:[%s17377_s15 + $0x50] sm:$0xff] %v9299_v42  ;;  %vm9046_vm12 = vcmp.gt.f32.partialorder %v8918_v47, 0.0  ;;  %v9174_v45 = vmul.f32 0.1, %v8918_v47  ;;  %v14111_v14 = vadd.f32 %v13624_v35, %v17158_v4  ;;  %v8201_v56 = vpop.f32.mrb[15].mxu0  ;;  %13782 = vmatmul.mubr.f32.gmra.mrb[120].mxu0 %v10467_v2  ;;  %12888 = vmatprep.mubr.f32.mxu1 %v9956_v57  ;;  %v10472_v57 = vld [vmem:[%s15743_s13 + $0x430] sm:$0xff] }
 0x54b   : > { %vm9045_vm13 = vcmp.gt.f32.partialorder %v8917_v20, 0.0  ;;  %v9173_v44 = vmul.f32 0.1, %v8917_v20  ;;  %v14112_v51 = vadd.f32 %v8201_v56, %v17161_v50  ;;  %13784 = vmatprep.mubr.f32.mxu0 %v10468_v59 }
 0x54c   : > { %v9302_v40 = vsel %vm9046_vm12, %v8918_v47, %v9174_v45  ;;  %v8920_v13 = vadd.f32 %v14111_v14, %v17359_v6  ;;  %v10473_v14 = vld [vmem:[%s15743_s13 + $0x438] sm:$0xff] }
 0x54d   : > { %9430 = vst [vmem:[%s17377_s15 + $0x68] sm:$0xff] %v9302_v40  ;;  %v9301_v52 = vsel %vm9045_vm13, %v8917_v20, %v9173_v44  ;;  %v8919_v4 = vadd.f32 %v14112_v51, %v17359_v6  ;;  %v13627_v27 = vpop.f32.mrb[16].mxu0  ;;  %12889 = vmatmul.mubr.f32.gmra.mrb[122].mxu1 %v9957_v18  ;;  %v9961_v20 = vld [vmem:[%s15737_s28 + $0x418] sm:$0xff] }
 0x54e   : > { %9429 = vst [vmem:[%s17377_s15 + $0x60] sm:$0xff] %v9301_v52  ;;  %vm9048_vm14 = vcmp.gt.f32.partialorder %v8920_v13, 0.0  ;;  %v9176_v50 = vmul.f32 0.1, %v8920_v13  ;;  %v14113_v38 = vadd.f32 %v13627_v27, %v17166_v37  ;;  %v8211_v36 = vpop.f32.mrb[17].mxu0  ;;  %13785 = vmatmul.mubr.f32.gmra.mrb[122].mxu0 %v10469_v7  ;;  %12891 = vmatprep.mubr.f32.mxu1 %v9958_v33 }
 0x54f   : > { %vm9047_vm15 = vcmp.gt.f32.partialorder %v8919_v4, 0.0  ;;  %v9175_v8 = vmul.f32 0.1, %v8919_v4  ;;  %v14114_v55 = vadd.f32 %v8211_v36, %v17169_v34  ;;  %13787 = vmatprep.mubr.f32.mxu0 %v10470_v15 }
 0x550   : > { %v9304_v46 = vsel %vm9048_vm14, %v8920_v13, %v9176_v50  ;;  %v8922_v2 = vadd.f32 %v14113_v38, %v17359_v6 }
 0x551   : > { %9432 = vst [vmem:[%s17377_s15 + $0x78] sm:$0xff] %v9304_v46  ;;  %v9303_v62 = vsel %vm9047_vm15, %v8919_v4, %v9175_v8  ;;  %v8921_v37 = vadd.f32 %v14114_v55, %v17359_v6  ;;  %v13630_v47 = vpop.f32.mrb[18].mxu0  ;;  %12892 = vmatmul.mubr.f32.gmra.mrb[124].mxu1 %v9959_v61 }
 0x552   : > { %9431 = vst [vmem:[%s17377_s15 + $0x70] sm:$0xff] %v9303_v62  ;;  %vm9050_vm0 = vcmp.gt.f32.partialorder %v8922_v2, 0.0  ;;  %v9178_v59 = vmul.f32 0.1, %v8922_v2  ;;  %v14115_v34 = vadd.f32 %v13630_v47, %v17174_v54  ;;  %v8221_v42 = vpop.f32.mrb[19].mxu0  ;;  %13788 = vmatmul.mubr.f32.gmra.mrb[124].mxu0 %v10471_v41  ;;  %12894 = vmatprep.mubr.f32.mxu1 %v9960_v25 }
 0x553   : > { %vm9049_vm1 = vcmp.gt.f32.partialorder %v8921_v37, 0.0  ;;  %v9177_v35 = vmul.f32 0.1, %v8921_v37  ;;  %v14116_v45 = vadd.f32 %v8221_v42, %v17177_v21  ;;  %13790 = vmatprep.mubr.f32.mxu0 %v10472_v57 }
 0x554   : > { %v9306_v56 = vsel %vm9050_vm0, %v8922_v2, %v9178_v59  ;;  %v8924_v18 = vadd.f32 %v14115_v34, %v17359_v6 }
 0x555   : > { %9434 = vst [vmem:[%s17377_s15 + $0x88] sm:$0xff] %v9306_v56  ;;  %v9305_v44 = vsel %vm9049_vm1, %v8921_v37, %v9177_v35  ;;  %v8923_v51 = vadd.f32 %v14116_v45, %v17359_v6  ;;  %v13633_v54 = vpop.f32.mrb[20].mxu0  ;;  %12895 = vmatmul.mubr.f32.gmra.mrb[126].mxu1 %v9961_v20 }
 0x556   : > { %9433 = vst [vmem:[%s17377_s15 + $0x80] sm:$0xff] %v9305_v44  ;;  %vm9052_vm2 = vcmp.gt.f32.partialorder %v8924_v18, 0.0  ;;  %v9180_v7 = vmul.f32 0.1, %v8924_v18  ;;  %v14117_v33 = vadd.f32 %v13633_v54, %v17182_v26  ;;  %v8231_v40 = vpop.f32.mrb[21].mxu0  ;;  %13791 = vmatmul.mubr.f32.gmra.mrb[126].mxu0 %v10473_v14 }
 0x557   : > { %vm9051_vm3 = vcmp.gt.f32.partialorder %v8923_v51, 0.0  ;;  %v9179_v21 = vmul.f32 0.1, %v8923_v51  ;;  %v14118_v13 = vadd.f32 %v8231_v40, %v17185_v28 }
 0x558   : > { %v9308_v15 = vsel %vm9052_vm2, %v8924_v18, %v9180_v7  ;;  %v8926_v52 = vadd.f32 %v14117_v33, %v17359_v6 }
 0x559   : > { %9436 = vst [vmem:[%s17377_s15 + $0x98] sm:$0xff] %v9308_v15  ;;  %v9307_v4 = vsel %vm9051_vm3, %v8923_v51, %v9179_v21  ;;  %v8925_v27 = vadd.f32 %v14118_v13, %v17359_v6  ;;  %v13636_v50 = vpop.f32.mrb[22].mxu0 }
 0x55a   : > { %9435 = vst [vmem:[%s17377_s15 + $0x90] sm:$0xff] %v9307_v4  ;;  %vm9054_vm4 = vcmp.gt.f32.partialorder %v8926_v52, 0.0  ;;  %v9182_v38 = vmul.f32 0.1, %v8926_v52  ;;  %v14119_v26 = vadd.f32 %v13636_v50, %v17190_v12  ;;  %v8241_v36 = vpop.f32.mrb[23].mxu0 }
 0x55b   : > { %vm9053_vm5 = vcmp.gt.f32.partialorder %v8925_v27, 0.0  ;;  %v9181_v61 = vmul.f32 0.1, %v8925_v27  ;;  %v14120_v28 = vadd.f32 %v8241_v36, %v17193_v23 }
 0x55c   : > { %v9310_v8 = vsel %vm9054_vm4, %v8926_v52, %v9182_v38  ;;  %v8928_v55 = vadd.f32 %v14119_v26, %v17359_v6 }
 0x55d   : > { %9438 = vst [vmem:[%s17377_s15 + $0xa8] sm:$0xff] %v9310_v8  ;;  %v9309_v41 = vsel %vm9053_vm5, %v8925_v27, %v9181_v61  ;;  %v8927_v25 = vadd.f32 %v14120_v28, %v17359_v6  ;;  %v13639_v46 = vpop.f32.mrb[24].mxu0 }
 0x55e   : > { %9437 = vst [vmem:[%s17377_s15 + $0xa0] sm:$0xff] %v9309_v41  ;;  %vm9056_vm6 = vcmp.gt.f32.partialorder %v8928_v55, 0.0  ;;  %v9184_v2 = vmul.f32 0.1, %v8928_v55  ;;  %v14121_v12 = vadd.f32 %v13639_v46, %v17198_v60  ;;  %v8251_v57 = vpop.f32.mrb[25].mxu0 }
 0x55f   : > { %vm9055_vm7 = vcmp.gt.f32.partialorder %v8927_v25, 0.0  ;;  %v9183_v62 = vmul.f32 0.1, %v8927_v25  ;;  %v14122_v23 = vadd.f32 %v8251_v57, %v17201_v3 }
 0x560   : > { %v9312_v37 = vsel %vm9056_vm6, %v8928_v55, %v9184_v2  ;;  %v8930_v47 = vadd.f32 %v14121_v12, %v17359_v6 }
 0x561   : > { %9440 = vst [vmem:[%s17377_s15 + $0xb8] sm:$0xff] %v9312_v37  ;;  %v9311_v59 = vsel %vm9055_vm7, %v8927_v25, %v9183_v62  ;;  %v8929_v34 = vadd.f32 %v14122_v23, %v17359_v6  ;;  %v13642_v42 = vpop.f32.mrb[26].mxu0 }
 0x562   : > { %9439 = vst [vmem:[%s17377_s15 + $0xb0] sm:$0xff] %v9311_v59  ;;  %vm9058_vm8 = vcmp.gt.f32.partialorder %v8930_v47, 0.0  ;;  %v9186_v20 = vmul.f32 0.1, %v8930_v47  ;;  %v14123_v60 = vadd.f32 %v13642_v42, %v17206_v53  ;;  %v8261_v35 = vpop.f32.mrb[27].mxu0 }
 0x563   : > { %vm9057_vm9 = vcmp.gt.f32.partialorder %v8929_v34, 0.0  ;;  %v9185_v45 = vmul.f32 0.1, %v8929_v34  ;;  %v14124_v3 = vadd.f32 %v8261_v35, %v17209_v10 }
 0x564   : > { %v9314_v14 = vsel %vm9058_vm8, %v8930_v47, %v9186_v20  ;;  %v8932_v56 = vadd.f32 %v14123_v60, %v17359_v6 }
 0x565   : > { %9442 = vst [vmem:[%s17377_s15 + $0xc8] sm:$0xff] %v9314_v14  ;;  %v9313_v18 = vsel %vm9057_vm9, %v8929_v34, %v9185_v45  ;;  %v8931_v44 = vadd.f32 %v14124_v3, %v17359_v6  ;;  %v13645_v51 = vpop.f32.mrb[28].mxu0 }
 0x566   : > { %9441 = vst [vmem:[%s17377_s15 + $0xc0] sm:$0xff] %v9313_v18  ;;  %vm9060_vm10 = vcmp.gt.f32.partialorder %v8932_v56, 0.0  ;;  %v9188_v54 = vmul.f32 0.1, %v8932_v56  ;;  %v14125_v53 = vadd.f32 %v13645_v51, %v17214_v58  ;;  %v8271_v7 = vpop.f32.mrb[29].mxu0 }
 0x567   : > { %vm9059_vm11 = vcmp.gt.f32.partialorder %v8931_v44, 0.0  ;;  %v9187_v33 = vmul.f32 0.1, %v8931_v44  ;;  %v14126_v10 = vadd.f32 %v8271_v7, %v17217_v9 }
 0x568   : > { %v9316_v40 = vsel %vm9060_vm10, %v8932_v56, %v9188_v54  ;;  %v8934_v21 = vadd.f32 %v14125_v53, %v17359_v6 }
 0x569   : > { %9444 = vst [vmem:[%s17377_s15 + $0xd8] sm:$0xff] %v9316_v40  ;;  %v9315_v13 = vsel %vm9059_vm11, %v8931_v44, %v9187_v33  ;;  %v8933_v15 = vadd.f32 %v14126_v10, %v17359_v6  ;;  %v13648_v52 = vpop.f32.mrb[30].mxu0 }
 0x56a   : > { %9443 = vst [vmem:[%s17377_s15 + $0xd0] sm:$0xff] %v9315_v13  ;;  %vm9062_vm12 = vcmp.gt.f32.partialorder %v8934_v21, 0.0  ;;  %v9190_v4 = vmul.f32 0.1, %v8934_v21  ;;  %v14127_v58 = vadd.f32 %v13648_v52, %v17222_v5  ;;  %v8281_v27 = vpop.f32.mrb[31].mxu0 }
 0x56b   : > { %vm9061_vm13 = vcmp.gt.f32.partialorder %v8933_v15, 0.0  ;;  %v9189_v50 = vmul.f32 0.1, %v8933_v15  ;;  %v14128_v9 = vadd.f32 %v8281_v27, %v17225_v32 }
 0x56c   : > { %v9318_v38 = vsel %vm9062_vm12, %v8934_v21, %v9190_v4  ;;  %v8936_v26 = vadd.f32 %v14127_v58, %v17359_v6 }
 0x56d   : > { %9446 = vst [vmem:[%s17377_s15 + $0xe8] sm:$0xff] %v9318_v38  ;;  %v9317_v36 = vsel %vm9061_vm13, %v8933_v15, %v9189_v50  ;;  %v8935_v61 = vadd.f32 %v14128_v9, %v17359_v6  ;;  %v13651_v28 = vpop.f32.mrb[32].mxu0 }
 0x56e   : > { %9445 = vst [vmem:[%s17377_s15 + $0xe0] sm:$0xff] %v9317_v36  ;;  %vm9064_vm14 = vcmp.gt.f32.partialorder %v8936_v26, 0.0  ;;  %v9192_v8 = vmul.f32 0.1, %v8936_v26  ;;  %v14129_v5 = vadd.f32 %v13651_v28, %v17230_v16  ;;  %v8291_v55 = vpop.f32.mrb[33].mxu0 }
 0x56f   : > { %vm9063_vm15 = vcmp.gt.f32.partialorder %v8935_v61, 0.0  ;;  %v9191_v41 = vmul.f32 0.1, %v8935_v61  ;;  %v14130_v32 = vadd.f32 %v8291_v55, %v17233_v31 }
 0x570   : > { %v9320_v25 = vsel %vm9064_vm14, %v8936_v26, %v9192_v8  ;;  %v8938_v46 = vadd.f32 %v14129_v5, %v17359_v6 }
 0x571   : > { %9448 = vst [vmem:[%s17377_s15 + $0xf8] sm:$0xff] %v9320_v25  ;;  %v9319_v2 = vsel %vm9063_vm15, %v8935_v61, %v9191_v41  ;;  %v8937_v12 = vadd.f32 %v14130_v32, %v17359_v6  ;;  %v13654_v57 = vpop.f32.mrb[34].mxu0 }
 0x572   : > { %9447 = vst [vmem:[%s17377_s15 + $0xf0] sm:$0xff] %v9319_v2  ;;  %vm9066_vm0 = vcmp.gt.f32.partialorder %v8938_v46, 0.0  ;;  %v9194_v62 = vmul.f32 0.1, %v8938_v46  ;;  %v14131_v16 = vadd.f32 %v13654_v57, %v17238_v49  ;;  %v8301_v23 = vpop.f32.mrb[35].mxu0 }
 0x573   : > { %vm9065_vm1 = vcmp.gt.f32.partialorder %v8937_v12, 0.0  ;;  %v9193_v37 = vmul.f32 0.1, %v8937_v12  ;;  %v14132_v31 = vadd.f32 %v8301_v23, %v17241_v63 }
 0x574   : > { %v9322_v47 = vsel %vm9066_vm0, %v8938_v46, %v9194_v62  ;;  %v8940_v59 = vadd.f32 %v14131_v16, %v17359_v6 }
 0x575   : > { %9450 = vst [vmem:[%s17377_s15 + $0x108] sm:$0xff] %v9322_v47  ;;  %v9321_v34 = vsel %vm9065_vm1, %v8937_v12, %v9193_v37  ;;  %v8939_v42 = vadd.f32 %v14132_v31, %v17359_v6  ;;  %v13657_v20 = vpop.f32.mrb[36].mxu0 }
 0x576   : > { %9449 = vst [vmem:[%s17377_s15 + $0x100] sm:$0xff] %v9321_v34  ;;  %vm9068_vm2 = vcmp.gt.f32.partialorder %v8940_v59, 0.0  ;;  %v9196_v60 = vmul.f32 0.1, %v8940_v59  ;;  %v14133_v49 = vadd.f32 %v13657_v20, %v17246_v48  ;;  %v8311_v35 = vpop.f32.mrb[37].mxu0 }
 0x577   : > { %vm9067_vm3 = vcmp.gt.f32.partialorder %v8939_v42, 0.0  ;;  %v9195_v45 = vmul.f32 0.1, %v8939_v42  ;;  %v14134_v63 = vadd.f32 %v8311_v35, %v17249_v43 }
 0x578   : > { %v9324_v3 = vsel %vm9068_vm2, %v8940_v59, %v9196_v60  ;;  %v8942_v14 = vadd.f32 %v14133_v49, %v17359_v6  ;;  %v17905_v60 = vld [vmem:[#allocation27_spill] sm:$0xff] }
 0x579   : > { %9452 = vst [vmem:[%s17377_s15 + $0x118] sm:$0xff] %v9324_v3  ;;  %v9323_v56 = vsel %vm9067_vm3, %v8939_v42, %v9195_v45  ;;  %v8941_v18 = vadd.f32 %v14134_v63, %v17359_v6  ;;  %v13660_v44 = vpop.f32.mrb[38].mxu0  ;;  %v17906_v45 = vld [vmem:[#allocation28_spill] sm:$0xff] }
 0x57a   : > { %9451 = vst [vmem:[%s17377_s15 + $0x110] sm:$0xff] %v9323_v56  ;;  %vm9070_vm4 = vcmp.gt.f32.partialorder %v8942_v14, 0.0  ;;  %v9198_v51 = vmul.f32 0.1, %v8942_v14  ;;  %v14135_v48 = vadd.f32 %v13660_v44, %v17254_v22  ;;  %v8321_v54 = vpop.f32.mrb[39].mxu0 }
 0x57b   : > { %vm9069_vm5 = vcmp.gt.f32.partialorder %v8941_v18, 0.0  ;;  %v9197_v53 = vmul.f32 0.1, %v8941_v18  ;;  %v14136_v43 = vadd.f32 %v8321_v54, %v17257_v11 }
 0x57c   : > { %v9326_v7 = vsel %vm9070_vm4, %v8942_v14, %v9198_v51  ;;  %v8944_v33 = vadd.f32 %v14135_v48, %v17359_v6  ;;  %v17907_v51 = vld [vmem:[#allocation19_spill] sm:$0xff] }
 0x57d   : > { %9454 = vst [vmem:[%s17377_s15 + $0x128] sm:$0xff] %v9326_v7  ;;  %v9325_v10 = vsel %vm9069_vm5, %v8941_v18, %v9197_v53  ;;  %v8943_v40 = vadd.f32 %v14136_v43, %v17359_v6  ;;  %v13663_v21 = vpop.f32.mrb[40].mxu0  ;;  %v17908_v43 = vld [vmem:[#allocation29_spill] sm:$0xff] }
 0x57e   : > { %9453 = vst [vmem:[%s17377_s15 + $0x120] sm:$0xff] %v9325_v10  ;;  %vm9072_vm6 = vcmp.gt.f32.partialorder %v8944_v33, 0.0  ;;  %v9200_v13 = vmul.f32 0.1, %v8944_v33  ;;  %v14137_v22 = vadd.f32 %v13663_v21, %v17262_v1  ;;  %v8331_v15 = vpop.f32.mrb[41].mxu0 }
 0x57f   : > { %vm9071_vm7 = vcmp.gt.f32.partialorder %v8943_v40, 0.0  ;;  %v9199_v52 = vmul.f32 0.1, %v8943_v40  ;;  %v14138_v11 = vadd.f32 %v8331_v15, %v17265_v29  ;;  %v17909_v15 = vld [vmem:[#allocation30_spill] sm:$0xff] }
 0x580   : > { %v9328_v4 = vsel %vm9072_vm6, %v8944_v33, %v9200_v13  ;;  %v8946_v58 = vadd.f32 %v14137_v22, %v17359_v6 }
 0x581   : > { %9456 = vst [vmem:[%s17377_s15 + $0x138] sm:$0xff] %v9328_v4  ;;  %v9327_v27 = vsel %vm9071_vm7, %v8943_v40, %v9199_v52  ;;  %v8945_v50 = vadd.f32 %v14138_v11, %v17359_v6  ;;  %v13666_v9 = vpop.f32.mrb[42].mxu0 }
 0x582   : > { %9455 = vst [vmem:[%s17377_s15 + $0x130] sm:$0xff] %v9327_v27  ;;  %vm9074_vm8 = vcmp.gt.f32.partialorder %v8946_v58, 0.0  ;;  %v9202_v38 = vmul.f32 0.1, %v8946_v58  ;;  %v14139_v1 = vadd.f32 %v13666_v9, %v17270_v17  ;;  %v8341_v26 = vpop.f32.mrb[43].mxu0 }
 0x583   : > { %vm9073_vm9 = vcmp.gt.f32.partialorder %v8945_v50, 0.0  ;;  %v9201_v36 = vmul.f32 0.1, %v8945_v50  ;;  %v14140_v29 = vadd.f32 %v8341_v26, %v17273_v19 }
 0x584   : > { %v9330_v61 = vsel %vm9074_vm8, %v8946_v58, %v9202_v38  ;;  %v8948_v28 = vadd.f32 %v14139_v1, %v17359_v6  ;;  %v17910_v58 = vld [vmem:[#allocation31_spill] sm:$0xff] }
 0x585   : > { %9458 = vst [vmem:[%s17377_s15 + $0x148] sm:$0xff] %v9330_v61  ;;  %v9329_v8 = vsel %vm9073_vm9, %v8945_v50, %v9201_v36  ;;  %v8947_v5 = vadd.f32 %v14140_v29, %v17359_v6  ;;  %v13669_v55 = vpop.f32.mrb[44].mxu0  ;;  %v17911_v29 = vld [vmem:[#allocation20_spill] sm:$0xff] }
 0x586   : > { %9457 = vst [vmem:[%s17377_s15 + $0x140] sm:$0xff] %v9329_v8  ;;  %vm9076_vm10 = vcmp.gt.f32.partialorder %v8948_v28, 0.0  ;;  %v9204_v41 = vmul.f32 0.1, %v8948_v28  ;;  %v14141_v17 = vadd.f32 %v13669_v55, %v17278_v24  ;;  %v8351_v32 = vpop.f32.mrb[45].mxu0 }
 0x587   : > { %vm9075_vm11 = vcmp.gt.f32.partialorder %v8947_v5, 0.0  ;;  %v9203_v25 = vmul.f32 0.1, %v8947_v5  ;;  %v14142_v19 = vadd.f32 %v8351_v32, %v17281_v39 }
 0x588   : > { %v9332_v46 = vsel %vm9076_vm10, %v8948_v28, %v9204_v41  ;;  %v8950_v2 = vadd.f32 %v14141_v17, %v17359_v6 }
 0x589   : > { %9460 = vst [vmem:[%s17377_s15 + $0x158] sm:$0xff] %v9332_v46  ;;  %v9331_v12 = vsel %vm9075_vm11, %v8947_v5, %v9203_v25  ;;  %v8949_v57 = vadd.f32 %v14142_v19, %v17359_v6  ;;  %v13672_v62 = vpop.f32.mrb[46].mxu0  ;;  %v17912_v5 = vld [vmem:[#allocation21_spill] sm:$0xff] }
 0x58a   : > { %9459 = vst [vmem:[%s17377_s15 + $0x150] sm:$0xff] %v9331_v12  ;;  %vm9078_vm12 = vcmp.gt.f32.partialorder %v8950_v2, 0.0  ;;  %v9206_v16 = vmul.f32 0.1, %v8950_v2  ;;  %v14143_v24 = vadd.f32 %v13672_v62, %v17286_v0  ;;  %v8361_v23 = vpop.f32.mrb[47].mxu0 }
 0x58b   : > { %vm9077_vm13 = vcmp.gt.f32.partialorder %v8949_v57, 0.0  ;;  %v9205_v37 = vmul.f32 0.1, %v8949_v57  ;;  %v14144_v39 = vadd.f32 %v8361_v23, %v17289_v30 }
 0x58c   : > { %v9334_v31 = vsel %vm9078_vm12, %v8950_v2, %v9206_v16  ;;  %v8952_v47 = vadd.f32 %v14143_v24, %v17359_v6  ;;  %v17913_v2 = vld [vmem:[#allocation22_spill] sm:$0xff]  ;;  %v17914_v16 = vld [vmem:[#allocation23_spill] sm:$0xff] }
 0x58d   : > { %9462 = vst [vmem:[%s17377_s15 + $0x168] sm:$0xff] %v9334_v31  ;;  %v9333_v59 = vsel %vm9077_vm13, %v8949_v57, %v9205_v37  ;;  %v8951_v34 = vadd.f32 %v14144_v39, %v17359_v6  ;;  %v13675_v42 = vpop.f32.mrb[48].mxu0 }
 0x58e   : > { %9461 = vst [vmem:[%s17377_s15 + $0x160] sm:$0xff] %v9333_v59  ;;  %vm9080_vm14 = vcmp.gt.f32.partialorder %v8952_v47, 0.0  ;;  %v9208_v20 = vmul.f32 0.1, %v8952_v47  ;;  %v14145_v0 = vadd.f32 %v13675_v42, %v17905_v60  ;;  %v8371_v49 = vpop.f32.mrb[49].mxu0 }
 0x58f   : > { %vm9079_vm15 = vcmp.gt.f32.partialorder %v8951_v34, 0.0  ;;  %v9207_v35 = vmul.f32 0.1, %v8951_v34  ;;  %v14146_v30 = vadd.f32 %v8371_v49, %v17906_v45 }
 0x590   : > { %v9336_v63 = vsel %vm9080_vm14, %v8952_v47, %v9208_v20  ;;  %v8954_v3 = vadd.f32 %v14145_v0, %v17359_v6  ;;  %v17916_v0 = vld [vmem:[#allocation25_spill] sm:$0xff] }
 0x591   : > { %9464 = vst [vmem:[%s17377_s15 + $0x178] sm:$0xff] %v9336_v63  ;;  %v9335_v14 = vsel %vm9079_vm15, %v8951_v34, %v9207_v35  ;;  %v8953_v56 = vadd.f32 %v14146_v30, %v17359_v6  ;;  %v13678_v18 = vpop.f32.mrb[50].mxu0  ;;  %v17915_v34 = vld [vmem:[#allocation24_spill] sm:$0xff] }
 0x592   : > { %9463 = vst [vmem:[%s17377_s15 + $0x170] sm:$0xff] %v9335_v14  ;;  %vm9082_vm0 = vcmp.gt.f32.partialorder %v8954_v3, 0.0  ;;  %v9210_v44 = vmul.f32 0.1, %v8954_v3  ;;  %v14147_v48 = vadd.f32 %v13678_v18, %v17907_v51  ;;  %v8381_v54 = vpop.f32.mrb[51].mxu0 }
 0x593   : > { %vm9081_vm1 = vcmp.gt.f32.partialorder %v8953_v56, 0.0  ;;  %v9209_v53 = vmul.f32 0.1, %v8953_v56  ;;  %v14148_v7 = vadd.f32 %v8381_v54, %v17908_v43 }
 0x594   : > { %v9338_v33 = vsel %vm9082_vm0, %v8954_v3, %v9210_v44  ;;  %v8956_v10 = vadd.f32 %v14147_v48, %v17359_v6  ;;  %v17918_v48 = vld [vmem:[#allocation32_spill] sm:$0xff] }
 0x595   : > { %9466 = vst [vmem:[%s17377_s15 + $0x188] sm:$0xff] %v9338_v33  ;;  %v9337_v40 = vsel %vm9081_vm1, %v8953_v56, %v9209_v53  ;;  %v8955_v21 = vadd.f32 %v14148_v7, %v17359_v6  ;;  %v13681_v13 = vpop.f32.mrb[52].mxu0  ;;  %v17917_v56 = vld [vmem:[#allocation26_spill] sm:$0xff] }
 0x596   : > { %9465 = vst [vmem:[%s17377_s15 + $0x180] sm:$0xff] %v9337_v40  ;;  %vm9084_vm2 = vcmp.gt.f32.partialorder %v8956_v10, 0.0  ;;  %v9212_v22 = vmul.f32 0.1, %v8956_v10  ;;  %v14149_v52 = vadd.f32 %v13681_v13, %v17909_v15  ;;  %v8391_v11 = vpop.f32.mrb[53].mxu0 }
 0x597   : > { %vm9083_vm3 = vcmp.gt.f32.partialorder %v8955_v21, 0.0  ;;  %v9211_v4 = vmul.f32 0.1, %v8955_v21  ;;  %v14150_v27 = vadd.f32 %v8391_v11, %v17910_v58  ;;  %v17588_v58 = vld [vmem:[#allocation10] ss:$0 sm:$0xff] }
 0x598   : > { %v9340_v50 = vsel %vm9084_vm2, %v8956_v10, %v9212_v22  ;;  %v8958_v9 = vadd.f32 %v14149_v52, %v17359_v6  ;;  %v17920_v52 = vld [vmem:[#allocation34_spill] sm:$0xff] }
 0x599   : > { %9468 = vst [vmem:[%s17377_s15 + $0x198] sm:$0xff] %v9340_v50  ;;  %v9339_v38 = vsel %vm9083_vm3, %v8955_v21, %v9211_v4  ;;  %v8957_v1 = vadd.f32 %v14150_v27, %v17359_v6  ;;  %v13684_v26 = vpop.f32.mrb[54].mxu0  ;;  %v17919_v21 = vld [vmem:[#allocation33_spill] sm:$0xff] }
 0x59a   : > { %9467 = vst [vmem:[%s17377_s15 + $0x190] sm:$0xff] %v9339_v38  ;;  %vm9086_vm4 = vcmp.gt.f32.partialorder %v8958_v9, 0.0  ;;  %v9214_v36 = vmul.f32 0.1, %v8958_v9  ;;  %v14151_v61 = vadd.f32 %v13684_v26, %v17911_v29  ;;  %v8401_v28 = vpop.f32.mrb[55].mxu0 }
 0x59b   : > { %vm9085_vm5 = vcmp.gt.f32.partialorder %v8957_v1, 0.0  ;;  %v9213_v8 = vmul.f32 0.1, %v8957_v1  ;;  %v14152_v55 = vadd.f32 %v8401_v28, %v17912_v5 }
 0x59c   : > { %v9342_v41 = vsel %vm9086_vm4, %v8958_v9, %v9214_v36  ;;  %v8960_v17 = vadd.f32 %v14151_v61, %v17359_v6 }
 0x59d   : > { %9470 = vst [vmem:[%s17377_s15 + $0x1a8] sm:$0xff] %v9342_v41  ;;  %v9341_v32 = vsel %vm9085_vm5, %v8957_v1, %v9213_v8  ;;  %v8959_v25 = vadd.f32 %v14152_v55, %v17359_v6  ;;  %v13687_v19 = vpop.f32.mrb[56].mxu0 }
 0x59e   : > { %9469 = vst [vmem:[%s17377_s15 + $0x1a0] sm:$0xff] %v9341_v32  ;;  %vm9088_vm6 = vcmp.gt.f32.partialorder %v8960_v17, 0.0  ;;  %v9216_v46 = vmul.f32 0.1, %v8960_v17  ;;  %v14153_v12 = vadd.f32 %v13687_v19, %v17913_v2  ;;  %v8411_v57 = vpop.f32.mrb[57].mxu0 }
 0x59f   : > { %vm9087_vm7 = vcmp.gt.f32.partialorder %v8959_v25, 0.0  ;;  %v9215_v62 = vmul.f32 0.1, %v8959_v25  ;;  %v14154_v24 = vadd.f32 %v8411_v57, %v17914_v16 }
 0x5a0   : > { %v9344_v23 = vsel %vm9088_vm6, %v8960_v17, %v9216_v46  ;;  %v8962_v37 = vadd.f32 %v14153_v12, %v17359_v6 }
 0x5a1   : > { %9472 = vst [vmem:[%s17377_s15 + $0x1b8] sm:$0xff] %v9344_v23  ;;  %v9343_v39 = vsel %vm9087_vm7, %v8959_v25, %v9215_v62  ;;  %v8961_v31 = vadd.f32 %v14154_v24, %v17359_v6  ;;  %v13690_v47 = vpop.f32.mrb[58].mxu0 }
 0x5a2   : > { %9471 = vst [vmem:[%s17377_s15 + $0x1b0] sm:$0xff] %v9343_v39  ;;  %vm9090_vm8 = vcmp.gt.f32.partialorder %v8962_v37, 0.0  ;;  %v9218_v59 = vmul.f32 0.1, %v8962_v37  ;;  %v14155_v42 = vadd.f32 %v13690_v47, %v17915_v34  ;;  %v8421_v20 = vpop.f32.mrb[59].mxu0 }
 0x5a3   : > { %vm9089_vm9 = vcmp.gt.f32.partialorder %v8961_v31, 0.0  ;;  %v9217_v60 = vmul.f32 0.1, %v8961_v31  ;;  %v14156_v49 = vadd.f32 %v8421_v20, %v17916_v0 }
 0x5a4   : > { %v9346_v35 = vsel %vm9090_vm8, %v8962_v37, %v9218_v59  ;;  %v8964_v45 = vadd.f32 %v14155_v42, %v17359_v6 }
 0x5a5   : > { %9474 = vst [vmem:[%s17377_s15 + $0x1c8] sm:$0xff] %v9346_v35  ;;  %v9345_v30 = vsel %vm9089_vm9, %v8961_v31, %v9217_v60  ;;  %v8963_v63 = vadd.f32 %v14156_v49, %v17359_v6  ;;  %v13693_v3 = vpop.f32.mrb[60].mxu0 }
 0x5a6   : > { %9473 = vst [vmem:[%s17377_s15 + $0x1c0] sm:$0xff] %v9345_v30  ;;  %vm9092_vm10 = vcmp.gt.f32.partialorder %v8964_v45, 0.0  ;;  %v9220_v14 = vmul.f32 0.1, %v8964_v45  ;;  %v14157_v18 = vadd.f32 %v13693_v3, %v17917_v56  ;;  %v8431_v44 = vpop.f32.mrb[61].mxu0 }
 0x5a7   : > { %vm9091_vm11 = vcmp.gt.f32.partialorder %v8963_v63, 0.0  ;;  %v9219_v51 = vmul.f32 0.1, %v8963_v63  ;;  %v14158_v54 = vadd.f32 %v8431_v44, %v17918_v48 }
 0x5a8   : > { %v9348_v53 = vsel %vm9092_vm10, %v8964_v45, %v9220_v14  ;;  %v8966_v43 = vadd.f32 %v14157_v18, %v17359_v6 }
 0x5a9   : > { %9476 = vst [vmem:[%s17377_s15 + $0x1d8] sm:$0xff] %v9348_v53  ;;  %v9347_v7 = vsel %vm9091_vm11, %v8963_v63, %v9219_v51  ;;  %v8965_v33 = vadd.f32 %v14158_v54, %v17359_v6  ;;  %v13696_v10 = vpop.f32.mrb[62].mxu0 }
 0x5aa   : > { %9475 = vst [vmem:[%s17377_s15 + $0x1d0] sm:$0xff] %v9347_v7  ;;  %vm9094_vm12 = vcmp.gt.f32.partialorder %v8966_v43, 0.0  ;;  %v9222_v40 = vmul.f32 0.1, %v8966_v43  ;;  %v14159_v13 = vadd.f32 %v13696_v10, %v17919_v21  ;;  %v8441_v22 = vpop.f32.mrb[63].mxu0 }
 0x5ab   : > { %vm9093_vm13 = vcmp.gt.f32.partialorder %v8965_v33, 0.0  ;;  %v9221_v15 = vmul.f32 0.1, %v8965_v33  ;;  %v14160_v11 = vadd.f32 %v8441_v22, %v17920_v52 }
 0x5ac   : > { %v9350_v4 = vsel %vm9094_vm12, %v8966_v43, %v9222_v40  ;;  %v8968_v27 = vadd.f32 %v17588_v58, %v14159_v13  ;;  %v12803_v50 = vpop.f32.mrb[64].mxu1 }
 0x5ad   : > { %9478 = vst [vmem:[%s17377_s15 + $0x1e8] sm:$0xff] %v9350_v4  ;;  %v9349_v6 = vsel %vm9093_vm13, %v8965_v33, %v9221_v15  ;;  %v8967_v9 = vadd.f32 %v17588_v58, %v14160_v11  ;;  %v13699_v38 = vpop.f32.mrb[64].mxu0  ;;  %v4535_v1 = vpop.f32.mrb[65].mxu1 }
 0x5ae   : > { %9477 = vst [vmem:[%s17377_s15 + $0x1e0] sm:$0xff] %v9349_v6  ;;  %vm9096_vm14 = vcmp.gt.f32.partialorder %v8968_v27, 0.0  ;;  %v9224_v26 = vmul.f32 0.1, %v8968_v27  ;;  %v14161_v36 = vadd.f32 %v13699_v38, %v12803_v50  ;;  %v8451_v29 = vpop.f32.mrb[65].mxu0 }
 0x5af   : > { %vm9095_vm15 = vcmp.gt.f32.partialorder %v8967_v9, 0.0  ;;  %v9223_v61 = vmul.f32 0.1, %v8967_v9  ;;  %v14162_v28 = vadd.f32 %v8451_v29, %v4535_v1 }
 0x5b0   : > { %v9352_v8 = vsel %vm9096_vm14, %v8968_v27, %v9224_v26  ;;  %v8970_v5 = vadd.f32 %v17588_v58, %v14161_v36  ;;  %v12806_v55 = vpop.f32.mrb[66].mxu1 }
 0x5b1   : > { %9480 = vst [vmem:[%s17377_s15 + $0x1f8] sm:$0xff] %v9352_v8  ;;  %v9351_v41 = vsel %vm9095_vm15, %v8967_v9, %v9223_v61  ;;  %v8969_v17 = vadd.f32 %v17588_v58, %v14162_v28  ;;  %v13702_v32 = vpop.f32.mrb[66].mxu0  ;;  %v4545_v25 = vpop.f32.mrb[67].mxu1 }
 0x5b2   : > { %9479 = vst [vmem:[%s17377_s15 + $0x1f0] sm:$0xff] %v9351_v41  ;;  %vm9098_vm0 = vcmp.gt.f32.partialorder %v8970_v5, 0.0  ;;  %v9226_v19 = vmul.f32 0.1, %v8970_v5  ;;  %v14163_v46 = vadd.f32 %v13702_v32, %v12806_v55  ;;  %v8461_v2 = vpop.f32.mrb[67].mxu0 }
 0x5b3   : > { %vm9097_vm1 = vcmp.gt.f32.partialorder %v8969_v17, 0.0  ;;  %v9225_v12 = vmul.f32 0.1, %v8969_v17  ;;  %v14164_v57 = vadd.f32 %v8461_v2, %v4545_v25 }
 0x5b4   : > { %v9354_v62 = vsel %vm9098_vm0, %v8970_v5, %v9226_v19  ;;  %v8972_v16 = vadd.f32 %v17588_v58, %v14163_v46  ;;  %v12809_v24 = vpop.f32.mrb[68].mxu1 }
 0x5b5   : > { %9482 = vst [vmem:[%s17377_s15 + $0x208] sm:$0xff] %v9354_v62  ;;  %v9353_v23 = vsel %vm9097_vm1, %v8969_v17, %v9225_v12  ;;  %v8971_v37 = vadd.f32 %v17588_v58, %v14164_v57  ;;  %v13705_v39 = vpop.f32.mrb[68].mxu0  ;;  %v4555_v31 = vpop.f32.mrb[69].mxu1 }
 0x5b6   : > { %9481 = vst [vmem:[%s17377_s15 + $0x200] sm:$0xff] %v9353_v23  ;;  %vm9100_vm2 = vcmp.gt.f32.partialorder %v8972_v16, 0.0  ;;  %v9228_v47 = vmul.f32 0.1, %v8972_v16  ;;  %v14165_v59 = vadd.f32 %v13705_v39, %v12809_v24  ;;  %v8471_v34 = vpop.f32.mrb[69].mxu0 }
 0x5b7   : > { %vm9099_vm3 = vcmp.gt.f32.partialorder %v8971_v37, 0.0  ;;  %v9227_v42 = vmul.f32 0.1, %v8971_v37  ;;  %v14166_v20 = vadd.f32 %v8471_v34, %v4555_v31 }
 0x5b8   : > { %v9356_v60 = vsel %vm9100_vm2, %v8972_v16, %v9228_v47  ;;  %v8974_v0 = vadd.f32 %v17588_v58, %v14165_v59  ;;  %v12812_v49 = vpop.f32.mrb[70].mxu1 }
 0x5b9   : > { %9484 = vst [vmem:[%s17377_s15 + $0x218] sm:$0xff] %v9356_v60  ;;  %v9355_v35 = vsel %vm9099_vm3, %v8971_v37, %v9227_v42  ;;  %v8973_v45 = vadd.f32 %v17588_v58, %v14166_v20  ;;  %v13708_v30 = vpop.f32.mrb[70].mxu0  ;;  %v4565_v63 = vpop.f32.mrb[71].mxu1 }
 0x5ba   : > { %9483 = vst [vmem:[%s17377_s15 + $0x210] sm:$0xff] %v9355_v35  ;;  %vm9102_vm4 = vcmp.gt.f32.partialorder %v8974_v0, 0.0  ;;  %v9230_v3 = vmul.f32 0.1, %v8974_v0  ;;  %v14167_v14 = vadd.f32 %v13708_v30, %v12812_v49  ;;  %v8481_v56 = vpop.f32.mrb[71].mxu0 }
 0x5bb   : > { %vm9101_vm5 = vcmp.gt.f32.partialorder %v8973_v45, 0.0  ;;  %v9229_v18 = vmul.f32 0.1, %v8973_v45  ;;  %v14168_v44 = vadd.f32 %v8481_v56, %v4565_v63 }
 0x5bc   : > { %v9358_v51 = vsel %vm9102_vm4, %v8974_v0, %v9230_v3  ;;  %v8976_v48 = vadd.f32 %v17588_v58, %v14167_v14  ;;  %v12815_v54 = vpop.f32.mrb[72].mxu1 }
 0x5bd   : > { %9486 = vst [vmem:[%s17377_s15 + $0x228] sm:$0xff] %v9358_v51  ;;  %v9357_v53 = vsel %vm9101_vm5, %v8973_v45, %v9229_v18  ;;  %v8975_v43 = vadd.f32 %v17588_v58, %v14168_v44  ;;  %v13711_v7 = vpop.f32.mrb[72].mxu0  ;;  %v4575_v33 = vpop.f32.mrb[73].mxu1 }
 0x5be   : > { %9485 = vst [vmem:[%s17377_s15 + $0x220] sm:$0xff] %v9357_v53  ;;  %vm9104_vm6 = vcmp.gt.f32.partialorder %v8976_v48, 0.0  ;;  %v9232_v10 = vmul.f32 0.1, %v8976_v48  ;;  %v14169_v40 = vadd.f32 %v13711_v7, %v12815_v54  ;;  %v8491_v21 = vpop.f32.mrb[73].mxu0 }
 0x5bf   : > { %vm9103_vm7 = vcmp.gt.f32.partialorder %v8975_v43, 0.0  ;;  %v9231_v13 = vmul.f32 0.1, %v8975_v43  ;;  %v14170_v22 = vadd.f32 %v8491_v21, %v4575_v33 }
 0x5c0   : > { %v9360_v15 = vsel %vm9104_vm6, %v8976_v48, %v9232_v10  ;;  %v8978_v52 = vadd.f32 %v17588_v58, %v14169_v40  ;;  %v12818_v11 = vpop.f32.mrb[74].mxu1 }
 0x5c1   : > { %9488 = vst [vmem:[%s17377_s15 + $0x238] sm:$0xff] %v9360_v15  ;;  %v9359_v4 = vsel %vm9103_vm7, %v8975_v43, %v9231_v13  ;;  %v8977_v27 = vadd.f32 %v17588_v58, %v14170_v22  ;;  %v13714_v50 = vpop.f32.mrb[74].mxu0  ;;  %v4585_v6 = vpop.f32.mrb[75].mxu1 }
 0x5c2   : > { %9487 = vst [vmem:[%s17377_s15 + $0x230] sm:$0xff] %v9359_v4  ;;  %vm9106_vm8 = vcmp.gt.f32.partialorder %v8978_v52, 0.0  ;;  %v9234_v9 = vmul.f32 0.1, %v8978_v52  ;;  %v14171_v38 = vadd.f32 %v13714_v50, %v12818_v11  ;;  %v8501_v1 = vpop.f32.mrb[75].mxu0 }
 0x5c3   : > { %vm9105_vm9 = vcmp.gt.f32.partialorder %v8977_v27, 0.0  ;;  %v9233_v26 = vmul.f32 0.1, %v8977_v27  ;;  %v14172_v36 = vadd.f32 %v8501_v1, %v4585_v6 }
 0x5c4   : > { %v9362_v29 = vsel %vm9106_vm8, %v8978_v52, %v9234_v9  ;;  %v8980_v61 = vadd.f32 %v17588_v58, %v14171_v38  ;;  %v12821_v28 = vpop.f32.mrb[76].mxu1 }
 0x5c5   : > { %9490 = vst [vmem:[%s17377_s15 + $0x248] sm:$0xff] %v9362_v29  ;;  %v9361_v8 = vsel %vm9105_vm9, %v8977_v27, %v9233_v26  ;;  %v8979_v5 = vadd.f32 %v17588_v58, %v14172_v36  ;;  %v13717_v55 = vpop.f32.mrb[76].mxu0  ;;  %v4595_v41 = vpop.f32.mrb[77].mxu1 }
 0x5c6   : > { %9489 = vst [vmem:[%s17377_s15 + $0x240] sm:$0xff] %v9361_v8  ;;  %vm9108_vm10 = vcmp.gt.f32.partialorder %v8980_v61, 0.0  ;;  %v9236_v17 = vmul.f32 0.1, %v8980_v61  ;;  %v14173_v32 = vadd.f32 %v13717_v55, %v12821_v28  ;;  %v8511_v25 = vpop.f32.mrb[77].mxu0 }
 0x5c7   : > { %vm9107_vm11 = vcmp.gt.f32.partialorder %v8979_v5, 0.0  ;;  %v9235_v19 = vmul.f32 0.1, %v8979_v5  ;;  %v14174_v46 = vadd.f32 %v8511_v25, %v4595_v41 }
 0x5c8   : > { %v9364_v2 = vsel %vm9108_vm10, %v8980_v61, %v9236_v17  ;;  %v8982_v12 = vadd.f32 %v17588_v58, %v14173_v32  ;;  %v12824_v57 = vpop.f32.mrb[78].mxu1 }
 0x5c9   : > { %9492 = vst [vmem:[%s17377_s15 + $0x258] sm:$0xff] %v9364_v2  ;;  %v9363_v62 = vsel %vm9107_vm11, %v8979_v5, %v9235_v19  ;;  %v8981_v16 = vadd.f32 %v17588_v58, %v14174_v46  ;;  %v13720_v24 = vpop.f32.mrb[78].mxu0  ;;  %v4605_v23 = vpop.f32.mrb[79].mxu1 }
 0x5ca   : > { %9491 = vst [vmem:[%s17377_s15 + $0x250] sm:$0xff] %v9363_v62  ;;  %vm9110_vm12 = vcmp.gt.f32.partialorder %v8982_v12, 0.0  ;;  %v9238_v37 = vmul.f32 0.1, %v8982_v12  ;;  %v14175_v39 = vadd.f32 %v13720_v24, %v12824_v57  ;;  %v8521_v31 = vpop.f32.mrb[79].mxu0 }
 0x5cb   : > { %vm9109_vm13 = vcmp.gt.f32.partialorder %v8981_v16, 0.0  ;;  %v9237_v47 = vmul.f32 0.1, %v8981_v16  ;;  %v14176_v59 = vadd.f32 %v8521_v31, %v4605_v23 }
 0x5cc   : > { %v9366_v34 = vsel %vm9110_vm12, %v8982_v12, %v9238_v37  ;;  %v8984_v42 = vadd.f32 %v17588_v58, %v14175_v39  ;;  %v12827_v20 = vpop.f32.mrb[80].mxu1 }
 0x5cd   : > { %9494 = vst [vmem:[%s17377_s15 + $0x268] sm:$0xff] %v9366_v34  ;;  %v9365_v60 = vsel %vm9109_vm13, %v8981_v16, %v9237_v47  ;;  %v8983_v0 = vadd.f32 %v17588_v58, %v14176_v59  ;;  %v13723_v49 = vpop.f32.mrb[80].mxu0  ;;  %v4615_v35 = vpop.f32.mrb[81].mxu1 }
 0x5ce   : > { %9493 = vst [vmem:[%s17377_s15 + $0x260] sm:$0xff] %v9365_v60  ;;  %vm9112_vm14 = vcmp.gt.f32.partialorder %v8984_v42, 0.0  ;;  %v9240_v45 = vmul.f32 0.1, %v8984_v42  ;;  %v14177_v30 = vadd.f32 %v13723_v49, %v12827_v20  ;;  %v8531_v63 = vpop.f32.mrb[81].mxu0 }
 0x5cf   : > { %vm9111_vm15 = vcmp.gt.f32.partialorder %v8983_v0, 0.0  ;;  %v9239_v3 = vmul.f32 0.1, %v8983_v0  ;;  %v14178_v14 = vadd.f32 %v8531_v63, %v4615_v35 }
 0x5d0   : > { %v9368_v56 = vsel %vm9112_vm14, %v8984_v42, %v9240_v45  ;;  %v8986_v18 = vadd.f32 %v17588_v58, %v14177_v30  ;;  %v12830_v44 = vpop.f32.mrb[82].mxu1 }
 0x5d1   : > { %9496 = vst [vmem:[%s17377_s15 + $0x278] sm:$0xff] %v9368_v56  ;;  %v9367_v51 = vsel %vm9111_vm15, %v8983_v0, %v9239_v3  ;;  %v8985_v48 = vadd.f32 %v17588_v58, %v14178_v14  ;;  %v13726_v54 = vpop.f32.mrb[82].mxu0  ;;  %v4625_v53 = vpop.f32.mrb[83].mxu1 }
 0x5d2   : > { %9495 = vst [vmem:[%s17377_s15 + $0x270] sm:$0xff] %v9367_v51  ;;  %vm9114_vm0 = vcmp.gt.f32.partialorder %v8986_v18, 0.0  ;;  %v9242_v43 = vmul.f32 0.1, %v8986_v18  ;;  %v14179_v7 = vadd.f32 %v13726_v54, %v12830_v44  ;;  %v8541_v33 = vpop.f32.mrb[83].mxu0 }
 0x5d3   : > { %vm9113_vm1 = vcmp.gt.f32.partialorder %v8985_v48, 0.0  ;;  %v9241_v10 = vmul.f32 0.1, %v8985_v48  ;;  %v14180_v40 = vadd.f32 %v8541_v33, %v4625_v53 }
 0x5d4   : > { %v9370_v21 = vsel %vm9114_vm0, %v8986_v18, %v9242_v43  ;;  %v8988_v13 = vadd.f32 %v17588_v58, %v14179_v7  ;;  %v12833_v22 = vpop.f32.mrb[84].mxu1 }
 0x5d5   : > { %9498 = vst [vmem:[%s17377_s15 + $0x288] sm:$0xff] %v9370_v21  ;;  %v9369_v15 = vsel %vm9113_vm1, %v8985_v48, %v9241_v10  ;;  %v8987_v52 = vadd.f32 %v17588_v58, %v14180_v40  ;;  %v13729_v11 = vpop.f32.mrb[84].mxu0  ;;  %v4635_v4 = vpop.f32.mrb[85].mxu1 }
 0x5d6   : > { %9497 = vst [vmem:[%s17377_s15 + $0x280] sm:$0xff] %v9369_v15  ;;  %vm9116_vm2 = vcmp.gt.f32.partialorder %v8988_v13, 0.0  ;;  %v9244_v27 = vmul.f32 0.1, %v8988_v13  ;;  %v14181_v50 = vadd.f32 %v13729_v11, %v12833_v22  ;;  %v8551_v6 = vpop.f32.mrb[85].mxu0 }
 0x5d7   : > { %vm9115_vm3 = vcmp.gt.f32.partialorder %v8987_v52, 0.0  ;;  %v9243_v9 = vmul.f32 0.1, %v8987_v52  ;;  %v14182_v38 = vadd.f32 %v8551_v6, %v4635_v4 }
 0x5d8   : > { %v9372_v1 = vsel %vm9116_vm2, %v8988_v13, %v9244_v27  ;;  %v8990_v26 = vadd.f32 %v17588_v58, %v14181_v50  ;;  %v12836_v36 = vpop.f32.mrb[86].mxu1 }
 0x5d9   : > { %9500 = vst [vmem:[%s17377_s15 + $0x298] sm:$0xff] %v9372_v1  ;;  %v9371_v29 = vsel %vm9115_vm3, %v8987_v52, %v9243_v9  ;;  %v8989_v61 = vadd.f32 %v17588_v58, %v14182_v38  ;;  %v13732_v28 = vpop.f32.mrb[86].mxu0  ;;  %v4645_v8 = vpop.f32.mrb[87].mxu1 }
 0x5da   : > { %9499 = vst [vmem:[%s17377_s15 + $0x290] sm:$0xff] %v9371_v29  ;;  %vm9118_vm4 = vcmp.gt.f32.partialorder %v8990_v26, 0.0  ;;  %v9246_v5 = vmul.f32 0.1, %v8990_v26  ;;  %v14183_v55 = vadd.f32 %v13732_v28, %v12836_v36  ;;  %v8561_v41 = vpop.f32.mrb[87].mxu0 }
 0x5db   : > { %vm9117_vm5 = vcmp.gt.f32.partialorder %v8989_v61, 0.0  ;;  %v9245_v17 = vmul.f32 0.1, %v8989_v61  ;;  %v14184_v32 = vadd.f32 %v8561_v41, %v4645_v8 }
 0x5dc   : > { %v9374_v25 = vsel %vm9118_vm4, %v8990_v26, %v9246_v5  ;;  %v8992_v19 = vadd.f32 %v17588_v58, %v14183_v55  ;;  %v12839_v46 = vpop.f32.mrb[88].mxu1 }
 0x5dd   : > { %9502 = vst [vmem:[%s17377_s15 + $0x2a8] sm:$0xff] %v9374_v25  ;;  %v9373_v2 = vsel %vm9117_vm5, %v8989_v61, %v9245_v17  ;;  %v8991_v12 = vadd.f32 %v17588_v58, %v14184_v32  ;;  %v13735_v57 = vpop.f32.mrb[88].mxu0  ;;  %v4655_v62 = vpop.f32.mrb[89].mxu1 }
 0x5de   : > { %9501 = vst [vmem:[%s17377_s15 + $0x2a0] sm:$0xff] %v9373_v2  ;;  %vm9120_vm6 = vcmp.gt.f32.partialorder %v8992_v19, 0.0  ;;  %v9248_v16 = vmul.f32 0.1, %v8992_v19  ;;  %v14185_v24 = vadd.f32 %v13735_v57, %v12839_v46  ;;  %v8571_v23 = vpop.f32.mrb[89].mxu0 }
 0x5df   : > { %vm9119_vm7 = vcmp.gt.f32.partialorder %v8991_v12, 0.0  ;;  %v9247_v37 = vmul.f32 0.1, %v8991_v12  ;;  %v14186_v39 = vadd.f32 %v8571_v23, %v4655_v62 }
 0x5e0   : > { %v9376_v31 = vsel %vm9120_vm6, %v8992_v19, %v9248_v16  ;;  %v8994_v47 = vadd.f32 %v17588_v58, %v14185_v24  ;;  %v12842_v59 = vpop.f32.mrb[90].mxu1 }
 0x5e1   : > { %9504 = vst [vmem:[%s17377_s15 + $0x2b8] sm:$0xff] %v9376_v31  ;;  %v9375_v34 = vsel %vm9119_vm7, %v8991_v12, %v9247_v37  ;;  %v8993_v42 = vadd.f32 %v17588_v58, %v14186_v39  ;;  %v13738_v20 = vpop.f32.mrb[90].mxu0  ;;  %v4665_v60 = vpop.f32.mrb[91].mxu1 }
 0x5e2   : > { %9503 = vst [vmem:[%s17377_s15 + $0x2b0] sm:$0xff] %v9375_v34  ;;  %vm9122_vm8 = vcmp.gt.f32.partialorder %v8994_v47, 0.0  ;;  %v9250_v0 = vmul.f32 0.1, %v8994_v47  ;;  %v14187_v49 = vadd.f32 %v13738_v20, %v12842_v59  ;;  %v8581_v35 = vpop.f32.mrb[91].mxu0 }
 0x5e3   : > { %vm9121_vm9 = vcmp.gt.f32.partialorder %v8993_v42, 0.0  ;;  %v9249_v45 = vmul.f32 0.1, %v8993_v42  ;;  %v14188_v30 = vadd.f32 %v8581_v35, %v4665_v60 }
 0x5e4   : > { %v9378_v63 = vsel %vm9122_vm8, %v8994_v47, %v9250_v0  ;;  %v8996_v3 = vadd.f32 %v17588_v58, %v14187_v49  ;;  %v12845_v14 = vpop.f32.mrb[92].mxu1 }
 0x5e5   : > { %9506 = vst [vmem:[%s17377_s15 + $0x2c8] sm:$0xff] %v9378_v63  ;;  %v9377_v56 = vsel %vm9121_vm9, %v8993_v42, %v9249_v45  ;;  %v8995_v18 = vadd.f32 %v17588_v58, %v14188_v30  ;;  %v13741_v44 = vpop.f32.mrb[92].mxu0  ;;  %v4675_v51 = vpop.f32.mrb[93].mxu1 }
 0x5e6   : > { %9505 = vst [vmem:[%s17377_s15 + $0x2c0] sm:$0xff] %v9377_v56  ;;  %vm9124_vm10 = vcmp.gt.f32.partialorder %v8996_v3, 0.0  ;;  %v9252_v48 = vmul.f32 0.1, %v8996_v3  ;;  %v14189_v54 = vadd.f32 %v13741_v44, %v12845_v14  ;;  %v8591_v53 = vpop.f32.mrb[93].mxu0 }
 0x5e7   : > { %vm9123_vm11 = vcmp.gt.f32.partialorder %v8995_v18, 0.0  ;;  %v9251_v43 = vmul.f32 0.1, %v8995_v18  ;;  %v14190_v7 = vadd.f32 %v8591_v53, %v4675_v51 }
 0x5e8   : > { %v9380_v33 = vsel %vm9124_vm10, %v8996_v3, %v9252_v48  ;;  %v8998_v10 = vadd.f32 %v17588_v58, %v14189_v54  ;;  %v12848_v40 = vpop.f32.mrb[94].mxu1 }
 0x5e9   : > { %9508 = vst [vmem:[%s17377_s15 + $0x2d8] sm:$0xff] %v9380_v33  ;;  %v9379_v21 = vsel %vm9123_vm11, %v8995_v18, %v9251_v43  ;;  %v8997_v13 = vadd.f32 %v17588_v58, %v14190_v7  ;;  %v13744_v22 = vpop.f32.mrb[94].mxu0  ;;  %v4685_v15 = vpop.f32.mrb[95].mxu1 }
 0x5ea   : > { %9507 = vst [vmem:[%s17377_s15 + $0x2d0] sm:$0xff] %v9379_v21  ;;  %vm9126_vm12 = vcmp.gt.f32.partialorder %v8998_v10, 0.0  ;;  %v9254_v52 = vmul.f32 0.1, %v8998_v10  ;;  %v14191_v11 = vadd.f32 %v13744_v22, %v12848_v40  ;;  %v8601_v4 = vpop.f32.mrb[95].mxu0 }
 0x5eb   : > { %vm9125_vm13 = vcmp.gt.f32.partialorder %v8997_v13, 0.0  ;;  %v9253_v27 = vmul.f32 0.1, %v8997_v13  ;;  %v14192_v50 = vadd.f32 %v8601_v4, %v4685_v15 }
 0x5ec   : > { %v9382_v6 = vsel %vm9126_vm12, %v8998_v10, %v9254_v52  ;;  %v9000_v9 = vadd.f32 %v17588_v58, %v14191_v11  ;;  %v12851_v38 = vpop.f32.mrb[96].mxu1 }
 0x5ed   : > { %9510 = vst [vmem:[%s17377_s15 + $0x2e8] sm:$0xff] %v9382_v6  ;;  %v9381_v1 = vsel %vm9125_vm13, %v8997_v13, %v9253_v27  ;;  %v8999_v26 = vadd.f32 %v17588_v58, %v14192_v50  ;;  %v13747_v36 = vpop.f32.mrb[96].mxu0  ;;  %v4695_v29 = vpop.f32.mrb[97].mxu1 }
 0x5ee   : > { %9509 = vst [vmem:[%s17377_s15 + $0x2e0] sm:$0xff] %v9381_v1  ;;  %vm9128_vm14 = vcmp.gt.f32.partialorder %v9000_v9, 0.0  ;;  %v9256_v61 = vmul.f32 0.1, %v9000_v9  ;;  %v14193_v28 = vadd.f32 %v13747_v36, %v12851_v38  ;;  %v8611_v8 = vpop.f32.mrb[97].mxu0 }
 0x5ef   : > { %vm9127_vm15 = vcmp.gt.f32.partialorder %v8999_v26, 0.0  ;;  %v9255_v5 = vmul.f32 0.1, %v8999_v26  ;;  %v14194_v55 = vadd.f32 %v8611_v8, %v4695_v29 }
 0x5f0   : > { %v9384_v41 = vsel %vm9128_vm14, %v9000_v9, %v9256_v61  ;;  %v9002_v17 = vadd.f32 %v17588_v58, %v14193_v28  ;;  %v12854_v32 = vpop.f32.mrb[98].mxu1 }
 0x5f1   : > { %9512 = vst [vmem:[%s17377_s15 + $0x2f8] sm:$0xff] %v9384_v41  ;;  %v9383_v25 = vsel %vm9127_vm15, %v8999_v26, %v9255_v5  ;;  %v9001_v19 = vadd.f32 %v17588_v58, %v14194_v55  ;;  %v13750_v46 = vpop.f32.mrb[98].mxu0  ;;  %v4705_v2 = vpop.f32.mrb[99].mxu1 }
 0x5f2   : > { %9511 = vst [vmem:[%s17377_s15 + $0x2f0] sm:$0xff] %v9383_v25  ;;  %vm9130_vm0 = vcmp.gt.f32.partialorder %v9002_v17, 0.0  ;;  %v9258_v12 = vmul.f32 0.1, %v9002_v17  ;;  %v14195_v57 = vadd.f32 %v13750_v46, %v12854_v32  ;;  %v8621_v62 = vpop.f32.mrb[99].mxu0 }
 0x5f3   : > { %vm9129_vm1 = vcmp.gt.f32.partialorder %v9001_v19, 0.0  ;;  %v9257_v16 = vmul.f32 0.1, %v9001_v19  ;;  %v14196_v24 = vadd.f32 %v8621_v62, %v4705_v2 }
 0x5f4   : > { %v9386_v23 = vsel %vm9130_vm0, %v9002_v17, %v9258_v12  ;;  %v9004_v37 = vadd.f32 %v17588_v58, %v14195_v57  ;;  %v12857_v39 = vpop.f32.mrb[100].mxu1 }
 0x5f5   : > { %9514 = vst [vmem:[%s17377_s15 + $0x308] sm:$0xff] %v9386_v23  ;;  %v9385_v31 = vsel %vm9129_vm1, %v9001_v19, %v9257_v16  ;;  %v9003_v47 = vadd.f32 %v17588_v58, %v14196_v24  ;;  %v13753_v59 = vpop.f32.mrb[100].mxu0  ;;  %v4715_v34 = vpop.f32.mrb[101].mxu1 }
 0x5f6   : > { %9513 = vst [vmem:[%s17377_s15 + $0x300] sm:$0xff] %v9385_v31  ;;  %vm9132_vm2 = vcmp.gt.f32.partialorder %v9004_v37, 0.0  ;;  %v9260_v42 = vmul.f32 0.1, %v9004_v37  ;;  %v14197_v20 = vadd.f32 %v13753_v59, %v12857_v39  ;;  %v8631_v60 = vpop.f32.mrb[101].mxu0 }
 0x5f7   : > { %vm9131_vm3 = vcmp.gt.f32.partialorder %v9003_v47, 0.0  ;;  %v9259_v0 = vmul.f32 0.1, %v9003_v47  ;;  %v14198_v49 = vadd.f32 %v8631_v60, %v4715_v34 }
 0x5f8   : > { %v9388_v35 = vsel %vm9132_vm2, %v9004_v37, %v9260_v42  ;;  %v9006_v45 = vadd.f32 %v17588_v58, %v14197_v20  ;;  %v12860_v30 = vpop.f32.mrb[102].mxu1 }
 0x5f9   : > { %9516 = vst [vmem:[%s17377_s15 + $0x318] sm:$0xff] %v9388_v35  ;;  %v9387_v63 = vsel %vm9131_vm3, %v9003_v47, %v9259_v0  ;;  %v9005_v3 = vadd.f32 %v17588_v58, %v14198_v49  ;;  %v13756_v14 = vpop.f32.mrb[102].mxu0  ;;  %v4725_v56 = vpop.f32.mrb[103].mxu1 }
 0x5fa   : > { %9515 = vst [vmem:[%s17377_s15 + $0x310] sm:$0xff] %v9387_v63  ;;  %vm9134_vm4 = vcmp.gt.f32.partialorder %v9006_v45, 0.0  ;;  %v9262_v18 = vmul.f32 0.1, %v9006_v45  ;;  %v14199_v44 = vadd.f32 %v13756_v14, %v12860_v30  ;;  %v8641_v51 = vpop.f32.mrb[103].mxu0 }
 0x5fb   : > { %vm9133_vm5 = vcmp.gt.f32.partialorder %v9005_v3, 0.0  ;;  %v9261_v48 = vmul.f32 0.1, %v9005_v3  ;;  %v14200_v54 = vadd.f32 %v8641_v51, %v4725_v56 }
 0x5fc   : > { %v9390_v53 = vsel %vm9134_vm4, %v9006_v45, %v9262_v18  ;;  %v9008_v43 = vadd.f32 %v17588_v58, %v14199_v44  ;;  %v12863_v7 = vpop.f32.mrb[104].mxu1 }
 0x5fd   : > { %9518 = vst [vmem:[%s17377_s15 + $0x328] sm:$0xff] %v9390_v53  ;;  %v9389_v33 = vsel %vm9133_vm5, %v9005_v3, %v9261_v48  ;;  %v9007_v10 = vadd.f32 %v17588_v58, %v14200_v54  ;;  %v13759_v40 = vpop.f32.mrb[104].mxu0  ;;  %v4735_v21 = vpop.f32.mrb[105].mxu1 }
 0x5fe   : > { %9517 = vst [vmem:[%s17377_s15 + $0x320] sm:$0xff] %v9389_v33  ;;  %vm9136_vm6 = vcmp.gt.f32.partialorder %v9008_v43, 0.0  ;;  %v9264_v13 = vmul.f32 0.1, %v9008_v43  ;;  %v14201_v22 = vadd.f32 %v13759_v40, %v12863_v7  ;;  %v8651_v15 = vpop.f32.mrb[105].mxu0 }
 0x5ff   : > { %vm9135_vm7 = vcmp.gt.f32.partialorder %v9007_v10, 0.0  ;;  %v9263_v52 = vmul.f32 0.1, %v9007_v10  ;;  %v14202_v11 = vadd.f32 %v8651_v15, %v4735_v21 }
 0x600   : > { %v9392_v4 = vsel %vm9136_vm6, %v9008_v43, %v9264_v13  ;;  %v9010_v27 = vadd.f32 %v17588_v58, %v14201_v22  ;;  %v12866_v50 = vpop.f32.mrb[106].mxu1 }
 0x601   : > { %9520 = vst [vmem:[%s17377_s15 + $0x338] sm:$0xff] %v9392_v4  ;;  %v9391_v6 = vsel %vm9135_vm7, %v9007_v10, %v9263_v52  ;;  %v9009_v9 = vadd.f32 %v17588_v58, %v14202_v11  ;;  %v13762_v38 = vpop.f32.mrb[106].mxu0  ;;  %v4745_v1 = vpop.f32.mrb[107].mxu1 }
 0x602   : > { %9519 = vst [vmem:[%s17377_s15 + $0x330] sm:$0xff] %v9391_v6  ;;  %vm9138_vm8 = vcmp.gt.f32.partialorder %v9010_v27, 0.0  ;;  %v9266_v26 = vmul.f32 0.1, %v9010_v27  ;;  %v14203_v36 = vadd.f32 %v13762_v38, %v12866_v50  ;;  %v8661_v29 = vpop.f32.mrb[107].mxu0 }
 0x603   : > { %vm9137_vm9 = vcmp.gt.f32.partialorder %v9009_v9, 0.0  ;;  %v9265_v61 = vmul.f32 0.1, %v9009_v9  ;;  %v14204_v28 = vadd.f32 %v8661_v29, %v4745_v1 }
 0x604   : > { %v9394_v8 = vsel %vm9138_vm8, %v9010_v27, %v9266_v26  ;;  %v9012_v5 = vadd.f32 %v17588_v58, %v14203_v36  ;;  %v12869_v55 = vpop.f32.mrb[108].mxu1 }
 0x605   : > { %9522 = vst [vmem:[%s17377_s15 + $0x348] sm:$0xff] %v9394_v8  ;;  %v9393_v41 = vsel %vm9137_vm9, %v9009_v9, %v9265_v61  ;;  %v9011_v17 = vadd.f32 %v17588_v58, %v14204_v28  ;;  %v13765_v32 = vpop.f32.mrb[108].mxu0  ;;  %v4755_v25 = vpop.f32.mrb[109].mxu1 }
 0x606   : > { %9521 = vst [vmem:[%s17377_s15 + $0x340] sm:$0xff] %v9393_v41  ;;  %vm9140_vm10 = vcmp.gt.f32.partialorder %v9012_v5, 0.0  ;;  %v9268_v19 = vmul.f32 0.1, %v9012_v5  ;;  %v14205_v46 = vadd.f32 %v13765_v32, %v12869_v55  ;;  %v8671_v2 = vpop.f32.mrb[109].mxu0 }
 0x607   : > { %vm9139_vm11 = vcmp.gt.f32.partialorder %v9011_v17, 0.0  ;;  %v9267_v12 = vmul.f32 0.1, %v9011_v17  ;;  %v14206_v57 = vadd.f32 %v8671_v2, %v4755_v25 }
 0x608   : > { %v9396_v62 = vsel %vm9140_vm10, %v9012_v5, %v9268_v19  ;;  %v9014_v16 = vadd.f32 %v17588_v58, %v14205_v46  ;;  %v12872_v24 = vpop.f32.mrb[110].mxu1 }
 0x609   : > { %9524 = vst [vmem:[%s17377_s15 + $0x358] sm:$0xff] %v9396_v62  ;;  %v9395_v23 = vsel %vm9139_vm11, %v9011_v17, %v9267_v12  ;;  %v9013_v37 = vadd.f32 %v17588_v58, %v14206_v57  ;;  %v13768_v39 = vpop.f32.mrb[110].mxu0  ;;  %v4765_v31 = vpop.f32.mrb[111].mxu1 }
 0x60a   : > { %9523 = vst [vmem:[%s17377_s15 + $0x350] sm:$0xff] %v9395_v23  ;;  %vm9142_vm12 = vcmp.gt.f32.partialorder %v9014_v16, 0.0  ;;  %v9270_v47 = vmul.f32 0.1, %v9014_v16  ;;  %v14207_v59 = vadd.f32 %v13768_v39, %v12872_v24  ;;  %v8681_v34 = vpop.f32.mrb[111].mxu0 }
 0x60b   : > { %vm9141_vm13 = vcmp.gt.f32.partialorder %v9013_v37, 0.0  ;;  %v9269_v42 = vmul.f32 0.1, %v9013_v37  ;;  %v14208_v20 = vadd.f32 %v8681_v34, %v4765_v31 }
 0x60c   : > { %v9398_v60 = vsel %vm9142_vm12, %v9014_v16, %v9270_v47  ;;  %v9016_v0 = vadd.f32 %v17588_v58, %v14207_v59  ;;  %v12875_v49 = vpop.f32.mrb[112].mxu1 }
 0x60d   : > { %9526 = vst [vmem:[%s17377_s15 + $0x368] sm:$0xff] %v9398_v60  ;;  %v9397_v35 = vsel %vm9141_vm13, %v9013_v37, %v9269_v42  ;;  %v9015_v45 = vadd.f32 %v17588_v58, %v14208_v20  ;;  %v13771_v30 = vpop.f32.mrb[112].mxu0  ;;  %v4775_v63 = vpop.f32.mrb[113].mxu1 }
 0x60e   : > { %9525 = vst [vmem:[%s17377_s15 + $0x360] sm:$0xff] %v9397_v35  ;;  %vm9144_vm14 = vcmp.gt.f32.partialorder %v9016_v0, 0.0  ;;  %v9272_v3 = vmul.f32 0.1, %v9016_v0  ;;  %v14209_v14 = vadd.f32 %v13771_v30, %v12875_v49  ;;  %v8691_v56 = vpop.f32.mrb[113].mxu0 }
 0x60f   : > { %vm9143_vm15 = vcmp.gt.f32.partialorder %v9015_v45, 0.0  ;;  %v9271_v18 = vmul.f32 0.1, %v9015_v45  ;;  %v14210_v44 = vadd.f32 %v8691_v56, %v4775_v63 }
 0x610   : > { %v9400_v51 = vsel %vm9144_vm14, %v9016_v0, %v9272_v3  ;;  %v9018_v48 = vadd.f32 %v17588_v58, %v14209_v14  ;;  %v12878_v54 = vpop.f32.mrb[114].mxu1 }
 0x611   : > { %9528 = vst [vmem:[%s17377_s15 + $0x378] sm:$0xff] %v9400_v51  ;;  %v9399_v53 = vsel %vm9143_vm15, %v9015_v45, %v9271_v18  ;;  %v9017_v43 = vadd.f32 %v17588_v58, %v14210_v44  ;;  %v13774_v7 = vpop.f32.mrb[114].mxu0  ;;  %v4785_v33 = vpop.f32.mrb[115].mxu1 }
 0x612   : > { %9527 = vst [vmem:[%s17377_s15 + $0x370] sm:$0xff] %v9399_v53  ;;  %vm9146_vm0 = vcmp.gt.f32.partialorder %v9018_v48, 0.0  ;;  %v9274_v10 = vmul.f32 0.1, %v9018_v48  ;;  %v14211_v40 = vadd.f32 %v13774_v7, %v12878_v54  ;;  %v8701_v21 = vpop.f32.mrb[115].mxu0 }
 0x613   : > { %vm9145_vm1 = vcmp.gt.f32.partialorder %v9017_v43, 0.0  ;;  %v9273_v13 = vmul.f32 0.1, %v9017_v43  ;;  %v14212_v22 = vadd.f32 %v8701_v21, %v4785_v33 }
 0x614   : > { %v9402_v15 = vsel %vm9146_vm0, %v9018_v48, %v9274_v10  ;;  %v9020_v52 = vadd.f32 %v17588_v58, %v14211_v40  ;;  %v12881_v11 = vpop.f32.mrb[116].mxu1 }
 0x615   : > { %9530 = vst [vmem:[%s17377_s15 + $0x388] sm:$0xff] %v9402_v15  ;;  %v9401_v4 = vsel %vm9145_vm1, %v9017_v43, %v9273_v13  ;;  %v9019_v27 = vadd.f32 %v17588_v58, %v14212_v22  ;;  %v13777_v50 = vpop.f32.mrb[116].mxu0  ;;  %v4795_v6 = vpop.f32.mrb[117].mxu1 }
 0x616   : > { %9529 = vst [vmem:[%s17377_s15 + $0x380] sm:$0xff] %v9401_v4  ;;  %vm9148_vm2 = vcmp.gt.f32.partialorder %v9020_v52, 0.0  ;;  %v9276_v9 = vmul.f32 0.1, %v9020_v52  ;;  %v14213_v38 = vadd.f32 %v13777_v50, %v12881_v11  ;;  %v8711_v1 = vpop.f32.mrb[117].mxu0 }
 0x617   : > { %vm9147_vm3 = vcmp.gt.f32.partialorder %v9019_v27, 0.0  ;;  %v9275_v26 = vmul.f32 0.1, %v9019_v27  ;;  %v14214_v36 = vadd.f32 %v8711_v1, %v4795_v6 }
 0x618   : > { %v9404_v29 = vsel %vm9148_vm2, %v9020_v52, %v9276_v9  ;;  %v9022_v61 = vadd.f32 %v17588_v58, %v14213_v38  ;;  %v12884_v28 = vpop.f32.mrb[118].mxu1 }
 0x619   : > { %9532 = vst [vmem:[%s17377_s15 + $0x398] sm:$0xff] %v9404_v29  ;;  %v9403_v8 = vsel %vm9147_vm3, %v9019_v27, %v9275_v26  ;;  %v9021_v5 = vadd.f32 %v17588_v58, %v14214_v36  ;;  %v13780_v55 = vpop.f32.mrb[118].mxu0  ;;  %v4805_v41 = vpop.f32.mrb[119].mxu1  ;;  %v15210_v26 = vld [vmem:[#allocation10] ss:$0 sm:$0xff] }
 0x61a   : > { %9531 = vst [vmem:[%s17377_s15 + $0x390] sm:$0xff] %v9403_v8  ;;  %vm9150_vm4 = vcmp.gt.f32.partialorder %v9022_v61, 0.0  ;;  %v9278_v17 = vmul.f32 0.1, %v9022_v61  ;;  %v14215_v32 = vadd.f32 %v13780_v55, %v12884_v28  ;;  %v8721_v25 = vpop.f32.mrb[119].mxu0 }
 0x61b   : > { %vm9149_vm5 = vcmp.gt.f32.partialorder %v9021_v5, 0.0  ;;  %v9277_v19 = vmul.f32 0.1, %v9021_v5  ;;  %v14216_v46 = vadd.f32 %v8721_v25, %v4805_v41 }
 0x61c   : > { %v9406_v2 = vsel %vm9150_vm4, %v9022_v61, %v9278_v17  ;;  %v9024_v12 = vadd.f32 %v17588_v58, %v14215_v32  ;;  %v12887_v57 = vpop.f32.mrb[120].mxu1 }
 0x61d   : > { %9534 = vst [vmem:[%s17377_s15 + $0x3a8] sm:$0xff] %v9406_v2  ;;  %v9405_v62 = vsel %vm9149_vm5, %v9021_v5, %v9277_v19  ;;  %v9023_v16 = vadd.f32 %v17588_v58, %v14216_v46  ;;  %v13783_v24 = vpop.f32.mrb[120].mxu0  ;;  %v4815_v23 = vpop.f32.mrb[121].mxu1 }
 0x61e   : > { %9533 = vst [vmem:[%s17377_s15 + $0x3a0] sm:$0xff] %v9405_v62  ;;  %vm9152_vm6 = vcmp.gt.f32.partialorder %v9024_v12, 0.0  ;;  %v9280_v37 = vmul.f32 0.1, %v9024_v12  ;;  %v14217_v39 = vadd.f32 %v13783_v24, %v12887_v57  ;;  %v8731_v31 = vpop.f32.mrb[121].mxu0 }
 0x61f   : > { %vm9151_vm7 = vcmp.gt.f32.partialorder %v9023_v16, 0.0  ;;  %v9279_v47 = vmul.f32 0.1, %v9023_v16  ;;  %v14218_v59 = vadd.f32 %v8731_v31, %v4815_v23 }
 0x620   : > { %v9408_v34 = vsel %vm9152_vm6, %v9024_v12, %v9280_v37  ;;  %v9026_v42 = vadd.f32 %v17588_v58, %v14217_v39  ;;  %v12890_v20 = vpop.f32.mrb[122].mxu1 }
 0x621   : > { %9536 = vst [vmem:[%s17377_s15 + $0x3b8] sm:$0xff] %v9408_v34  ;;  %v9407_v60 = vsel %vm9151_vm7, %v9023_v16, %v9279_v47  ;;  %v9025_v0 = vadd.f32 %v17588_v58, %v14218_v59  ;;  %v13786_v49 = vpop.f32.mrb[122].mxu0  ;;  %v4825_v35 = vpop.f32.mrb[123].mxu1 }
 0x622   : > { %9535 = vst [vmem:[%s17377_s15 + $0x3b0] sm:$0xff] %v9407_v60  ;;  %vm9154_vm8 = vcmp.gt.f32.partialorder %v9026_v42, 0.0  ;;  %v9282_v45 = vmul.f32 0.1, %v9026_v42  ;;  %v14219_v30 = vadd.f32 %v13786_v49, %v12890_v20  ;;  %v8741_v63 = vpop.f32.mrb[123].mxu0 }
 0x623   : > { %vm9153_vm9 = vcmp.gt.f32.partialorder %v9025_v0, 0.0  ;;  %v9281_v3 = vmul.f32 0.1, %v9025_v0  ;;  %v14220_v14 = vadd.f32 %v8741_v63, %v4825_v35 }
 0x624   : > { %v9410_v56 = vsel %vm9154_vm8, %v9026_v42, %v9282_v45  ;;  %v9028_v18 = vadd.f32 %v17588_v58, %v14219_v30  ;;  %v12893_v44 = vpop.f32.mrb[124].mxu1 }
 0x625   : > { %9538 = vst [vmem:[%s17377_s15 + $0x3c8] sm:$0xff] %v9410_v56  ;;  %v9409_v51 = vsel %vm9153_vm9, %v9025_v0, %v9281_v3  ;;  %v9027_v48 = vadd.f32 %v17588_v58, %v14220_v14  ;;  %v13789_v54 = vpop.f32.mrb[124].mxu0  ;;  %v4835_v53 = vpop.f32.mrb[125].mxu1 }
 0x626   : > { %9537 = vst [vmem:[%s17377_s15 + $0x3c0] sm:$0xff] %v9409_v51  ;;  %vm9156_vm10 = vcmp.gt.f32.partialorder %v9028_v18, 0.0  ;;  %v9284_v43 = vmul.f32 0.1, %v9028_v18  ;;  %v14221_v7 = vadd.f32 %v13789_v54, %v12893_v44  ;;  %v8751_v33 = vpop.f32.mrb[125].mxu0 }
 0x627   : > { %vm9155_vm11 = vcmp.gt.f32.partialorder %v9027_v48, 0.0  ;;  %v9283_v10 = vmul.f32 0.1, %v9027_v48  ;;  %v14222_v40 = vadd.f32 %v8751_v33, %v4835_v53 }
 0x628   : > { %v9412_v21 = vsel %vm9156_vm10, %v9028_v18, %v9284_v43  ;;  %v9030_v13 = vadd.f32 %v17588_v58, %v14221_v7  ;;  %v12896_v22 = vpop.f32.mrb[126].mxu1 }
 0x629   : > { %9540 = vst [vmem:[%s17377_s15 + $0x3d8] sm:$0xff] %v9412_v21  ;;  %v9411_v15 = vsel %vm9155_vm11, %v9027_v48, %v9283_v10  ;;  %v9029_v52 = vadd.f32 %v17588_v58, %v14222_v40  ;;  %v13792_v11 = vpop.f32.mrb[126].mxu0  ;;  %v4845_v4 = vpop.f32.mrb[127].mxu1 }
 0x62a   : > { %9539 = vst [vmem:[%s17377_s15 + $0x3d0] sm:$0xff] %v9411_v15  ;;  %vm9158_vm12 = vcmp.gt.f32.partialorder %v9030_v13, 0.0  ;;  %v9286_v27 = vmul.f32 0.1, %v9030_v13  ;;  %v14223_v50 = vadd.f32 %v13792_v11, %v12896_v22  ;;  %v8761_v6 = vpop.f32.mrb[127].mxu0 }
 0x62b   : > { %vm9157_vm13 = vcmp.gt.f32.partialorder %v9029_v52, 0.0  ;;  %v9285_v9 = vmul.f32 0.1, %v9029_v52  ;;  %v14224_v38 = vadd.f32 %v8761_v6, %v4845_v4 }
 0x62c   : > { %v9414_v1 = vsel %vm9158_vm12, %v9030_v13, %v9286_v27  ;;  %v9032_v36 = vadd.f32 %v15210_v26, %v14223_v50 }
 0x62d   : > { %9542 = vst [vmem:[%s17377_s15 + $0x3e8] sm:$0xff] %v9414_v1  ;;  %v9413_v58 = vsel %vm9157_vm13, %v9029_v52, %v9285_v9  ;;  %v9031_v29 = vadd.f32 %v15210_v26, %v14224_v38 }
 0x62e   : > { %9541 = vst [vmem:[%s17377_s15 + $0x3e0] sm:$0xff] %v9413_v58  ;;  %vm9160_vm14 = vcmp.gt.f32.partialorder %v9032_v36, 0.0  ;;  %v9288_v61 = vmul.f32 0.1, %v9032_v36 }
 0x62f   : > { %vm9159_vm15 = vcmp.gt.f32.partialorder %v9031_v29, 0.0  ;;  %v9287_v28 = vmul.f32 0.1, %v9031_v29 }
 0x630   : > { %v9416_v8 = vsel %vm9160_vm14, %v9032_v36, %v9288_v61 }
 0x631   : > { %9544 = vst [vmem:[%s17377_s15 + $0x3f8] sm:$0xff] %v9416_v8  ;;  %v9415_v5 = vsel %vm9159_vm15, %v9031_v29, %v9287_v28 }
 0x632   : > { %9543 = vst [vmem:[%s17377_s15 + $0x3f0] sm:$0xff] %v9415_v5 }
 0x633   : > { %15370 = shalt.err (!%p15367_p1)
}
 0x634   : > { %s15371_s1 = scalar_lea.hbm %s17725_s26, 16384  ;;  %s15375_s21 = scalar_lea.hbm %s17778_s5, 32768 }
 0x635   : > { %p15372_p5 = scmp.ne.s32.totalorder %s17725_s26, %s15371_s1  ;;  %p15376_p4 = scmp.lt.u32.totalorder %s17725_s26, %s17778_s5 }
 0x636   : > { %p15377_p8 = scmp.lt.u32.totalorder %s15375_s21, %s15371_s1  ;;  %p15379_p3 = scmp.lt.u32.totalorder %s15371_s1, %s17725_s26 }
 0x637   : > { %p15373_p11 = pnand %p15372_p5, %p17921_p7 }
 0x638   : > { %p15378_p13 = por %p15377_p8, %p15376_p4 }
 0x639   : > { %p15374_p12 = pneg %p15373_p11 }
 0x63a   : > { %p15380_p0 = por %p15379_p3, %p15378_p13 }
 0x63c   : > { %p15381_p6 = pnand %p15380_p0, %p15374_p12 }
 0x63e   : > { %15384 = shalt.err (!%p15381_p6)
}
 0x63f   : > { %s15441_s7 = smov 128   ;;  %s15442_s28 = smov 8  }
 0x640   : > { %15142 = dma.vmem_to_hbm [thread:$0]  (%p17921_p7), %s17727_s24, 16384, %s17725_s26, %s9546_s22, %s15441_s7, %s15441_s7, %s15442_s28  }
 0x641 PF: > { %s17922_s13 = sld [smem:[#allocation16_spill]]  ;;  %s9574_s29 = sand.u32 1, %s15419_s18  }
 0x642   : > { %p17923_p2 = scmp.ne.s32.totalorder %s17832_s6, 0  ;;  %s9575_s15 = scalar_lea.sflag [#allocation4], %s9574_s29 }
 0x647   : > { %p17924_p9 = scmp.ge.s32.totalorder %s17922_s13, 2 }
 0x649   : > { %p15162_p10 = pnand %p17924_p9, %p17923_p2 }
 0x64b   : > { %15414 = dma.done.wait (!%p15162_p10), %s9575_s15, 16384  }
 0x64c   : > { %15416 = vsyncadd (!%p15162_p10), %s9575_s15, 4294950912  ;;  %s17925_s21 = sld [smem:[#allocation17_spill]]  ;;  %s17926_s14 = sld [smem:[#allocation18_spill]] }
 0x64d   : > { %s17927_s18 = smov %s15423_s19  ;;  %s17928_s19 = smov %s15427_s20 }
 0x652   : > { %p22_p1 = scmp.ge.s32.totalorder %s17925_s21, 4   ;;  %s17929_s20 = smov %s17926_s14 }
 0x654   :  { %24 = sbr.rel (!%p22_p1) target bundleno = 11 (0xb), region = 131 }
 0x65b   :  { %9580 = vsyncpa [#allocation3], 1 }
 0x65c   :  { %9582 = vsyncpa [#allocation3 + $0x1], 1 }
 0x65d   :  { %9583 = vsyncpa [#allocation6], 1 }
 0x65e   :  { %9585 = vsyncpa [#allocation6 + $0x1], 1 }
 0x65f   :  { %9586 = vsyncpa [#allocation9], 1 }
 0x660   :  { %9587 = vsyncpa [#allocation4], 1 }
 0x661   :  { %9589 = vsyncpa [#allocation4 + $0x1], 1 }

</bundles_post_ra>
